<compile_context>
chip_gen: v6e
topology: v6e:2x2x1
jax: 0.10.0
libtpu: 0.0.40
codegen_flags: <defaults>
</compile_context>

<pallas_src>
import functools

import jax
import jax.numpy as jnp
from jax.experimental import pallas as pl
from jax.experimental.pallas import tpu as pltpu

DIM_H = 256   # VAE.DIMENSION_H
DIM_Z = 100   # VAE.DIMENSION_Z
DIM = 128     # VAE.DIM
ZP = 128      # DIM_Z padded to a full 128-lane block


def _round_up(x, m):
    return ((x + m - 1) // m) * m


# ---------------------------------------------------------------------------
# Pallas kernels
# ---------------------------------------------------------------------------
def _matmul_kernel(a_ref, b_ref, bias_ref, o_ref, *, activation):
    """Single-K-block matmul (bf16 in, f32 out) + bias + fused activation."""
    y = jnp.dot(a_ref[...], b_ref[...], preferred_element_type=jnp.float32)
    y = y + bias_ref[...]
    if activation == "elu":        # nn.ELU (alpha=1)
        y = jnp.where(y > 0, y, jnp.exp(jnp.minimum(y, 0.0)) - 1.0)
    elif activation == "relu":     # nn.ReLU
        y = jnp.maximum(y, 0.0)
    elif activation == "sigmoid":  # nn.Sigmoid (exp->inf resolves to 0.0 in f32)
        y = 1.0 / (1.0 + jnp.exp(-y))
    o_ref[...] = y


def _encfc_reparam_kernel(h_ref, w_ref, b_ref, eps_ref, q_ref, z_ref):
    """Fused encoder_fc + reparameterize.

    Weight/bias columns are remapped so mu occupies lanes [0,128) and
    log_sigma lanes [128,256) -> all slices are 128-lane aligned; exp goes
    to the EUP slot in the epilogue (free).
    """
    q = jnp.dot(h_ref[...], w_ref[...], preferred_element_type=jnp.float32)
    q = q + b_ref[...]
    q_ref[...] = q
    mu = q[:, :ZP]
    log_sigma = q[:, ZP:]
    sigma = jnp.exp(log_sigma) + 1e-07
    z_ref[...] = mu + sigma * eps_ref[...]


def _bn_relu_kernel(x_ref, g_ref, b_ref, o_ref, *, n_rows, eps):
    """Training-mode BatchNorm (batch stats over rows, per feature) + ReLU."""
    x = x_ref[...]
    s = jnp.sum(x, axis=0, keepdims=True)
    ss = jnp.sum(x * x, axis=0, keepdims=True)
    mean = s / n_rows
    var = ss / n_rows - mean * mean          # biased variance (PyTorch train)
    inv = jax.lax.rsqrt(var + eps)
    y = (x - mean) * inv * g_ref[...] + b_ref[...]
    o_ref[...] = jnp.maximum(y, 0.0)


# ---------------------------------------------------------------------------
# Tile choosers
# ---------------------------------------------------------------------------
def _tile_rows(m):
    """Row padding + row tile. Avoid padding tiny M to 128 (bf16 pack = 16)."""
    if m <= 256:
        mp = _round_up(m, 16)
        return mp, mp
    mp128 = _round_up(m, 128)
    mp256 = _round_up(m, 256)
    if mp256 == mp128:            # 256-aligned tiles when free (v6e/v7x MXU)
        return mp256, 256
    return mp128, 128


def _tile_cols(np_):
    """Largest 128-multiple divisor of Np <= 1024, preferring >= 2 j-tiles."""
    if np_ <= 128:
        return np_
    best = 128
    t = 256
    while t <= min(np_ // 2, 1024):
        if np_ % t == 0:
            best = t
        t += 128
    return best


# ---------------------------------------------------------------------------
# Kernel wrappers
# ---------------------------------------------------------------------------
def pallas_matmul_bias_act(a, b, bias, activation="none"):
    """(M,K) @ (K,N) + bias with fused activation; bf16 operands, f32 result."""
    M, K = a.shape
    K2, N = b.shape
    assert K == K2
    Kp = _round_up(K, 128)
    Np = _round_up(N, 128)
    Mp, tm = _tile_rows(M)
    tn = _tile_cols(Np)

    ap = jnp.pad(a.astype(jnp.float32), ((0, Mp - M), (0, Kp - K))).astype(jnp.bfloat16)
    bp = jnp.pad(b.astype(jnp.float32), ((0, Kp - K), (0, Np - N))).astype(jnp.bfloat16)
    biasp = jnp.pad(bias.astype(jnp.float32), (0, Np - N)).reshape(1, Np)

    out = pl.pallas_call(
        functools.partial(_matmul_kernel, activation=activation),
        out_shape=jax.ShapeDtypeStruct((Mp, Np), jnp.float32),
        grid_spec=pltpu.PrefetchScalarGridSpec(
            num_scalar_prefetch=0,
            grid=(Mp // tm, Np // tn),
            in_specs=[
                pl.BlockSpec((tm, Kp), lambda i, j: (i, 0)),
                pl.BlockSpec((Kp, tn), lambda i, j: (0, j)),
                pl.BlockSpec((1, tn), lambda i, j: (0, j)),
            ],
            out_specs=pl.BlockSpec((tm, tn), lambda i, j: (i, j)),
        ),
        compiler_params=pltpu.CompilerParams(
            dimension_semantics=("parallel", "parallel")),
    )(ap, bp, biasp)
    return out[:M, :N]


def pallas_encfc_reparam(h, w_t, bias, eps):
    """Fused encoder_fc (h @ W^T + b) and reparameterization.

    h: (B, 256) activations, w_t: (256, 200) = W.T, bias: (200,), eps: (B, 100).
    Returns mu (B,100), log_sigma (B,100), z (B,100).
    """
    B = h.shape[0]
    Bp = _round_up(B, 16)

    # Remap output columns: [0:100] -> lanes [0:100], [100:200] -> lanes [128:228].
    w2 = jnp.pad(w_t.astype(jnp.float32).reshape(DIM_H, 2, DIM_Z),
                 ((0, 0), (0, 0), (0, ZP - DIM_Z))).reshape(DIM_H, 2 * ZP)
    b2 = jnp.pad(bias.astype(jnp.float32).reshape(2, DIM_Z),
                 ((0, 0), (0, ZP - DIM_Z))).reshape(1, 2 * ZP)

    hp = jnp.pad(h.astype(jnp.float32), ((0, Bp - B), (0, 0))).astype(jnp.bfloat16)
    epsp = jnp.pad(eps.astype(jnp.float32), ((0, Bp - B), (0, ZP - DIM_Z)))

    q, z = pl.pallas_call(
        _encfc_reparam_kernel,
        out_shape=(jax.ShapeDtypeStruct((Bp, 2 * ZP), jnp.float32),
                   jax.ShapeDtypeStruct((Bp, ZP), jnp.float32)),
    )(hp, w2.astype(jnp.bfloat16), b2, epsp)

    mu = q[:B, :DIM_Z]
    log_sigma = q[:B, ZP:ZP + DIM_Z]
    return mu, log_sigma, z[:B, :DIM_Z]


def pallas_batchnorm_relu(x2d, gamma, beta, eps=1e-5):
    """BatchNorm2d (train-mode batch statistics) + ReLU on a (rows, C) slab."""
    R, C = x2d.shape
    Rp = _round_up(R, 8)
    xp = jnp.pad(x2d.astype(jnp.float32), ((0, Rp - R), (0, 0)))
    tc = 128 if C % 128 == 0 else C
    # TODO(synk): for large batches the (Rp, tc) block should also be row-tiled
    # (two-pass mean/var) to stay under v7x's 64 MiB VMEM; fine at B=2.
    out = pl.pallas_call(
        functools.partial(_bn_relu_kernel, n_rows=float(R), eps=eps),
        out_shape=jax.ShapeDtypeStruct((Rp, C), jnp.float32),
        grid_spec=pltpu.PrefetchScalarGridSpec(
            num_scalar_prefetch=0,
            grid=(C // tc,),
            in_specs=[
                pl.BlockSpec((Rp, tc), lambda j: (0, j)),
                pl.BlockSpec((1, tc), lambda j: (0, j)),
                pl.BlockSpec((1, tc), lambda j: (0, j)),
            ],
            out_specs=pl.BlockSpec((Rp, tc), lambda j: (0, j)),
        ),
        compiler_params=pltpu.CompilerParams(dimension_semantics=("parallel",)),
    )(xp, gamma.reshape(1, C).astype(jnp.float32),
      beta.reshape(1, C).astype(jnp.float32))
    return out[:R]


# ---------------------------------------------------------------------------
# Conv / deconv glue (patch gather etc. in plain JAX; matmuls in Pallas)
# ---------------------------------------------------------------------------
def _im2col(x_nhwc, k):
    """Single-gather im2col: (B,H,W,C) -> (B*Ho*Wo, k*k*C), feature=(di,dj,c)."""
    B, H, W, C = x_nhwc.shape
    Ho, Wo = H - k + 1, W - k + 1
    ii = jnp.arange(Ho)[:, None] + jnp.arange(k)[None, :]          # (Ho, k)
    jj = jnp.arange(Wo)[:, None] + jnp.arange(k)[None, :]          # (Wo, k)
    patches = x_nhwc[:, ii[:, None, :, None], jj[None, :, None, :], :]
    return patches.reshape(B * Ho * Wo, k * k * C), (B, Ho, Wo)


def conv2d(x_nhwc, w_oikk, b, activation):
    """nn.Conv2d (stride 1, no padding) as im2col + Pallas matmul."""
    Co, Ci, k, _ = w_oikk.shape
    patches, (B, Ho, Wo) = _im2col(x_nhwc, k)
    wm = jnp.transpose(w_oikk, (2, 3, 1, 0)).reshape(k * k * Ci, Co)
    y = pallas_matmul_bias_act(patches, wm, b, activation)
    return y.reshape(B, Ho, Wo, Co)


def avg_pool2(x_nhwc):
    """nn.AvgPool2d(2, stride=2)."""
    B, H, W, C = x_nhwc.shape
    return x_nhwc.reshape(B, H // 2, 2, W // 2, 2, C).mean(axis=(2, 4))


def conv_transpose2x2_s2(x_nhwc, w_iokk, b, activation):
    """nn.ConvTranspose2d(k=2, stride=2): non-overlapping -> per-pixel matmul.

    Output columns are ordered (di, dj, co) so Co stays contiguous in lanes and
    the pixel-shuffle below is a lane-preserving permutation.
    """
    Ci, Co, _, _ = w_iokk.shape
    B, H, W, _ = x_nhwc.shape
    x2d = x_nhwc.reshape(B * H * W, Ci)
    wm = jnp.transpose(w_iokk, (0, 2, 3, 1)).reshape(Ci, 4 * Co)
    bias = jnp.tile(b, 4)
    y = pallas_matmul_bias_act(x2d, wm, bias, activation)
    y = y.reshape(B, H, W, 2, 2, Co)
    y = jnp.transpose(y, (0, 1, 3, 2, 4, 5)).reshape(B, 2 * H, 2 * W, Co)
    return y


# ---------------------------------------------------------------------------
# Parameters (deterministic init; PyTorch layouts: Conv (O,I,kH,kW),
# ConvTranspose (I,O,kH,kW), Linear (out,in))
# ---------------------------------------------------------------------------
def init_params(key):
    ks = jax.random.split(key, 14)

    def rnd(k, shape, scale=0.05):
        return scale * jax.random.normal(k, shape, dtype=jnp.float32)

    return {
        "enc_conv1_w": rnd(ks[0], (32, 3, 9, 9)),
        "enc_conv1_b": rnd(ks[1], (32,)),
        "enc_conv2_w": rnd(ks[2], (64, 32, 3, 3)),
        "enc_conv2_b": rnd(ks[3], (64,)),
        "enc_conv3_w": rnd(ks[4], (256, 64, 5, 5)),
        "enc_conv3_b": rnd(ks[5], (256,)),
        "enc_fc_w": rnd(ks[6], (2 * DIM_Z, DIM_H)),
        "enc_fc_b": rnd(ks[7], (2 * DIM_Z,)),
        "pre_fc_w": rnd(ks[8], (4 * 4 * 4 * DIM, DIM_Z)),
        "pre_fc_b": rnd(ks[9], (4 * 4 * 4 * DIM,)),
        "dec1_w": rnd(ks[10], (4 * DIM, 2 * DIM, 2, 2)),
        "dec1_b": rnd(ks[11], (2 * DIM,)),
        "bn1_g": jnp.ones((2 * DIM,), jnp.float32),
        "bn1_b": jnp.zeros((2 * DIM,), jnp.float32),
        "dec2_w": rnd(ks[12], (2 * DIM, DIM, 2, 2)),
        "dec2_b": rnd(ks[13], (DIM,)),
        "bn2_g": jnp.ones((DIM,), jnp.float32),
        "bn2_b": jnp.zeros((DIM,), jnp.float32),
        "dec3_w": rnd(jax.random.fold_in(key, 99), (DIM, 3, 2, 2)),
        "dec3_b": rnd(jax.random.fold_in(key, 100), (3,)),
    }


# ---------------------------------------------------------------------------
# VAE forward (mirrors VAE.forward)
# ---------------------------------------------------------------------------
def vae_forward(params, x_nchw, eps_noise):
    # ----- encoder -----
    x = jnp.transpose(x_nchw, (0, 2, 3, 1))                              # NCHW->NHWC
    h = conv2d(x, params["enc_conv1_w"], params["enc_conv1_b"], "elu")   # 24x24x32
    h = avg_pool2(h)                                                     # 12x12x32
    h = conv2d(h, params["enc_conv2_w"], params["enc_conv2_b"], "elu")   # 10x10x64
    h = avg_pool2(h)                                                     # 5x5x64
    h = conv2d(h, params["enc_conv3_w"], params["enc_conv3_b"], "elu")   # 1x1x256
    B = h.shape[0]
    h = h.reshape(B, DIM_H)                                              # .squeeze()

    # ----- encoder_fc + reparameterize (fused Pallas kernel) -----
    # TODO(synk): torch.randn is stateful; the Gaussian noise is a fixed input.
    mu, log_sigma, z = pallas_encfc_reparam(
        h, params["enc_fc_w"].T, params["enc_fc_b"], eps_noise)

    # ----- decoder -----
    out = pallas_matmul_bias_act(z, params["pre_fc_w"].T,
                                 params["pre_fc_b"], "relu")             # (B, 8192)
    out = out.reshape(B, 4 * DIM, 4, 4)            # torch .view(-1, 512, 4, 4)
    out = jnp.transpose(out, (0, 2, 3, 1))         # -> NHWC (B,4,4,512)

    out = conv_transpose2x2_s2(out, params["dec1_w"], params["dec1_b"], "none")
    B1, H1, W1, C1 = out.shape                                           # (B,8,8,256)
    out = pallas_batchnorm_relu(out.reshape(B1 * H1 * W1, C1),
                                params["bn1_g"], params["bn1_b"]
                                ).reshape(B1, H1, W1, C1)

    out = conv_transpose2x2_s2(out, params["dec2_w"], params["dec2_b"], "none")
    B2, H2, W2, C2 = out.shape                                           # (B,16,16,128)
    out = pallas_batchnorm_relu(out.reshape(B2 * H2 * W2, C2),
                                params["bn2_g"], params["bn2_b"]
                                ).reshape(B2, H2, W2, C2)

    out = conv_transpose2x2_s2(out, params["dec3_w"], params["dec3_b"], "sigmoid")
    decoder_mu = jnp.transpose(out, (0, 3, 1, 2))                        # (B,3,32,32)
    return decoder_mu, mu, log_sigma


if __name__ == "__main__":
    key = jax.random.PRNGKey(0)
    k_param, k_x, k_eps = jax.random.split(key, 3)
    params = init_params(k_param)

    B = 2  # SVHN images: the conv stack requires 3x32x32 inputs
    x = jax.random.normal(k_x, (B, 3, 32, 32), dtype=jnp.float32)
    eps_noise = jax.random.normal(k_eps, (B, DIM_Z), dtype=jnp.float32)

    dec_mu, mu, log_sigma = jax.jit(vae_forward)(params, x, eps_noise)
    jax.block_until_ready((dec_mu, mu, log_sigma))

    assert dec_mu.shape == (B, 3, 32, 32)
    assert mu.shape == (B, DIM_Z)
    assert log_sigma.shape == (B, DIM_Z)
    print("KERNEL_OK")
</pallas_src>

<mosaic_0001>
module attributes {stable_mosaic.version = 11 : i64} {
  func.func @_matmul_kernel(%arg0: i32, %arg1: i32, %arg2: memref<128x256xbf16, #tpu.memory_space<vmem>>, %arg3: memref<256x128xbf16, #tpu.memory_space<vmem>>, %arg4: memref<1x128xf32, #tpu.memory_space<vmem>>, %arg5: memref<128x128xf32, #tpu.memory_space<vmem>>) attributes {dimension_semantics = [#tpu.dimension_semantics<parallel>, #tpu.dimension_semantics<parallel>], iteration_bounds = array<i64: 9, 1>, scalar_prefetch = 0 : i64, scratch_operands = 0 : i64, tpu.core_type = #tpu.core_type<tc>, window_params = [{transform_indices = @transform_0, window_bounds = array<i64: 128, 256>}, {transform_indices = @transform_1, window_bounds = array<i64: 256, 128>}, {transform_indices = @transform_2, window_bounds = array<i64: 1, 128>}, {transform_indices = @transform_3, window_bounds = array<i64: 128, 128>}]} {
    %c0 = arith.constant 0 : index
    %c0_0 = arith.constant 0 : index
    %0 = vector.load %arg2[%c0, %c0_0] : memref<128x256xbf16, #tpu.memory_space<vmem>>, vector<128x256xbf16>
    %c0_1 = arith.constant 0 : index
    %c0_2 = arith.constant 0 : index
    %1 = vector.load %arg3[%c0_1, %c0_2] : memref<256x128xbf16, #tpu.memory_space<vmem>>, vector<256x128xbf16>
    %cst = arith.constant dense<0.000000e+00> : vector<128x128xf32>
    %2 = tpu.matmul %0, %1, %cst {dimension_numbers = #tpu.dot_dimension_numbers<[1], [0], [0], [1], [0, 0, 1, 1], [], []>} : vector<128x256xbf16>, vector<256x128xbf16>, vector<128x128xf32> -> vector<128x128xf32>
    %c0_3 = arith.constant 0 : index
    %c0_4 = arith.constant 0 : index
    %3 = vector.load %arg4[%c0_3, %c0_4] : memref<1x128xf32, #tpu.memory_space<vmem>>, vector<1x128xf32>
    %4 = vector.broadcast %3 : vector<1x128xf32> to vector<128x128xf32>
    %5 = arith.addf %2, %4 : vector<128x128xf32>
    %cst_5 = arith.constant 0.000000e+00 : f32
    %6 = vector.broadcast %cst_5 : f32 to vector<128x128xf32>
    %7 = arith.cmpf ogt, %5, %6 : vector<128x128xf32>
    %cst_6 = arith.constant 0.000000e+00 : f32
    %8 = vector.broadcast %cst_6 : f32 to vector<128x128xf32>
    %9 = arith.minimumf %5, %8 : vector<128x128xf32>
    %10 = math.exp %9 : vector<128x128xf32>
    %cst_7 = arith.constant 1.000000e+00 : f32
    %11 = vector.broadcast %cst_7 : f32 to vector<128x128xf32>
    %12 = arith.subf %10, %11 : vector<128x128xf32>
    %13 = arith.select %7, %5, %12 : vector<128x128xi1>, vector<128x128xf32>
    %c0_8 = arith.constant 0 : index
    %c0_9 = arith.constant 0 : index
    %14 = vector.load %arg5[%c0_8, %c0_9] : memref<128x128xf32, #tpu.memory_space<vmem>>, vector<128x128xf32>
    tpu.vector_store %arg5[%c0_8, %c0_9], %13 {strides = array<i32>} : memref<128x128xf32, #tpu.memory_space<vmem>>, vector<128x128xf32>,
    return
  }
  func.func @transform_0(%arg0: i32, %arg1: i32) -> (i32, i32) {
    %c0_i32 = arith.constant 0 : i32
    %c0_i32_0 = arith.constant 0 : i32
    return %arg0, %c0_i32 : i32, i32
  }
  func.func @transform_1(%arg0: i32, %arg1: i32) -> (i32, i32) {
    %c0_i32 = arith.constant 0 : i32
    %c0_i32_0 = arith.constant 0 : i32
    return %c0_i32, %arg1 : i32, i32
  }
  func.func @transform_2(%arg0: i32, %arg1: i32) -> (i32, i32) {
    %c0_i32 = arith.constant 0 : i32
    %c0_i32_0 = arith.constant 0 : i32
    return %c0_i32, %arg1 : i32, i32
  }
  func.func @transform_3(%arg0: i32, %arg1: i32) -> (i32, i32) {
    %c0_i32 = arith.constant 0 : i32
    return %arg0, %arg1 : i32, i32
  }
}

module attributes {stable_mosaic.version = 11 : i64} {
  func.func @_matmul_kernel(%arg0: i32, %arg1: i32, %arg2: memref<208x384xbf16, #tpu.memory_space<vmem>>, %arg3: memref<384x128xbf16, #tpu.memory_space<vmem>>, %arg4: memref<1x128xf32, #tpu.memory_space<vmem>>, %arg5: memref<208x128xf32, #tpu.memory_space<vmem>>) attributes {dimension_semantics = [#tpu.dimension_semantics<parallel>, #tpu.dimension_semantics<parallel>], iteration_bounds = array<i64: 1, 1>, scalar_prefetch = 0 : i64, scratch_operands = 0 : i64, tpu.core_type = #tpu.core_type<tc>, window_params = [{transform_indices = @transform_0, window_bounds = array<i64: 208, 384>}, {transform_indices = @transform_1, window_bounds = array<i64: 384, 128>}, {transform_indices = @transform_2, window_bounds = array<i64: 1, 128>}, {transform_indices = @transform_3, window_bounds = array<i64: 208, 128>}]} {
    %c0 = arith.constant 0 : index
    %c0_0 = arith.constant 0 : index
    %0 = vector.load %arg2[%c0, %c0_0] : memref<208x384xbf16, #tpu.memory_space<vmem>>, vector<208x384xbf16>
    %c0_1 = arith.constant 0 : index
    %c0_2 = arith.constant 0 : index
    %1 = vector.load %arg3[%c0_1, %c0_2] : memref<384x128xbf16, #tpu.memory_space<vmem>>, vector<384x128xbf16>
    %cst = arith.constant dense<0.000000e+00> : vector<208x128xf32>
    %2 = tpu.matmul %0, %1, %cst {dimension_numbers = #tpu.dot_dimension_numbers<[1], [0], [0], [1], [0, 0, 1, 1], [], []>} : vector<208x384xbf16>, vector<384x128xbf16>, vector<208x128xf32> -> vector<208x128xf32>
    %c0_3 = arith.constant 0 : index
    %c0_4 = arith.constant 0 : index
    %3 = vector.load %arg4[%c0_3, %c0_4] : memref<1x128xf32, #tpu.memory_space<vmem>>, vector<1x128xf32>
    %4 = vector.broadcast %3 : vector<1x128xf32> to vector<208x128xf32>
    %5 = arith.addf %2, %4 : vector<208x128xf32>
    %cst_5 = arith.constant 0.000000e+00 : f32
    %6 = vector.broadcast %cst_5 : f32 to vector<208x128xf32>
    %7 = arith.cmpf ogt, %5, %6 : vector<208x128xf32>
    %cst_6 = arith.constant 0.000000e+00 : f32
    %8 = vector.broadcast %cst_6 : f32 to vector<208x128xf32>
    %9 = arith.minimumf %5, %8 : vector<208x128xf32>
    %10 = math.exp %9 : vector<208x128xf32>
    %cst_7 = arith.constant 1.000000e+00 : f32
    %11 = vector.broadcast %cst_7 : f32 to vector<208x128xf32>
    %12 = arith.subf %10, %11 : vector<208x128xf32>
    %13 = arith.select %7, %5, %12 : vector<208x128xi1>, vector<208x128xf32>
    %c0_8 = arith.constant 0 : index
    %c0_9 = arith.constant 0 : index
    %14 = vector.load %arg5[%c0_8, %c0_9] : memref<208x128xf32, #tpu.memory_space<vmem>>, vector<208x128xf32>
    tpu.vector_store %arg5[%c0_8, %c0_9], %13 {strides = array<i32>} : memref<208x128xf32, #tpu.memory_space<vmem>>, vector<208x128xf32>,
    return
  }
  func.func @transform_0(%arg0: i32, %arg1: i32) -> (i32, i32) {
    %c0_i32 = arith.constant 0 : i32
    %c0_i32_0 = arith.constant 0 : i32
    return %arg0, %c0_i32 : i32, i32
  }
  func.func @transform_1(%arg0: i32, %arg1: i32) -> (i32, i32) {
    %c0_i32 = arith.constant 0 : i32
    %c0_i32_0 = arith.constant 0 : i32
    return %c0_i32, %arg1 : i32, i32
  }
  func.func @transform_2(%arg0: i32, %arg1: i32) -> (i32, i32) {
    %c0_i32 = arith.constant 0 : i32
    %c0_i32_0 = arith.constant 0 : i32
    return %c0_i32, %arg1 : i32, i32
  }
  func.func @transform_3(%arg0: i32, %arg1: i32) -> (i32, i32) {
    %c0_i32 = arith.constant 0 : i32
    return %arg0, %arg1 : i32, i32
  }
}

module attributes {stable_mosaic.version = 11 : i64} {
  func.func @_matmul_kernel(%arg0: i32, %arg1: i32, %arg2: memref<16x1664xbf16, #tpu.memory_space<vmem>>, %arg3: memref<1664x128xbf16, #tpu.memory_space<vmem>>, %arg4: memref<1x128xf32, #tpu.memory_space<vmem>>, %arg5: memref<16x128xf32, #tpu.memory_space<vmem>>) attributes {dimension_semantics = [#tpu.dimension_semantics<parallel>, #tpu.dimension_semantics<parallel>], iteration_bounds = array<i64: 1, 2>, scalar_prefetch = 0 : i64, scratch_operands = 0 : i64, tpu.core_type = #tpu.core_type<tc>, window_params = [{transform_indices = @transform_0, window_bounds = array<i64: 16, 1664>}, {transform_indices = @transform_1, window_bounds = array<i64: 1664, 128>}, {transform_indices = @transform_2, window_bounds = array<i64: 1, 128>}, {transform_indices = @transform_3, window_bounds = array<i64: 16, 128>}]} {
    %c0 = arith.constant 0 : index
    %c0_0 = arith.constant 0 : index
    %0 = vector.load %arg2[%c0, %c0_0] : memref<16x1664xbf16, #tpu.memory_space<vmem>>, vector<16x1664xbf16>
    %c0_1 = arith.constant 0 : index
    %c0_2 = arith.constant 0 : index
    %1 = vector.load %arg3[%c0_1, %c0_2] : memref<1664x128xbf16, #tpu.memory_space<vmem>>, vector<1664x128xbf16>
    %cst = arith.constant dense<0.000000e+00> : vector<16x128xf32>
    %2 = tpu.matmul %0, %1, %cst {dimension_numbers = #tpu.dot_dimension_numbers<[1], [0], [0], [1], [0, 0, 1, 1], [], []>} : vector<16x1664xbf16>, vector<1664x128xbf16>, vector<16x128xf32> -> vector<16x128xf32>
    %c0_3 = arith.constant 0 : index
    %c0_4 = arith.constant 0 : index
    %3 = vector.load %arg4[%c0_3, %c0_4] : memref<1x128xf32, #tpu.memory_space<vmem>>, vector<1x128xf32>
    %4 = vector.broadcast %3 : vector<1x128xf32> to vector<16x128xf32>
    %5 = arith.addf %2, %4 : vector<16x128xf32>
    %cst_5 = arith.constant 0.000000e+00 : f32
    %6 = vector.broadcast %cst_5 : f32 to vector<16x128xf32>
    %7 = arith.cmpf ogt, %5, %6 : vector<16x128xf32>
    %cst_6 = arith.constant 0.000000e+00 : f32
    %8 = vector.broadcast %cst_6 : f32 to vector<16x128xf32>
    %9 = arith.minimumf %5, %8 : vector<16x128xf32>
    %10 = math.exp %9 : vector<16x128xf32>
    %cst_7 = arith.constant 1.000000e+00 : f32
    %11 = vector.broadcast %cst_7 : f32 to vector<16x128xf32>
    %12 = arith.subf %10, %11 : vector<16x128xf32>
    %13 = arith.select %7, %5, %12 : vector<16x128xi1>, vector<16x128xf32>
    %c0_8 = arith.constant 0 : index
    %c0_9 = arith.constant 0 : index
    %14 = vector.load %arg5[%c0_8, %c0_9] : memref<16x128xf32, #tpu.memory_space<vmem>>, vector<16x128xf32>
    tpu.vector_store %arg5[%c0_8, %c0_9], %13 {strides = array<i32>} : memref<16x128xf32, #tpu.memory_space<vmem>>, vector<16x128xf32>,
    return
  }
  func.func @transform_0(%arg0: i32, %arg1: i32) -> (i32, i32) {
    %c0_i32 = arith.constant 0 : i32
    %c0_i32_0 = arith.constant 0 : i32
    return %arg0, %c0_i32 : i32, i32
  }
  func.func @transform_1(%arg0: i32, %arg1: i32) -> (i32, i32) {
    %c0_i32 = arith.constant 0 : i32
    %c0_i32_0 = arith.constant 0 : i32
    return %c0_i32, %arg1 : i32, i32
  }
  func.func @transform_2(%arg0: i32, %arg1: i32) -> (i32, i32) {
    %c0_i32 = arith.constant 0 : i32
    %c0_i32_0 = arith.constant 0 : i32
    return %c0_i32, %arg1 : i32, i32
  }
  func.func @transform_3(%arg0: i32, %arg1: i32) -> (i32, i32) {
    %c0_i32 = arith.constant 0 : i32
    return %arg0, %arg1 : i32, i32
  }
}

module attributes {stable_mosaic.version = 11 : i64} {
  func.func @_encfc_reparam_kernel(%arg0: memref<16x256xbf16, #tpu.memory_space<vmem>>, %arg1: memref<256x256xbf16, #tpu.memory_space<vmem>>, %arg2: memref<1x256xf32, #tpu.memory_space<vmem>>, %arg3: memref<16x128xf32, #tpu.memory_space<vmem>>, %arg4: memref<16x256xf32, #tpu.memory_space<vmem>>, %arg5: memref<16x128xf32, #tpu.memory_space<vmem>>) attributes {dimension_semantics = [], scalar_prefetch = 0 : i64, scratch_operands = 0 : i64, tpu.core_type = #tpu.core_type<tc>} {
    %c0 = arith.constant 0 : index
    %c0_0 = arith.constant 0 : index
    %0 = vector.load %arg0[%c0, %c0_0] : memref<16x256xbf16, #tpu.memory_space<vmem>>, vector<16x256xbf16>
    %c0_1 = arith.constant 0 : index
    %c0_2 = arith.constant 0 : index
    %1 = vector.load %arg1[%c0_1, %c0_2] : memref<256x256xbf16, #tpu.memory_space<vmem>>, vector<256x256xbf16>
    %cst = arith.constant dense<0.000000e+00> : vector<16x256xf32>
    %2 = tpu.matmul %0, %1, %cst {dimension_numbers = #tpu.dot_dimension_numbers<[1], [0], [0], [1], [0, 0, 1, 1], [], []>} : vector<16x256xbf16>, vector<256x256xbf16>, vector<16x256xf32> -> vector<16x256xf32>
    %c0_3 = arith.constant 0 : index
    %c0_4 = arith.constant 0 : index
    %3 = vector.load %arg2[%c0_3, %c0_4] : memref<1x256xf32, #tpu.memory_space<vmem>>, vector<1x256xf32>
    %4 = vector.broadcast %3 : vector<1x256xf32> to vector<16x256xf32>
    %5 = arith.addf %2, %4 : vector<16x256xf32>
    %c0_5 = arith.constant 0 : index
    %c0_6 = arith.constant 0 : index
    %6 = vector.load %arg4[%c0_5, %c0_6] : memref<16x256xf32, #tpu.memory_space<vmem>>, vector<16x256xf32>
    tpu.vector_store %arg4[%c0_5, %c0_6], %5 {strides = array<i32>} : memref<16x256xf32, #tpu.memory_space<vmem>>, vector<16x256xf32>,
    %7 = vector.extract_strided_slice %5 {offsets = [0, 0], sizes = [16, 128], strides = [1, 1]} : vector<16x256xf32> to vector<16x128xf32>
    %8 = vector.extract_strided_slice %5 {offsets = [0, 128], sizes = [16, 128], strides = [1, 1]} : vector<16x256xf32> to vector<16x128xf32>
    %9 = math.exp %8 : vector<16x128xf32>
    %cst_7 = arith.constant 1.000000e-07 : f32
    %10 = vector.broadcast %cst_7 : f32 to vector<16x128xf32>
    %11 = arith.addf %9, %10 : vector<16x128xf32>
    %c0_8 = arith.constant 0 : index
    %c0_9 = arith.constant 0 : index
    %12 = vector.load %arg3[%c0_8, %c0_9] : memref<16x128xf32, #tpu.memory_space<vmem>>, vector<16x128xf32>
    %13 = arith.mulf %11, %12 : vector<16x128xf32>
    %14 = arith.addf %7, %13 : vector<16x128xf32>
    %c0_10 = arith.constant 0 : index
    %c0_11 = arith.constant 0 : index
    %15 = vector.load %arg5[%c0_10, %c0_11] : memref<16x128xf32, #tpu.memory_space<vmem>>, vector<16x128xf32>
    tpu.vector_store %arg5[%c0_10, %c0_11], %14 {strides = array<i32>} : memref<16x128xf32, #tpu.memory_space<vmem>>, vector<16x128xf32>,
    return
  }
}

module attributes {stable_mosaic.version = 11 : i64} {
  func.func @_matmul_kernel(%arg0: i32, %arg1: i32, %arg2: memref<16x128xbf16, #tpu.memory_space<vmem>>, %arg3: memref<128x1024xbf16, #tpu.memory_space<vmem>>, %arg4: memref<1x1024xf32, #tpu.memory_space<vmem>>, %arg5: memref<16x1024xf32, #tpu.memory_space<vmem>>) attributes {dimension_semantics = [#tpu.dimension_semantics<parallel>, #tpu.dimension_semantics<parallel>], iteration_bounds = array<i64: 1, 8>, scalar_prefetch = 0 : i64, scratch_operands = 0 : i64, tpu.core_type = #tpu.core_type<tc>, window_params = [{transform_indices = @transform_0, window_bounds = array<i64: 16, 128>}, {transform_indices = @transform_1, window_bounds = array<i64: 128, 1024>}, {transform_indices = @transform_2, window_bounds = array<i64: 1, 1024>}, {transform_indices = @transform_3, window_bounds = array<i64: 16, 1024>}]} {
    %c0 = arith.constant 0 : index
    %c0_0 = arith.constant 0 : index
    %0 = vector.load %arg2[%c0, %c0_0] : memref<16x128xbf16, #tpu.memory_space<vmem>>, vector<16x128xbf16>
    %c0_1 = arith.constant 0 : index
    %c0_2 = arith.constant 0 : index
    %1 = vector.load %arg3[%c0_1, %c0_2] : memref<128x1024xbf16, #tpu.memory_space<vmem>>, vector<128x1024xbf16>
    %cst = arith.constant dense<0.000000e+00> : vector<16x1024xf32>
    %2 = tpu.matmul %0, %1, %cst {dimension_numbers = #tpu.dot_dimension_numbers<[1], [0], [0], [1], [0, 0, 1, 1], [], []>} : vector<16x128xbf16>, vector<128x1024xbf16>, vector<16x1024xf32> -> vector<16x1024xf32>
    %c0_3 = arith.constant 0 : index
    %c0_4 = arith.constant 0 : index
    %3 = vector.load %arg4[%c0_3, %c0_4] : memref<1x1024xf32, #tpu.memory_space<vmem>>, vector<1x1024xf32>
    %4 = vector.broadcast %3 : vector<1x1024xf32> to vector<16x1024xf32>
    %5 = arith.addf %2, %4 : vector<16x1024xf32>
    %cst_5 = arith.constant 0.000000e+00 : f32
    %6 = vector.broadcast %cst_5 : f32 to vector<16x1024xf32>
    %7 = arith.maximumf %5, %6 : vector<16x1024xf32>
    %c0_6 = arith.constant 0 : index
    %c0_7 = arith.constant 0 : index
    %8 = vector.load %arg5[%c0_6, %c0_7] : memref<16x1024xf32, #tpu.memory_space<vmem>>, vector<16x1024xf32>
    tpu.vector_store %arg5[%c0_6, %c0_7], %7 {strides = array<i32>} : memref<16x1024xf32, #tpu.memory_space<vmem>>, vector<16x1024xf32>,
    return
  }
  func.func @transform_0(%arg0: i32, %arg1: i32) -> (i32, i32) {
    %c0_i32 = arith.constant 0 : i32
    %c0_i32_0 = arith.constant 0 : i32
    return %arg0, %c0_i32 : i32, i32
  }
  func.func @transform_1(%arg0: i32, %arg1: i32) -> (i32, i32) {
    %c0_i32 = arith.constant 0 : i32
    %c0_i32_0 = arith.constant 0 : i32
    return %c0_i32, %arg1 : i32, i32
  }
  func.func @transform_2(%arg0: i32, %arg1: i32) -> (i32, i32) {
    %c0_i32 = arith.constant 0 : i32
    %c0_i32_0 = arith.constant 0 : i32
    return %c0_i32, %arg1 : i32, i32
  }
  func.func @transform_3(%arg0: i32, %arg1: i32) -> (i32, i32) {
    %c0_i32 = arith.constant 0 : i32
    return %arg0, %arg1 : i32, i32
  }
}

module attributes {stable_mosaic.version = 11 : i64} {
  func.func @_matmul_kernel(%arg0: i32, %arg1: i32, %arg2: memref<32x512xbf16, #tpu.memory_space<vmem>>, %arg3: memref<512x512xbf16, #tpu.memory_space<vmem>>, %arg4: memref<1x512xf32, #tpu.memory_space<vmem>>, %arg5: memref<32x512xf32, #tpu.memory_space<vmem>>) attributes {dimension_semantics = [#tpu.dimension_semantics<parallel>, #tpu.dimension_semantics<parallel>], iteration_bounds = array<i64: 1, 2>, scalar_prefetch = 0 : i64, scratch_operands = 0 : i64, tpu.core_type = #tpu.core_type<tc>, window_params = [{transform_indices = @transform_0, window_bounds = array<i64: 32, 512>}, {transform_indices = @transform_1, window_bounds = array<i64: 512, 512>}, {transform_indices = @transform_2, window_bounds = array<i64: 1, 512>}, {transform_indices = @transform_3, window_bounds = array<i64: 32, 512>}]} {
    %c0 = arith.constant 0 : index
    %c0_0 = arith.constant 0 : index
    %0 = vector.load %arg2[%c0, %c0_0] : memref<32x512xbf16, #tpu.memory_space<vmem>>, vector<32x512xbf16>
    %c0_1 = arith.constant 0 : index
    %c0_2 = arith.constant 0 : index
    %1 = vector.load %arg3[%c0_1, %c0_2] : memref<512x512xbf16, #tpu.memory_space<vmem>>, vector<512x512xbf16>
    %cst = arith.constant dense<0.000000e+00> : vector<32x512xf32>
    %2 = tpu.matmul %0, %1, %cst {dimension_numbers = #tpu.dot_dimension_numbers<[1], [0], [0], [1], [0, 0, 1, 1], [], []>} : vector<32x512xbf16>, vector<512x512xbf16>, vector<32x512xf32> -> vector<32x512xf32>
    %c0_3 = arith.constant 0 : index
    %c0_4 = arith.constant 0 : index
    %3 = vector.load %arg4[%c0_3, %c0_4] : memref<1x512xf32, #tpu.memory_space<vmem>>, vector<1x512xf32>
    %4 = vector.broadcast %3 : vector<1x512xf32> to vector<32x512xf32>
    %5 = arith.addf %2, %4 : vector<32x512xf32>
    %c0_5 = arith.constant 0 : index
    %c0_6 = arith.constant 0 : index
    %6 = vector.load %arg5[%c0_5, %c0_6] : memref<32x512xf32, #tpu.memory_space<vmem>>, vector<32x512xf32>
    tpu.vector_store %arg5[%c0_5, %c0_6], %5 {strides = array<i32>} : memref<32x512xf32, #tpu.memory_space<vmem>>, vector<32x512xf32>,
    return
  }
  func.func @transform_0(%arg0: i32, %arg1: i32) -> (i32, i32) {
    %c0_i32 = arith.constant 0 : i32
    %c0_i32_0 = arith.constant 0 : i32
    return %arg0, %c0_i32 : i32, i32
  }
  func.func @transform_1(%arg0: i32, %arg1: i32) -> (i32, i32) {
    %c0_i32 = arith.constant 0 : i32
    %c0_i32_0 = arith.constant 0 : i32
    return %c0_i32, %arg1 : i32, i32
  }
  func.func @transform_2(%arg0: i32, %arg1: i32) -> (i32, i32) {
    %c0_i32 = arith.constant 0 : i32
    %c0_i32_0 = arith.constant 0 : i32
    return %c0_i32, %arg1 : i32, i32
  }
  func.func @transform_3(%arg0: i32, %arg1: i32) -> (i32, i32) {
    %c0_i32 = arith.constant 0 : i32
    return %arg0, %arg1 : i32, i32
  }
}

module attributes {stable_mosaic.version = 11 : i64} {
  func.func @_bn_relu_kernel(%arg0: i32, %arg1: memref<128x128xf32, #tpu.memory_space<vmem>>, %arg2: memref<1x128xf32, #tpu.memory_space<vmem>>, %arg3: memref<1x128xf32, #tpu.memory_space<vmem>>, %arg4: memref<128x128xf32, #tpu.memory_space<vmem>>) attributes {dimension_semantics = [#tpu.dimension_semantics<parallel>], iteration_bounds = array<i64: 2>, scalar_prefetch = 0 : i64, scratch_operands = 0 : i64, tpu.core_type = #tpu.core_type<tc>, window_params = [{transform_indices = @transform_0, window_bounds = array<i64: 128, 128>}, {transform_indices = @transform_1, window_bounds = array<i64: 1, 128>}, {transform_indices = @transform_2, window_bounds = array<i64: 1, 128>}, {transform_indices = @transform_3, window_bounds = array<i64: 128, 128>}]} {
    %c0 = arith.constant 0 : index
    %c0_0 = arith.constant 0 : index
    %0 = vector.load %arg1[%c0, %c0_0] : memref<128x128xf32, #tpu.memory_space<vmem>>, vector<128x128xf32>
    %cst = arith.constant dense<0.000000e+00> : vector<128xf32>
    %1 = vector.multi_reduction <add>, %0, %cst [0] : vector<128x128xf32> to vector<128xf32>
    %2 = vector.shape_cast %1 : vector<128xf32> to vector<1x128xf32>
    %3 = arith.mulf %0, %0 : vector<128x128xf32>
    %cst_1 = arith.constant dense<0.000000e+00> : vector<128xf32>
    %4 = vector.multi_reduction <add>, %3, %cst_1 [0] : vector<128x128xf32> to vector<128xf32>
    %5 = vector.shape_cast %4 : vector<128xf32> to vector<1x128xf32>
    %cst_2 = arith.constant 1.280000e+02 : f32
    %6 = vector.broadcast %cst_2 : f32 to vector<1x128xf32>
    %7 = arith.divf %2, %6 : vector<1x128xf32>
    %cst_3 = arith.constant 1.280000e+02 : f32
    %8 = vector.broadcast %cst_3 : f32 to vector<1x128xf32>
    %9 = arith.divf %5, %8 : vector<1x128xf32>
    %10 = arith.mulf %7, %7 : vector<1x128xf32>
    %11 = arith.subf %9, %10 : vector<1x128xf32>
    %cst_4 = arith.constant 9.99999974E-6 : f32
    %12 = vector.broadcast %cst_4 : f32 to vector<1x128xf32>
    %13 = arith.addf %11, %12 : vector<1x128xf32>
    %14 = math.rsqrt %13 : vector<1x128xf32>
    %15 = vector.broadcast %7 : vector<1x128xf32> to vector<128x128xf32>
    %16 = arith.subf %0, %15 : vector<128x128xf32>
    %17 = vector.broadcast %14 : vector<1x128xf32> to vector<128x128xf32>
    %18 = arith.mulf %16, %17 : vector<128x128xf32>
    %c0_5 = arith.constant 0 : index
    %c0_6 = arith.constant 0 : index
    %19 = vector.load %arg2[%c0_5, %c0_6] : memref<1x128xf32, #tpu.memory_space<vmem>>, vector<1x128xf32>
    %20 = vector.broadcast %19 : vector<1x128xf32> to vector<128x128xf32>
    %21 = arith.mulf %18, %20 : vector<128x128xf32>
    %c0_7 = arith.constant 0 : index
    %c0_8 = arith.constant 0 : index
    %22 = vector.load %arg3[%c0_7, %c0_8] : memref<1x128xf32, #tpu.memory_space<vmem>>, vector<1x128xf32>
    %23 = vector.broadcast %22 : vector<1x128xf32> to vector<128x128xf32>
    %24 = arith.addf %21, %23 : vector<128x128xf32>
    %cst_9 = arith.constant 0.000000e+00 : f32
    %25 = vector.broadcast %cst_9 : f32 to vector<128x128xf32>
    %26 = arith.maximumf %24, %25 : vector<128x128xf32>
    %c0_10 = arith.constant 0 : index
    %c0_11 = arith.constant 0 : index
    %27 = vector.load %arg4[%c0_10, %c0_11] : memref<128x128xf32, #tpu.memory_space<vmem>>, vector<128x128xf32>
    tpu.vector_store %arg4[%c0_10, %c0_11], %26 {strides = array<i32>} : memref<128x128xf32, #tpu.memory_space<vmem>>, vector<128x128xf32>,
    return
  }
  func.func @transform_0(%arg0: i32) -> (i32, i32) {
    %c0_i32 = arith.constant 0 : i32
    %c0_i32_0 = arith.constant 0 : i32
    return %c0_i32, %arg0 : i32, i32
  }
  func.func @transform_1(%arg0: i32) -> (i32, i32) {
    %c0_i32 = arith.constant 0 : i32
    %c0_i32_0 = arith.constant 0 : i32
    return %c0_i32, %arg0 : i32, i32
  }
  func.func @transform_2(%arg0: i32) -> (i32, i32) {
    %c0_i32 = arith.constant 0 : i32
    %c0_i32_0 = arith.constant 0 : i32
    return %c0_i32, %arg0 : i32, i32
  }
  func.func @transform_3(%arg0: i32) -> (i32, i32) {
    %c0_i32 = arith.constant 0 : i32
    %c0_i32_0 = arith.constant 0 : i32
    return %c0_i32, %arg0 : i32, i32
  }
}

module attributes {stable_mosaic.version = 11 : i64} {
  func.func @_matmul_kernel(%arg0: i32, %arg1: i32, %arg2: memref<128x256xbf16, #tpu.memory_space<vmem>>, %arg3: memref<256x256xbf16, #tpu.memory_space<vmem>>, %arg4: memref<1x256xf32, #tpu.memory_space<vmem>>, %arg5: memref<128x256xf32, #tpu.memory_space<vmem>>) attributes {dimension_semantics = [#tpu.dimension_semantics<parallel>, #tpu.dimension_semantics<parallel>], iteration_bounds = array<i64: 1, 2>, scalar_prefetch = 0 : i64, scratch_operands = 0 : i64, tpu.core_type = #tpu.core_type<tc>, window_params = [{transform_indices = @transform_0, window_bounds = array<i64: 128, 256>}, {transform_indices = @transform_1, window_bounds = array<i64: 256, 256>}, {transform_indices = @transform_2, window_bounds = array<i64: 1, 256>}, {transform_indices = @transform_3, window_bounds = array<i64: 128, 256>}]} {
    %c0 = arith.constant 0 : index
    %c0_0 = arith.constant 0 : index
    %0 = vector.load %arg2[%c0, %c0_0] : memref<128x256xbf16, #tpu.memory_space<vmem>>, vector<128x256xbf16>
    %c0_1 = arith.constant 0 : index
    %c0_2 = arith.constant 0 : index
    %1 = vector.load %arg3[%c0_1, %c0_2] : memref<256x256xbf16, #tpu.memory_space<vmem>>, vector<256x256xbf16>
    %cst = arith.constant dense<0.000000e+00> : vector<128x256xf32>
    %2 = tpu.matmul %0, %1, %cst {dimension_numbers = #tpu.dot_dimension_numbers<[1], [0], [0], [1], [0, 0, 1, 1], [], []>} : vector<128x256xbf16>, vector<256x256xbf16>, vector<128x256xf32> -> vector<128x256xf32>
    %c0_3 = arith.constant 0 : index
    %c0_4 = arith.constant 0 : index
    %3 = vector.load %arg4[%c0_3, %c0_4] : memref<1x256xf32, #tpu.memory_space<vmem>>, vector<1x256xf32>
    %4 = vector.broadcast %3 : vector<1x256xf32> to vector<128x256xf32>
    %5 = arith.addf %2, %4 : vector<128x256xf32>
    %c0_5 = arith.constant 0 : index
    %c0_6 = arith.constant 0 : index
    %6 = vector.load %arg5[%c0_5, %c0_6] : memref<128x256xf32, #tpu.memory_space<vmem>>, vector<128x256xf32>
    tpu.vector_store %arg5[%c0_5, %c0_6], %5 {strides = array<i32>} : memref<128x256xf32, #tpu.memory_space<vmem>>, vector<128x256xf32>,
    return
  }
  func.func @transform_0(%arg0: i32, %arg1: i32) -> (i32, i32) {
    %c0_i32 = arith.constant 0 : i32
    %c0_i32_0 = arith.constant 0 : i32
    return %arg0, %c0_i32 : i32, i32
  }
  func.func @transform_1(%arg0: i32, %arg1: i32) -> (i32, i32) {
    %c0_i32 = arith.constant 0 : i32
    %c0_i32_0 = arith.constant 0 : i32
    return %c0_i32, %arg1 : i32, i32
  }
  func.func @transform_2(%arg0: i32, %arg1: i32) -> (i32, i32) {
    %c0_i32 = arith.constant 0 : i32
    %c0_i32_0 = arith.constant 0 : i32
    return %c0_i32, %arg1 : i32, i32
  }
  func.func @transform_3(%arg0: i32, %arg1: i32) -> (i32, i32) {
    %c0_i32 = arith.constant 0 : i32
    return %arg0, %arg1 : i32, i32
  }
}

module attributes {stable_mosaic.version = 11 : i64} {
  func.func @_bn_relu_kernel(%arg0: i32, %arg1: memref<512x128xf32, #tpu.memory_space<vmem>>, %arg2: memref<1x128xf32, #tpu.memory_space<vmem>>, %arg3: memref<1x128xf32, #tpu.memory_space<vmem>>, %arg4: memref<512x128xf32, #tpu.memory_space<vmem>>) attributes {dimension_semantics = [#tpu.dimension_semantics<parallel>], iteration_bounds = array<i64: 1>, scalar_prefetch = 0 : i64, scratch_operands = 0 : i64, tpu.core_type = #tpu.core_type<tc>, window_params = [{transform_indices = @transform_0, window_bounds = array<i64: 512, 128>}, {transform_indices = @transform_1, window_bounds = array<i64: 1, 128>}, {transform_indices = @transform_2, window_bounds = array<i64: 1, 128>}, {transform_indices = @transform_3, window_bounds = array<i64: 512, 128>}]} {
    %c0 = arith.constant 0 : index
    %c0_0 = arith.constant 0 : index
    %0 = vector.load %arg1[%c0, %c0_0] : memref<512x128xf32, #tpu.memory_space<vmem>>, vector<512x128xf32>
    %cst = arith.constant dense<0.000000e+00> : vector<128xf32>
    %1 = vector.multi_reduction <add>, %0, %cst [0] : vector<512x128xf32> to vector<128xf32>
    %2 = vector.shape_cast %1 : vector<128xf32> to vector<1x128xf32>
    %3 = arith.mulf %0, %0 : vector<512x128xf32>
    %cst_1 = arith.constant dense<0.000000e+00> : vector<128xf32>
    %4 = vector.multi_reduction <add>, %3, %cst_1 [0] : vector<512x128xf32> to vector<128xf32>
    %5 = vector.shape_cast %4 : vector<128xf32> to vector<1x128xf32>
    %cst_2 = arith.constant 5.120000e+02 : f32
    %6 = vector.broadcast %cst_2 : f32 to vector<1x128xf32>
    %7 = arith.divf %2, %6 : vector<1x128xf32>
    %cst_3 = arith.constant 5.120000e+02 : f32
    %8 = vector.broadcast %cst_3 : f32 to vector<1x128xf32>
    %9 = arith.divf %5, %8 : vector<1x128xf32>
    %10 = arith.mulf %7, %7 : vector<1x128xf32>
    %11 = arith.subf %9, %10 : vector<1x128xf32>
    %cst_4 = arith.constant 9.99999974E-6 : f32
    %12 = vector.broadcast %cst_4 : f32 to vector<1x128xf32>
    %13 = arith.addf %11, %12 : vector<1x128xf32>
    %14 = math.rsqrt %13 : vector<1x128xf32>
    %15 = vector.broadcast %7 : vector<1x128xf32> to vector<512x128xf32>
    %16 = arith.subf %0, %15 : vector<512x128xf32>
    %17 = vector.broadcast %14 : vector<1x128xf32> to vector<512x128xf32>
    %18 = arith.mulf %16, %17 : vector<512x128xf32>
    %c0_5 = arith.constant 0 : index
    %c0_6 = arith.constant 0 : index
    %19 = vector.load %arg2[%c0_5, %c0_6] : memref<1x128xf32, #tpu.memory_space<vmem>>, vector<1x128xf32>
    %20 = vector.broadcast %19 : vector<1x128xf32> to vector<512x128xf32>
    %21 = arith.mulf %18, %20 : vector<512x128xf32>
    %c0_7 = arith.constant 0 : index
    %c0_8 = arith.constant 0 : index
    %22 = vector.load %arg3[%c0_7, %c0_8] : memref<1x128xf32, #tpu.memory_space<vmem>>, vector<1x128xf32>
    %23 = vector.broadcast %22 : vector<1x128xf32> to vector<512x128xf32>
    %24 = arith.addf %21, %23 : vector<512x128xf32>
    %cst_9 = arith.constant 0.000000e+00 : f32
    %25 = vector.broadcast %cst_9 : f32 to vector<512x128xf32>
    %26 = arith.maximumf %24, %25 : vector<512x128xf32>
    %c0_10 = arith.constant 0 : index
    %c0_11 = arith.constant 0 : index
    %27 = vector.load %arg4[%c0_10, %c0_11] : memref<512x128xf32, #tpu.memory_space<vmem>>, vector<512x128xf32>
    tpu.vector_store %arg4[%c0_10, %c0_11], %26 {strides = array<i32>} : memref<512x128xf32, #tpu.memory_space<vmem>>, vector<512x128xf32>,
    return
  }
  func.func @transform_0(%arg0: i32) -> (i32, i32) {
    %c0_i32 = arith.constant 0 : i32
    %c0_i32_0 = arith.constant 0 : i32
    return %c0_i32, %arg0 : i32, i32
  }
  func.func @transform_1(%arg0: i32) -> (i32, i32) {
    %c0_i32 = arith.constant 0 : i32
    %c0_i32_0 = arith.constant 0 : i32
    return %c0_i32, %arg0 : i32, i32
  }
  func.func @transform_2(%arg0: i32) -> (i32, i32) {
    %c0_i32 = arith.constant 0 : i32
    %c0_i32_0 = arith.constant 0 : i32
    return %c0_i32, %arg0 : i32, i32
  }
  func.func @transform_3(%arg0: i32) -> (i32, i32) {
    %c0_i32 = arith.constant 0 : i32
    %c0_i32_0 = arith.constant 0 : i32
    return %c0_i32, %arg0 : i32, i32
  }
}

module attributes {stable_mosaic.version = 11 : i64} {
  func.func @_matmul_kernel(%arg0: i32, %arg1: i32, %arg2: memref<256x128xbf16, #tpu.memory_space<vmem>>, %arg3: memref<128x128xbf16, #tpu.memory_space<vmem>>, %arg4: memref<1x128xf32, #tpu.memory_space<vmem>>, %arg5: memref<256x128xf32, #tpu.memory_space<vmem>>) attributes {dimension_semantics = [#tpu.dimension_semantics<parallel>, #tpu.dimension_semantics<parallel>], iteration_bounds = array<i64: 2, 1>, scalar_prefetch = 0 : i64, scratch_operands = 0 : i64, tpu.core_type = #tpu.core_type<tc>, window_params = [{transform_indices = @transform_0, window_bounds = array<i64: 256, 128>}, {transform_indices = @transform_1, window_bounds = array<i64: 128, 128>}, {transform_indices = @transform_2, window_bounds = array<i64: 1, 128>}, {transform_indices = @transform_3, window_bounds = array<i64: 256, 128>}]} {
    %c0 = arith.constant 0 : index
    %c0_0 = arith.constant 0 : index
    %0 = vector.load %arg2[%c0, %c0_0] : memref<256x128xbf16, #tpu.memory_space<vmem>>, vector<256x128xbf16>
    %c0_1 = arith.constant 0 : index
    %c0_2 = arith.constant 0 : index
    %1 = vector.load %arg3[%c0_1, %c0_2] : memref<128x128xbf16, #tpu.memory_space<vmem>>, vector<128x128xbf16>
    %cst = arith.constant dense<0.000000e+00> : vector<256x128xf32>
    %2 = tpu.matmul %0, %1, %cst {dimension_numbers = #tpu.dot_dimension_numbers<[1], [0], [0], [1], [0, 0, 1, 1], [], []>} : vector<256x128xbf16>, vector<128x128xbf16>, vector<256x128xf32> -> vector<256x128xf32>
    %c0_3 = arith.constant 0 : index
    %c0_4 = arith.constant 0 : index
    %3 = vector.load %arg4[%c0_3, %c0_4] : memref<1x128xf32, #tpu.memory_space<vmem>>, vector<1x128xf32>
    %4 = vector.broadcast %3 : vector<1x128xf32> to vector<256x128xf32>
    %5 = arith.addf %2, %4 : vector<256x128xf32>
    %cst_5 = arith.constant 0.000000e+00 : f32
    %6 = vector.broadcast %cst_5 : f32 to vector<256x128xf32>
    %7 = arith.subf %6, %5 : vector<256x128xf32>
    %8 = math.exp %7 : vector<256x128xf32>
    %cst_6 = arith.constant 1.000000e+00 : f32
    %9 = vector.broadcast %cst_6 : f32 to vector<256x128xf32>
    %10 = arith.addf %9, %8 : vector<256x128xf32>
    %cst_7 = arith.constant 1.000000e+00 : f32
    %11 = vector.broadcast %cst_7 : f32 to vector<256x128xf32>
    %12 = arith.divf %11, %10 : vector<256x128xf32>
    %c0_8 = arith.constant 0 : index
    %c0_9 = arith.constant 0 : index
    %13 = vector.load %arg5[%c0_8, %c0_9] : memref<256x128xf32, #tpu.memory_space<vmem>>, vector<256x128xf32>
    tpu.vector_store %arg5[%c0_8, %c0_9], %12 {strides = array<i32>} : memref<256x128xf32, #tpu.memory_space<vmem>>, vector<256x128xf32>,
    return
  }
  func.func @transform_0(%arg0: i32, %arg1: i32) -> (i32, i32) {
    %c0_i32 = arith.constant 0 : i32
    %c0_i32_0 = arith.constant 0 : i32
    return %arg0, %c0_i32 : i32, i32
  }
  func.func @transform_1(%arg0: i32, %arg1: i32) -> (i32, i32) {
    %c0_i32 = arith.constant 0 : i32
    %c0_i32_0 = arith.constant 0 : i32
    return %c0_i32, %arg1 : i32, i32
  }
  func.func @transform_2(%arg0: i32, %arg1: i32) -> (i32, i32) {
    %c0_i32 = arith.constant 0 : i32
    %c0_i32_0 = arith.constant 0 : i32
    return %c0_i32, %arg1 : i32, i32
  }
  func.func @transform_3(%arg0: i32, %arg1: i32) -> (i32, i32) {
    %c0_i32 = arith.constant 0 : i32
    return %arg0, %arg1 : i32, i32
  }
}

</mosaic_0001>

<bundles_post_ra>
// kernel: vae_forward.10
= control target key start
LH: loop header
LB: loop body
LE: loop exit
PB: predicated region body
PF: predicated region fallthrough
CT: control target
= control target key end

     0   :  { %s1055_s12 = smov 0   ;;  %s1057_s13 = smov 0   ;;  %s1272_s0 = inlined_call_operand.vmem [shape: bf16[1152,256], index: 0, kind: input, shape index: {}]   ;;  %s1273_s1 = inlined_call_operand.vmem [shape: bf16[256,128], index: 1, kind: input, shape index: {}]   ;;  %s1274_s2 = inlined_call_operand.vmem [shape: f32[1,128], index: 2, kind: input, shape index: {}]   ;;  %s1275_s3 = inlined_call_operand.vmem [shape: f32[1152,128], index: 3, kind: output, shape index: {}]  }
   0x1   :  { %s1059_s14 = smov 0  }
   0x2 LB: > { %s25_s15 = sadd.s32 1, %s1029_s13  ;;  %p777_p0 = scmp.ge.s32.totalorder %s1033_s14, 1  ;;  %s1033_s14 = sphi %s1059_s14, %s13_s14   ;;  %s1029_s13 = sphi %s1057_s13, %s1277_s13   ;;  %s1025_s12 = sphi %s1055_s12, %s1276_s12  }
   0x3   : > { %p27_p1 = scmp.ge.s32.totalorder %s25_s15, 9  ;;  %p170_p2 = scmp.lt.s32.totalorder %s1033_s14, 10 }
   0x5   : > { %s1279_s15 = smov (%p27_p1, %s25_s15), 0  ;;  %p171_p3 = pnand %p777_p0, %p170_p2 }
   0x6   : > { %s778_s18 = sshll.u32 (!%p171_p3), %s1025_s12, 4 }
   0x7   : > { %174 = sbr.rel (%p171_p3) target bundleno = 295 (0x127), region = 32  ;;  %p206_p4 = scmp.lt.s32.totalorder (!%p171_p3), %s778_s18, 143 }
   0xc   : > { %v939_v0 = vld [vmem:[%s1273_s1 + $0x78] sm:$0xff]   ;;  %v941_v2 = vld [vmem:[%s1273_s1 + $0x70] sm:$0xff]   ;;  %v943_v4 = vld [vmem:[%s1273_s1 + $0x68] sm:$0xff]   ;;  %s1281_s18 = smov (!%p206_p4, %s778_s18), 143 }
   0xd   : > { %v940_v1 = vld [vmem:[%s1273_s1 + $0x38] sm:$0xff]   ;;  %835 = vmatprep.subr.bf16.mxu0 %v939_v0  ;;  %899 = vmatprep.subr.bf16.mxu1 %v939_v0  ;;  %v942_v3 = vld [vmem:[%s1273_s1 + $0x30] sm:$0xff]   ;;  %v944_v5 = vld [vmem:[%s1273_s1 + $0x28] sm:$0xff]   ;;  %s834_s6 = sshll.u32 %s1281_s18, 3 }
   0xe   : > { %836 = vmatpush3.bf16.msra.mxu0 %v940_v1  ;;  %907 = vmatpush3.bf16.msra.mxu1 %v940_v1  ;;  %v945_v6 = vld [vmem:[%s1273_s1 + $0x60] sm:$0xff]   ;;  %v947_v8 = vld [vmem:[%s1273_s1 + $0x58] sm:$0xff]   ;;  %s1108_s11 = scalar_lea.vmem %s1272_s0, %s834_s6  ;;  %v949_v10 = vld [vmem:[%s1273_s1 + $0x50] sm:$0xff]   ;;  %s1198_s8 = scalar_lea.vmem %s1275_s3, %s834_s6 }
   0xf   : > { %837 = vmatprep.subr.bf16.mxu0 %v941_v2  ;;  %900 = vmatprep.subr.bf16.mxu1 %v941_v2  ;;  %v946_v7 = vld [vmem:[%s1273_s1 + $0x20] sm:$0xff]   ;;  %v948_v9 = vld [vmem:[%s1273_s1 + $0x18] sm:$0xff]   ;;  %v950_v13 = vld [vmem:[%s1273_s1 + $0x10] sm:$0xff]  }
  0x10   : > { %v957_v11 = vld [vmem:[%s1108_s11 + $0x4] ss:$8 sps:$4 sm:$0xff]   ;;  %v955_v18 = vld [vmem:[%s1108_s11] ss:$8 sps:$4 sm:$0xff]   ;;  %v961_v20 = vld [vmem:[%s1108_s11 + $0x14] ss:$8 sps:$4 sm:$0xff]  }
  0x11   : > { %v960_v12 = vld [vmem:[%s1108_s11 + $0x44] ss:$8 sps:$4 sm:$0xff]   ;;  %492 = vmatprep.mubr.bf16.mxu0 %v957_v11  ;;  %v958_v19 = vld [vmem:[%s1108_s11 + $0x40] ss:$8 sps:$4 sm:$0xff]   ;;  %v963_v21 = vld [vmem:[%s1108_s11 + $0x54] ss:$8 sps:$4 sm:$0xff]  }
  0x12   : > { %838 = vmatpush3.bf16.msra.mxu0 %v942_v3  ;;  %908 = vmatpush3.bf16.msra.mxu1 %v942_v3  ;;  %v951_v14 = vld [vmem:[%s1273_s1 + $0x48] sm:$0xff]   ;;  %v953_v16 = vld [vmem:[%s1273_s1 + $0x40] sm:$0xff]   ;;  %v965_v22 = vld [vmem:[%s1108_s11 + $0x10] ss:$8 sps:$4 sm:$0xff]  }
  0x13   : > { %839 = vmatprep.subr.bf16.mxu0 %v943_v4  ;;  %901 = vmatprep.subr.bf16.mxu1 %v943_v4  ;;  %v952_v15 = vld [vmem:[%s1273_s1 + $0x8] sm:$0xff]   ;;  %v954_v17 = vld [vmem:[%s1273_s1] sm:$0xff]   ;;  %v966_v23 = vld [vmem:[%s1108_s11 + $0x50] ss:$8 sps:$4 sm:$0xff]  }
  0x14   : > { %524 = vmatprep.mubr.bf16.mxu1 %v960_v12  ;;  %v967_v24 = vld [vmem:[%s1108_s11 + $0x24] ss:$8 sps:$4 sm:$0xff]   ;;  %v971_v26 = vld [vmem:[%s1108_s11 + $0x20] ss:$8 sps:$4 sm:$0xff]   ;;  %v973_v28 = vld [vmem:[%s1108_s11 + $0x34] ss:$8 sps:$4 sm:$0xff]  }
  0x15   : > { %v969_v25 = vld [vmem:[%s1108_s11 + $0x64] ss:$8 sps:$4 sm:$0xff]   ;;  %v972_v27 = vld [vmem:[%s1108_s11 + $0x60] ss:$8 sps:$4 sm:$0xff]   ;;  %v975_v29 = vld [vmem:[%s1108_s11 + $0x74] ss:$8 sps:$4 sm:$0xff]  }
  0x16   : > { %840 = vmatpush3.bf16.msra.mxu0 %v944_v5  ;;  %909 = vmatpush3.bf16.msra.mxu1 %v944_v5  ;;  %v977_v30 = vld [vmem:[%s1108_s11 + $0x30] ss:$8 sps:$4 sm:$0xff]   ;;  %v1150_v34 = vld [vmem:[%s1274_s2] ss:$0 sm:$0xff] }
  0x17   : > { %841 = vmatprep.subr.bf16.mxu0 %v945_v6  ;;  %902 = vmatprep.subr.bf16.mxu1 %v945_v6  ;;  %v978_v31 = vld [vmem:[%s1108_s11 + $0x70] ss:$8 sps:$4 sm:$0xff]  }
  0x1a   : > { %842 = vmatpush3.bf16.msra.mxu0 %v946_v7  ;;  %910 = vmatpush3.bf16.msra.mxu1 %v946_v7 }
  0x1b   : > { %843 = vmatprep.subr.bf16.mxu0 %v947_v8  ;;  %903 = vmatprep.subr.bf16.mxu1 %v947_v8 }
  0x1e   : > { %844 = vmatpush3.bf16.msra.mxu0 %v948_v9  ;;  %911 = vmatpush3.bf16.msra.mxu1 %v948_v9 }
  0x1f   : > { %845 = vmatprep.subr.bf16.mxu0 %v949_v10  ;;  %904 = vmatprep.subr.bf16.mxu1 %v949_v10 }
  0x22   : > { %846 = vmatpush3.bf16.msra.mxu0 %v950_v13  ;;  %912 = vmatpush3.bf16.msra.mxu1 %v950_v13 }
  0x23   : > { %847 = vmatprep.subr.bf16.mxu0 %v951_v14  ;;  %905 = vmatprep.subr.bf16.mxu1 %v951_v14 }
  0x26   : > { %848 = vmatpush3.bf16.msra.mxu0 %v952_v15  ;;  %913 = vmatpush3.bf16.msra.mxu1 %v952_v15 }
  0x27   : > { %849 = vmatprep.subr.bf16.mxu0 %v953_v16  ;;  %906 = vmatprep.subr.bf16.mxu1 %v953_v16 }
  0x2a   : > { %850 = vmatpush3.bf16.msra.mxu0 %v954_v17  ;;  %914 = vmatpush3.bf16.msra.mxu1 %v954_v17 }
  0x2d   : > { %493 = vmatmul.mubr.bf16.vlgmr.msra.gmra.mxu0 %v955_v18  ;;  %525 = vmatmul.mubr.bf16.vlgmr.msra.gmra.mxu1 %v958_v19 }
  0x2e   : > { %500 = vmatprep.mubr.bf16.mxu0 %v961_v20  ;;  %532 = vmatprep.mubr.bf16.mxu1 %v963_v21 }
  0x35   : > { %501 = vmatmul.mubr.bf16.gmra.mxu0 %v965_v22  ;;  %533 = vmatmul.mubr.bf16.gmra.mxu1 %v966_v23 }
  0x36   : > { %508 = vmatprep.mubr.bf16.mxu0 %v967_v24  ;;  %540 = vmatprep.mubr.bf16.mxu1 %v969_v25 }
  0x3d   : > { %509 = vmatmul.mubr.bf16.gmra.mxu0 %v971_v26  ;;  %541 = vmatmul.mubr.bf16.gmra.mxu1 %v972_v27 }
  0x3e   : > { %516 = vmatprep.mubr.bf16.mxu0 %v973_v28  ;;  %548 = vmatprep.mubr.bf16.mxu1 %v975_v29 }
  0x45   : > { %517 = vmatmul.mubr.bf16.gmra.mxu0 %v977_v30  ;;  %549 = vmatmul.mubr.bf16.gmra.mxu1 %v978_v31 }
  0xed   : > { %v851_v32 = vpop.f32.mrf.mxu0  ;;  %v875_v33 = vpop.f32.mrf.mxu1 }
  0xef   : > { %v852_v35 = vpop.f32.mrf.mxu0  ;;  %v876_v36 = vpop.f32.mrf.mxu1 }
  0xf0   : > { %v853_v37 = vadd.f32 %v852_v35, %v851_v32  ;;  %v877_v38 = vadd.f32 %v876_v36, %v875_v33 }
  0xf1   : > { %v854_v39 = vpop.f32.mrf.mxu0  ;;  %v878_v40 = vpop.f32.mrf.mxu1 }
  0xf2   : > { %v1153_v41 = vadd.f32 %v853_v37, %v1150_v34  ;;  %v1156_v42 = vadd.f32 %v877_v38, %v1150_v34 }
  0xf3   : > { %v855_v43 = vpop.f32.mrf.mxu0  ;;  %v879_v44 = vpop.f32.mrf.mxu1 }
  0xf4   : > { %v573_v45 = vmin.f32 %v1153_v41, 0.0  ;;  %v581_v46 = vmin.f32 %v1156_v42, 0.0  ;;  %v856_v47 = vadd.f32 %v855_v43, %v854_v39  ;;  %v880_v48 = vadd.f32 %v879_v44, %v878_v40 }
  0xf5   : > { %v857_v49 = vpop.f32.mrf.mxu0  ;;  %v881_v50 = vpop.f32.mrf.mxu1  ;;  %vm557_vm0 = vcmp.gt.f32.partialorder %v1153_v41, 0.0  ;;  %vm565_vm1 = vcmp.gt.f32.partialorder %v1156_v42, 0.0 }
  0xf6   : > { %v589_v51 = vmul.f32 1.442695, %v573_v45  ;;  %v605_v52 = vmul.f32 1.442695, %v581_v46  ;;  %v1161_v53 = vadd.f32 %v856_v47, %v1150_v34  ;;  %v1164_v54 = vadd.f32 %v880_v48, %v1150_v34 }
  0xf7   : > { %v858_v55 = vpop.f32.mrf.mxu0  ;;  %v882_v56 = vpop.f32.mrf.mxu1 }
  0xf8   : > { %979 = vpow2.f32 %v589_v51  ;;  %v859_v57 = vadd.f32 %v858_v55, %v857_v49  ;;  %v883_v58 = vadd.f32 %v882_v56, %v881_v50  ;;  %v574_v59 = vmin.f32 %v1161_v53, 0.0 }
  0xf9   : > { %981 = vpow2.f32 %v605_v52  ;;  %v860_v60 = vpop.f32.mrf.mxu0  ;;  %v884_v61 = vpop.f32.mrf.mxu1  ;;  %v582_v62 = vmin.f32 %v1164_v54, 0.0  ;;  %vm558_vm2 = vcmp.gt.f32.partialorder %v1161_v53, 0.0  ;;  %vm566_vm3 = vcmp.gt.f32.partialorder %v1164_v54, 0.0 }
  0xfa   : > { %v1169_v63 = vadd.f32 %v859_v57, %v1150_v34  ;;  %v1172_v0 = vadd.f32 %v883_v58, %v1150_v34  ;;  %v591_v1 = vmul.f32 1.442695, %v574_v59 }
  0xfb   : > { %v861_v2 = vpop.f32.mrf.mxu0  ;;  %v885_v3 = vpop.f32.mrf.mxu1  ;;  %v607_v4 = vmul.f32 1.442695, %v582_v62 }
  0xfc   : > { %v575_v5 = vmin.f32 %v1169_v63, 0.0  ;;  %983 = vpow2.f32 %v591_v1  ;;  %v583_v6 = vmin.f32 %v1172_v0, 0.0  ;;  %v862_v7 = vadd.f32 %v861_v2, %v860_v60 }
  0xfd   : > { %v886_v8 = vadd.f32 %v885_v3, %v884_v61  ;;  %v863_v9 = vpop.f32.mrf.mxu0  ;;  %v887_v10 = vpop.f32.mrf.mxu1  ;;  %985 = vpow2.f32 %v607_v4  ;;  %vm559_vm4 = vcmp.gt.f32.partialorder %v1169_v63, 0.0  ;;  %vm567_vm5 = vcmp.gt.f32.partialorder %v1172_v0, 0.0 }
  0xfe   : > { %v593_v11 = vmul.f32 1.442695, %v575_v5  ;;  %v609_v12 = vmul.f32 1.442695, %v583_v6  ;;  %v1177_v13 = vadd.f32 %v862_v7, %v1150_v34 }
  0xff   : > { %v1180_v14 = vadd.f32 %v886_v8, %v1150_v34  ;;  %v864_v15 = vpop.f32.mrf.mxu0  ;;  %v888_v16 = vpop.f32.mrf.mxu1 }
 0x100   : > { %987 = vpow2.f32 %v593_v11  ;;  %v865_v17 = vadd.f32 %v864_v15, %v863_v9  ;;  %v889_v18 = vadd.f32 %v888_v16, %v887_v10  ;;  %v576_v19 = vmin.f32 %v1177_v13, 0.0 }
 0x101   : > { %989 = vpow2.f32 %v609_v12  ;;  %v866_v20 = vpop.f32.mrf.mxu0  ;;  %v890_v21 = vpop.f32.mrf.mxu1  ;;  %v584_v22 = vmin.f32 %v1180_v14, 0.0  ;;  %vm560_vm6 = vcmp.gt.f32.partialorder %v1177_v13, 0.0  ;;  %vm568_vm7 = vcmp.gt.f32.partialorder %v1180_v14, 0.0 }
 0x102   : > { %v1185_v23 = vadd.f32 %v865_v17, %v1150_v34  ;;  %v1188_v24 = vadd.f32 %v889_v18, %v1150_v34  ;;  %v595_v25 = vmul.f32 1.442695, %v576_v19 }
 0x103   : > { %v867_v26 = vpop.f32.mrf.mxu0  ;;  %v891_v27 = vpop.f32.mrf.mxu1  ;;  %v611_v28 = vmul.f32 1.442695, %v584_v22 }
 0x104   : > { %v577_v29 = vmin.f32 %v1185_v23, 0.0  ;;  %991 = vpow2.f32 %v595_v25  ;;  %v585_v31 = vmin.f32 %v1188_v24, 0.0  ;;  %v868_v32 = vadd.f32 %v867_v26, %v866_v20 }
 0x105   : > { %v980_v30 = vpop.eup %979  ;;  %v892_v33 = vadd.f32 %v891_v27, %v890_v21  ;;  %v869_v35 = vpop.f32.mrf.mxu0  ;;  %993 = vpow2.f32 %v611_v28  ;;  %vm561_vm8 = vcmp.gt.f32.partialorder %v1185_v23, 0.0  ;;  %vm569_vm9 = vcmp.gt.f32.partialorder %v1188_v24, 0.0 }
 0x106   : > { %v893_v36 = vpop.f32.mrf.mxu1  ;;  %v982_v37 = vpop.eup %981  ;;  %v816_v38 = vadd.f32 -1.0, %v980_v30  ;;  %v597_v39 = vmul.f32 1.442695, %v577_v29  ;;  %v613_v43 = vmul.f32 1.442695, %v585_v31  ;;  %v1202_v44 = vadd.f32 %v868_v32, %v1150_v34 }
 0x107   : > { %v824_v40 = vadd.f32 -1.0, %v982_v37  ;;  %v1205_v45 = vadd.f32 %v892_v33, %v1150_v34  ;;  %v870_v46 = vpop.f32.mrf.mxu0 }
 0x108   : > { %v894_v47 = vpop.f32.mrf.mxu1  ;;  %v637_v48 = vsel %vm557_vm0, %v1153_v41, %v816_v38  ;;  %995 = vpow2.f32 %v597_v39  ;;  %v871_v49 = vadd.f32 %v870_v46, %v869_v35  ;;  %v578_v52 = vmin.f32 %v1202_v44, 0.0 }
 0x109   : > { %v895_v50 = vadd.f32 %v894_v47, %v893_v36  ;;  %653 = vst [vmem:[%s1198_s8] sm:$0xff] %v637_v48  ;;  %v645_v51 = vsel %vm565_vm1, %v1156_v42, %v824_v40  ;;  %997 = vpow2.f32 %v613_v43  ;;  %v872_v55 = vpop.f32.mrf.mxu0  ;;  %v984_v57 = vpop.eup %983  ;;  %v586_v58 = vmin.f32 %v1205_v45, 0.0 }
 0x10a   : > { %v896_v56 = vpop.f32.mrf.mxu1  ;;  %661 = vst [vmem:[%s1198_s8 + $0x40] sm:$0xff] %v645_v51  ;;  %v1216_v59 = vadd.f32 %v871_v49, %v1150_v34  ;;  %v986_v60 = vpop.eup %985  ;;  %v817_v42 = vadd.f32 -1.0, %v984_v57  ;;  %v599_v61 = vmul.f32 1.442695, %v578_v52  ;;  %vm562_vm10 = vcmp.gt.f32.partialorder %v1202_v44, 0.0 }
 0x10b   : > { %v1219_v41 = vadd.f32 %v895_v50, %v1150_v34  ;;  %v825_v62 = vadd.f32 -1.0, %v986_v60  ;;  %v615_v1 = vmul.f32 1.442695, %v586_v58  ;;  %v873_v3 = vpop.f32.mrf.mxu0  ;;  %vm570_vm11 = vcmp.gt.f32.partialorder %v1205_v45, 0.0 }
 0x10c   : > { %v579_v2 = vmin.f32 %v1216_v59, 0.0  ;;  %v897_v4 = vpop.f32.mrf.mxu1  ;;  %v638_v6 = vsel %vm558_vm2, %v1161_v53, %v817_v42  ;;  %999 = vpow2.f32 %v599_v61  ;;  %v874_v16 = vadd.f32 %v873_v3, %v872_v55 }
 0x10d   : > { %v988_v5 = vpop.eup %987  ;;  %v587_v7 = vmin.f32 %v1219_v41, 0.0  ;;  %654 = vst [vmem:[%s1198_s8 + $0x8] sm:$0xff] %v638_v6  ;;  %v646_v9 = vsel %vm566_vm3, %v1164_v54, %v825_v62  ;;  %1001 = vpow2.f32 %v615_v1  ;;  %v898_v17 = vadd.f32 %v897_v4, %v896_v56 }
 0x10e   : > { %v990_v8 = vpop.eup %989  ;;  %v818_v10 = vadd.f32 -1.0, %v988_v5  ;;  %v601_v11 = vmul.f32 1.442695, %v579_v2  ;;  %662 = vst [vmem:[%s1198_s8 + $0x48] sm:$0xff] %v646_v9  ;;  %v522_v54 = vadd.f32 %v874_v16, %v1150_v34  ;;  %vm563_vm12 = vcmp.gt.f32.partialorder %v1216_v59, 0.0 }
 0x10f   : > { %v826_v12 = vadd.f32 -1.0, %v990_v8  ;;  %v617_v15 = vmul.f32 1.442695, %v587_v7  ;;  %v554_v19 = vadd.f32 %v898_v17, %v1150_v34  ;;  %vm571_vm13 = vcmp.gt.f32.partialorder %v1219_v41, 0.0 }
 0x110   : > { %v639_v53 = vsel %vm559_vm4, %v1169_v63, %v818_v10  ;;  %1003 = vpow2.f32 %v601_v11  ;;  %v580_v25 = vmin.f32 %v522_v54, 0.0  ;;  %vm564_vm14 = vcmp.gt.f32.partialorder %v522_v54, 0.0 }
 0x111   : > { %655 = vst [vmem:[%s1198_s8 + $0x10] sm:$0xff] %v639_v53  ;;  %v647_v18 = vsel %vm567_vm5, %v1172_v0, %v826_v12  ;;  %1005 = vpow2.f32 %v617_v15  ;;  %v992_v20 = vpop.eup %991  ;;  %v588_v26 = vmin.f32 %v554_v19, 0.0  ;;  %vm572_vm15 = vcmp.gt.f32.partialorder %v554_v19, 0.0 }
 0x112   : > { %663 = vst [vmem:[%s1198_s8 + $0x50] sm:$0xff] %v647_v18  ;;  %v994_v21 = vpop.eup %993  ;;  %v819_v22 = vadd.f32 -1.0, %v992_v20  ;;  %v603_v28 = vmul.f32 1.442695, %v580_v25 }
 0x113   : > { %v827_v63 = vadd.f32 -1.0, %v994_v21  ;;  %v619_v31 = vmul.f32 1.442695, %v588_v26 }
 0x114   : > { %v640_v0 = vsel %vm560_vm6, %v1177_v13, %v819_v22  ;;  %1007 = vpow2.f32 %v603_v28 }
 0x115   : > { %v996_v27 = vpop.eup %995  ;;  %656 = vst [vmem:[%s1198_s8 + $0x18] sm:$0xff] %v640_v0  ;;  %v648_v34 = vsel %vm568_vm7, %v1180_v14, %v827_v63  ;;  %1009 = vpow2.f32 %v619_v31 }
 0x116   : > { %v998_v29 = vpop.eup %997  ;;  %v820_v30 = vadd.f32 -1.0, %v996_v27  ;;  %664 = vst [vmem:[%s1198_s8 + $0x58] sm:$0xff] %v648_v34 }
 0x117   : > { %v828_v32 = vadd.f32 -1.0, %v998_v29 }
 0x118   : > { %v641_v33 = vsel %vm561_vm8, %v1185_v23, %v820_v30 }
 0x119   : > { %657 = vst [vmem:[%s1198_s8 + $0x20] sm:$0xff] %v641_v33  ;;  %v649_v13 = vsel %vm569_vm9, %v1188_v24, %v828_v32  ;;  %v1000_v35 = vpop.eup %999 }
 0x11a   : > { %665 = vst [vmem:[%s1198_s8 + $0x60] sm:$0xff] %v649_v13  ;;  %v1002_v14 = vpop.eup %1001  ;;  %v821_v36 = vadd.f32 -1.0, %v1000_v35 }
 0x11b   : > { %v829_v37 = vadd.f32 -1.0, %v1002_v14 }
 0x11c   : > { %v642_v39 = vsel %vm562_vm10, %v1202_v44, %v821_v36 }
 0x11d   : > { %v1004_v38 = vpop.eup %1003  ;;  %658 = vst [vmem:[%s1198_s8 + $0x28] sm:$0xff] %v642_v39  ;;  %v650_v40 = vsel %vm570_vm11, %v1205_v45, %v829_v37 }
 0x11e   : > { %v1006_v23 = vpop.eup %1005  ;;  %v822_v43 = vadd.f32 -1.0, %v1004_v38  ;;  %666 = vst [vmem:[%s1198_s8 + $0x68] sm:$0xff] %v650_v40 }
 0x11f   : > { %v830_v24 = vadd.f32 -1.0, %v1006_v23 }
 0x120   : > { %v643_v46 = vsel %vm563_vm12, %v1216_v59, %v822_v43 }
 0x121   : > { %659 = vst [vmem:[%s1198_s8 + $0x30] sm:$0xff] %v643_v46  ;;  %v651_v44 = vsel %vm571_vm13, %v1219_v41, %v830_v24  ;;  %v1008_v47 = vpop.eup %1007 }
 0x122   : > { %667 = vst [vmem:[%s1198_s8 + $0x70] sm:$0xff] %v651_v44  ;;  %v1010_v48 = vpop.eup %1009  ;;  %v823_v49 = vadd.f32 -1.0, %v1008_v47 }
 0x123   : > { %v831_v45 = vadd.f32 -1.0, %v1010_v48 }
 0x124   : > { %v644_v50 = vsel %vm564_vm14, %v522_v54, %v823_v49 }
 0x125   : > { %660 = vst [vmem:[%s1198_s8 + $0x38] sm:$0xff] %v644_v50  ;;  %v652_v51 = vsel %vm572_vm15, %v554_v19, %v831_v45 }
 0x126   : > { %668 = vst [vmem:[%s1198_s8 + $0x78] sm:$0xff] %v652_v51 }
 0x127 PF: > { %s13_s14 = sadd.s32 1, %s1033_s14   ;;  %s1276_s12 = smov %s1029_s13 }
 0x128   : > { %p10_p5 = scmp.ge.s32.totalorder %s13_s14, 11   ;;  %s1277_s13 = smov %s1279_s15 }
 0x12a   :  { %12 = sbr.rel (!%p10_p5) target bundleno = 2 (0x2), region = 68 }

// kernel: vae_forward.11
= control target key start
LH: loop header
LB: loop body
LE: loop exit
PB: predicated region body
PF: predicated region fallthrough
CT: control target
= control target key end

     0   :  { %v1337_v1 = vmov 0.0   ;;  %vm1338_vm0 = vmmov 0   ;;  %s1796_s1 = inlined_call_operand.vmem [shape: bf16[384,128], index: 1, kind: input, shape index: {}]   ;;  %s1797_s0 = inlined_call_operand.vmem [shape: bf16[208,384], index: 0, kind: input, shape index: {}]   ;;  %s1798_s2 = inlined_call_operand.vmem [shape: f32[1,128], index: 2, kind: input, shape index: {}]   ;;  %s1799_s3 = inlined_call_operand.vmem [shape: f32[208,128], index: 3, kind: output, shape index: {}]  }
   0x1   :  { %v1209_v0 = vld [vmem:[%s1796_s1 + $0x78] sm:$0xff]   ;;  %1139 = vmatprep.subr.bf16.mxu1 %v1337_v1  ;;  %1155 = vmatprep.mubr.msk.bf16.mxu1 %vm1338_vm0, %v1337_v1  ;;  %v1212_v4 = vld [vmem:[%s1796_s1 + $0x70] sm:$0xff]   ;;  %v1215_v7 = vld [vmem:[%s1796_s1 + $0x68] sm:$0xff]  }
   0x2   :  { %v1210_v2 = vld [vmem:[%s1796_s1 + $0x38] sm:$0xff]   ;;  %1024 = vmatprep.subr.bf16.mxu0 %v1209_v0  ;;  %v1213_v5 = vld [vmem:[%s1796_s1 + $0x30] sm:$0xff]   ;;  %v1216_v8 = vld [vmem:[%s1796_s1 + $0x28] sm:$0xff]  }
   0x3   :  { %v1211_v3 = vld [vmem:[%s1796_s1 + $0xb8] sm:$0xff]   ;;  %1025 = vmatpush3.bf16.msra.mxu0 %v1210_v2  ;;  %v1214_v6 = vld [vmem:[%s1796_s1 + $0xb0] sm:$0xff]   ;;  %v1217_v9 = vld [vmem:[%s1796_s1 + $0xa8] sm:$0xff]  }
   0x4   :  { %1140 = vmatpush3.bf16.msra.mxu1 %v1211_v3  ;;  %1026 = vmatprep.subr.bf16.mxu0 %v1212_v4  ;;  %v1218_v10 = vld [vmem:[%s1796_s1 + $0x60] sm:$0xff]   ;;  %v1221_v13 = vld [vmem:[%s1796_s1 + $0x58] sm:$0xff]   ;;  %v1224_v16 = vld [vmem:[%s1796_s1 + $0x50] sm:$0xff]  }
   0x5   :  { %1141 = vmatprep.subr.bf16.mxu1 %v1337_v1  ;;  %v1219_v11 = vld [vmem:[%s1796_s1 + $0x20] sm:$0xff]   ;;  %v1222_v14 = vld [vmem:[%s1796_s1 + $0x18] sm:$0xff]   ;;  %v1225_v17 = vld [vmem:[%s1796_s1 + $0x10] sm:$0xff]  }
   0x6   :  { %v1220_v12 = vld [vmem:[%s1796_s1 + $0xa0] sm:$0xff]   ;;  %v1223_v15 = vld [vmem:[%s1796_s1 + $0x98] sm:$0xff]   ;;  %v1226_v18 = vld [vmem:[%s1796_s1 + $0x90] sm:$0xff]  }
   0x7   :  { %1027 = vmatpush3.bf16.msra.mxu0 %v1213_v5  ;;  %v1227_v19 = vld [vmem:[%s1796_s1 + $0x48] sm:$0xff]   ;;  %v1230_v22 = vld [vmem:[%s1796_s1 + $0x40] sm:$0xff]   ;;  %v1243_v32 = vld [vmem:[%s1797_s0 + $0x30] ss:$12 sps:$4 sm:$0xff]  }
   0x8   :  { %1142 = vmatpush3.bf16.msra.mxu1 %v1214_v6  ;;  %1028 = vmatprep.subr.bf16.mxu0 %v1215_v7  ;;  %v1228_v20 = vld [vmem:[%s1796_s1 + $0x8] sm:$0xff]   ;;  %v1235_v23 = vld [vmem:[%s1797_s0 + $0x4] ss:$12 sps:$4 sm:$0xff]   ;;  %v1241_v31 = vld [vmem:[%s1797_s0 + $0x34] ss:$12 sps:$4 sm:$0xff]  }
   0x9   :  { %1143 = vmatprep.subr.bf16.mxu1 %v1337_v1  ;;  %v1229_v21 = vld [vmem:[%s1796_s1 + $0x88] sm:$0xff]   ;;  %v1231_v24 = vld [vmem:[%s1796_s1] sm:$0xff]   ;;  %506 = vmatprep.mubr.bf16.mxu0 %v1235_v23  ;;  %v1248_v36 = vld [vmem:[%s1797_s0 + $0x50] ss:$12 sps:$4 sm:$0xff]  }
   0xa   :  { %v1232_v25 = vld [vmem:[%s1796_s1 + $0x80] sm:$0xff]   ;;  %v1236_v27 = vld [vmem:[%s1797_s0 + $0x8] ss:$12 sps:$4 sm:$0xff]   ;;  %v1245_v34 = vld [vmem:[%s1797_s0 + $0x4c] ss:$12 sps:$4 sm:$0xff]  }
   0xb   :  { %1029 = vmatpush3.bf16.msra.mxu0 %v1216_v8  ;;  %v1233_v26 = vld [vmem:[%s1797_s0] ss:$12 sps:$4 sm:$0xff]   ;;  %v1237_v28 = vld [vmem:[%s1797_s0 + $0x1c] ss:$12 sps:$4 sm:$0xff]   ;;  %v1239_v29 = vld [vmem:[%s1797_s0 + $0x18] ss:$12 sps:$4 sm:$0xff]  }
   0xc   :  { %1144 = vmatpush3.bf16.msra.mxu1 %v1217_v9  ;;  %1030 = vmatprep.subr.bf16.mxu0 %v1218_v10  ;;  %v1240_v30 = vld [vmem:[%s1797_s0 + $0x20] ss:$12 sps:$4 sm:$0xff]   ;;  %v1244_v33 = vld [vmem:[%s1797_s0 + $0x38] ss:$12 sps:$4 sm:$0xff]   ;;  %v1247_v35 = vld [vmem:[%s1797_s0 + $0x48] ss:$12 sps:$4 sm:$0xff]  }
   0xd   :  { %1145 = vmatprep.subr.bf16.mxu1 %v1337_v1  ;;  %v1249_v37 = vld [vmem:[%s1797_s0 + $0x64] ss:$12 sps:$4 sm:$0xff]   ;;  %v1251_v38 = vld [vmem:[%s1797_s0 + $0x60] ss:$12 sps:$4 sm:$0xff]   ;;  %v1252_v39 = vld [vmem:[%s1797_s0 + $0x68] ss:$12 sps:$4 sm:$0xff]  }
   0xe   :  { %v1253_v40 = vld [vmem:[%s1797_s0 + $0x7c] ss:$12 sps:$4 sm:$0xff]   ;;  %v1255_v41 = vld [vmem:[%s1797_s0 + $0x78] ss:$12 sps:$4 sm:$0xff]   ;;  %v1256_v42 = vld [vmem:[%s1797_s0 + $0x80] ss:$12 sps:$4 sm:$0xff]  }
   0xf   :  { %1031 = vmatpush3.bf16.msra.mxu0 %v1219_v11  ;;  %v1257_v43 = vld [vmem:[%s1797_s0 + $0x94] ss:$12 sps:$4 sm:$0xff]   ;;  %v1259_v44 = vld [vmem:[%s1797_s0 + $0x90] ss:$12 sps:$4 sm:$0xff]   ;;  %v1260_v45 = vld [vmem:[%s1797_s0 + $0x98] ss:$12 sps:$4 sm:$0xff]  }
  0x10   :  { %1146 = vmatpush3.bf16.msra.mxu1 %v1220_v12  ;;  %1032 = vmatprep.subr.bf16.mxu0 %v1221_v13  ;;  %v1261_v46 = vld [vmem:[%s1797_s0 + $0xac] ss:$12 sps:$4 sm:$0xff]   ;;  %v1263_v47 = vld [vmem:[%s1797_s0 + $0xa8] ss:$12 sps:$4 sm:$0xff]   ;;  %v1264_v48 = vld [vmem:[%s1797_s0 + $0xb0] ss:$12 sps:$4 sm:$0xff]  }
  0x11   :  { %1147 = vmatprep.subr.bf16.mxu1 %v1337_v1  ;;  %v1265_v49 = vld [vmem:[%s1797_s0 + $0xc4] ss:$12 sps:$4 sm:$0xff]   ;;  %v1267_v50 = vld [vmem:[%s1797_s0 + $0xc0] ss:$12 sps:$4 sm:$0xff]   ;;  %v1268_v51 = vld [vmem:[%s1797_s0 + $0xc8] ss:$12 sps:$4 sm:$0xff]  }
  0x12   :  { %v1269_v52 = vld [vmem:[%s1797_s0 + $0xdc] ss:$12 sps:$4 sm:$0xff]   ;;  %v1271_v53 = vld [vmem:[%s1797_s0 + $0xd8] ss:$12 sps:$4 sm:$0xff]   ;;  %v1272_v54 = vld [vmem:[%s1797_s0 + $0xe0] ss:$12 sps:$4 sm:$0xff]  }
  0x13   :  { %1033 = vmatpush3.bf16.msra.mxu0 %v1222_v14  ;;  %v1273_v55 = vld [vmem:[%s1797_s0 + $0xf4] ss:$12 sps:$4 sm:$0xff]   ;;  %v1275_v56 = vld [vmem:[%s1797_s0 + $0xf0] ss:$12 sps:$4 sm:$0xff]   ;;  %v1276_v57 = vld [vmem:[%s1797_s0 + $0xf8] ss:$12 sps:$4 sm:$0xff]  }
  0x14   :  { %1148 = vmatpush3.bf16.msra.mxu1 %v1223_v15  ;;  %1034 = vmatprep.subr.bf16.mxu0 %v1224_v16  ;;  %v1277_v58 = vld [vmem:[%s1797_s0 + $0x10c] ss:$12 sps:$4 sm:$0xff]   ;;  %v1279_v59 = vld [vmem:[%s1797_s0 + $0x108] ss:$12 sps:$4 sm:$0xff]   ;;  %v1280_v60 = vld [vmem:[%s1797_s0 + $0x110] ss:$12 sps:$4 sm:$0xff]  }
  0x15   :  { %1149 = vmatprep.subr.bf16.mxu1 %v1337_v1  ;;  %v1281_v61 = vld [vmem:[%s1797_s0 + $0x124] ss:$12 sps:$4 sm:$0xff]   ;;  %v1283_v62 = vld [vmem:[%s1797_s0 + $0x120] ss:$12 sps:$4 sm:$0xff]   ;;  %v1284_v63 = vld [vmem:[%s1797_s0 + $0x128] ss:$12 sps:$4 sm:$0xff]  }
  0x16   :  { %v1585_v3 = vld [vmem:[%s1798_s2] ss:$0 sm:$0xff] }
  0x17   :  { %1035 = vmatpush3.bf16.msra.mxu0 %v1225_v17 }
  0x18   :  { %1150 = vmatpush3.bf16.msra.mxu1 %v1226_v18  ;;  %1036 = vmatprep.subr.bf16.mxu0 %v1227_v19 }
  0x19   :  { %1151 = vmatprep.subr.bf16.mxu1 %v1337_v1 }
  0x1b   :  { %1037 = vmatpush3.bf16.msra.mxu0 %v1228_v20 }
  0x1c   :  { %1152 = vmatpush3.bf16.msra.mxu1 %v1229_v21  ;;  %1038 = vmatprep.subr.bf16.mxu0 %v1230_v22 }
  0x1d   :  { %1153 = vmatprep.subr.bf16.mxu1 %v1337_v1 }
  0x1f   :  { %1039 = vmatpush3.bf16.msra.mxu0 %v1231_v24 }
  0x20   :  { %1154 = vmatpush3.bf16.msra.mxu1 %v1232_v25 }
  0x22   :  { %507 = vmatmul.mubr.bf16.vlgmr.msra.gmra.mxu0 %v1233_v26 }
  0x23   :  { %1156 = vmatmul.mubr.bf16.vlgmr.msra.gmra.mxu1 %v1236_v27  ;;  %514 = vmatprep.mubr.bf16.mxu0 %v1237_v28 }
  0x24   :  { %1159 = vmatprep.mubr.msk.bf16.mxu1 %vm1338_vm0, %v1337_v1 }
  0x2a   :  { %515 = vmatmul.mubr.bf16.gmra.mxu0 %v1239_v29 }
  0x2b   :  { %1160 = vmatmul.mubr.bf16.gmra.mxu1 %v1240_v30  ;;  %522 = vmatprep.mubr.bf16.mxu0 %v1241_v31 }
  0x2c   :  { %1163 = vmatprep.mubr.msk.bf16.mxu1 %vm1338_vm0, %v1337_v1 }
  0x32   :  { %523 = vmatmul.mubr.bf16.gmra.mxu0 %v1243_v32 }
  0x33   :  { %1164 = vmatmul.mubr.bf16.gmra.mxu1 %v1244_v33  ;;  %530 = vmatprep.mubr.bf16.mxu0 %v1245_v34 }
  0x34   :  { %1167 = vmatprep.mubr.msk.bf16.mxu1 %vm1338_vm0, %v1337_v1 }
  0x3a   :  { %531 = vmatmul.mubr.bf16.gmra.mxu0 %v1247_v35 }
  0x3b   :  { %1168 = vmatmul.mubr.bf16.gmra.mxu1 %v1248_v36  ;;  %538 = vmatprep.mubr.bf16.mxu0 %v1249_v37 }
  0x3c   :  { %1171 = vmatprep.mubr.msk.bf16.mxu1 %vm1338_vm0, %v1337_v1 }
  0x42   :  { %539 = vmatmul.mubr.bf16.gmra.mxu0 %v1251_v38 }
  0x43   :  { %1172 = vmatmul.mubr.bf16.gmra.mxu1 %v1252_v39  ;;  %546 = vmatprep.mubr.bf16.mxu0 %v1253_v40 }
  0x44   :  { %1175 = vmatprep.mubr.msk.bf16.mxu1 %vm1338_vm0, %v1337_v1 }
  0x4a   :  { %547 = vmatmul.mubr.bf16.gmra.mxu0 %v1255_v41 }
  0x4b   :  { %1176 = vmatmul.mubr.bf16.gmra.mxu1 %v1256_v42  ;;  %554 = vmatprep.mubr.bf16.mxu0 %v1257_v43 }
  0x4c   :  { %1179 = vmatprep.mubr.msk.bf16.mxu1 %vm1338_vm0, %v1337_v1 }
  0x52   :  { %555 = vmatmul.mubr.bf16.gmra.mxu0 %v1259_v44 }
  0x53   :  { %1180 = vmatmul.mubr.bf16.gmra.mxu1 %v1260_v45  ;;  %562 = vmatprep.mubr.bf16.mxu0 %v1261_v46 }
  0x54   :  { %1183 = vmatprep.mubr.msk.bf16.mxu1 %vm1338_vm0, %v1337_v1 }
  0x5a   :  { %563 = vmatmul.mubr.bf16.gmra.mxu0 %v1263_v47 }
  0x5b   :  { %1184 = vmatmul.mubr.bf16.gmra.mxu1 %v1264_v48  ;;  %570 = vmatprep.mubr.bf16.mxu0 %v1265_v49 }
  0x5c   :  { %1187 = vmatprep.mubr.msk.bf16.mxu1 %vm1338_vm0, %v1337_v1 }
  0x62   :  { %571 = vmatmul.mubr.bf16.gmra.mxu0 %v1267_v50 }
  0x63   :  { %1188 = vmatmul.mubr.bf16.gmra.mxu1 %v1268_v51  ;;  %578 = vmatprep.mubr.bf16.mxu0 %v1269_v52 }
  0x64   :  { %1191 = vmatprep.mubr.msk.bf16.mxu1 %vm1338_vm0, %v1337_v1 }
  0x6a   :  { %579 = vmatmul.mubr.bf16.gmra.mxu0 %v1271_v53 }
  0x6b   :  { %1192 = vmatmul.mubr.bf16.gmra.mxu1 %v1272_v54  ;;  %586 = vmatprep.mubr.bf16.mxu0 %v1273_v55 }
  0x6c   :  { %1195 = vmatprep.mubr.msk.bf16.mxu1 %vm1338_vm0, %v1337_v1 }
  0x72   :  { %587 = vmatmul.mubr.bf16.gmra.mxu0 %v1275_v56 }
  0x73   :  { %1196 = vmatmul.mubr.bf16.gmra.mxu1 %v1276_v57  ;;  %594 = vmatprep.mubr.bf16.mxu0 %v1277_v58 }
  0x74   :  { %1199 = vmatprep.mubr.msk.bf16.mxu1 %vm1338_vm0, %v1337_v1 }
  0x7a   :  { %595 = vmatmul.mubr.bf16.gmra.mxu0 %v1279_v59 }
  0x7b   :  { %1200 = vmatmul.mubr.bf16.gmra.mxu1 %v1280_v60  ;;  %602 = vmatprep.mubr.bf16.mxu0 %v1281_v61 }
  0x7c   :  { %1203 = vmatprep.mubr.msk.bf16.mxu1 %vm1338_vm0, %v1337_v1 }
  0x82   :  { %603 = vmatmul.mubr.bf16.gmra.mxu0 %v1283_v62 }
  0x83   :  { %1204 = vmatmul.mubr.bf16.gmra.mxu1 %v1284_v63 }
  0xe2   :  { %v1040_v0 = vpop.f32.mrf.mxu0 }
  0xe3   :  { %v645_v2 = vpop.f32.mrf.mxu1 }
  0xe4   :  { %v1041_v4 = vpop.f32.mrf.mxu0 }
  0xe5   :  { %v1042_v5 = vadd.f32 %v1041_v4, %v1040_v0  ;;  %v1157_v1 = vpop.f32.mrf.mxu1 }
  0xe6   :  { %v1043_v6 = vpop.f32.mrf.mxu0 }
  0xe7   :  { %v509_v7 = vadd.f32 %v1042_v5, %v1585_v3  ;;  %v648_v8 = vpop.f32.mrf.mxu1 }
  0xe8   :  { %v1044_v9 = vpop.f32.mrf.mxu0 }
  0xe9   :  { %v646_v10 = vadd.f32 %v645_v2, %v509_v7  ;;  %v1045_v11 = vadd.f32 %v1044_v9, %v1043_v6  ;;  %v1158_v12 = vpop.f32.mrf.mxu1 }
  0xea   :  { %v1046_v13 = vpop.f32.mrf.mxu0 }
  0xeb   :  { %v774_v14 = vmin.f32 %v646_v10, 0.0  ;;  %v512_v15 = vadd.f32 %v1045_v11, %v1585_v3  ;;  %v653_v16 = vpop.f32.mrf.mxu1  ;;  %vm748_vm1 = vcmp.gt.f32.partialorder %v646_v10, 0.0 }
  0xec   :  { %v1047_v17 = vpop.f32.mrf.mxu0 }
  0xed   :  { %v800_v18 = vmul.f32 1.442695, %v774_v14  ;;  %v1589_v19 = vadd.f32 %v648_v8, %v512_v15  ;;  %v1048_v20 = vadd.f32 %v1047_v17, %v1046_v13  ;;  %v1161_v21 = vpop.f32.mrf.mxu1 }
  0xee   :  { %v1049_v22 = vpop.f32.mrf.mxu0 }
  0xef   :  { %1285 = vpow2.f32 %v800_v18  ;;  %v775_v23 = vmin.f32 %v1589_v19, 0.0  ;;  %v517_v24 = vadd.f32 %v1048_v20, %v1585_v3  ;;  %v656_v25 = vpop.f32.mrf.mxu1  ;;  %vm749_vm2 = vcmp.gt.f32.partialorder %v1589_v19, 0.0 }
  0xf0   :  { %v1050_v26 = vpop.f32.mrf.mxu0 }
  0xf1   :  { %v802_v27 = vmul.f32 1.442695, %v775_v23  ;;  %v1593_v28 = vadd.f32 %v653_v16, %v517_v24  ;;  %v1051_v29 = vadd.f32 %v1050_v26, %v1049_v22  ;;  %v1162_v30 = vpop.f32.mrf.mxu1 }
  0xf2   :  { %v1052_v31 = vpop.f32.mrf.mxu0 }
  0xf3   :  { %1287 = vpow2.f32 %v802_v27  ;;  %v776_v32 = vmin.f32 %v1593_v28, 0.0  ;;  %v520_v33 = vadd.f32 %v1051_v29, %v1585_v3  ;;  %v661_v34 = vpop.f32.mrf.mxu1  ;;  %vm750_vm3 = vcmp.gt.f32.partialorder %v1593_v28, 0.0 }
  0xf4   :  { %v1053_v35 = vpop.f32.mrf.mxu0 }
  0xf5   :  { %v804_v36 = vmul.f32 1.442695, %v776_v32  ;;  %v1597_v37 = vadd.f32 %v656_v25, %v520_v33  ;;  %v1054_v38 = vadd.f32 %v1053_v35, %v1052_v31  ;;  %v1165_v39 = vpop.f32.mrf.mxu1 }
  0xf6   :  { %v1055_v40 = vpop.f32.mrf.mxu0 }
  0xf7   :  { %1289 = vpow2.f32 %v804_v36  ;;  %v777_v41 = vmin.f32 %v1597_v37, 0.0  ;;  %v525_v42 = vadd.f32 %v1054_v38, %v1585_v3  ;;  %v664_v43 = vpop.f32.mrf.mxu1  ;;  %vm751_vm4 = vcmp.gt.f32.partialorder %v1597_v37, 0.0 }
  0xf8   :  { %v1056_v44 = vpop.f32.mrf.mxu0 }
  0xf9   :  { %v806_v45 = vmul.f32 1.442695, %v777_v41  ;;  %v1601_v46 = vadd.f32 %v661_v34, %v525_v42  ;;  %v1057_v47 = vadd.f32 %v1056_v44, %v1055_v40  ;;  %v1166_v48 = vpop.f32.mrf.mxu1 }
  0xfa   :  { %v1058_v49 = vpop.f32.mrf.mxu0 }
  0xfb   :  { %1291 = vpow2.f32 %v806_v45  ;;  %v778_v50 = vmin.f32 %v1601_v46, 0.0  ;;  %v528_v51 = vadd.f32 %v1057_v47, %v1585_v3  ;;  %v669_v52 = vpop.f32.mrf.mxu1  ;;  %vm752_vm5 = vcmp.gt.f32.partialorder %v1601_v46, 0.0 }
  0xfc   :  { %v1286_v53 = vpop.eup %1285  ;;  %v1059_v54 = vpop.f32.mrf.mxu0 }
  0xfd   :  { %v998_v55 = vadd.f32 -1.0, %v1286_v53  ;;  %v808_v56 = vmul.f32 1.442695, %v778_v50  ;;  %v1605_v57 = vadd.f32 %v664_v43, %v528_v51  ;;  %v1060_v58 = vadd.f32 %v1059_v54, %v1058_v49  ;;  %v1169_v59 = vpop.f32.mrf.mxu1 }
  0xfe   :  { %v1061_v60 = vpop.f32.mrf.mxu0 }
  0xff   :  { %v878_v61 = vsel %vm748_vm1, %v646_v10, %v998_v55  ;;  %1293 = vpow2.f32 %v808_v56  ;;  %v779_v62 = vmin.f32 %v1605_v57, 0.0  ;;  %v672_v63 = vpop.f32.mrf.mxu1  ;;  %v533_v2 = vadd.f32 %v1060_v58, %v1585_v3 }
 0x100   :  { %v1288_v0 = vpop.eup %1287  ;;  %904 = vst [vmem:[%s1799_s3] sm:$0xff] %v878_v61  ;;  %v1062_v4 = vpop.f32.mrf.mxu0  ;;  %vm753_vm6 = vcmp.gt.f32.partialorder %v1605_v57, 0.0 }
 0x101   :  { %v999_v5 = vadd.f32 -1.0, %v1288_v0  ;;  %v810_v1 = vmul.f32 1.442695, %v779_v62  ;;  %v1063_v6 = vadd.f32 %v1062_v4, %v1061_v60  ;;  %v1170_v7 = vpop.f32.mrf.mxu1  ;;  %v1613_v8 = vadd.f32 %v669_v52, %v533_v2 }
 0x102   :  { %v1064_v9 = vpop.f32.mrf.mxu0 }
 0x103   :  { %v879_v10 = vsel %vm749_vm2, %v1589_v19, %v999_v5  ;;  %1295 = vpow2.f32 %v810_v1  ;;  %v536_v11 = vadd.f32 %v1063_v6, %v1585_v3  ;;  %v677_v12 = vpop.f32.mrf.mxu1  ;;  %v780_v14 = vmin.f32 %v1613_v8, 0.0 }
 0x104   :  { %v1290_v13 = vpop.eup %1289  ;;  %905 = vst [vmem:[%s1799_s3 + $0x8] sm:$0xff] %v879_v10  ;;  %v1065_v15 = vpop.f32.mrf.mxu0  ;;  %vm754_vm7 = vcmp.gt.f32.partialorder %v1613_v8, 0.0 }
 0x105   :  { %v1000_v16 = vadd.f32 -1.0, %v1290_v13  ;;  %v1621_v17 = vadd.f32 %v672_v63, %v536_v11  ;;  %v1066_v18 = vadd.f32 %v1065_v15, %v1064_v9  ;;  %v1173_v20 = vpop.f32.mrf.mxu1  ;;  %v812_v19 = vmul.f32 1.442695, %v780_v14 }
 0x106   :  { %v1067_v21 = vpop.f32.mrf.mxu0 }
 0x107   :  { %v880_v22 = vsel %vm750_vm3, %v1593_v28, %v1000_v16  ;;  %v781_v23 = vmin.f32 %v1621_v17, 0.0  ;;  %v541_v24 = vadd.f32 %v1066_v18, %v1585_v3  ;;  %v680_v25 = vpop.f32.mrf.mxu1  ;;  %1297 = vpow2.f32 %v812_v19 }
 0x108   :  { %v1292_v26 = vpop.eup %1291  ;;  %906 = vst [vmem:[%s1799_s3 + $0x10] sm:$0xff] %v880_v22  ;;  %v1068_v27 = vpop.f32.mrf.mxu0  ;;  %vm755_vm8 = vcmp.gt.f32.partialorder %v1621_v17, 0.0 }
 0x109   :  { %v1001_v29 = vadd.f32 -1.0, %v1292_v26  ;;  %v814_v30 = vmul.f32 1.442695, %v781_v23  ;;  %v1630_v31 = vadd.f32 %v677_v12, %v541_v24  ;;  %v1069_v32 = vadd.f32 %v1068_v27, %v1067_v21  ;;  %v1174_v33 = vpop.f32.mrf.mxu1 }
 0x10a   :  { %v1070_v28 = vpop.f32.mrf.mxu0 }
 0x10b   :  { %v881_v34 = vsel %vm751_vm4, %v1597_v37, %v1001_v29  ;;  %1299 = vpow2.f32 %v814_v30  ;;  %v782_v35 = vmin.f32 %v1630_v31, 0.0  ;;  %v685_v36 = vpop.f32.mrf.mxu1  ;;  %v544_v39 = vadd.f32 %v1069_v32, %v1585_v3 }
 0x10c   :  { %v1294_v38 = vpop.eup %1293  ;;  %907 = vst [vmem:[%s1799_s3 + $0x18] sm:$0xff] %v881_v34  ;;  %v1071_v40 = vpop.f32.mrf.mxu0  ;;  %vm756_vm9 = vcmp.gt.f32.partialorder %v1630_v31, 0.0 }
 0x10d   :  { %v1002_v41 = vadd.f32 -1.0, %v1294_v38  ;;  %v816_v42 = vmul.f32 1.442695, %v782_v35  ;;  %v1072_v43 = vadd.f32 %v1071_v40, %v1070_v28  ;;  %v1177_v44 = vpop.f32.mrf.mxu1  ;;  %v1640_v45 = vadd.f32 %v680_v25, %v544_v39 }
 0x10e   :  { %v1073_v37 = vpop.f32.mrf.mxu0 }
 0x10f   :  { %v882_v47 = vsel %vm752_vm5, %v1601_v46, %v1002_v41  ;;  %1301 = vpow2.f32 %v816_v42  ;;  %v549_v48 = vadd.f32 %v1072_v43, %v1585_v3  ;;  %v688_v49 = vpop.f32.mrf.mxu1  ;;  %v783_v51 = vmin.f32 %v1640_v45, 0.0 }
 0x110   :  { %v1296_v50 = vpop.eup %1295  ;;  %908 = vst [vmem:[%s1799_s3 + $0x20] sm:$0xff] %v882_v47  ;;  %v1074_v52 = vpop.f32.mrf.mxu0  ;;  %vm757_vm10 = vcmp.gt.f32.partialorder %v1640_v45, 0.0 }
 0x111   :  { %v1003_v53 = vadd.f32 -1.0, %v1296_v50  ;;  %v1648_v54 = vadd.f32 %v685_v36, %v549_v48  ;;  %v1075_v55 = vadd.f32 %v1074_v52, %v1073_v37  ;;  %v1178_v56 = vpop.f32.mrf.mxu1  ;;  %v818_v46 = vmul.f32 1.442695, %v783_v51 }
 0x112   :  { %v1076_v58 = vpop.f32.mrf.mxu0 }
 0x113   :  { %v883_v59 = vsel %vm753_vm6, %v1605_v57, %v1003_v53  ;;  %v784_v60 = vmin.f32 %v1648_v54, 0.0  ;;  %v552_v61 = vadd.f32 %v1075_v55, %v1585_v3  ;;  %v693_v62 = vpop.f32.mrf.mxu1  ;;  %1303 = vpow2.f32 %v818_v46 }
 0x114   :  { %909 = vst [vmem:[%s1799_s3 + $0x28] sm:$0xff] %v883_v59  ;;  %v1077_v63 = vpop.f32.mrf.mxu0  ;;  %v1298_v0 = vpop.eup %1297  ;;  %vm758_vm11 = vcmp.gt.f32.partialorder %v1648_v54, 0.0 }
 0x115   :  { %v820_v2 = vmul.f32 1.442695, %v784_v60  ;;  %v1657_v4 = vadd.f32 %v688_v49, %v552_v61  ;;  %v1078_v5 = vadd.f32 %v1077_v63, %v1076_v58  ;;  %v1181_v1 = vpop.f32.mrf.mxu1  ;;  %v1004_v6 = vadd.f32 -1.0, %v1298_v0 }
 0x116   :  { %v1079_v7 = vpop.f32.mrf.mxu0 }
 0x117   :  { %1305 = vpow2.f32 %v820_v2  ;;  %v785_v57 = vmin.f32 %v1657_v4, 0.0  ;;  %v557_v9 = vadd.f32 %v1078_v5, %v1585_v3  ;;  %v696_v10 = vpop.f32.mrf.mxu1  ;;  %v884_v12 = vsel %vm754_vm7, %v1613_v8, %v1004_v6 }
 0x118   :  { %v1300_v11 = vpop.eup %1299  ;;  %v1080_v13 = vpop.f32.mrf.mxu0  ;;  %910 = vst [vmem:[%s1799_s3 + $0x30] sm:$0xff] %v884_v12  ;;  %vm759_vm12 = vcmp.gt.f32.partialorder %v1657_v4, 0.0 }
 0x119   :  { %v1005_v14 = vadd.f32 -1.0, %v1300_v11  ;;  %v822_v15 = vmul.f32 1.442695, %v785_v57  ;;  %v1666_v16 = vadd.f32 %v693_v62, %v557_v9  ;;  %v1081_v18 = vadd.f32 %v1080_v13, %v1079_v7  ;;  %v1182_v20 = vpop.f32.mrf.mxu1 }
 0x11a   :  { %v1082_v19 = vpop.f32.mrf.mxu0 }
 0x11b   :  { %v885_v21 = vsel %vm755_vm8, %v1621_v17, %v1005_v14  ;;  %1307 = vpow2.f32 %v822_v15  ;;  %v786_v22 = vmin.f32 %v1666_v16, 0.0  ;;  %v701_v8 = vpop.f32.mrf.mxu1  ;;  %v560_v24 = vadd.f32 %v1081_v18, %v1585_v3 }
 0x11c   :  { %v1302_v23 = vpop.eup %1301  ;;  %911 = vst [vmem:[%s1799_s3 + $0x38] sm:$0xff] %v885_v21  ;;  %v1083_v25 = vpop.f32.mrf.mxu0  ;;  %vm760_vm13 = vcmp.gt.f32.partialorder %v1666_v16, 0.0 }
 0x11d   :  { %v1006_v26 = vadd.f32 -1.0, %v1302_v23  ;;  %v824_v27 = vmul.f32 1.442695, %v786_v22  ;;  %v1084_v29 = vadd.f32 %v1083_v25, %v1082_v19  ;;  %v1185_v30 = vpop.f32.mrf.mxu1  ;;  %v1676_v32 = vadd.f32 %v696_v10, %v560_v24 }
 0x11e   :  { %v1085_v17 = vpop.f32.mrf.mxu0 }
 0x11f   :  { %v886_v33 = vsel %vm756_vm9, %v1630_v31, %v1006_v26  ;;  %1309 = vpow2.f32 %v824_v27  ;;  %v565_v28 = vadd.f32 %v1084_v29, %v1585_v3  ;;  %v704_v34 = vpop.f32.mrf.mxu1  ;;  %v787_v35 = vmin.f32 %v1676_v32, 0.0 }
 0x120   :  { %912 = vst [vmem:[%s1799_s3 + $0x40] sm:$0xff] %v886_v33  ;;  %v1086_v36 = vpop.f32.mrf.mxu0  ;;  %v1304_v38 = vpop.eup %1303  ;;  %vm761_vm14 = vcmp.gt.f32.partialorder %v1676_v32, 0.0 }
 0x121   :  { %v1684_v39 = vadd.f32 %v701_v8, %v565_v28  ;;  %v1087_v40 = vadd.f32 %v1086_v36, %v1085_v17  ;;  %v1186_v41 = vpop.f32.mrf.mxu1  ;;  %v1007_v42 = vadd.f32 -1.0, %v1304_v38  ;;  %v826_v43 = vmul.f32 1.442695, %v787_v35 }
 0x122   :  { %v1088_v44 = vpop.f32.mrf.mxu0 }
 0x123   :  { %v788_v31 = vmin.f32 %v1684_v39, 0.0  ;;  %v568_v37 = vadd.f32 %v1087_v40, %v1585_v3  ;;  %v709_v47 = vpop.f32.mrf.mxu1  ;;  %v887_v49 = vsel %vm757_vm10, %v1640_v45, %v1007_v42  ;;  %1311 = vpow2.f32 %v826_v43 }
 0x124   :  { %v1306_v48 = vpop.eup %1305  ;;  %v1089_v50 = vpop.f32.mrf.mxu0  ;;  %913 = vst [vmem:[%s1799_s3 + $0x48] sm:$0xff] %v887_v49  ;;  %vm762_vm15 = vcmp.gt.f32.partialorder %v1684_v39, 0.0 }
 0x125   :  { %v1008_v51 = vadd.f32 -1.0, %v1306_v48  ;;  %v828_v52 = vmul.f32 1.442695, %v788_v31  ;;  %v1693_v53 = vadd.f32 %v704_v34, %v568_v37  ;;  %v1090_v55 = vadd.f32 %v1089_v50, %v1088_v44  ;;  %v1189_v56 = vpop.f32.mrf.mxu1 }
 0x126   :  { %v1091_v46 = vpop.f32.mrf.mxu0 }
 0x127   :  { %v888_v58 = vsel %vm758_vm11, %v1648_v54, %v1008_v51  ;;  %1313 = vpow2.f32 %v828_v52  ;;  %v789_v45 = vmin.f32 %v1693_v53, 0.0  ;;  %v712_v59 = vpop.f32.mrf.mxu1  ;;  %v573_v61 = vadd.f32 %v1090_v55, %v1585_v3 }
 0x128   :  { %v1308_v60 = vpop.eup %1307  ;;  %914 = vst [vmem:[%s1799_s3 + $0x50] sm:$0xff] %v888_v58  ;;  %v1092_v62 = vpop.f32.mrf.mxu0  ;;  %vm763_vm0 = vcmp.gt.f32.partialorder %v1693_v53, 0.0 }
 0x129   :  { %v1009_v63 = vadd.f32 -1.0, %v1308_v60  ;;  %v830_v0 = vmul.f32 1.442695, %v789_v45  ;;  %v1093_v2 = vadd.f32 %v1092_v62, %v1091_v46  ;;  %v1190_v5 = vpop.f32.mrf.mxu1  ;;  %v1703_v1 = vadd.f32 %v709_v47, %v573_v61 }
 0x12a   :  { %v1094_v54 = vpop.f32.mrf.mxu0 }
 0x12b   :  { %v889_v6 = vsel %vm759_vm12, %v1657_v4, %v1009_v63  ;;  %1315 = vpow2.f32 %v830_v0  ;;  %v576_v7 = vadd.f32 %v1093_v2, %v1585_v3  ;;  %v717_v57 = vpop.f32.mrf.mxu1  ;;  %v790_v10 = vmin.f32 %v1703_v1, 0.0 }
 0x12c   :  { %v1310_v9 = vpop.eup %1309  ;;  %915 = vst [vmem:[%s1799_s3 + $0x58] sm:$0xff] %v889_v6  ;;  %v1095_v11 = vpop.f32.mrf.mxu0  ;;  %vm764_vm1 = vcmp.gt.f32.partialorder %v1703_v1, 0.0 }
 0x12d   :  { %v1010_v12 = vadd.f32 -1.0, %v1310_v9  ;;  %v1711_v13 = vadd.f32 %v712_v59, %v576_v7  ;;  %v1096_v14 = vadd.f32 %v1095_v11, %v1094_v54  ;;  %v1193_v15 = vpop.f32.mrf.mxu1  ;;  %v832_v4 = vmul.f32 1.442695, %v790_v10 }
 0x12e   :  { %v1097_v18 = vpop.f32.mrf.mxu0 }
 0x12f   :  { %v890_v20 = vsel %vm760_vm13, %v1666_v16, %v1010_v12  ;;  %v791_v19 = vmin.f32 %v1711_v13, 0.0  ;;  %v581_v21 = vadd.f32 %v1096_v14, %v1585_v3  ;;  %v720_v22 = vpop.f32.mrf.mxu1  ;;  %1317 = vpow2.f32 %v832_v4 }
 0x130   :  { %916 = vst [vmem:[%s1799_s3 + $0x60] sm:$0xff] %v890_v20  ;;  %v1098_v8 = vpop.f32.mrf.mxu0  ;;  %v1312_v23 = vpop.eup %1311  ;;  %vm765_vm2 = vcmp.gt.f32.partialorder %v1711_v13, 0.0 }
 0x131   :  { %v834_v24 = vmul.f32 1.442695, %v791_v19  ;;  %v1720_v25 = vadd.f32 %v717_v57, %v581_v21  ;;  %v1099_v26 = vadd.f32 %v1098_v8, %v1097_v18  ;;  %v1194_v27 = vpop.f32.mrf.mxu1  ;;  %v1011_v29 = vadd.f32 -1.0, %v1312_v23 }
 0x132   :  { %v1100_v30 = vpop.f32.mrf.mxu0 }
 0x133   :  { %1319 = vpow2.f32 %v834_v24  ;;  %v792_v16 = vmin.f32 %v1720_v25, 0.0  ;;  %v584_v17 = vadd.f32 %v1099_v26, %v1585_v3  ;;  %v725_v33 = vpop.f32.mrf.mxu1  ;;  %v891_v34 = vsel %vm761_vm14, %v1676_v32, %v1011_v29 }
 0x134   :  { %v1314_v28 = vpop.eup %1313  ;;  %v1101_v35 = vpop.f32.mrf.mxu0  ;;  %917 = vst [vmem:[%s1799_s3 + $0x68] sm:$0xff] %v891_v34  ;;  %vm766_vm3 = vcmp.gt.f32.partialorder %v1720_v25, 0.0 }
 0x135   :  { %v1012_v36 = vadd.f32 -1.0, %v1314_v28  ;;  %v836_v38 = vmul.f32 1.442695, %v792_v16  ;;  %v1729_v40 = vadd.f32 %v720_v22, %v584_v17  ;;  %v1102_v41 = vadd.f32 %v1101_v35, %v1100_v30  ;;  %v1197_v42 = vpop.f32.mrf.mxu1 }
 0x136   :  { %v1103_v43 = vpop.f32.mrf.mxu0 }
 0x137   :  { %v892_v44 = vsel %vm762_vm15, %v1684_v39, %v1012_v36  ;;  %1321 = vpow2.f32 %v836_v38  ;;  %v793_v31 = vmin.f32 %v1729_v40, 0.0  ;;  %v728_v32 = vpop.f32.mrf.mxu1  ;;  %v589_v47 = vadd.f32 %v1102_v41, %v1585_v3 }
 0x138   :  { %v1316_v37 = vpop.eup %1315  ;;  %918 = vst [vmem:[%s1799_s3 + $0x70] sm:$0xff] %v892_v44  ;;  %v1104_v48 = vpop.f32.mrf.mxu0  ;;  %vm767_vm4 = vcmp.gt.f32.partialorder %v1729_v40, 0.0 }
 0x139   :  { %v1013_v49 = vadd.f32 -1.0, %v1316_v37  ;;  %v838_v50 = vmul.f32 1.442695, %v793_v31  ;;  %v1105_v51 = vadd.f32 %v1104_v48, %v1103_v43  ;;  %v1198_v52 = vpop.f32.mrf.mxu1  ;;  %v1739_v55 = vadd.f32 %v725_v33, %v589_v47 }
 0x13a   :  { %v1106_v39 = vpop.f32.mrf.mxu0 }
 0x13b   :  { %v893_v56 = vsel %vm763_vm0, %v1693_v53, %v1013_v49  ;;  %1323 = vpow2.f32 %v838_v50  ;;  %v592_v46 = vadd.f32 %v1105_v51, %v1585_v3  ;;  %v733_v58 = vpop.f32.mrf.mxu1  ;;  %v794_v45 = vmin.f32 %v1739_v55, 0.0 }
 0x13c   :  { %919 = vst [vmem:[%s1799_s3 + $0x78] sm:$0xff] %v893_v56  ;;  %v1107_v59 = vpop.f32.mrf.mxu0  ;;  %v1318_v60 = vpop.eup %1317  ;;  %vm768_vm5 = vcmp.gt.f32.partialorder %v1739_v55, 0.0 }
 0x13d   :  { %v1747_v61 = vadd.f32 %v728_v32, %v592_v46  ;;  %v1108_v62 = vadd.f32 %v1107_v59, %v1106_v39  ;;  %v1201_v63 = vpop.f32.mrf.mxu1  ;;  %v1014_v0 = vadd.f32 -1.0, %v1318_v60  ;;  %v840_v2 = vmul.f32 1.442695, %v794_v45 }
 0x13e   :  { %v1109_v5 = vpop.f32.mrf.mxu0 }
 0x13f   :  { %v795_v53 = vmin.f32 %v1747_v61, 0.0  ;;  %v597_v54 = vadd.f32 %v1108_v62, %v1585_v3  ;;  %v736_v6 = vpop.f32.mrf.mxu1  ;;  %v894_v57 = vsel %vm764_vm1, %v1703_v1, %v1014_v0  ;;  %1325 = vpow2.f32 %v840_v2 }
 0x140   :  { %v1320_v7 = vpop.eup %1319  ;;  %v1110_v9 = vpop.f32.mrf.mxu0  ;;  %920 = vst [vmem:[%s1799_s3 + $0x80] sm:$0xff] %v894_v57  ;;  %vm769_vm6 = vcmp.gt.f32.partialorder %v1747_v61, 0.0 }
 0x141   :  { %v1015_v10 = vadd.f32 -1.0, %v1320_v7  ;;  %v842_v11 = vmul.f32 1.442695, %v795_v53  ;;  %v734_v12 = vadd.f32 %v733_v58, %v597_v54  ;;  %v1111_v14 = vadd.f32 %v1110_v9, %v1109_v5  ;;  %v1202_v15 = vpop.f32.mrf.mxu1 }
 0x142   :  { %v1112_v4 = vpop.f32.mrf.mxu0 }
 0x143   :  { %v895_v18 = vsel %vm765_vm2, %v1711_v13, %v1015_v10  ;;  %1327 = vpow2.f32 %v842_v11  ;;  %v796_v20 = vmin.f32 %v734_v12, 0.0  ;;  %v741_v19 = vpop.f32.mrf.mxu1  ;;  %v600_v21 = vadd.f32 %v1111_v14, %v1585_v3 }
 0x144   :  { %v1322_v1 = vpop.eup %1321  ;;  %921 = vst [vmem:[%s1799_s3 + $0x88] sm:$0xff] %v895_v18  ;;  %v1113_v22 = vpop.f32.mrf.mxu0  ;;  %vm770_vm7 = vcmp.gt.f32.partialorder %v734_v12, 0.0 }
 0x145   :  { %v1016_v8 = vadd.f32 -1.0, %v1322_v1  ;;  %v844_v23 = vmul.f32 1.442695, %v796_v20  ;;  %v1114_v24 = vadd.f32 %v1113_v22, %v1112_v4  ;;  %v1205_v26 = vpop.f32.mrf.mxu1  ;;  %v737_v27 = vadd.f32 %v736_v6, %v600_v21 }
 0x146   :  { %v1115_v29 = vpop.f32.mrf.mxu0 }
 0x147   :  { %v896_v13 = vsel %vm766_vm3, %v1720_v25, %v1016_v8  ;;  %1329 = vpow2.f32 %v844_v23  ;;  %v605_v30 = vadd.f32 %v1114_v24, %v1585_v3  ;;  %v744_v16 = vpop.f32.mrf.mxu1  ;;  %v797_v33 = vmin.f32 %v737_v27, 0.0 }
 0x148   :  { %v1324_v17 = vpop.eup %1323  ;;  %922 = vst [vmem:[%s1799_s3 + $0x90] sm:$0xff] %v896_v13  ;;  %v1116_v28 = vpop.f32.mrf.mxu0  ;;  %vm771_vm8 = vcmp.gt.f32.partialorder %v737_v27, 0.0 }
 0x149   :  { %v1017_v34 = vadd.f32 -1.0, %v1324_v17  ;;  %v742_v35 = vadd.f32 %v741_v19, %v605_v30  ;;  %v1117_v36 = vadd.f32 %v1116_v28, %v1115_v29  ;;  %v1206_v38 = vpop.f32.mrf.mxu1  ;;  %v846_v41 = vmul.f32 1.442695, %v797_v33 }
 0x14b   :  { %v897_v25 = vsel %vm767_vm4, %v1729_v40, %v1017_v34  ;;  %v798_v42 = vmin.f32 %v742_v35, 0.0  ;;  %v608_v43 = vadd.f32 %v1117_v36, %v1585_v3  ;;  %1331 = vpow2.f32 %v846_v41 }
 0x14c   :  { %923 = vst [vmem:[%s1799_s3 + $0x98] sm:$0xff] %v897_v25  ;;  %v1326_v44 = vpop.eup %1325  ;;  %vm772_vm9 = vcmp.gt.f32.partialorder %v742_v35, 0.0 }
 0x14d   :  { %v848_v31 = vmul.f32 1.442695, %v798_v42  ;;  %v745_v32 = vadd.f32 %v744_v16, %v608_v43  ;;  %v1018_v37 = vadd.f32 -1.0, %v1326_v44 }
 0x14f   :  { %1333 = vpow2.f32 %v848_v31  ;;  %v799_v47 = vmin.f32 %v745_v32, 0.0  ;;  %v898_v49 = vsel %vm768_vm5, %v1739_v55, %v1018_v37  ;;  %vm773_vm10 = vcmp.gt.f32.partialorder %v745_v32, 0.0 }
 0x150   :  { %v1328_v48 = vpop.eup %1327  ;;  %924 = vst [vmem:[%s1799_s3 + $0xa0] sm:$0xff] %v898_v49 }
 0x151   :  { %v1019_v3 = vadd.f32 -1.0, %v1328_v48  ;;  %v850_v40 = vmul.f32 1.442695, %v799_v47 }
 0x153   :  { %v899_v50 = vsel %vm769_vm6, %v1747_v61, %v1019_v3  ;;  %1335 = vpow2.f32 %v850_v40 }
 0x154   :  { %v1330_v51 = vpop.eup %1329  ;;  %925 = vst [vmem:[%s1799_s3 + $0xa8] sm:$0xff] %v899_v50 }
 0x155   :  { %v1020_v52 = vadd.f32 -1.0, %v1330_v51 }
 0x157   :  { %v900_v39 = vsel %vm770_vm7, %v734_v12, %v1020_v52 }
 0x158   :  { %926 = vst [vmem:[%s1799_s3 + $0xb0] sm:$0xff] %v900_v39  ;;  %v1332_v55 = vpop.eup %1331 }
 0x159   :  { %v1021_v56 = vadd.f32 -1.0, %v1332_v55 }
 0x15b   :  { %v901_v58 = vsel %vm771_vm8, %v737_v27, %v1021_v56 }
 0x15c   :  { %v1334_v46 = vpop.eup %1333  ;;  %927 = vst [vmem:[%s1799_s3 + $0xb8] sm:$0xff] %v901_v58 }
 0x15d   :  { %v1022_v45 = vadd.f32 -1.0, %v1334_v46 }
 0x15f   :  { %v902_v59 = vsel %vm772_vm9, %v742_v35, %v1022_v45 }
 0x160   :  { %v1336_v60 = vpop.eup %1335  ;;  %928 = vst [vmem:[%s1799_s3 + $0xc0] sm:$0xff] %v902_v59 }
 0x161   :  { %v1023_v61 = vadd.f32 -1.0, %v1336_v60 }
 0x163   :  { %v903_v62 = vsel %vm773_vm10, %v745_v32, %v1023_v61 }
 0x164   :  { %929 = vst [vmem:[%s1799_s3 + $0xc8] sm:$0xff] %v903_v62 }

// kernel: vae_forward.12
= control target key start
LH: loop header
LB: loop body
LE: loop exit
PB: predicated region body
PF: predicated region fallthrough
CT: control target
= control target key end

     0   :  { %s2977_s12 = smov 0   ;;  %s2979_s13 = smov 0   ;;  %s3623_s0 = inlined_call_operand.vmem [shape: bf16[16,1664], index: 0, kind: input, shape index: {}]   ;;  %s3624_s1 = inlined_call_operand.vmem [shape: bf16[1664,256], index: 1, kind: input, shape index: {}]   ;;  %s3625_s2 = inlined_call_operand.vmem [shape: f32[1,256], index: 2, kind: input, shape index: {}]   ;;  %s3626_s3 = inlined_call_operand.vmem [shape: f32[16,256], index: 3, kind: output, shape index: {}]  }
   0x1   :  { %s2981_s14 = smov 0   ;;  %s2983_s15 = smov 0  }
   0x2   :  { %s2985_s16 = smov 0  }
   0x3 LB: > { %s22_s17 = sadd.s32 1, %s2949_s15  ;;  %s2451_s18 = sadd.s32 4294967295, %s2953_s16   ;;  %s2953_s16 = sphi %s2985_s16, %s13_s16   ;;  %s2949_s15 = sphi %s2983_s15, %s3631_s15   ;;  %s2945_s14 = sphi %s2981_s14, %s3630_s14   ;;  %s2941_s13 = sphi %s2979_s13, %s3629_s13   ;;  %s2937_s12 = sphi %s2977_s12, %s3628_s12  }
   0x4   : > { %p23_p0 = scmp.ge.s32.totalorder %s22_s17, 2  ;;  %p65_p1 = scmp.ne.s32.totalorder %s2941_s13, %s2937_s12 }
   0x5   : > { %p66_p2 = scmp.eq.s32.totalorder %s2953_s16, 0  ;;  %p123_p4 = scmp.eq.s32.totalorder %s2451_s18, 1 }
   0x6   : > { %s3633_s17 = smov (%p23_p0, %s22_s17), 0  ;;  %s58_s20 = sadd.s32 1, %s2941_s13 }
   0x7   : > { %p67_p3 = por %p66_p2, %p65_p1  ;;  %s55_s19 = ssub.s32 %s2949_s15, %s3633_s17 }
   0x8   : > { %p56_p5 = scmp.eq.s32.totalorder %s55_s19, 0  ;;  %p3012_p6 = por %p123_p4, %p65_p1 }
   0x9   : > { %p2455_p7 = scmp.ge.s32.totalorder %s2953_s16, 2 }
   0xa   : > { %s3017_s22 = scalar_select %p56_p5, %s2941_s13, %s58_s20  }
   0xb   : > { %155 = sbr.rel (%p2455_p7) target bundleno = 159 (0x9f), region = 20 }
  0x10   : > { %158 = sbr.rel (!%p67_p3) target bundleno = 159 (0x9f), region = 24  ;;  %s160_s23 = sand.u32 (%p67_p3), 1, %s2941_s13  }
  0x11   : > { %s2456_s24 = sshll.u32 (%p67_p3), %s2949_s15, 2  ;;  %s2744_s25 = smul.u32 (%p67_p3), 832, %s160_s23 }
  0x12   : > { %s3025_s28 = scalar_lea.vmem (%p67_p3), %s3624_s1, %s2456_s24 }
  0x13   : > { %v181_v0 = vld [vmem:[%s3025_s28] sm:$0xf] (%p67_p3)  ;;  %v183_v1 = vld [vmem:[%s3025_s28 + $0x8] sm:$0xf] (%p67_p3)  ;;  %v185_v2 = vld [vmem:[%s3025_s28 + $0x10] sm:$0xf] (%p67_p3) }
  0x14   : > { %v187_v3 = vld [vmem:[%s3025_s28 + $0x18] sm:$0xf] (%p67_p3)  ;;  %v189_v4 = vld [vmem:[%s3025_s28 + $0x20] sm:$0xf] (%p67_p3)  ;;  %s3032_s29 = scalar_lea.vmem (%p67_p3), [#allocation2], %s2744_s25 }
  0x15   : > { %182 = vst [vmem:[%s3032_s29] sm:$0xf] %v181_v0  ;;  %184 = vst [vmem:[%s3032_s29 + $0x4] sm:$0xf] %v183_v1  ;;  %v191_v5 = vld [vmem:[%s3025_s28 + $0x28] sm:$0xf] }
  0x16   : > { %186 = vst [vmem:[%s3032_s29 + $0x8] sm:$0xf] %v185_v2  ;;  %188 = vst [vmem:[%s3032_s29 + $0xc] sm:$0xf] %v187_v3  ;;  %v193_v6 = vld [vmem:[%s3025_s28 + $0x30] sm:$0xf] }
  0x17   : > { %190 = vst [vmem:[%s3032_s29 + $0x10] sm:$0xf] %v189_v4  ;;  %v195_v7 = vld [vmem:[%s3025_s28 + $0x38] sm:$0xf]  ;;  %192 = vst [vmem:[%s3032_s29 + $0x14] sm:$0xf] %v191_v5 }
  0x18   : > { %194 = vst [vmem:[%s3032_s29 + $0x18] sm:$0xf] %v193_v6  ;;  %196 = vst [vmem:[%s3032_s29 + $0x1c] sm:$0xf] %v195_v7  ;;  %v197_v8 = vld [vmem:[%s3025_s28 + $0x40] sm:$0xf] }
  0x19   : > { %v199_v9 = vld [vmem:[%s3025_s28 + $0x48] sm:$0xf]  ;;  %v201_v10 = vld [vmem:[%s3025_s28 + $0x50] sm:$0xf]  ;;  %198 = vst [vmem:[%s3032_s29 + $0x20] sm:$0xf] %v197_v8 }
  0x1a   : > { %200 = vst [vmem:[%s3032_s29 + $0x24] sm:$0xf] %v199_v9  ;;  %202 = vst [vmem:[%s3032_s29 + $0x28] sm:$0xf] %v201_v10  ;;  %v203_v11 = vld [vmem:[%s3025_s28 + $0x58] sm:$0xf] }
  0x1b   : > { %v205_v12 = vld [vmem:[%s3025_s28 + $0x60] sm:$0xf]  ;;  %v207_v13 = vld [vmem:[%s3025_s28 + $0x68] sm:$0xf]  ;;  %204 = vst [vmem:[%s3032_s29 + $0x2c] sm:$0xf] %v203_v11 }
  0x1c   : > { %206 = vst [vmem:[%s3032_s29 + $0x30] sm:$0xf] %v205_v12  ;;  %208 = vst [vmem:[%s3032_s29 + $0x34] sm:$0xf] %v207_v13  ;;  %v209_v14 = vld [vmem:[%s3025_s28 + $0x70] sm:$0xf] }
  0x1d   : > { %v211_v15 = vld [vmem:[%s3025_s28 + $0x78] sm:$0xf]  ;;  %v213_v16 = vld [vmem:[%s3025_s28 + $0x80] sm:$0xf]  ;;  %210 = vst [vmem:[%s3032_s29 + $0x38] sm:$0xf] %v209_v14 }
  0x1e   : > { %212 = vst [vmem:[%s3032_s29 + $0x3c] sm:$0xf] %v211_v15  ;;  %214 = vst [vmem:[%s3032_s29 + $0x40] sm:$0xf] %v213_v16  ;;  %v215_v17 = vld [vmem:[%s3025_s28 + $0x88] sm:$0xf] }
  0x1f   : > { %v217_v18 = vld [vmem:[%s3025_s28 + $0x90] sm:$0xf]  ;;  %v219_v19 = vld [vmem:[%s3025_s28 + $0x98] sm:$0xf]  ;;  %216 = vst [vmem:[%s3032_s29 + $0x44] sm:$0xf] %v215_v17 }
  0x20   : > { %218 = vst [vmem:[%s3032_s29 + $0x48] sm:$0xf] %v217_v18  ;;  %220 = vst [vmem:[%s3032_s29 + $0x4c] sm:$0xf] %v219_v19  ;;  %v221_v20 = vld [vmem:[%s3025_s28 + $0xa0] sm:$0xf] }
  0x21   : > { %v223_v21 = vld [vmem:[%s3025_s28 + $0xa8] sm:$0xf]  ;;  %v225_v22 = vld [vmem:[%s3025_s28 + $0xb0] sm:$0xf]  ;;  %222 = vst [vmem:[%s3032_s29 + $0x50] sm:$0xf] %v221_v20 }
  0x22   : > { %224 = vst [vmem:[%s3032_s29 + $0x54] sm:$0xf] %v223_v21  ;;  %226 = vst [vmem:[%s3032_s29 + $0x58] sm:$0xf] %v225_v22  ;;  %v227_v23 = vld [vmem:[%s3025_s28 + $0xb8] sm:$0xf] }
  0x23   : > { %v229_v24 = vld [vmem:[%s3025_s28 + $0xc0] sm:$0xf]  ;;  %v231_v25 = vld [vmem:[%s3025_s28 + $0xc8] sm:$0xf]  ;;  %228 = vst [vmem:[%s3032_s29 + $0x5c] sm:$0xf] %v227_v23 }
  0x24   : > { %230 = vst [vmem:[%s3032_s29 + $0x60] sm:$0xf] %v229_v24  ;;  %232 = vst [vmem:[%s3032_s29 + $0x64] sm:$0xf] %v231_v25  ;;  %v233_v26 = vld [vmem:[%s3025_s28 + $0xd0] sm:$0xf] }
  0x25   : > { %v235_v27 = vld [vmem:[%s3025_s28 + $0xd8] sm:$0xf]  ;;  %v237_v28 = vld [vmem:[%s3025_s28 + $0xe0] sm:$0xf]  ;;  %234 = vst [vmem:[%s3032_s29 + $0x68] sm:$0xf] %v233_v26 }
  0x26   : > { %236 = vst [vmem:[%s3032_s29 + $0x6c] sm:$0xf] %v235_v27  ;;  %238 = vst [vmem:[%s3032_s29 + $0x70] sm:$0xf] %v237_v28  ;;  %v239_v29 = vld [vmem:[%s3025_s28 + $0xe8] sm:$0xf] }
  0x27   : > { %v241_v30 = vld [vmem:[%s3025_s28 + $0xf0] sm:$0xf]  ;;  %v243_v31 = vld [vmem:[%s3025_s28 + $0xf8] sm:$0xf]  ;;  %240 = vst [vmem:[%s3032_s29 + $0x74] sm:$0xf] %v239_v29 }
  0x28   : > { %242 = vst [vmem:[%s3032_s29 + $0x78] sm:$0xf] %v241_v30  ;;  %244 = vst [vmem:[%s3032_s29 + $0x7c] sm:$0xf] %v243_v31  ;;  %v245_v32 = vld [vmem:[%s3025_s28 + $0x100] sm:$0xf] }
  0x29   : > { %v247_v33 = vld [vmem:[%s3025_s28 + $0x108] sm:$0xf]  ;;  %v249_v34 = vld [vmem:[%s3025_s28 + $0x110] sm:$0xf]  ;;  %246 = vst [vmem:[%s3032_s29 + $0x80] sm:$0xf] %v245_v32 }
  0x2a   : > { %248 = vst [vmem:[%s3032_s29 + $0x84] sm:$0xf] %v247_v33  ;;  %250 = vst [vmem:[%s3032_s29 + $0x88] sm:$0xf] %v249_v34  ;;  %v251_v35 = vld [vmem:[%s3025_s28 + $0x118] sm:$0xf] }
  0x2b   : > { %v253_v36 = vld [vmem:[%s3025_s28 + $0x120] sm:$0xf]  ;;  %v255_v37 = vld [vmem:[%s3025_s28 + $0x128] sm:$0xf]  ;;  %252 = vst [vmem:[%s3032_s29 + $0x8c] sm:$0xf] %v251_v35 }
  0x2c   : > { %254 = vst [vmem:[%s3032_s29 + $0x90] sm:$0xf] %v253_v36  ;;  %256 = vst [vmem:[%s3032_s29 + $0x94] sm:$0xf] %v255_v37  ;;  %v257_v38 = vld [vmem:[%s3025_s28 + $0x130] sm:$0xf] }
  0x2d   : > { %v259_v39 = vld [vmem:[%s3025_s28 + $0x138] sm:$0xf]  ;;  %v261_v40 = vld [vmem:[%s3025_s28 + $0x140] sm:$0xf]  ;;  %258 = vst [vmem:[%s3032_s29 + $0x98] sm:$0xf] %v257_v38 }
  0x2e   : > { %260 = vst [vmem:[%s3032_s29 + $0x9c] sm:$0xf] %v259_v39  ;;  %262 = vst [vmem:[%s3032_s29 + $0xa0] sm:$0xf] %v261_v40  ;;  %v263_v41 = vld [vmem:[%s3025_s28 + $0x148] sm:$0xf] }
  0x2f   : > { %v265_v42 = vld [vmem:[%s3025_s28 + $0x150] sm:$0xf]  ;;  %v267_v43 = vld [vmem:[%s3025_s28 + $0x158] sm:$0xf]  ;;  %264 = vst [vmem:[%s3032_s29 + $0xa4] sm:$0xf] %v263_v41 }
  0x30   : > { %266 = vst [vmem:[%s3032_s29 + $0xa8] sm:$0xf] %v265_v42  ;;  %268 = vst [vmem:[%s3032_s29 + $0xac] sm:$0xf] %v267_v43  ;;  %v269_v44 = vld [vmem:[%s3025_s28 + $0x160] sm:$0xf] }
  0x31   : > { %v271_v45 = vld [vmem:[%s3025_s28 + $0x168] sm:$0xf]  ;;  %v273_v46 = vld [vmem:[%s3025_s28 + $0x170] sm:$0xf]  ;;  %270 = vst [vmem:[%s3032_s29 + $0xb0] sm:$0xf] %v269_v44 }
  0x32   : > { %272 = vst [vmem:[%s3032_s29 + $0xb4] sm:$0xf] %v271_v45  ;;  %274 = vst [vmem:[%s3032_s29 + $0xb8] sm:$0xf] %v273_v46  ;;  %v275_v47 = vld [vmem:[%s3025_s28 + $0x178] sm:$0xf] }
  0x33   : > { %v277_v48 = vld [vmem:[%s3025_s28 + $0x180] sm:$0xf]  ;;  %v279_v49 = vld [vmem:[%s3025_s28 + $0x188] sm:$0xf]  ;;  %276 = vst [vmem:[%s3032_s29 + $0xbc] sm:$0xf] %v275_v47 }
  0x34   : > { %278 = vst [vmem:[%s3032_s29 + $0xc0] sm:$0xf] %v277_v48  ;;  %280 = vst [vmem:[%s3032_s29 + $0xc4] sm:$0xf] %v279_v49  ;;  %v281_v50 = vld [vmem:[%s3025_s28 + $0x190] sm:$0xf] }
  0x35   : > { %v283_v51 = vld [vmem:[%s3025_s28 + $0x198] sm:$0xf]  ;;  %v285_v52 = vld [vmem:[%s3025_s28 + $0x1a0] sm:$0xf]  ;;  %282 = vst [vmem:[%s3032_s29 + $0xc8] sm:$0xf] %v281_v50 }
  0x36   : > { %284 = vst [vmem:[%s3032_s29 + $0xcc] sm:$0xf] %v283_v51  ;;  %286 = vst [vmem:[%s3032_s29 + $0xd0] sm:$0xf] %v285_v52  ;;  %v287_v53 = vld [vmem:[%s3025_s28 + $0x1a8] sm:$0xf] }
  0x37   : > { %v289_v54 = vld [vmem:[%s3025_s28 + $0x1b0] sm:$0xf]  ;;  %v291_v55 = vld [vmem:[%s3025_s28 + $0x1b8] sm:$0xf]  ;;  %288 = vst [vmem:[%s3032_s29 + $0xd4] sm:$0xf] %v287_v53 }
  0x38   : > { %290 = vst [vmem:[%s3032_s29 + $0xd8] sm:$0xf] %v289_v54  ;;  %292 = vst [vmem:[%s3032_s29 + $0xdc] sm:$0xf] %v291_v55  ;;  %v293_v56 = vld [vmem:[%s3025_s28 + $0x1c0] sm:$0xf] }
  0x39   : > { %v295_v57 = vld [vmem:[%s3025_s28 + $0x1c8] sm:$0xf]  ;;  %v297_v58 = vld [vmem:[%s3025_s28 + $0x1d0] sm:$0xf]  ;;  %294 = vst [vmem:[%s3032_s29 + $0xe0] sm:$0xf] %v293_v56 }
  0x3a   : > { %296 = vst [vmem:[%s3032_s29 + $0xe4] sm:$0xf] %v295_v57  ;;  %298 = vst [vmem:[%s3032_s29 + $0xe8] sm:$0xf] %v297_v58  ;;  %v299_v59 = vld [vmem:[%s3025_s28 + $0x1d8] sm:$0xf] }
  0x3b   : > { %v301_v60 = vld [vmem:[%s3025_s28 + $0x1e0] sm:$0xf]  ;;  %v303_v61 = vld [vmem:[%s3025_s28 + $0x1e8] sm:$0xf]  ;;  %300 = vst [vmem:[%s3032_s29 + $0xec] sm:$0xf] %v299_v59 }
  0x3c   : > { %302 = vst [vmem:[%s3032_s29 + $0xf0] sm:$0xf] %v301_v60  ;;  %304 = vst [vmem:[%s3032_s29 + $0xf4] sm:$0xf] %v303_v61  ;;  %v305_v62 = vld [vmem:[%s3025_s28 + $0x1f0] sm:$0xf] }
  0x3d   : > { %v307_v63 = vld [vmem:[%s3025_s28 + $0x1f8] sm:$0xf]  ;;  %v309_v0 = vld [vmem:[%s3025_s28 + $0x200] sm:$0xf]  ;;  %306 = vst [vmem:[%s3032_s29 + $0xf8] sm:$0xf] %v305_v62 }
  0x3e   : > { %308 = vst [vmem:[%s3032_s29 + $0xfc] sm:$0xf] %v307_v63  ;;  %310 = vst [vmem:[%s3032_s29 + $0x100] sm:$0xf] %v309_v0  ;;  %v311_v1 = vld [vmem:[%s3025_s28 + $0x208] sm:$0xf] }
  0x3f   : > { %v313_v2 = vld [vmem:[%s3025_s28 + $0x210] sm:$0xf]  ;;  %v315_v3 = vld [vmem:[%s3025_s28 + $0x218] sm:$0xf]  ;;  %312 = vst [vmem:[%s3032_s29 + $0x104] sm:$0xf] %v311_v1 }
  0x40   : > { %314 = vst [vmem:[%s3032_s29 + $0x108] sm:$0xf] %v313_v2  ;;  %316 = vst [vmem:[%s3032_s29 + $0x10c] sm:$0xf] %v315_v3  ;;  %v317_v4 = vld [vmem:[%s3025_s28 + $0x220] sm:$0xf] }
  0x41   : > { %v319_v5 = vld [vmem:[%s3025_s28 + $0x228] sm:$0xf]  ;;  %v321_v6 = vld [vmem:[%s3025_s28 + $0x230] sm:$0xf]  ;;  %318 = vst [vmem:[%s3032_s29 + $0x110] sm:$0xf] %v317_v4 }
  0x42   : > { %320 = vst [vmem:[%s3032_s29 + $0x114] sm:$0xf] %v319_v5  ;;  %322 = vst [vmem:[%s3032_s29 + $0x118] sm:$0xf] %v321_v6  ;;  %v323_v7 = vld [vmem:[%s3025_s28 + $0x238] sm:$0xf] }
  0x43   : > { %v325_v8 = vld [vmem:[%s3025_s28 + $0x240] sm:$0xf]  ;;  %v327_v9 = vld [vmem:[%s3025_s28 + $0x248] sm:$0xf]  ;;  %324 = vst [vmem:[%s3032_s29 + $0x11c] sm:$0xf] %v323_v7 }
  0x44   : > { %326 = vst [vmem:[%s3032_s29 + $0x120] sm:$0xf] %v325_v8  ;;  %328 = vst [vmem:[%s3032_s29 + $0x124] sm:$0xf] %v327_v9  ;;  %v329_v10 = vld [vmem:[%s3025_s28 + $0x250] sm:$0xf] }
  0x45   : > { %v331_v11 = vld [vmem:[%s3025_s28 + $0x258] sm:$0xf]  ;;  %v333_v12 = vld [vmem:[%s3025_s28 + $0x260] sm:$0xf]  ;;  %330 = vst [vmem:[%s3032_s29 + $0x128] sm:$0xf] %v329_v10 }
  0x46   : > { %332 = vst [vmem:[%s3032_s29 + $0x12c] sm:$0xf] %v331_v11  ;;  %334 = vst [vmem:[%s3032_s29 + $0x130] sm:$0xf] %v333_v12  ;;  %v335_v13 = vld [vmem:[%s3025_s28 + $0x268] sm:$0xf] }
  0x47   : > { %v337_v14 = vld [vmem:[%s3025_s28 + $0x270] sm:$0xf]  ;;  %v339_v15 = vld [vmem:[%s3025_s28 + $0x278] sm:$0xf]  ;;  %336 = vst [vmem:[%s3032_s29 + $0x134] sm:$0xf] %v335_v13 }
  0x48   : > { %338 = vst [vmem:[%s3032_s29 + $0x138] sm:$0xf] %v337_v14  ;;  %340 = vst [vmem:[%s3032_s29 + $0x13c] sm:$0xf] %v339_v15  ;;  %v341_v16 = vld [vmem:[%s3025_s28 + $0x280] sm:$0xf] }
  0x49   : > { %v343_v17 = vld [vmem:[%s3025_s28 + $0x288] sm:$0xf]  ;;  %v345_v18 = vld [vmem:[%s3025_s28 + $0x290] sm:$0xf]  ;;  %342 = vst [vmem:[%s3032_s29 + $0x140] sm:$0xf] %v341_v16 }
  0x4a   : > { %344 = vst [vmem:[%s3032_s29 + $0x144] sm:$0xf] %v343_v17  ;;  %346 = vst [vmem:[%s3032_s29 + $0x148] sm:$0xf] %v345_v18  ;;  %v347_v19 = vld [vmem:[%s3025_s28 + $0x298] sm:$0xf] }
  0x4b   : > { %v349_v20 = vld [vmem:[%s3025_s28 + $0x2a0] sm:$0xf]  ;;  %v351_v21 = vld [vmem:[%s3025_s28 + $0x2a8] sm:$0xf]  ;;  %348 = vst [vmem:[%s3032_s29 + $0x14c] sm:$0xf] %v347_v19 }
  0x4c   : > { %350 = vst [vmem:[%s3032_s29 + $0x150] sm:$0xf] %v349_v20  ;;  %352 = vst [vmem:[%s3032_s29 + $0x154] sm:$0xf] %v351_v21  ;;  %v353_v22 = vld [vmem:[%s3025_s28 + $0x2b0] sm:$0xf] }
  0x4d   : > { %v355_v23 = vld [vmem:[%s3025_s28 + $0x2b8] sm:$0xf]  ;;  %v357_v24 = vld [vmem:[%s3025_s28 + $0x2c0] sm:$0xf]  ;;  %354 = vst [vmem:[%s3032_s29 + $0x158] sm:$0xf] %v353_v22 }
  0x4e   : > { %356 = vst [vmem:[%s3032_s29 + $0x15c] sm:$0xf] %v355_v23  ;;  %358 = vst [vmem:[%s3032_s29 + $0x160] sm:$0xf] %v357_v24  ;;  %v359_v25 = vld [vmem:[%s3025_s28 + $0x2c8] sm:$0xf] }
  0x4f   : > { %v361_v26 = vld [vmem:[%s3025_s28 + $0x2d0] sm:$0xf]  ;;  %v363_v27 = vld [vmem:[%s3025_s28 + $0x2d8] sm:$0xf]  ;;  %360 = vst [vmem:[%s3032_s29 + $0x164] sm:$0xf] %v359_v25 }
  0x50   : > { %362 = vst [vmem:[%s3032_s29 + $0x168] sm:$0xf] %v361_v26  ;;  %364 = vst [vmem:[%s3032_s29 + $0x16c] sm:$0xf] %v363_v27  ;;  %v365_v28 = vld [vmem:[%s3025_s28 + $0x2e0] sm:$0xf] }
  0x51   : > { %v367_v29 = vld [vmem:[%s3025_s28 + $0x2e8] sm:$0xf]  ;;  %v369_v30 = vld [vmem:[%s3025_s28 + $0x2f0] sm:$0xf]  ;;  %366 = vst [vmem:[%s3032_s29 + $0x170] sm:$0xf] %v365_v28 }
  0x52   : > { %368 = vst [vmem:[%s3032_s29 + $0x174] sm:$0xf] %v367_v29  ;;  %370 = vst [vmem:[%s3032_s29 + $0x178] sm:$0xf] %v369_v30  ;;  %v371_v31 = vld [vmem:[%s3025_s28 + $0x2f8] sm:$0xf] }
  0x53   : > { %v373_v32 = vld [vmem:[%s3025_s28 + $0x300] sm:$0xf]  ;;  %v375_v33 = vld [vmem:[%s3025_s28 + $0x308] sm:$0xf]  ;;  %372 = vst [vmem:[%s3032_s29 + $0x17c] sm:$0xf] %v371_v31 }
  0x54   : > { %374 = vst [vmem:[%s3032_s29 + $0x180] sm:$0xf] %v373_v32  ;;  %376 = vst [vmem:[%s3032_s29 + $0x184] sm:$0xf] %v375_v33  ;;  %v377_v34 = vld [vmem:[%s3025_s28 + $0x310] sm:$0xf] }
  0x55   : > { %v379_v35 = vld [vmem:[%s3025_s28 + $0x318] sm:$0xf]  ;;  %v381_v36 = vld [vmem:[%s3025_s28 + $0x320] sm:$0xf]  ;;  %378 = vst [vmem:[%s3032_s29 + $0x188] sm:$0xf] %v377_v34 }
  0x56   : > { %380 = vst [vmem:[%s3032_s29 + $0x18c] sm:$0xf] %v379_v35  ;;  %382 = vst [vmem:[%s3032_s29 + $0x190] sm:$0xf] %v381_v36  ;;  %v383_v37 = vld [vmem:[%s3025_s28 + $0x328] sm:$0xf] }
  0x57   : > { %v385_v38 = vld [vmem:[%s3025_s28 + $0x330] sm:$0xf]  ;;  %v387_v39 = vld [vmem:[%s3025_s28 + $0x338] sm:$0xf]  ;;  %384 = vst [vmem:[%s3032_s29 + $0x194] sm:$0xf] %v383_v37 }
  0x58   : > { %386 = vst [vmem:[%s3032_s29 + $0x198] sm:$0xf] %v385_v38  ;;  %388 = vst [vmem:[%s3032_s29 + $0x19c] sm:$0xf] %v387_v39  ;;  %v389_v40 = vld [vmem:[%s3025_s28 + $0x340] sm:$0xf] }
  0x59   : > { %v391_v41 = vld [vmem:[%s3025_s28 + $0x348] sm:$0xf]  ;;  %v393_v42 = vld [vmem:[%s3025_s28 + $0x350] sm:$0xf]  ;;  %390 = vst [vmem:[%s3032_s29 + $0x1a0] sm:$0xf] %v389_v40 }
  0x5a   : > { %392 = vst [vmem:[%s3032_s29 + $0x1a4] sm:$0xf] %v391_v41  ;;  %394 = vst [vmem:[%s3032_s29 + $0x1a8] sm:$0xf] %v393_v42  ;;  %v395_v43 = vld [vmem:[%s3025_s28 + $0x358] sm:$0xf] }
  0x5b   : > { %v397_v44 = vld [vmem:[%s3025_s28 + $0x360] sm:$0xf]  ;;  %v399_v45 = vld [vmem:[%s3025_s28 + $0x368] sm:$0xf]  ;;  %396 = vst [vmem:[%s3032_s29 + $0x1ac] sm:$0xf] %v395_v43 }
  0x5c   : > { %398 = vst [vmem:[%s3032_s29 + $0x1b0] sm:$0xf] %v397_v44  ;;  %400 = vst [vmem:[%s3032_s29 + $0x1b4] sm:$0xf] %v399_v45  ;;  %v401_v46 = vld [vmem:[%s3025_s28 + $0x370] sm:$0xf] }
  0x5d   : > { %v403_v47 = vld [vmem:[%s3025_s28 + $0x378] sm:$0xf]  ;;  %v405_v48 = vld [vmem:[%s3025_s28 + $0x380] sm:$0xf]  ;;  %402 = vst [vmem:[%s3032_s29 + $0x1b8] sm:$0xf] %v401_v46 }
  0x5e   : > { %404 = vst [vmem:[%s3032_s29 + $0x1bc] sm:$0xf] %v403_v47  ;;  %406 = vst [vmem:[%s3032_s29 + $0x1c0] sm:$0xf] %v405_v48  ;;  %v407_v49 = vld [vmem:[%s3025_s28 + $0x388] sm:$0xf] }
  0x5f   : > { %v409_v50 = vld [vmem:[%s3025_s28 + $0x390] sm:$0xf]  ;;  %v411_v51 = vld [vmem:[%s3025_s28 + $0x398] sm:$0xf]  ;;  %408 = vst [vmem:[%s3032_s29 + $0x1c4] sm:$0xf] %v407_v49 }
  0x60   : > { %410 = vst [vmem:[%s3032_s29 + $0x1c8] sm:$0xf] %v409_v50  ;;  %412 = vst [vmem:[%s3032_s29 + $0x1cc] sm:$0xf] %v411_v51  ;;  %v413_v52 = vld [vmem:[%s3025_s28 + $0x3a0] sm:$0xf] }
  0x61   : > { %v415_v53 = vld [vmem:[%s3025_s28 + $0x3a8] sm:$0xf]  ;;  %v417_v54 = vld [vmem:[%s3025_s28 + $0x3b0] sm:$0xf]  ;;  %414 = vst [vmem:[%s3032_s29 + $0x1d0] sm:$0xf] %v413_v52 }
  0x62   : > { %416 = vst [vmem:[%s3032_s29 + $0x1d4] sm:$0xf] %v415_v53  ;;  %418 = vst [vmem:[%s3032_s29 + $0x1d8] sm:$0xf] %v417_v54  ;;  %v419_v55 = vld [vmem:[%s3025_s28 + $0x3b8] sm:$0xf] }
  0x63   : > { %v421_v56 = vld [vmem:[%s3025_s28 + $0x3c0] sm:$0xf]  ;;  %v423_v57 = vld [vmem:[%s3025_s28 + $0x3c8] sm:$0xf]  ;;  %420 = vst [vmem:[%s3032_s29 + $0x1dc] sm:$0xf] %v419_v55 }
  0x64   : > { %422 = vst [vmem:[%s3032_s29 + $0x1e0] sm:$0xf] %v421_v56  ;;  %424 = vst [vmem:[%s3032_s29 + $0x1e4] sm:$0xf] %v423_v57  ;;  %v425_v58 = vld [vmem:[%s3025_s28 + $0x3d0] sm:$0xf] }
  0x65   : > { %v427_v59 = vld [vmem:[%s3025_s28 + $0x3d8] sm:$0xf]  ;;  %v429_v60 = vld [vmem:[%s3025_s28 + $0x3e0] sm:$0xf]  ;;  %426 = vst [vmem:[%s3032_s29 + $0x1e8] sm:$0xf] %v425_v58 }
  0x66   : > { %428 = vst [vmem:[%s3032_s29 + $0x1ec] sm:$0xf] %v427_v59  ;;  %430 = vst [vmem:[%s3032_s29 + $0x1f0] sm:$0xf] %v429_v60  ;;  %v431_v61 = vld [vmem:[%s3025_s28 + $0x3e8] sm:$0xf] }
  0x67   : > { %v433_v62 = vld [vmem:[%s3025_s28 + $0x3f0] sm:$0xf]  ;;  %v435_v63 = vld [vmem:[%s3025_s28 + $0x3f8] sm:$0xf]  ;;  %432 = vst [vmem:[%s3032_s29 + $0x1f4] sm:$0xf] %v431_v61 }
  0x68   : > { %434 = vst [vmem:[%s3032_s29 + $0x1f8] sm:$0xf] %v433_v62  ;;  %436 = vst [vmem:[%s3032_s29 + $0x1fc] sm:$0xf] %v435_v63  ;;  %v437_v0 = vld [vmem:[%s3025_s28 + $0x400] sm:$0xf] }
  0x69   : > { %v439_v1 = vld [vmem:[%s3025_s28 + $0x408] sm:$0xf]  ;;  %v441_v2 = vld [vmem:[%s3025_s28 + $0x410] sm:$0xf]  ;;  %438 = vst [vmem:[%s3032_s29 + $0x200] sm:$0xf] %v437_v0 }
  0x6a   : > { %440 = vst [vmem:[%s3032_s29 + $0x204] sm:$0xf] %v439_v1  ;;  %442 = vst [vmem:[%s3032_s29 + $0x208] sm:$0xf] %v441_v2  ;;  %v443_v3 = vld [vmem:[%s3025_s28 + $0x418] sm:$0xf] }
  0x6b   : > { %v445_v4 = vld [vmem:[%s3025_s28 + $0x420] sm:$0xf]  ;;  %v447_v5 = vld [vmem:[%s3025_s28 + $0x428] sm:$0xf]  ;;  %444 = vst [vmem:[%s3032_s29 + $0x20c] sm:$0xf] %v443_v3 }
  0x6c   : > { %446 = vst [vmem:[%s3032_s29 + $0x210] sm:$0xf] %v445_v4  ;;  %448 = vst [vmem:[%s3032_s29 + $0x214] sm:$0xf] %v447_v5  ;;  %v449_v6 = vld [vmem:[%s3025_s28 + $0x430] sm:$0xf] }
  0x6d   : > { %v451_v7 = vld [vmem:[%s3025_s28 + $0x438] sm:$0xf]  ;;  %v453_v8 = vld [vmem:[%s3025_s28 + $0x440] sm:$0xf]  ;;  %450 = vst [vmem:[%s3032_s29 + $0x218] sm:$0xf] %v449_v6 }
  0x6e   : > { %452 = vst [vmem:[%s3032_s29 + $0x21c] sm:$0xf] %v451_v7  ;;  %454 = vst [vmem:[%s3032_s29 + $0x220] sm:$0xf] %v453_v8  ;;  %v455_v9 = vld [vmem:[%s3025_s28 + $0x448] sm:$0xf] }
  0x6f   : > { %v457_v10 = vld [vmem:[%s3025_s28 + $0x450] sm:$0xf]  ;;  %v459_v11 = vld [vmem:[%s3025_s28 + $0x458] sm:$0xf]  ;;  %456 = vst [vmem:[%s3032_s29 + $0x224] sm:$0xf] %v455_v9 }
  0x70   : > { %458 = vst [vmem:[%s3032_s29 + $0x228] sm:$0xf] %v457_v10  ;;  %460 = vst [vmem:[%s3032_s29 + $0x22c] sm:$0xf] %v459_v11  ;;  %v461_v12 = vld [vmem:[%s3025_s28 + $0x460] sm:$0xf] }
  0x71   : > { %v463_v13 = vld [vmem:[%s3025_s28 + $0x468] sm:$0xf]  ;;  %v465_v14 = vld [vmem:[%s3025_s28 + $0x470] sm:$0xf]  ;;  %462 = vst [vmem:[%s3032_s29 + $0x230] sm:$0xf] %v461_v12 }
  0x72   : > { %464 = vst [vmem:[%s3032_s29 + $0x234] sm:$0xf] %v463_v13  ;;  %466 = vst [vmem:[%s3032_s29 + $0x238] sm:$0xf] %v465_v14  ;;  %v467_v15 = vld [vmem:[%s3025_s28 + $0x478] sm:$0xf] }
  0x73   : > { %v469_v16 = vld [vmem:[%s3025_s28 + $0x480] sm:$0xf]  ;;  %v471_v17 = vld [vmem:[%s3025_s28 + $0x488] sm:$0xf]  ;;  %468 = vst [vmem:[%s3032_s29 + $0x23c] sm:$0xf] %v467_v15 }
  0x74   : > { %470 = vst [vmem:[%s3032_s29 + $0x240] sm:$0xf] %v469_v16  ;;  %472 = vst [vmem:[%s3032_s29 + $0x244] sm:$0xf] %v471_v17  ;;  %v473_v18 = vld [vmem:[%s3025_s28 + $0x490] sm:$0xf] }
  0x75   : > { %v475_v19 = vld [vmem:[%s3025_s28 + $0x498] sm:$0xf]  ;;  %v477_v20 = vld [vmem:[%s3025_s28 + $0x4a0] sm:$0xf]  ;;  %474 = vst [vmem:[%s3032_s29 + $0x248] sm:$0xf] %v473_v18 }
  0x76   : > { %476 = vst [vmem:[%s3032_s29 + $0x24c] sm:$0xf] %v475_v19  ;;  %478 = vst [vmem:[%s3032_s29 + $0x250] sm:$0xf] %v477_v20  ;;  %v479_v21 = vld [vmem:[%s3025_s28 + $0x4a8] sm:$0xf] }
  0x77   : > { %v481_v22 = vld [vmem:[%s3025_s28 + $0x4b0] sm:$0xf]  ;;  %v483_v23 = vld [vmem:[%s3025_s28 + $0x4b8] sm:$0xf]  ;;  %480 = vst [vmem:[%s3032_s29 + $0x254] sm:$0xf] %v479_v21 }
  0x78   : > { %482 = vst [vmem:[%s3032_s29 + $0x258] sm:$0xf] %v481_v22  ;;  %484 = vst [vmem:[%s3032_s29 + $0x25c] sm:$0xf] %v483_v23  ;;  %v485_v24 = vld [vmem:[%s3025_s28 + $0x4c0] sm:$0xf] }
  0x79   : > { %v487_v25 = vld [vmem:[%s3025_s28 + $0x4c8] sm:$0xf]  ;;  %v489_v26 = vld [vmem:[%s3025_s28 + $0x4d0] sm:$0xf]  ;;  %486 = vst [vmem:[%s3032_s29 + $0x260] sm:$0xf] %v485_v24 }
  0x7a   : > { %488 = vst [vmem:[%s3032_s29 + $0x264] sm:$0xf] %v487_v25  ;;  %490 = vst [vmem:[%s3032_s29 + $0x268] sm:$0xf] %v489_v26  ;;  %v491_v27 = vld [vmem:[%s3025_s28 + $0x4d8] sm:$0xf] }
  0x7b   : > { %v493_v28 = vld [vmem:[%s3025_s28 + $0x4e0] sm:$0xf]  ;;  %v495_v29 = vld [vmem:[%s3025_s28 + $0x4e8] sm:$0xf]  ;;  %492 = vst [vmem:[%s3032_s29 + $0x26c] sm:$0xf] %v491_v27 }
  0x7c   : > { %494 = vst [vmem:[%s3032_s29 + $0x270] sm:$0xf] %v493_v28  ;;  %496 = vst [vmem:[%s3032_s29 + $0x274] sm:$0xf] %v495_v29  ;;  %v497_v30 = vld [vmem:[%s3025_s28 + $0x4f0] sm:$0xf] }
  0x7d   : > { %v499_v31 = vld [vmem:[%s3025_s28 + $0x4f8] sm:$0xf]  ;;  %v501_v32 = vld [vmem:[%s3025_s28 + $0x500] sm:$0xf]  ;;  %498 = vst [vmem:[%s3032_s29 + $0x278] sm:$0xf] %v497_v30 }
  0x7e   : > { %500 = vst [vmem:[%s3032_s29 + $0x27c] sm:$0xf] %v499_v31  ;;  %502 = vst [vmem:[%s3032_s29 + $0x280] sm:$0xf] %v501_v32  ;;  %v503_v33 = vld [vmem:[%s3025_s28 + $0x508] sm:$0xf] }
  0x7f   : > { %v505_v34 = vld [vmem:[%s3025_s28 + $0x510] sm:$0xf]  ;;  %v507_v35 = vld [vmem:[%s3025_s28 + $0x518] sm:$0xf]  ;;  %504 = vst [vmem:[%s3032_s29 + $0x284] sm:$0xf] %v503_v33 }
  0x80   : > { %506 = vst [vmem:[%s3032_s29 + $0x288] sm:$0xf] %v505_v34  ;;  %508 = vst [vmem:[%s3032_s29 + $0x28c] sm:$0xf] %v507_v35  ;;  %v509_v36 = vld [vmem:[%s3025_s28 + $0x520] sm:$0xf] }
  0x81   : > { %v511_v37 = vld [vmem:[%s3025_s28 + $0x528] sm:$0xf]  ;;  %v513_v38 = vld [vmem:[%s3025_s28 + $0x530] sm:$0xf]  ;;  %510 = vst [vmem:[%s3032_s29 + $0x290] sm:$0xf] %v509_v36 }
  0x82   : > { %512 = vst [vmem:[%s3032_s29 + $0x294] sm:$0xf] %v511_v37  ;;  %514 = vst [vmem:[%s3032_s29 + $0x298] sm:$0xf] %v513_v38  ;;  %v515_v39 = vld [vmem:[%s3025_s28 + $0x538] sm:$0xf] }
  0x83   : > { %v517_v40 = vld [vmem:[%s3025_s28 + $0x540] sm:$0xf]  ;;  %v519_v41 = vld [vmem:[%s3025_s28 + $0x548] sm:$0xf]  ;;  %516 = vst [vmem:[%s3032_s29 + $0x29c] sm:$0xf] %v515_v39 }
  0x84   : > { %518 = vst [vmem:[%s3032_s29 + $0x2a0] sm:$0xf] %v517_v40  ;;  %520 = vst [vmem:[%s3032_s29 + $0x2a4] sm:$0xf] %v519_v41  ;;  %v521_v42 = vld [vmem:[%s3025_s28 + $0x550] sm:$0xf] }
  0x85   : > { %v523_v43 = vld [vmem:[%s3025_s28 + $0x558] sm:$0xf]  ;;  %v525_v44 = vld [vmem:[%s3025_s28 + $0x560] sm:$0xf]  ;;  %522 = vst [vmem:[%s3032_s29 + $0x2a8] sm:$0xf] %v521_v42 }
  0x86   : > { %524 = vst [vmem:[%s3032_s29 + $0x2ac] sm:$0xf] %v523_v43  ;;  %526 = vst [vmem:[%s3032_s29 + $0x2b0] sm:$0xf] %v525_v44  ;;  %v527_v45 = vld [vmem:[%s3025_s28 + $0x568] sm:$0xf] }
  0x87   : > { %v529_v46 = vld [vmem:[%s3025_s28 + $0x570] sm:$0xf]  ;;  %v531_v47 = vld [vmem:[%s3025_s28 + $0x578] sm:$0xf]  ;;  %528 = vst [vmem:[%s3032_s29 + $0x2b4] sm:$0xf] %v527_v45 }
  0x88   : > { %530 = vst [vmem:[%s3032_s29 + $0x2b8] sm:$0xf] %v529_v46  ;;  %532 = vst [vmem:[%s3032_s29 + $0x2bc] sm:$0xf] %v531_v47  ;;  %v533_v48 = vld [vmem:[%s3025_s28 + $0x580] sm:$0xf] }
  0x89   : > { %v535_v49 = vld [vmem:[%s3025_s28 + $0x588] sm:$0xf]  ;;  %v537_v50 = vld [vmem:[%s3025_s28 + $0x590] sm:$0xf]  ;;  %534 = vst [vmem:[%s3032_s29 + $0x2c0] sm:$0xf] %v533_v48 }
  0x8a   : > { %536 = vst [vmem:[%s3032_s29 + $0x2c4] sm:$0xf] %v535_v49  ;;  %538 = vst [vmem:[%s3032_s29 + $0x2c8] sm:$0xf] %v537_v50  ;;  %v539_v51 = vld [vmem:[%s3025_s28 + $0x598] sm:$0xf] }
  0x8b   : > { %v541_v52 = vld [vmem:[%s3025_s28 + $0x5a0] sm:$0xf]  ;;  %v543_v53 = vld [vmem:[%s3025_s28 + $0x5a8] sm:$0xf]  ;;  %540 = vst [vmem:[%s3032_s29 + $0x2cc] sm:$0xf] %v539_v51 }
  0x8c   : > { %542 = vst [vmem:[%s3032_s29 + $0x2d0] sm:$0xf] %v541_v52  ;;  %544 = vst [vmem:[%s3032_s29 + $0x2d4] sm:$0xf] %v543_v53  ;;  %v545_v54 = vld [vmem:[%s3025_s28 + $0x5b0] sm:$0xf] }
  0x8d   : > { %v547_v55 = vld [vmem:[%s3025_s28 + $0x5b8] sm:$0xf]  ;;  %v549_v56 = vld [vmem:[%s3025_s28 + $0x5c0] sm:$0xf]  ;;  %546 = vst [vmem:[%s3032_s29 + $0x2d8] sm:$0xf] %v545_v54 }
  0x8e   : > { %548 = vst [vmem:[%s3032_s29 + $0x2dc] sm:$0xf] %v547_v55  ;;  %550 = vst [vmem:[%s3032_s29 + $0x2e0] sm:$0xf] %v549_v56  ;;  %v551_v57 = vld [vmem:[%s3025_s28 + $0x5c8] sm:$0xf] }
  0x8f   : > { %v553_v58 = vld [vmem:[%s3025_s28 + $0x5d0] sm:$0xf]  ;;  %v555_v59 = vld [vmem:[%s3025_s28 + $0x5d8] sm:$0xf]  ;;  %552 = vst [vmem:[%s3032_s29 + $0x2e4] sm:$0xf] %v551_v57 }
  0x90   : > { %554 = vst [vmem:[%s3032_s29 + $0x2e8] sm:$0xf] %v553_v58  ;;  %556 = vst [vmem:[%s3032_s29 + $0x2ec] sm:$0xf] %v555_v59  ;;  %v557_v60 = vld [vmem:[%s3025_s28 + $0x5e0] sm:$0xf] }
  0x91   : > { %v559_v61 = vld [vmem:[%s3025_s28 + $0x5e8] sm:$0xf]  ;;  %v561_v62 = vld [vmem:[%s3025_s28 + $0x5f0] sm:$0xf]  ;;  %558 = vst [vmem:[%s3032_s29 + $0x2f0] sm:$0xf] %v557_v60 }
  0x92   : > { %560 = vst [vmem:[%s3032_s29 + $0x2f4] sm:$0xf] %v559_v61  ;;  %562 = vst [vmem:[%s3032_s29 + $0x2f8] sm:$0xf] %v561_v62  ;;  %v563_v63 = vld [vmem:[%s3025_s28 + $0x5f8] sm:$0xf] }
  0x93   : > { %v565_v0 = vld [vmem:[%s3025_s28 + $0x600] sm:$0xf]  ;;  %v567_v1 = vld [vmem:[%s3025_s28 + $0x608] sm:$0xf]  ;;  %564 = vst [vmem:[%s3032_s29 + $0x2fc] sm:$0xf] %v563_v63 }
  0x94   : > { %566 = vst [vmem:[%s3032_s29 + $0x300] sm:$0xf] %v565_v0  ;;  %568 = vst [vmem:[%s3032_s29 + $0x304] sm:$0xf] %v567_v1  ;;  %v569_v2 = vld [vmem:[%s3025_s28 + $0x610] sm:$0xf] }
  0x95   : > { %v571_v3 = vld [vmem:[%s3025_s28 + $0x618] sm:$0xf]  ;;  %v573_v4 = vld [vmem:[%s3025_s28 + $0x620] sm:$0xf]  ;;  %570 = vst [vmem:[%s3032_s29 + $0x308] sm:$0xf] %v569_v2 }
  0x96   : > { %572 = vst [vmem:[%s3032_s29 + $0x30c] sm:$0xf] %v571_v3  ;;  %574 = vst [vmem:[%s3032_s29 + $0x310] sm:$0xf] %v573_v4  ;;  %v575_v5 = vld [vmem:[%s3025_s28 + $0x628] sm:$0xf] }
  0x97   : > { %v577_v6 = vld [vmem:[%s3025_s28 + $0x630] sm:$0xf]  ;;  %v579_v7 = vld [vmem:[%s3025_s28 + $0x638] sm:$0xf]  ;;  %576 = vst [vmem:[%s3032_s29 + $0x314] sm:$0xf] %v575_v5 }
  0x98   : > { %578 = vst [vmem:[%s3032_s29 + $0x318] sm:$0xf] %v577_v6  ;;  %580 = vst [vmem:[%s3032_s29 + $0x31c] sm:$0xf] %v579_v7  ;;  %v581_v8 = vld [vmem:[%s3025_s28 + $0x640] sm:$0xf] }
  0x99   : > { %v583_v9 = vld [vmem:[%s3025_s28 + $0x648] sm:$0xf]  ;;  %v585_v10 = vld [vmem:[%s3025_s28 + $0x650] sm:$0xf]  ;;  %582 = vst [vmem:[%s3032_s29 + $0x320] sm:$0xf] %v581_v8 }
  0x9a   : > { %584 = vst [vmem:[%s3032_s29 + $0x324] sm:$0xf] %v583_v9  ;;  %586 = vst [vmem:[%s3032_s29 + $0x328] sm:$0xf] %v585_v10  ;;  %v587_v11 = vld [vmem:[%s3025_s28 + $0x658] sm:$0xf] }
  0x9b   : > { %v589_v12 = vld [vmem:[%s3025_s28 + $0x660] sm:$0xf]  ;;  %v591_v13 = vld [vmem:[%s3025_s28 + $0x668] sm:$0xf]  ;;  %588 = vst [vmem:[%s3032_s29 + $0x32c] sm:$0xf] %v587_v11 }
  0x9c   : > { %590 = vst [vmem:[%s3032_s29 + $0x330] sm:$0xf] %v589_v12  ;;  %592 = vst [vmem:[%s3032_s29 + $0x334] sm:$0xf] %v591_v13  ;;  %v593_v14 = vld [vmem:[%s3025_s28 + $0x670] sm:$0xf] }
  0x9d   : > { %v595_v15 = vld [vmem:[%s3025_s28 + $0x678] sm:$0xf]  ;;  %594 = vst [vmem:[%s3032_s29 + $0x338] sm:$0xf] %v593_v14 }
  0x9e   : > { %596 = vst [vmem:[%s3032_s29 + $0x33c] sm:$0xf] %v595_v15 }
  0x9f PF: > { %p2457_p8 = scmp.ge.s32.totalorder %s2953_s16, 1  ;;  %p1041_p9 = scmp.lt.s32.totalorder %s2953_s16, 3 }
  0xa1   : > { %p1042_p10 = pnand %p2457_p8, %p1041_p9 }
  0xa2   : > { %s1048_s30 = sand.u32 (!%p1042_p10), 1, %s2937_s12   ;;  %p1086_p11 = scmp.lt.s32.totalorder (!%p1042_p10), %s2945_s14, 1 }
  0xa3   : > { %1045 = sbr.rel (%p1042_p10) target bundleno = 527 (0x20f), region = 69  ;;  %s2458_s26 = sshll.u32 (!%p1042_p10), %s1048_s30, 4 }
  0xa4   : > { %s2745_s4 = smul.u32 (!%p1042_p10), 832, %s1048_s30  ;;  %s1078_s27 = scalar_lea.vmem (!%p1042_p10), [#allocation3], %s2458_s26 }
  0xa6   : > { %s3456_s9 = scalar_lea.vmem (!%p1042_p10), [#allocation2], %s2745_s4 }
  0xa8   : > { %v2821_v16 = vld [vmem:[%s3623_s0 + $0x4] ss:$52 sps:$4 sm:$0xff]   ;;  %v2826_v17 = vld [vmem:[%s3623_s0 + $0xc] ss:$52 sps:$4 sm:$0xff]   ;;  %v2792_v22 = vld [vmem:[%s3456_s9 + $0x70] sm:$0xff]   ;;  %vm2956_vm0 = vmmov 0  }
  0xa9   : > { %2042 = vmatprep.mubr.bf16.mxu0 %v2821_v16  ;;  %v2788_v18 = vld [vmem:[%s3456_s9 + $0x78] sm:$0xff]   ;;  %2083 = vmatprep.mubr.bf16.mxu1 %v2826_v17  ;;  %v2793_v23 = vld [vmem:[%s3456_s9 + $0x30] sm:$0xff]   ;;  %v2796_v26 = vld [vmem:[%s3456_s9 + $0x68] sm:$0xff]   ;;  %s2580_s28 = sshll.u32 (%p3012_p6), %s2945_s14, 3 }
  0xaa   : > { %v2789_v19 = vld [vmem:[%s3456_s9 + $0x38] sm:$0xff]   ;;  %2583 = vmatprep.subr.bf16.mxu0 %v2788_v18  ;;  %v2794_v24 = vld [vmem:[%s3456_s9 + $0xf0] sm:$0xff]   ;;  %v2797_v27 = vld [vmem:[%s3456_s9 + $0x28] sm:$0xff]   ;;  %s2322_s29 = scalar_lea.vmem (%p3012_p6), %s3626_s3, %s2580_s28 }
  0xab   : > { %v2790_v20 = vld [vmem:[%s3456_s9 + $0xf8] sm:$0xff]   ;;  %2584 = vmatpush3.bf16.msra.mxu0 %v2789_v19  ;;  %v2795_v25 = vld [vmem:[%s3456_s9 + $0xb0] sm:$0xff]   ;;  %v2798_v28 = vld [vmem:[%s3456_s9 + $0xe8] sm:$0xff]  }
  0xac   : > { %v2791_v21 = vld [vmem:[%s3456_s9 + $0xb8] sm:$0xff]   ;;  %2605 = vmatprep.subr.bf16.mxu1 %v2790_v20  ;;  %2585 = vmatprep.subr.bf16.mxu0 %v2792_v22  ;;  %v2799_v29 = vld [vmem:[%s3456_s9 + $0xa8] sm:$0xff]   ;;  %v2800_v30 = vld [vmem:[%s3456_s9 + $0x60] sm:$0xff]  }
  0xad   : > { %2606 = vmatpush3.bf16.msra.mxu1 %v2791_v21  ;;  %v2801_v31 = vld [vmem:[%s3456_s9 + $0x20] sm:$0xff]   ;;  %v2804_v34 = vld [vmem:[%s3456_s9 + $0x58] sm:$0xff]   ;;  %v2808_v38 = vld [vmem:[%s3456_s9 + $0x50] sm:$0xff]  }
  0xae   : > { %2607 = vmatprep.subr.bf16.mxu1 %v2794_v24  ;;  %v2802_v32 = vld [vmem:[%s3456_s9 + $0xe0] sm:$0xff]   ;;  %v2805_v35 = vld [vmem:[%s3456_s9 + $0x18] sm:$0xff]   ;;  %v2809_v39 = vld [vmem:[%s3456_s9 + $0x10] sm:$0xff]  }
  0xaf   : > { %2586 = vmatpush3.bf16.msra.mxu0 %v2793_v23  ;;  %v2803_v33 = vld [vmem:[%s3456_s9 + $0xa0] sm:$0xff]   ;;  %v2806_v36 = vld [vmem:[%s3456_s9 + $0xd8] sm:$0xff]   ;;  %v2810_v40 = vld [vmem:[%s3456_s9 + $0xd0] sm:$0xff]  }
  0xb0   : > { %2587 = vmatprep.subr.bf16.mxu0 %v2796_v26  ;;  %v2807_v37 = vld [vmem:[%s3456_s9 + $0x98] sm:$0xff]   ;;  %v2811_v41 = vld [vmem:[%s3456_s9 + $0x90] sm:$0xff]   ;;  %v2812_v42 = vld [vmem:[%s3456_s9 + $0x48] sm:$0xff]  }
  0xb1   : > { %2608 = vmatpush3.bf16.msra.mxu1 %v2795_v25  ;;  %v2813_v43 = vld [vmem:[%s3456_s9 + $0x8] sm:$0xff]   ;;  %v2816_v46 = vld [vmem:[%s3456_s9 + $0x40] sm:$0xff]   ;;  %v2823_v53 = vld [vmem:[%s3456_s9 + $0x178] sm:$0xff]  }
  0xb2   : > { %2609 = vmatprep.subr.bf16.mxu1 %v2798_v28  ;;  %v2814_v44 = vld [vmem:[%s3456_s9 + $0xc8] sm:$0xff]   ;;  %v2819_v47 = vld [vmem:[%s3623_s0] ss:$52 sps:$4 sm:$0xff]   ;;  %v2827_v54 = vld [vmem:[%s3456_s9 + $0x138] sm:$0xff]  }
  0xb3   : > { %2588 = vmatpush3.bf16.msra.mxu0 %v2797_v27  ;;  %v2815_v45 = vld [vmem:[%s3456_s9 + $0x88] sm:$0xff]   ;;  %v2817_v48 = vld [vmem:[%s3456_s9] sm:$0xff]   ;;  %v2828_v55 = vld [vmem:[%s3456_s9 + $0x1f8] sm:$0xff]  }
  0xb4   : > { %2589 = vmatprep.subr.bf16.mxu0 %v2800_v30  ;;  %v2859_v49 = vld [vmem:[%s3623_s0 + $0x14] ss:$52 sps:$4 sm:$0xff]   ;;  %v2818_v50 = vld [vmem:[%s3456_s9 + $0xc0] sm:$0xff]   ;;  %v2829_v56 = vld [vmem:[%s3456_s9 + $0x1b8] sm:$0xff]  }
  0xb5   : > { %2610 = vmatpush3.bf16.msra.mxu1 %v2799_v29  ;;  %v2824_v51 = vld [vmem:[%s3623_s0 + $0x8] ss:$52 sps:$4 sm:$0xff]   ;;  %v2822_v52 = vld [vmem:[%s3456_s9 + $0x80] sm:$0xff]   ;;  %v2830_v57 = vld [vmem:[%s3456_s9 + $0x170] sm:$0xff]  }
  0xb6   : > { %2611 = vmatprep.subr.bf16.mxu1 %v2802_v32  ;;  %v2831_v58 = vld [vmem:[%s3456_s9 + $0x130] sm:$0xff]   ;;  %v2834_v61 = vld [vmem:[%s3456_s9 + $0x168] sm:$0xff]   ;;  %v2838_v1 = vld [vmem:[%s3456_s9 + $0x160] sm:$0xff]  }
  0xb7   : > { %2590 = vmatpush3.bf16.msra.mxu0 %v2801_v31  ;;  %v2832_v59 = vld [vmem:[%s3456_s9 + $0x1f0] sm:$0xff]   ;;  %v2835_v62 = vld [vmem:[%s3456_s9 + $0x128] sm:$0xff]   ;;  %v2839_v2 = vld [vmem:[%s3456_s9 + $0x120] sm:$0xff]  }
  0xb8   : > { %2591 = vmatprep.subr.bf16.mxu0 %v2804_v34  ;;  %v2833_v60 = vld [vmem:[%s3456_s9 + $0x1b0] sm:$0xff]   ;;  %v2836_v63 = vld [vmem:[%s3456_s9 + $0x1e8] sm:$0xff]   ;;  %v2840_v3 = vld [vmem:[%s3456_s9 + $0x1e0] sm:$0xff]  }
  0xb9   : > { %2612 = vmatpush3.bf16.msra.mxu1 %v2803_v33  ;;  %v2837_v0 = vld [vmem:[%s3456_s9 + $0x1a8] sm:$0xff]   ;;  %v2841_v4 = vld [vmem:[%s3456_s9 + $0x1a0] sm:$0xff]   ;;  %v2842_v5 = vld [vmem:[%s3456_s9 + $0x158] sm:$0xff]  }
  0xba   : > { %2613 = vmatprep.subr.bf16.mxu1 %v2806_v36  ;;  %v2843_v6 = vld [vmem:[%s3456_s9 + $0x118] sm:$0xff]   ;;  %v2846_v9 = vld [vmem:[%s3456_s9 + $0x150] sm:$0xff]   ;;  %v2850_v13 = vld [vmem:[%s3456_s9 + $0x148] sm:$0xff]  }
  0xbb   : > { %2592 = vmatpush3.bf16.msra.mxu0 %v2805_v35  ;;  %v2844_v7 = vld [vmem:[%s3456_s9 + $0x1d8] sm:$0xff]   ;;  %v2847_v10 = vld [vmem:[%s3456_s9 + $0x110] sm:$0xff]   ;;  %v2851_v14 = vld [vmem:[%s3456_s9 + $0x108] sm:$0xff]  }
  0xbc   : > { %2593 = vmatprep.subr.bf16.mxu0 %v2808_v38  ;;  %v2845_v8 = vld [vmem:[%s3456_s9 + $0x198] sm:$0xff]   ;;  %v2848_v11 = vld [vmem:[%s3456_s9 + $0x1d0] sm:$0xff]   ;;  %v2852_v15 = vld [vmem:[%s3456_s9 + $0x1c8] sm:$0xff]  }
  0xbd   : > { %2614 = vmatpush3.bf16.msra.mxu1 %v2807_v37  ;;  %v2849_v12 = vld [vmem:[%s3456_s9 + $0x190] sm:$0xff]   ;;  %v2853_v16 = vld [vmem:[%s3456_s9 + $0x188] sm:$0xff]   ;;  %v2854_v17 = vld [vmem:[%s3456_s9 + $0x140] sm:$0xff]  }
  0xbe   : > { %2615 = vmatprep.subr.bf16.mxu1 %v2810_v40  ;;  %v2857_v18 = vld [vmem:[%s3623_s0 + $0x10] ss:$52 sps:$4 sm:$0xff]   ;;  %v2861_v22 = vld [vmem:[%s3456_s9 + $0x278] sm:$0xff]   ;;  %v2872_v32 = vld [vmem:[%s3456_s9 + $0x268] sm:$0xff]  }
  0xbf   : > { %2594 = vmatpush3.bf16.msra.mxu0 %v2809_v39  ;;  %v2855_v19 = vld [vmem:[%s3456_s9 + $0x100] sm:$0xff]   ;;  %v2862_v23 = vld [vmem:[%s3623_s0 + $0x18] ss:$52 sps:$4 sm:$0xff]   ;;  %v2864_v24 = vld [vmem:[%s3623_s0 + $0x1c] ss:$52 sps:$4 sm:$0xff]  }
  0xc0   : > { %2595 = vmatprep.subr.bf16.mxu0 %v2812_v42  ;;  %v2856_v20 = vld [vmem:[%s3456_s9 + $0x1c0] sm:$0xff]   ;;  %v2865_v25 = vld [vmem:[%s3456_s9 + $0x238] sm:$0xff]   ;;  %v2868_v28 = vld [vmem:[%s3456_s9 + $0x270] sm:$0xff]  }
  0xc1   : > { %2616 = vmatpush3.bf16.msra.mxu1 %v2811_v41  ;;  %v2860_v21 = vld [vmem:[%s3456_s9 + $0x180] sm:$0xff]   ;;  %v2866_v26 = vld [vmem:[%s3456_s9 + $0x2f8] sm:$0xff]   ;;  %v2869_v29 = vld [vmem:[%s3456_s9 + $0x230] sm:$0xff]  }
  0xc2   : > { %2617 = vmatprep.subr.bf16.mxu1 %v2814_v44  ;;  %v2867_v27 = vld [vmem:[%s3456_s9 + $0x2b8] sm:$0xff]   ;;  %v2870_v30 = vld [vmem:[%s3456_s9 + $0x2f0] sm:$0xff]   ;;  %v2873_v33 = vld [vmem:[%s3456_s9 + $0x228] sm:$0xff]  }
  0xc3   : > { %2596 = vmatpush3.bf16.msra.mxu0 %v2813_v43  ;;  %v2871_v31 = vld [vmem:[%s3456_s9 + $0x2b0] sm:$0xff]   ;;  %v2874_v34 = vld [vmem:[%s3456_s9 + $0x2e8] sm:$0xff]   ;;  %v2876_v36 = vld [vmem:[%s3456_s9 + $0x260] sm:$0xff]  }
  0xc4   : > { %2597 = vmatprep.subr.bf16.mxu0 %v2816_v46  ;;  %v2875_v35 = vld [vmem:[%s3456_s9 + $0x2a8] sm:$0xff]   ;;  %v2877_v37 = vld [vmem:[%s3456_s9 + $0x220] sm:$0xff]   ;;  %v2880_v40 = vld [vmem:[%s3456_s9 + $0x258] sm:$0xff]  }
  0xc5   : > { %2618 = vmatpush3.bf16.msra.mxu1 %v2815_v45  ;;  %v2878_v38 = vld [vmem:[%s3456_s9 + $0x2e0] sm:$0xff]   ;;  %v2881_v41 = vld [vmem:[%s3456_s9 + $0x218] sm:$0xff]   ;;  %v2884_v44 = vld [vmem:[%s3456_s9 + $0x250] sm:$0xff]  }
  0xc6   : > { %2619 = vmatprep.subr.bf16.mxu1 %v2818_v50  ;;  %v2879_v39 = vld [vmem:[%s3456_s9 + $0x2a0] sm:$0xff]   ;;  %v2882_v42 = vld [vmem:[%s3456_s9 + $0x2d8] sm:$0xff]   ;;  %v2885_v45 = vld [vmem:[%s3456_s9 + $0x210] sm:$0xff]  }
  0xc7   : > { %2598 = vmatpush3.bf16.msra.mxu0 %v2817_v48  ;;  %v2883_v43 = vld [vmem:[%s3456_s9 + $0x298] sm:$0xff]   ;;  %v2886_v46 = vld [vmem:[%s3456_s9 + $0x2d0] sm:$0xff]   ;;  %v2888_v48 = vld [vmem:[%s3456_s9 + $0x248] sm:$0xff]  }
  0xc8   : > { %2627 = vmatprep.subr.bf16.mxu0 %v2823_v53  ;;  %v2890_v50 = vld [vmem:[%s3456_s9 + $0x2c8] sm:$0xff]   ;;  %v2893_v53 = vld [vmem:[%s3456_s9 + $0x200] sm:$0xff]  }
  0xc9   : > { %2620 = vmatpush3.bf16.msra.mxu1 %v2822_v52  ;;  %v2892_v52 = vld [vmem:[%s3456_s9 + $0x240] sm:$0xff]  }
  0xca   : > { %2043 = vmatmul.mubr.bf16.vlgmr.msra.gmra.mxu0 %v2819_v47  ;;  %2649 = vmatprep.subr.bf16.mxu1 %v2828_v55  ;;  %v2887_v47 = vld [vmem:[%s3456_s9 + $0x290] sm:$0xff]  }
  0xcb   : > { %2628 = vmatpush3.bf16.msra.mxu0 %v2827_v54  ;;  %2124 = vmatprep.mubr.bf16.mxu0 %v2859_v49  ;;  %v2889_v49 = vld [vmem:[%s3456_s9 + $0x208] sm:$0xff]   ;;  %v2894_v54 = vld [vmem:[%s3456_s9 + $0x2c0] sm:$0xff]  }
  0xcc   : > { %2084 = vmatmul.mubr.bf16.vlgmr.msra.gmra.mxu1 %v2824_v51  ;;  %2629 = vmatprep.subr.bf16.mxu0 %v2830_v57  ;;  %v2891_v51 = vld [vmem:[%s3456_s9 + $0x288] sm:$0xff]   ;;  %v2895_v55 = vld [vmem:[%s3623_s0 + $0x20] ss:$52 sps:$4 sm:$0xff]  }
  0xcd   : > { %2650 = vmatpush3.bf16.msra.mxu1 %v2829_v56  ;;  %2165 = vmatprep.mubr.bf16.mxu1 %v2864_v24  ;;  %v2897_v56 = vld [vmem:[%s3623_s0 + $0x24] ss:$52 sps:$4 sm:$0xff]  }
  0xce   : > { %2651 = vmatprep.subr.bf16.mxu1 %v2832_v59  ;;  %v2898_v57 = vld [vmem:[%s3456_s9 + $0x280] sm:$0xff]   ;;  %v2899_v59 = vld [vmem:[%s3623_s0 + $0x28] ss:$52 sps:$4 sm:$0xff]  }
  0xcf   : > { %2630 = vmatpush3.bf16.msra.mxu0 %v2831_v58  ;;  %v2955_v58 = vmov 0.0  }
  0xd0   : > { %2631 = vmatprep.subr.bf16.mxu0 %v2834_v61  ;;  %v2902_v61 = vld [vmem:[%s3456_s9 + $0x338] sm:$0xff]  }
  0xd1   : > { %2652 = vmatpush3.bf16.msra.mxu1 %v2833_v60  ;;  %v2901_v60 = vld [vmem:[%s3623_s0 + $0x2c] ss:$52 sps:$4 sm:$0xff]  }
  0xd2   : > { %2653 = vmatprep.subr.bf16.mxu1 %v2836_v63  ;;  %v2904_v63 = vld [vmem:[%s3456_s9 + $0x328] sm:$0xff]  }
  0xd3   : > { %2632 = vmatpush3.bf16.msra.mxu0 %v2835_v62  ;;  %v2903_v62 = vld [vmem:[%s3456_s9 + $0x330] sm:$0xff]  }
  0xd4   : > { %2633 = vmatprep.subr.bf16.mxu0 %v2838_v1  ;;  %v2906_v1 = vld [vmem:[%s3456_s9 + $0x318] sm:$0xff]  }
  0xd5   : > { %2654 = vmatpush3.bf16.msra.mxu1 %v2837_v0  ;;  %v2905_v0 = vld [vmem:[%s3456_s9 + $0x320] sm:$0xff]  }
  0xd6   : > { %2655 = vmatprep.subr.bf16.mxu1 %v2840_v3  ;;  %v2908_v3 = vld [vmem:[%s3456_s9 + $0x308] sm:$0xff]  }
  0xd7   : > { %2634 = vmatpush3.bf16.msra.mxu0 %v2839_v2  ;;  %v2907_v2 = vld [vmem:[%s3456_s9 + $0x310] sm:$0xff]  }
  0xd8   : > { %2635 = vmatprep.subr.bf16.mxu0 %v2842_v5  ;;  %v2910_v5 = vld [vmem:[%s3623_s0 + $0x30] ss:$52 sps:$4 sm:$0xff]  }
  0xd9   : > { %2656 = vmatpush3.bf16.msra.mxu1 %v2841_v4  ;;  %v2909_v4 = vld [vmem:[%s3456_s9 + $0x300] sm:$0xff]   ;;  %s1087_s9 = scalar_select %p1086_p11, %s2945_s14, 1 }
  0xda   : > { %2657 = vmatprep.subr.bf16.mxu1 %v2844_v7 }
  0xdb   : > { %2636 = vmatpush3.bf16.msra.mxu0 %v2843_v6  ;;  %s1088_s25 = scalar_lea.vmem %s3625_s2, %s1087_s9 }
  0xdc   : > { %2637 = vmatprep.subr.bf16.mxu0 %v2846_v9 }
  0xdd   : > { %2658 = vmatpush3.bf16.msra.mxu1 %v2845_v8 }
  0xde   : > { %2659 = vmatprep.subr.bf16.mxu1 %v2848_v11 }
  0xdf   : > { %2638 = vmatpush3.bf16.msra.mxu0 %v2847_v10 }
  0xe0   : > { %2639 = vmatprep.subr.bf16.mxu0 %v2850_v13 }
  0xe1   : > { %2660 = vmatpush3.bf16.msra.mxu1 %v2849_v12 }
  0xe2   : > { %2661 = vmatprep.subr.bf16.mxu1 %v2852_v15 }
  0xe3   : > { %2640 = vmatpush3.bf16.msra.mxu0 %v2851_v14 }
  0xe4   : > { %2641 = vmatprep.subr.bf16.mxu0 %v2854_v17 }
  0xe5   : > { %2662 = vmatpush3.bf16.msra.mxu1 %v2853_v16 }
  0xe6   : > { %2663 = vmatprep.subr.bf16.mxu1 %v2856_v20 }
  0xe7   : > { %2642 = vmatpush3.bf16.msra.mxu0 %v2855_v19 }
  0xe8   : > { %2671 = vmatprep.subr.bf16.mxu0 %v2861_v22  ;;  %v2459_v22 = vld [vmem:[%s1088_s25] ss:$0 sm:$0xff] }
  0xe9   : > { %2664 = vmatpush3.bf16.msra.mxu1 %v2860_v21 }
  0xea   : > { %2125 = vmatmul.mubr.bf16.vlgmr.msra.gmra.mxu0 %v2857_v18  ;;  %2693 = vmatprep.subr.bf16.mxu1 %v2866_v26 }
  0xeb   : > { %2672 = vmatpush3.bf16.msra.mxu0 %v2865_v25  ;;  %2206 = vmatprep.mubr.bf16.mxu0 %v2897_v56 }
  0xec   : > { %2166 = vmatmul.mubr.bf16.vlgmr.msra.gmra.mxu1 %v2862_v23  ;;  %2673 = vmatprep.subr.bf16.mxu0 %v2868_v28 }
  0xed   : > { %2694 = vmatpush3.bf16.msra.mxu1 %v2867_v27  ;;  %2247 = vmatprep.mubr.bf16.mxu1 %v2901_v60 }
  0xee   : > { %2695 = vmatprep.subr.bf16.mxu1 %v2870_v30 }
  0xef   : > { %2674 = vmatpush3.bf16.msra.mxu0 %v2869_v29 }
  0xf0   : > { %2675 = vmatprep.subr.bf16.mxu0 %v2872_v32 }
  0xf1   : > { %2696 = vmatpush3.bf16.msra.mxu1 %v2871_v31 }
  0xf2   : > { %2697 = vmatprep.subr.bf16.mxu1 %v2874_v34 }
  0xf3   : > { %2676 = vmatpush3.bf16.msra.mxu0 %v2873_v33 }
  0xf4   : > { %2677 = vmatprep.subr.bf16.mxu0 %v2876_v36 }
  0xf5   : > { %2698 = vmatpush3.bf16.msra.mxu1 %v2875_v35 }
  0xf6   : > { %2699 = vmatprep.subr.bf16.mxu1 %v2878_v38 }
  0xf7   : > { %2678 = vmatpush3.bf16.msra.mxu0 %v2877_v37 }
  0xf8   : > { %2679 = vmatprep.subr.bf16.mxu0 %v2880_v40 }
  0xf9   : > { %2700 = vmatpush3.bf16.msra.mxu1 %v2879_v39 }
  0xfa   : > { %2701 = vmatprep.subr.bf16.mxu1 %v2882_v42 }
  0xfb   : > { %2680 = vmatpush3.bf16.msra.mxu0 %v2881_v41 }
  0xfc   : > { %2681 = vmatprep.subr.bf16.mxu0 %v2884_v44 }
  0xfd   : > { %2702 = vmatpush3.bf16.msra.mxu1 %v2883_v43 }
  0xfe   : > { %2703 = vmatprep.subr.bf16.mxu1 %v2886_v46 }
  0xff   : > { %2682 = vmatpush3.bf16.msra.mxu0 %v2885_v45 }
 0x100   : > { %2683 = vmatprep.subr.bf16.mxu0 %v2888_v48 }
 0x101   : > { %2704 = vmatpush3.bf16.msra.mxu1 %v2887_v47 }
 0x102   : > { %2705 = vmatprep.subr.bf16.mxu1 %v2890_v50 }
 0x103   : > { %2684 = vmatpush3.bf16.msra.mxu0 %v2889_v49 }
 0x104   : > { %2685 = vmatprep.subr.bf16.mxu0 %v2892_v52 }
 0x105   : > { %2706 = vmatpush3.bf16.msra.mxu1 %v2891_v51 }
 0x106   : > { %2707 = vmatprep.subr.bf16.mxu1 %v2894_v54 }
 0x107   : > { %2686 = vmatpush3.bf16.msra.mxu0 %v2893_v53 }
 0x108   : > { %2724 = vmatprep.subr.bf16.mxu0 %v2955_v58 }
 0x109   : > { %2708 = vmatpush3.bf16.msra.mxu1 %v2898_v57 }
 0x10a   : > { %2207 = vmatmul.mubr.bf16.vlgmr.msra.gmra.mxu0 %v2895_v55 }
 0x10b   : > { %2740 = vmatprep.mubr.msk.bf16.mxu0 %vm2956_vm0, %v2955_v58  ;;  %2725 = vmatpush3.bf16.msra.mxu0 %v2902_v61 }
 0x10c   : > { %2248 = vmatmul.mubr.bf16.vlgmr.msra.gmra.mxu1 %v2899_v59  ;;  %2726 = vmatprep.subr.bf16.mxu0 %v2955_v58 }
 0x10f   : > { %2727 = vmatpush3.bf16.msra.mxu0 %v2903_v62 }
 0x110   : > { %2728 = vmatprep.subr.bf16.mxu0 %v2955_v58 }
 0x113   : > { %2729 = vmatpush3.bf16.msra.mxu0 %v2904_v63 }
 0x114   : > { %2730 = vmatprep.subr.bf16.mxu0 %v2955_v58 }
 0x117   : > { %2731 = vmatpush3.bf16.msra.mxu0 %v2905_v0 }
 0x118   : > { %2732 = vmatprep.subr.bf16.mxu0 %v2955_v58 }
 0x11b   : > { %2733 = vmatpush3.bf16.msra.mxu0 %v2906_v1 }
 0x11c   : > { %2734 = vmatprep.subr.bf16.mxu0 %v2955_v58 }
 0x11f   : > { %2735 = vmatpush3.bf16.msra.mxu0 %v2907_v2 }
 0x120   : > { %2736 = vmatprep.subr.bf16.mxu0 %v2955_v58 }
 0x123   : > { %2737 = vmatpush3.bf16.msra.mxu0 %v2908_v3 }
 0x124   : > { %2738 = vmatprep.subr.bf16.mxu0 %v2955_v58 }
 0x127   : > { %2739 = vmatpush3.bf16.msra.mxu0 %v2909_v4 }
 0x12a   : > { %2741 = vmatmul.mubr.bf16.vlgmr.msra.gmra.mxu0 %v2910_v5 }
 0x18a   : > { %v2599_v6 = vpop.f32.mrf.mxu0 }
 0x18c   : > { %v2600_v7 = vpop.f32.mrf.mxu0  ;;  %v2621_v8 = vpop.f32.mrf.mxu1 }
 0x18d   : > { %v2601_v21 = vadd.f32 %v2600_v7, %v2599_v6 }
 0x18e   : > { %v2602_v9 = vpop.f32.mrf.mxu0  ;;  %v2622_v10 = vpop.f32.mrf.mxu1 }
 0x18f   : > { %v2045_v25 = vadd.f32 %v2601_v21, %v2459_v22  ;;  %v2623_v26 = vadd.f32 %v2622_v10, %v2621_v8 }
 0x190   : > { %v2603_v11 = vpop.f32.mrf.mxu0  ;;  %v2624_v12 = vpop.f32.mrf.mxu1 }
 0x191   : > { %v2604_v27 = vadd.f32 %v2603_v11, %v2602_v9  ;;  %v2086_v31 = vadd.f32 %v2623_v26, %v2045_v25 }
 0x192   : > { %v2625_v14 = vpop.f32.mrf.mxu1 }
 0x193   : > { %v2048_v32 = vadd.f32 %v2604_v27, %v2459_v22  ;;  %v2626_v33 = vadd.f32 %v2625_v14, %v2624_v12 }
 0x195   : > { %v2089_v39 = vadd.f32 %v2626_v33, %v2048_v32 }
 0x1aa   : > { %v2643_v13 = vpop.f32.mrf.mxu0 }
 0x1ac   : > { %v2644_v15 = vpop.f32.mrf.mxu0  ;;  %v2665_v16 = vpop.f32.mrf.mxu1 }
 0x1ad   : > { %v2645_v30 = vadd.f32 %v2644_v15, %v2643_v13 }
 0x1ae   : > { %v2646_v17 = vpop.f32.mrf.mxu0  ;;  %v2666_v18 = vpop.f32.mrf.mxu1 }
 0x1af   : > { %v2127_v36 = vadd.f32 %v2645_v30, %v2086_v31  ;;  %v2667_v37 = vadd.f32 %v2666_v18, %v2665_v16 }
 0x1b0   : > { %v2647_v19 = vpop.f32.mrf.mxu0  ;;  %v2668_v20 = vpop.f32.mrf.mxu1 }
 0x1b1   : > { %v2648_v38 = vadd.f32 %v2647_v19, %v2646_v17  ;;  %v2168_v43 = vadd.f32 %v2667_v37, %v2127_v36 }
 0x1b2   : > { %v2669_v24 = vpop.f32.mrf.mxu1 }
 0x1b3   : > { %v2130_v44 = vadd.f32 %v2648_v38, %v2089_v39  ;;  %v2670_v45 = vadd.f32 %v2669_v24, %v2668_v20 }
 0x1b5   : > { %v2171_v50 = vadd.f32 %v2670_v45, %v2130_v44 }
 0x1ca   : > { %v2687_v23 = vpop.f32.mrf.mxu0 }
 0x1cc   : > { %v2688_v28 = vpop.f32.mrf.mxu0  ;;  %v2709_v29 = vpop.f32.mrf.mxu1 }
 0x1cd   : > { %v2689_v40 = vadd.f32 %v2688_v28, %v2687_v23 }
 0x1ce   : > { %v2690_v34 = vpop.f32.mrf.mxu0  ;;  %v2710_v35 = vpop.f32.mrf.mxu1 }
 0x1cf   : > { %v2209_v46 = vadd.f32 %v2689_v40, %v2168_v43  ;;  %v2711_v47 = vadd.f32 %v2710_v35, %v2709_v29 }
 0x1d0   : > { %v2691_v41 = vpop.f32.mrf.mxu0  ;;  %v2712_v42 = vpop.f32.mrf.mxu1 }
 0x1d1   : > { %v2692_v48 = vadd.f32 %v2691_v41, %v2690_v34  ;;  %v2250_v53 = vadd.f32 %v2711_v47, %v2209_v46 }
 0x1d2   : > { %v2713_v49 = vpop.f32.mrf.mxu1 }
 0x1d3   : > { %v2212_v51 = vadd.f32 %v2692_v48, %v2171_v50  ;;  %v2714_v52 = vadd.f32 %v2713_v49, %v2712_v42 }
 0x1d5   : > { %v2253_v58 = vadd.f32 %v2714_v52, %v2212_v51 }
 0x1ea   : > { %v2290_v54 = vpop.f32.mrf.mxu0 }
 0x1eb   : > { %v2291_v55 = vadd.f32 %v2290_v54, %v2250_v53 }
 0x1ec   : > { %v2742_v56 = vpop.f32.mrf.mxu0 }
 0x1ed   : > { %v2299_v57 = vmin.f32 %v2291_v55, 0.0  ;;  %vm2297_vm1 = vcmp.gt.f32.partialorder %v2291_v55, 0.0 }
 0x1ee   : > { %v2293_v59 = vpop.f32.mrf.mxu0 }
 0x1ef   : > { %v2301_v60 = vmul.f32 1.442695, %v2299_v57  ;;  %v2294_v61 = vadd.f32 %v2293_v59, %v2253_v58 }
 0x1f0   : > { %v2743_v62 = vpop.f32.mrf.mxu0 }
 0x1f1   : > { %2911 = vpow2.f32 %v2301_v60  ;;  %v2300_v63 = vmin.f32 %v2294_v61, 0.0  ;;  %vm2298_vm2 = vcmp.gt.f32.partialorder %v2294_v61, 0.0 }
 0x1f3   : > { %v2303_v0 = vmul.f32 1.442695, %v2300_v63 }
 0x1f5   : > { %2913 = vpow2.f32 %v2303_v0 }
 0x1fe   : > { %v2912_v1 = vpop.eup %2911 }
 0x1ff   : > { %v2577_v2 = vadd.f32 -1.0, %v2912_v1 }
 0x201   : > { %v2307_v3 = vsel %vm2297_vm1, %v2291_v55, %v2577_v2 }
 0x202   : > { %v2914_v4 = vpop.eup %2913  ;;  %2309 = vst [vmem:[%s1078_s27] sm:$0xff] %v2307_v3  ;;  %2317 = sbr.rel (!%p3012_p6) target bundleno = 527 (0x20f), region = 77 }
 0x203   : > { %v2578_v5 = vadd.f32 -1.0, %v2914_v4 }
 0x205   : > { %v2308_v6 = vsel %vm2298_vm2, %v2294_v61, %v2578_v5 }
 0x206   : > { %2310 = vst [vmem:[%s1078_s27 + $0x8] sm:$0xff] %v2308_v6 }
 0x209   : > { %v2353_v7 = vld [vmem:[%s1078_s27] sm:$0xff] }
 0x20a   : > { %2354 = vst [vmem:[%s2322_s29] sm:$0xff] %v2353_v7 }
 0x20d   : > { %v2355_v8 = vld [vmem:[%s1078_s27 + $0x8] sm:$0xff] }
 0x20e   : > { %2356 = vst [vmem:[%s2322_s29 + $0x10] sm:$0xff] %v2355_v8 }
 0x20f PF: > { %s13_s16 = sadd.s32 1, %s2953_s16   ;;  %s3628_s12 = smov %s2941_s13 }
 0x210   : > { %p10_p12 = scmp.ge.s32.totalorder %s13_s16, 4   ;;  %s3629_s13 = smov %s3017_s22 }
 0x211   : > { %s3630_s14 = smov %s2949_s15  ;;  %s3631_s15 = smov %s3633_s17 }
 0x212   :  { %12 = sbr.rel (!%p10_p12) target bundleno = 3 (0x3), region = 152 }

// kernel: vae_forward.13
= control target key start
LH: loop header
LB: loop body
LE: loop exit
PB: predicated region body
PF: predicated region fallthrough
CT: control target
= control target key end

     0   :  { %v55_v34 = vlaneseq  ;;  %s552_s1 = inlined_call_operand.vmem [shape: bf16[256,256], index: 1, kind: input, shape index: {}]   ;;  %s553_s0 = inlined_call_operand.vmem [shape: bf16[16,256], index: 0, kind: input, shape index: {}]   ;;  %s554_s2 = inlined_call_operand.vmem [shape: f32[1,256], index: 2, kind: input, shape index: {}]   ;;  %s555_s4 = inlined_call_operand.vmem [shape: f32[16,256], index: 4, kind: output, shape index: {0}]   ;;  %s556_s3 = inlined_call_operand.vmem [shape: f32[16,128], index: 3, kind: input, shape index: {}]   ;;  %s557_s5 = inlined_call_operand.vmem [shape: f32[16,128], index: 5, kind: output, shape index: {1}]  }
   0x1   :  { %v338_v0 = vld [vmem:[%s552_s1 + $0x74] ss:$8 sps:$4 sm:$0xff]   ;;  %v340_v1 = vld [vmem:[%s552_s1 + $0x70] ss:$8 sps:$4 sm:$0xff]   ;;  %v341_v2 = vld [vmem:[%s552_s1 + $0x64] ss:$8 sps:$4 sm:$0xff]  }
   0x2   :  { %235 = vmatprep.subr.bf16.mxu0 %v338_v0  ;;  %v343_v3 = vld [vmem:[%s552_s1 + $0x60] ss:$8 sps:$4 sm:$0xff]   ;;  %v344_v4 = vld [vmem:[%s552_s1 + $0x54] ss:$8 sps:$4 sm:$0xff]   ;;  %v346_v5 = vld [vmem:[%s552_s1 + $0x50] ss:$8 sps:$4 sm:$0xff]  }
   0x3   :  { %236 = vmatpush1.bf16.msra.mxu0 %v340_v1  ;;  %v347_v6 = vld [vmem:[%s552_s1 + $0x44] ss:$8 sps:$4 sm:$0xff]   ;;  %v349_v7 = vld [vmem:[%s552_s1 + $0x40] ss:$8 sps:$4 sm:$0xff]   ;;  %v350_v8 = vld [vmem:[%s552_s1 + $0x34] ss:$8 sps:$4 sm:$0xff]  }
   0x4   :  { %237 = vmatprep.subr.bf16.mxu0 %v341_v2  ;;  %v352_v9 = vld [vmem:[%s552_s1 + $0x30] ss:$8 sps:$4 sm:$0xff]   ;;  %v353_v10 = vld [vmem:[%s552_s1 + $0x24] ss:$8 sps:$4 sm:$0xff]   ;;  %v355_v11 = vld [vmem:[%s552_s1 + $0x20] ss:$8 sps:$4 sm:$0xff]  }
   0x5   :  { %v356_v12 = vld [vmem:[%s552_s1 + $0x14] ss:$8 sps:$4 sm:$0xff]   ;;  %v388_v13 = vld [vmem:[%s553_s0 + $0x4] ss:$8 sps:$4 sm:$0xff]   ;;  %v358_v14 = vld [vmem:[%s552_s1 + $0x10] ss:$8 sps:$4 sm:$0xff]  }
   0x6   :  { %v359_v15 = vld [vmem:[%s552_s1 + $0x4] ss:$8 sps:$4 sm:$0xff]   ;;  %267 = vmatprep.mubr.bf16.mxu0 %v388_v13  ;;  %v361_v16 = vld [vmem:[%s552_s1] ss:$8 sps:$4 sm:$0xff]   ;;  %v362_v17 = vld [vmem:[%s552_s1 + $0xf4] ss:$8 sps:$4 sm:$0xff]  }
   0x7   :  { %238 = vmatpush1.bf16.msra.mxu0 %v343_v3  ;;  %v364_v18 = vld [vmem:[%s552_s1 + $0xf0] ss:$8 sps:$4 sm:$0xff]   ;;  %v365_v19 = vld [vmem:[%s552_s1 + $0xe4] ss:$8 sps:$4 sm:$0xff]   ;;  %v367_v20 = vld [vmem:[%s552_s1 + $0xe0] ss:$8 sps:$4 sm:$0xff]  }
   0x8   :  { %239 = vmatprep.subr.bf16.mxu0 %v344_v4  ;;  %v368_v21 = vld [vmem:[%s552_s1 + $0xd4] ss:$8 sps:$4 sm:$0xff]   ;;  %v370_v22 = vld [vmem:[%s552_s1 + $0xd0] ss:$8 sps:$4 sm:$0xff]   ;;  %v371_v23 = vld [vmem:[%s552_s1 + $0xc4] ss:$8 sps:$4 sm:$0xff]  }
   0x9   :  { %v373_v24 = vld [vmem:[%s552_s1 + $0xc0] ss:$8 sps:$4 sm:$0xff]   ;;  %v374_v25 = vld [vmem:[%s552_s1 + $0xb4] ss:$8 sps:$4 sm:$0xff]   ;;  %v376_v26 = vld [vmem:[%s552_s1 + $0xb0] ss:$8 sps:$4 sm:$0xff]  }
   0xa   :  { %v377_v27 = vld [vmem:[%s552_s1 + $0xa4] ss:$8 sps:$4 sm:$0xff]   ;;  %v379_v28 = vld [vmem:[%s552_s1 + $0xa0] ss:$8 sps:$4 sm:$0xff]   ;;  %v380_v29 = vld [vmem:[%s552_s1 + $0x94] ss:$8 sps:$4 sm:$0xff]  }
   0xb   :  { %240 = vmatpush1.bf16.msra.mxu0 %v346_v5  ;;  %v382_v30 = vld [vmem:[%s552_s1 + $0x90] ss:$8 sps:$4 sm:$0xff]   ;;  %v383_v31 = vld [vmem:[%s552_s1 + $0x84] ss:$8 sps:$4 sm:$0xff]   ;;  %v385_v32 = vld [vmem:[%s552_s1 + $0x80] ss:$8 sps:$4 sm:$0xff]  }
   0xc   :  { %241 = vmatprep.subr.bf16.mxu0 %v347_v6  ;;  %v386_v33 = vld [vmem:[%s553_s0] ss:$8 sps:$4 sm:$0xff]   ;;  %v56_v35 = vshrl.u32 %v55_v34, 7 }
   0xd   :  { %v53_v37 = vld [vmem:[%s554_s2] sm:$0x3]  ;;  %v289_v56 = vld [vmem:[%s556_s3 + $0x8] sm:$0xff] }
   0xe   :  { %v57_v36 = vsub.s32 0, %v56_v35  ;;  %v61_v38 = vsub.s32 1, %v56_v35  ;;  %v288_v52 = vld [vmem:[%s556_s3] sm:$0xff] }
   0xf   :  { %242 = vmatpush1.bf16.msra.mxu0 %v349_v7 }
  0x10   :  { %243 = vmatprep.subr.bf16.mxu0 %v350_v8  ;;  %v58_v39 = vrot.slane %v53_v37, %v57_v36  ;;  %v62_v40 = vrot.slane %v53_v37, %v61_v38 }
  0x13   :  { %244 = vmatpush1.bf16.msra.mxu0 %v352_v9 }
  0x14   :  { %245 = vmatprep.subr.bf16.mxu0 %v353_v10 }
  0x17   :  { %246 = vmatpush1.bf16.msra.mxu0 %v355_v11 }
  0x18   :  { %247 = vmatprep.subr.bf16.mxu0 %v356_v12 }
  0x1b   :  { %248 = vmatpush1.bf16.msra.mxu0 %v358_v14 }
  0x1c   :  { %249 = vmatprep.subr.bf16.mxu0 %v359_v15 }
  0x1f   :  { %250 = vmatpush1.bf16.msra.mxu0 %v361_v16 }
  0x20   :  { %251 = vmatprep.subr.bf16.mxu0 %v362_v17 }
  0x23   :  { %252 = vmatpush2.bf16.msra.mxu0 %v364_v18 }
  0x24   :  { %253 = vmatprep.subr.bf16.mxu0 %v365_v19 }
  0x27   :  { %254 = vmatpush2.bf16.msra.mxu0 %v367_v20 }
  0x28   :  { %255 = vmatprep.subr.bf16.mxu0 %v368_v21 }
  0x2b   :  { %256 = vmatpush2.bf16.msra.mxu0 %v370_v22 }
  0x2c   :  { %257 = vmatprep.subr.bf16.mxu0 %v371_v23 }
  0x2f   :  { %258 = vmatpush2.bf16.msra.mxu0 %v373_v24 }
  0x30   :  { %259 = vmatprep.subr.bf16.mxu0 %v374_v25 }
  0x33   :  { %260 = vmatpush2.bf16.msra.mxu0 %v376_v26 }
  0x34   :  { %261 = vmatprep.subr.bf16.mxu0 %v377_v27 }
  0x37   :  { %262 = vmatpush2.bf16.msra.mxu0 %v379_v28 }
  0x38   :  { %263 = vmatprep.subr.bf16.mxu0 %v380_v29 }
  0x3b   :  { %264 = vmatpush2.bf16.msra.mxu0 %v382_v30 }
  0x3c   :  { %265 = vmatprep.subr.bf16.mxu0 %v383_v31 }
  0x3f   :  { %266 = vmatpush2.bf16.msra.mxu0 %v385_v32 }
  0x42   :  { %268 = vmatmul.mubr.bf16.vlgmr.msra.gmra.mxu0 %v386_v33 }
 0x102   :  { %v269_v41 = vpop.f32.mrf.mxu0 }
 0x103   :  { %v270_v42 = vadd.f32 %v269_v41, %v58_v39 }
 0x104   :  { %v271_v43 = vpop.f32.mrf.mxu0 }
 0x105   :  { %278 = vst [vmem:[%s555_s4] sm:$0xff] %v270_v42  ;;  %v272_v44 = vadd.f32 %v271_v43, %v62_v40 }
 0x106   :  { %v273_v45 = vpop.f32.mrf.mxu0 }
 0x107   :  { %279 = vst [vmem:[%s555_s4 + $0x8] sm:$0xff] %v272_v44  ;;  %v282_v46 = vmul.f32 1.442695, %v272_v44  ;;  %v274_v47 = vadd.f32 %v273_v45, %v58_v39 }
 0x108   :  { %v275_v48 = vpop.f32.mrf.mxu0 }
 0x109   :  { %389 = vpow2.f32 %v282_v46  ;;  %280 = vst [vmem:[%s555_s4 + $0x10] sm:$0xff] %v274_v47  ;;  %v276_v49 = vadd.f32 %v275_v48, %v62_v40 }
 0x10b   :  { %281 = vst [vmem:[%s555_s4 + $0x18] sm:$0xff] %v276_v49  ;;  %v284_v50 = vmul.f32 1.442695, %v276_v49 }
 0x10d   :  { %391 = vpow2.f32 %v284_v50 }
 0x116   :  { %v390_v51 = vpop.eup %389 }
 0x117   :  { %v286_v53 = vadd.f32 1e-07, %v390_v51 }
 0x119   :  { %v290_v54 = vmul.f32 %v288_v52, %v286_v53 }
 0x11a   :  { %v392_v55 = vpop.eup %391 }
 0x11b   :  { %v292_v57 = vadd.f32 %v290_v54, %v270_v42  ;;  %v287_v58 = vadd.f32 1e-07, %v392_v55 }
 0x11d   :  { %294 = vst [vmem:[%s557_s5] sm:$0xff] %v292_v57  ;;  %v291_v59 = vmul.f32 %v289_v56, %v287_v58 }
 0x11f   :  { %v293_v60 = vadd.f32 %v291_v59, %v274_v47 }
 0x121   :  { %295 = vst [vmem:[%s557_s5 + $0x8] sm:$0xff] %v293_v60 }

// kernel: vae_forward.14
= control target key start
LH: loop header
LB: loop body
LE: loop exit
PB: predicated region body
PF: predicated region fallthrough
CT: control target
= control target key end

     0   :  { %s1347_s12 = smov 0   ;;  %s1349_s13 = smov 0   ;;  %s1672_s0 = inlined_call_operand.vmem [shape: bf16[16,128], index: 0, kind: input, shape index: {}]   ;;  %s1673_s1 = inlined_call_operand.vmem [shape: bf16[128,8192], index: 1, kind: input, shape index: {}]   ;;  %s1674_s2 = inlined_call_operand.vmem [shape: f32[1,8192], index: 2, kind: input, shape index: {}]   ;;  %s1675_s3 = inlined_call_operand.vmem [shape: f32[16,8192], index: 3, kind: output, shape index: {}]  }
   0x1   :  { %s1351_s14 = smov 0   ;;  %s1353_s15 = smov 0  }
   0x2   :  { %s1355_s16 = smov 0  }
   0x3 LB: > { %s22_s17 = sadd.s32 1, %s1320_s15  ;;  %s1160_s18 = sadd.s32 4294967295, %s1324_s16   ;;  %s1324_s16 = sphi %s1355_s16, %s13_s16   ;;  %s1320_s15 = sphi %s1353_s15, %s1680_s15   ;;  %s1316_s14 = sphi %s1351_s14, %s1679_s14   ;;  %s1312_s13 = sphi %s1349_s13, %s1678_s13   ;;  %s1308_s12 = sphi %s1347_s12, %s1677_s12  }
   0x4   : > { %p23_p0 = scmp.ge.s32.totalorder %s22_s17, 8  ;;  %p65_p1 = scmp.ne.s32.totalorder %s1312_s13, %s1308_s12 }
   0x5   : > { %p66_p2 = scmp.eq.s32.totalorder %s1324_s16, 0  ;;  %p123_p4 = scmp.eq.s32.totalorder %s1160_s18, 7 }
   0x6   : > { %s1682_s17 = smov (%p23_p0, %s22_s17), 0  ;;  %s58_s20 = sadd.s32 1, %s1312_s13 }
   0x7   : > { %p67_p3 = por %p66_p2, %p65_p1  ;;  %s55_s19 = ssub.s32 %s1320_s15, %s1682_s17 }
   0x8   : > { %p56_p5 = scmp.eq.s32.totalorder %s55_s19, 0  ;;  %p1382_p6 = por %p123_p4, %p65_p1 }
   0x9   : > { %p1164_p7 = scmp.ge.s32.totalorder %s1324_s16, 8 }
   0xa   : > { %s1387_s22 = scalar_select %p56_p5, %s1312_s13, %s58_s20  }
   0xb   : > { %154 = sbr.rel (%p1164_p7) target bundleno = 52 (0x34), region = 20 }
  0x10   : > { %157 = sbr.rel (!%p67_p3) target bundleno = 52 (0x34), region = 24  ;;  %s159_s23 = sand.u32 (%p67_p3), 1, %s1312_s13  }
  0x11   : > { %s1242_s24 = sshll.u32 (%p67_p3), %s1320_s15, 5  ;;  %s1165_s25 = sshll.u32 (%p67_p3), %s159_s23, 9 }
  0x12   : > { %s1395_s28 = scalar_lea.vmem (%p67_p3), %s1673_s1, %s1242_s24  ;;  %s1400_s29 = scalar_lea.vmem (%p67_p3), [#allocation2], %s1165_s25 }
  0x13   : > { %v177_v0 = vld [vmem:[%s1395_s28] sm:$0xff] (%p67_p3)  ;;  %v179_v1 = vld [vmem:[%s1395_s28 + $0x8] sm:$0xff] (%p67_p3)  ;;  %v181_v2 = vld [vmem:[%s1395_s28 + $0x10] sm:$0xff] (%p67_p3) }
  0x14   : > { %178 = vst [vmem:[%s1400_s29] sm:$0xff] (%p67_p3), %v177_v0  ;;  %180 = vst [vmem:[%s1400_s29 + $0x8] sm:$0xff] (%p67_p3), %v179_v1  ;;  %v183_v3 = vld [vmem:[%s1395_s28 + $0x18] sm:$0xff] (%p67_p3)  ;;  %v185_v4 = vld [vmem:[%s1395_s28 + $0x100] sm:$0xff] (%p67_p3) }
  0x15   : > { %182 = vst [vmem:[%s1400_s29 + $0x10] sm:$0xff] %v181_v2  ;;  %v187_v5 = vld [vmem:[%s1395_s28 + $0x108] sm:$0xff]  ;;  %184 = vst [vmem:[%s1400_s29 + $0x18] sm:$0xff] %v183_v3  ;;  %v189_v6 = vld [vmem:[%s1395_s28 + $0x110] sm:$0xff] }
  0x16   : > { %186 = vst [vmem:[%s1400_s29 + $0x20] sm:$0xff] %v185_v4  ;;  %188 = vst [vmem:[%s1400_s29 + $0x28] sm:$0xff] %v187_v5  ;;  %v191_v7 = vld [vmem:[%s1395_s28 + $0x118] sm:$0xff]  ;;  %v193_v8 = vld [vmem:[%s1395_s28 + $0x200] sm:$0xff] }
  0x17   : > { %190 = vst [vmem:[%s1400_s29 + $0x30] sm:$0xff] %v189_v6  ;;  %192 = vst [vmem:[%s1400_s29 + $0x38] sm:$0xff] %v191_v7  ;;  %v195_v9 = vld [vmem:[%s1395_s28 + $0x208] sm:$0xff]  ;;  %v197_v10 = vld [vmem:[%s1395_s28 + $0x210] sm:$0xff] }
  0x18   : > { %194 = vst [vmem:[%s1400_s29 + $0x40] sm:$0xff] %v193_v8  ;;  %v199_v11 = vld [vmem:[%s1395_s28 + $0x218] sm:$0xff]  ;;  %196 = vst [vmem:[%s1400_s29 + $0x48] sm:$0xff] %v195_v9  ;;  %v201_v12 = vld [vmem:[%s1395_s28 + $0x300] sm:$0xff] }
  0x19   : > { %198 = vst [vmem:[%s1400_s29 + $0x50] sm:$0xff] %v197_v10  ;;  %200 = vst [vmem:[%s1400_s29 + $0x58] sm:$0xff] %v199_v11  ;;  %v203_v13 = vld [vmem:[%s1395_s28 + $0x308] sm:$0xff]  ;;  %v205_v14 = vld [vmem:[%s1395_s28 + $0x310] sm:$0xff] }
  0x1a   : > { %202 = vst [vmem:[%s1400_s29 + $0x60] sm:$0xff] %v201_v12  ;;  %204 = vst [vmem:[%s1400_s29 + $0x68] sm:$0xff] %v203_v13  ;;  %v207_v15 = vld [vmem:[%s1395_s28 + $0x318] sm:$0xff]  ;;  %v209_v16 = vld [vmem:[%s1395_s28 + $0x400] sm:$0xff] }
  0x1b   : > { %206 = vst [vmem:[%s1400_s29 + $0x70] sm:$0xff] %v205_v14  ;;  %v211_v17 = vld [vmem:[%s1395_s28 + $0x408] sm:$0xff]  ;;  %208 = vst [vmem:[%s1400_s29 + $0x78] sm:$0xff] %v207_v15  ;;  %v213_v18 = vld [vmem:[%s1395_s28 + $0x410] sm:$0xff] }
  0x1c   : > { %210 = vst [vmem:[%s1400_s29 + $0x80] sm:$0xff] %v209_v16  ;;  %212 = vst [vmem:[%s1400_s29 + $0x88] sm:$0xff] %v211_v17  ;;  %v215_v19 = vld [vmem:[%s1395_s28 + $0x418] sm:$0xff]  ;;  %v217_v20 = vld [vmem:[%s1395_s28 + $0x500] sm:$0xff] }
  0x1d   : > { %214 = vst [vmem:[%s1400_s29 + $0x90] sm:$0xff] %v213_v18  ;;  %216 = vst [vmem:[%s1400_s29 + $0x98] sm:$0xff] %v215_v19  ;;  %v219_v21 = vld [vmem:[%s1395_s28 + $0x508] sm:$0xff]  ;;  %v221_v22 = vld [vmem:[%s1395_s28 + $0x510] sm:$0xff] }
  0x1e   : > { %218 = vst [vmem:[%s1400_s29 + $0xa0] sm:$0xff] %v217_v20  ;;  %v223_v23 = vld [vmem:[%s1395_s28 + $0x518] sm:$0xff]  ;;  %220 = vst [vmem:[%s1400_s29 + $0xa8] sm:$0xff] %v219_v21  ;;  %v225_v24 = vld [vmem:[%s1395_s28 + $0x600] sm:$0xff] }
  0x1f   : > { %222 = vst [vmem:[%s1400_s29 + $0xb0] sm:$0xff] %v221_v22  ;;  %224 = vst [vmem:[%s1400_s29 + $0xb8] sm:$0xff] %v223_v23  ;;  %v227_v25 = vld [vmem:[%s1395_s28 + $0x608] sm:$0xff]  ;;  %v229_v26 = vld [vmem:[%s1395_s28 + $0x610] sm:$0xff] }
  0x20   : > { %226 = vst [vmem:[%s1400_s29 + $0xc0] sm:$0xff] %v225_v24  ;;  %228 = vst [vmem:[%s1400_s29 + $0xc8] sm:$0xff] %v227_v25  ;;  %v231_v27 = vld [vmem:[%s1395_s28 + $0x618] sm:$0xff]  ;;  %v233_v28 = vld [vmem:[%s1395_s28 + $0x700] sm:$0xff] }
  0x21   : > { %230 = vst [vmem:[%s1400_s29 + $0xd0] sm:$0xff] %v229_v26  ;;  %v235_v29 = vld [vmem:[%s1395_s28 + $0x708] sm:$0xff]  ;;  %232 = vst [vmem:[%s1400_s29 + $0xd8] sm:$0xff] %v231_v27  ;;  %v237_v30 = vld [vmem:[%s1395_s28 + $0x710] sm:$0xff] }
  0x22   : > { %234 = vst [vmem:[%s1400_s29 + $0xe0] sm:$0xff] %v233_v28  ;;  %236 = vst [vmem:[%s1400_s29 + $0xe8] sm:$0xff] %v235_v29  ;;  %v239_v31 = vld [vmem:[%s1395_s28 + $0x718] sm:$0xff]  ;;  %v241_v32 = vld [vmem:[%s1395_s28 + $0x800] sm:$0xff] }
  0x23   : > { %238 = vst [vmem:[%s1400_s29 + $0xf0] sm:$0xff] %v237_v30  ;;  %240 = vst [vmem:[%s1400_s29 + $0xf8] sm:$0xff] %v239_v31  ;;  %v243_v33 = vld [vmem:[%s1395_s28 + $0x808] sm:$0xff]  ;;  %v245_v34 = vld [vmem:[%s1395_s28 + $0x810] sm:$0xff] }
  0x24   : > { %242 = vst [vmem:[%s1400_s29 + $0x100] sm:$0xff] %v241_v32  ;;  %v247_v35 = vld [vmem:[%s1395_s28 + $0x818] sm:$0xff]  ;;  %244 = vst [vmem:[%s1400_s29 + $0x108] sm:$0xff] %v243_v33  ;;  %v249_v36 = vld [vmem:[%s1395_s28 + $0x900] sm:$0xff] }
  0x25   : > { %246 = vst [vmem:[%s1400_s29 + $0x110] sm:$0xff] %v245_v34  ;;  %248 = vst [vmem:[%s1400_s29 + $0x118] sm:$0xff] %v247_v35  ;;  %v251_v37 = vld [vmem:[%s1395_s28 + $0x908] sm:$0xff]  ;;  %v253_v38 = vld [vmem:[%s1395_s28 + $0x910] sm:$0xff] }
  0x26   : > { %250 = vst [vmem:[%s1400_s29 + $0x120] sm:$0xff] %v249_v36  ;;  %252 = vst [vmem:[%s1400_s29 + $0x128] sm:$0xff] %v251_v37  ;;  %v255_v39 = vld [vmem:[%s1395_s28 + $0x918] sm:$0xff]  ;;  %v257_v40 = vld [vmem:[%s1395_s28 + $0xa00] sm:$0xff] }
  0x27   : > { %254 = vst [vmem:[%s1400_s29 + $0x130] sm:$0xff] %v253_v38  ;;  %v259_v41 = vld [vmem:[%s1395_s28 + $0xa08] sm:$0xff]  ;;  %256 = vst [vmem:[%s1400_s29 + $0x138] sm:$0xff] %v255_v39  ;;  %v261_v42 = vld [vmem:[%s1395_s28 + $0xa10] sm:$0xff] }
  0x28   : > { %258 = vst [vmem:[%s1400_s29 + $0x140] sm:$0xff] %v257_v40  ;;  %260 = vst [vmem:[%s1400_s29 + $0x148] sm:$0xff] %v259_v41  ;;  %v263_v43 = vld [vmem:[%s1395_s28 + $0xa18] sm:$0xff]  ;;  %v265_v44 = vld [vmem:[%s1395_s28 + $0xb00] sm:$0xff] }
  0x29   : > { %262 = vst [vmem:[%s1400_s29 + $0x150] sm:$0xff] %v261_v42  ;;  %264 = vst [vmem:[%s1400_s29 + $0x158] sm:$0xff] %v263_v43  ;;  %v267_v45 = vld [vmem:[%s1395_s28 + $0xb08] sm:$0xff]  ;;  %v269_v46 = vld [vmem:[%s1395_s28 + $0xb10] sm:$0xff] }
  0x2a   : > { %266 = vst [vmem:[%s1400_s29 + $0x160] sm:$0xff] %v265_v44  ;;  %v271_v47 = vld [vmem:[%s1395_s28 + $0xb18] sm:$0xff]  ;;  %268 = vst [vmem:[%s1400_s29 + $0x168] sm:$0xff] %v267_v45  ;;  %v273_v48 = vld [vmem:[%s1395_s28 + $0xc00] sm:$0xff] }
  0x2b   : > { %270 = vst [vmem:[%s1400_s29 + $0x170] sm:$0xff] %v269_v46  ;;  %272 = vst [vmem:[%s1400_s29 + $0x178] sm:$0xff] %v271_v47  ;;  %v275_v49 = vld [vmem:[%s1395_s28 + $0xc08] sm:$0xff]  ;;  %v277_v50 = vld [vmem:[%s1395_s28 + $0xc10] sm:$0xff] }
  0x2c   : > { %274 = vst [vmem:[%s1400_s29 + $0x180] sm:$0xff] %v273_v48  ;;  %276 = vst [vmem:[%s1400_s29 + $0x188] sm:$0xff] %v275_v49  ;;  %v279_v51 = vld [vmem:[%s1395_s28 + $0xc18] sm:$0xff]  ;;  %v281_v52 = vld [vmem:[%s1395_s28 + $0xd00] sm:$0xff] }
  0x2d   : > { %278 = vst [vmem:[%s1400_s29 + $0x190] sm:$0xff] %v277_v50  ;;  %v283_v53 = vld [vmem:[%s1395_s28 + $0xd08] sm:$0xff]  ;;  %280 = vst [vmem:[%s1400_s29 + $0x198] sm:$0xff] %v279_v51  ;;  %v285_v54 = vld [vmem:[%s1395_s28 + $0xd10] sm:$0xff] }
  0x2e   : > { %282 = vst [vmem:[%s1400_s29 + $0x1a0] sm:$0xff] %v281_v52  ;;  %284 = vst [vmem:[%s1400_s29 + $0x1a8] sm:$0xff] %v283_v53  ;;  %v287_v55 = vld [vmem:[%s1395_s28 + $0xd18] sm:$0xff]  ;;  %v289_v56 = vld [vmem:[%s1395_s28 + $0xe00] sm:$0xff] }
  0x2f   : > { %286 = vst [vmem:[%s1400_s29 + $0x1b0] sm:$0xff] %v285_v54  ;;  %288 = vst [vmem:[%s1400_s29 + $0x1b8] sm:$0xff] %v287_v55  ;;  %v291_v57 = vld [vmem:[%s1395_s28 + $0xe08] sm:$0xff]  ;;  %v293_v58 = vld [vmem:[%s1395_s28 + $0xe10] sm:$0xff] }
  0x30   : > { %290 = vst [vmem:[%s1400_s29 + $0x1c0] sm:$0xff] %v289_v56  ;;  %v295_v59 = vld [vmem:[%s1395_s28 + $0xe18] sm:$0xff]  ;;  %292 = vst [vmem:[%s1400_s29 + $0x1c8] sm:$0xff] %v291_v57  ;;  %v297_v60 = vld [vmem:[%s1395_s28 + $0xf00] sm:$0xff] }
  0x31   : > { %294 = vst [vmem:[%s1400_s29 + $0x1d0] sm:$0xff] %v293_v58  ;;  %296 = vst [vmem:[%s1400_s29 + $0x1d8] sm:$0xff] %v295_v59  ;;  %v299_v61 = vld [vmem:[%s1395_s28 + $0xf08] sm:$0xff]  ;;  %v301_v62 = vld [vmem:[%s1395_s28 + $0xf10] sm:$0xff] }
  0x32   : > { %298 = vst [vmem:[%s1400_s29 + $0x1e0] sm:$0xff] %v297_v60  ;;  %300 = vst [vmem:[%s1400_s29 + $0x1e8] sm:$0xff] %v299_v61  ;;  %v303_v63 = vld [vmem:[%s1395_s28 + $0xf18] sm:$0xff] }
  0x33   : > { %302 = vst [vmem:[%s1400_s29 + $0x1f0] sm:$0xff] %v301_v62  ;;  %304 = vst [vmem:[%s1400_s29 + $0x1f8] sm:$0xff] %v303_v63 }
  0x34 PF: > { %p1168_p8 = scmp.ge.s32.totalorder %s1324_s16, 1  ;;  %p317_p9 = scmp.lt.s32.totalorder %s1324_s16, 9 }
  0x36   : > { %p318_p10 = pnand %p1168_p8, %p317_p9 }
  0x37   : > { %s324_s30 = sand.u32 (!%p318_p10), 1, %s1308_s12   ;;  %s1171_s8 = sshll.u32 (!%p318_p10), %s1316_s14, 3 }
  0x38   : > { %321 = sbr.rel (%p318_p10) target bundleno = 341 (0x155), region = 51  ;;  %s1169_s4 = sshll.u32 (!%p318_p10), %s324_s30, 9 }
  0x39   : > { %s1534_s5 = scalar_lea.vmem (!%p318_p10), [#allocation2], %s1169_s4  ;;  %p363_p11 = scmp.lt.s32.totalorder (!%p318_p10), %s1171_s8, 63 }
  0x3a   : > { %s1170_s18 = sshll.u32 (!%p318_p10), %s324_s30, 7 }
  0x3b   : > { %s1617_s19 = scalar_lea.vmem (!%p318_p10), [#allocation3], %s1170_s18 }
  0x3d   : > { %v1326_v0 = vmov 0   ;;  %v428_v1 = vld [vmem:[%s1534_s5 + $0x1c0] sm:$0xff]  ;;  %v429_v3 = vld [vmem:[%s1534_s5 + $0x1c8] sm:$0xff]  ;;  %v430_v63 = vld [vmem:[%s1534_s5 + $0x1d0] sm:$0xff]  ;;  %s1684_s8 = smov (!%p363_p11, %s1171_s8), 63  ;;  %s1243_s12 = sshll.u32 (%p1382_p6), %s1316_s14, 6 }
  0x3e   : > { %836 = vmatprep.mubr.bf16.mxu0 %v1326_v0  ;;  %879 = vmatprep.mubr.bf16.mxu1 %v1326_v0  ;;  %v432_v2 = vld [vmem:[%s1534_s5 + $0x1e0] sm:$0xff]  ;;  %v433_v5 = vld [vmem:[%s1534_s5 + $0x1e8] sm:$0xff]  ;;  %s365_s11 = scalar_lea.vmem %s1674_s2, %s1684_s8  ;;  %s1020_s24 = scalar_lea.vmem (%p1382_p6), %s1675_s3, %s1243_s12 }
  0x3f   : > { %v1230_v4 = vcombine.high %v428_v1, %v432_v2  ;;  %v1229_v6 = vcombine.low %v428_v1, %v432_v2  ;;  %v420_v7 = vld [vmem:[%s1534_s5 + $0x180] sm:$0xff]  ;;  %v1232_v9 = vcombine.high %v429_v3, %v433_v5  ;;  %v1231_v10 = vcombine.low %v429_v3, %v433_v5  ;;  %v421_v12 = vld [vmem:[%s1534_s5 + $0x188] sm:$0xff]  ;;  %v434_v1 = vld [vmem:[%s1534_s5 + $0x1f0] sm:$0xff] }
  0x40   : > { %v424_v8 = vld [vmem:[%s1534_s5 + $0x1a0] sm:$0xff]  ;;  %v425_v13 = vld [vmem:[%s1534_s5 + $0x1a8] sm:$0xff]  ;;  %v431_v2 = vld [vmem:[%s1534_s5 + $0x1d8] sm:$0xff] }
  0x41   : > { %v1222_v11 = vcombine.high %v420_v7, %v424_v8  ;;  %v412_v14 = vld [vmem:[%s1534_s5 + $0x140] sm:$0xff]  ;;  %804 = vmatprep.subr.bf16.mxu0 %v1230_v4  ;;  %v1224_v15 = vcombine.high %v421_v12, %v425_v13  ;;  %v413_v17 = vld [vmem:[%s1534_s5 + $0x148] sm:$0xff]  ;;  %847 = vmatprep.subr.bf16.mxu1 %v1232_v9  ;;  %v1221_v19 = vcombine.low %v420_v7, %v424_v8  ;;  %v435_v3 = vld [vmem:[%s1534_s5 + $0x1f8] sm:$0xff] }
  0x42   : > { %v416_v16 = vld [vmem:[%s1534_s5 + $0x160] sm:$0xff]  ;;  %v417_v18 = vld [vmem:[%s1534_s5 + $0x168] sm:$0xff]  ;;  %805 = vmatpush1.bf16.msra.mxu0 %v1229_v6  ;;  %848 = vmatpush1.bf16.msra.mxu1 %v1231_v10  ;;  %v1223_v20 = vcombine.low %v421_v12, %v425_v13  ;;  %v1234_v6 = vcombine.high %v430_v63, %v434_v1  ;;  %v1236_v7 = vcombine.high %v431_v2, %v435_v3  ;;  %v422_v8 = vld [vmem:[%s1534_s5 + $0x190] sm:$0xff] }
  0x43   : > { %806 = vmatprep.subr.bf16.mxu0 %v1222_v11  ;;  %v1214_v21 = vcombine.high %v412_v14, %v416_v16  ;;  %849 = vmatprep.subr.bf16.mxu1 %v1224_v15  ;;  %v1216_v22 = vcombine.high %v413_v17, %v417_v18  ;;  %v404_v23 = vld [vmem:[%s1534_s5 + $0x100] sm:$0xff]  ;;  %v405_v25 = vld [vmem:[%s1534_s5 + $0x108] sm:$0xff]  ;;  %v1213_v27 = vcombine.low %v412_v14, %v416_v16  ;;  %v426_v9 = vld [vmem:[%s1534_s5 + $0x1b0] sm:$0xff] }
  0x44   : > { %v408_v24 = vld [vmem:[%s1534_s5 + $0x120] sm:$0xff]  ;;  %v409_v26 = vld [vmem:[%s1534_s5 + $0x128] sm:$0xff]  ;;  %v1215_v28 = vcombine.low %v413_v17, %v417_v18  ;;  %v423_v11 = vld [vmem:[%s1534_s5 + $0x198] sm:$0xff]  ;;  %v1233_v13 = vcombine.low %v430_v63, %v434_v1  ;;  %v1235_v14 = vcombine.low %v431_v2, %v435_v3  ;;  %v1226_v15 = vcombine.high %v422_v8, %v426_v9 }
  0x45   : > { %v1206_v29 = vcombine.high %v404_v23, %v408_v24  ;;  %v1208_v30 = vcombine.high %v405_v25, %v409_v26  ;;  %v396_v31 = vld [vmem:[%s1534_s5 + $0xc0] sm:$0xff]  ;;  %v397_v33 = vld [vmem:[%s1534_s5 + $0xc8] sm:$0xff]  ;;  %v1205_v35 = vcombine.low %v404_v23, %v408_v24  ;;  %v1207_v36 = vcombine.low %v405_v25, %v409_v26  ;;  %v427_v12 = vld [vmem:[%s1534_s5 + $0x1b8] sm:$0xff] }
  0x46   : > { %807 = vmatpush1.bf16.msra.mxu0 %v1221_v19  ;;  %850 = vmatpush1.bf16.msra.mxu1 %v1223_v20  ;;  %v400_v32 = vld [vmem:[%s1534_s5 + $0xe0] sm:$0xff]  ;;  %v401_v34 = vld [vmem:[%s1534_s5 + $0xe8] sm:$0xff]  ;;  %v1228_v16 = vcombine.high %v423_v11, %v427_v12  ;;  %v414_v17 = vld [vmem:[%s1534_s5 + $0x150] sm:$0xff]  ;;  %v438_v3 = vlaneseq }
  0x47   : > { %808 = vmatprep.subr.bf16.mxu0 %v1214_v21  ;;  %851 = vmatprep.subr.bf16.mxu1 %v1216_v22  ;;  %v1198_v37 = vcombine.high %v396_v31, %v400_v32  ;;  %v1200_v38 = vcombine.high %v397_v33, %v401_v34  ;;  %v388_v39 = vld [vmem:[%s1534_s5 + $0x80] sm:$0xff]  ;;  %v389_v41 = vld [vmem:[%s1534_s5 + $0x88] sm:$0xff]  ;;  %v1197_v43 = vcombine.low %v396_v31, %v400_v32  ;;  %v418_v18 = vld [vmem:[%s1534_s5 + $0x170] sm:$0xff] }
  0x48   : > { %v392_v40 = vld [vmem:[%s1534_s5 + $0xa0] sm:$0xff]  ;;  %v393_v42 = vld [vmem:[%s1534_s5 + $0xa8] sm:$0xff]  ;;  %v1199_v44 = vcombine.low %v397_v33, %v401_v34  ;;  %v415_v19 = vld [vmem:[%s1534_s5 + $0x158] sm:$0xff]  ;;  %v1225_v21 = vcombine.low %v422_v8, %v426_v9  ;;  %v1227_v22 = vcombine.low %v423_v11, %v427_v12  ;;  %v1218_v23 = vcombine.high %v414_v17, %v418_v18 }
  0x49   : > { %v1190_v45 = vcombine.high %v388_v39, %v392_v40  ;;  %v1192_v46 = vcombine.high %v389_v41, %v393_v42  ;;  %v380_v47 = vld [vmem:[%s1534_s5 + $0x40] sm:$0xff]  ;;  %v381_v49 = vld [vmem:[%s1534_s5 + $0x48] sm:$0xff]  ;;  %v1189_v51 = vcombine.low %v388_v39, %v392_v40  ;;  %v1191_v52 = vcombine.low %v389_v41, %v393_v42  ;;  %v419_v20 = vld [vmem:[%s1534_s5 + $0x178] sm:$0xff] }
  0x4a   : > { %809 = vmatpush1.bf16.msra.mxu0 %v1213_v27  ;;  %852 = vmatpush1.bf16.msra.mxu1 %v1215_v28  ;;  %v384_v48 = vld [vmem:[%s1534_s5 + $0x60] sm:$0xff]  ;;  %v385_v50 = vld [vmem:[%s1534_s5 + $0x68] sm:$0xff]  ;;  %v1220_v24 = vcombine.high %v415_v19, %v419_v20  ;;  %v406_v25 = vld [vmem:[%s1534_s5 + $0x110] sm:$0xff] }
  0x4b   : > { %810 = vmatprep.subr.bf16.mxu0 %v1206_v29  ;;  %853 = vmatprep.subr.bf16.mxu1 %v1208_v30  ;;  %v1182_v53 = vcombine.high %v380_v47, %v384_v48  ;;  %v1184_v54 = vcombine.high %v381_v49, %v385_v50  ;;  %v372_v55 = vld [vmem:[%s1534_s5] sm:$0xff]  ;;  %v373_v57 = vld [vmem:[%s1534_s5 + $0x8] sm:$0xff]  ;;  %v1181_v59 = vcombine.low %v380_v47, %v384_v48  ;;  %v410_v26 = vld [vmem:[%s1534_s5 + $0x130] sm:$0xff] }
  0x4c   : > { %v376_v56 = vld [vmem:[%s1534_s5 + $0x20] sm:$0xff]  ;;  %v377_v58 = vld [vmem:[%s1534_s5 + $0x28] sm:$0xff]  ;;  %v1183_v60 = vcombine.low %v381_v49, %v385_v50  ;;  %v407_v27 = vld [vmem:[%s1534_s5 + $0x118] sm:$0xff]  ;;  %v1217_v29 = vcombine.low %v414_v17, %v418_v18  ;;  %v1219_v30 = vcombine.low %v415_v19, %v419_v20  ;;  %v1210_v31 = vcombine.high %v406_v25, %v410_v26 }
  0x4d   : > { %v1174_v61 = vcombine.high %v372_v55, %v376_v56  ;;  %v1176_v62 = vcombine.high %v373_v57, %v377_v58  ;;  %v1173_v4 = vcombine.low %v372_v55, %v376_v56  ;;  %v1175_v5 = vcombine.low %v373_v57, %v377_v58  ;;  %v1577_v10 = vld [vmem:[%s1672_s0] sm:$0xff]   ;;  %v411_v28 = vld [vmem:[%s1534_s5 + $0x138] sm:$0xff]  ;;  %v398_v33 = vld [vmem:[%s1534_s5 + $0xd0] sm:$0xff] }
  0x4e   : > { %811 = vmatpush1.bf16.msra.mxu0 %v1205_v35  ;;  %854 = vmatpush1.bf16.msra.mxu1 %v1207_v36  ;;  %v1212_v32 = vcombine.high %v407_v27, %v411_v28  ;;  %v402_v34 = vld [vmem:[%s1534_s5 + $0xf0] sm:$0xff]  ;;  %v399_v35 = vld [vmem:[%s1534_s5 + $0xd8] sm:$0xff] }
  0x4f   : > { %812 = vmatprep.subr.bf16.mxu0 %v1198_v37  ;;  %855 = vmatprep.subr.bf16.mxu1 %v1200_v38  ;;  %v403_v36 = vld [vmem:[%s1534_s5 + $0xf8] sm:$0xff]  ;;  %v1209_v37 = vcombine.low %v406_v25, %v410_v26  ;;  %v1202_v38 = vcombine.high %v398_v33, %v402_v34  ;;  %v390_v40 = vld [vmem:[%s1534_s5 + $0x90] sm:$0xff] }
  0x50   : > { %v1204_v39 = vcombine.high %v399_v35, %v403_v36  ;;  %v394_v41 = vld [vmem:[%s1534_s5 + $0xb0] sm:$0xff]  ;;  %v391_v42 = vld [vmem:[%s1534_s5 + $0x98] sm:$0xff] }
  0x51   : > { %v382_v48 = vld [vmem:[%s1534_s5 + $0x50] sm:$0xff]  ;;  %v383_v50 = vld [vmem:[%s1534_s5 + $0x58] sm:$0xff] }
  0x52   : > { %813 = vmatpush1.bf16.msra.mxu0 %v1197_v43  ;;  %856 = vmatpush1.bf16.msra.mxu1 %v1199_v44  ;;  %v395_v43 = vld [vmem:[%s1534_s5 + $0xb8] sm:$0xff]  ;;  %v1201_v44 = vcombine.low %v398_v33, %v402_v34  ;;  %v386_v49 = vld [vmem:[%s1534_s5 + $0x70] sm:$0xff] }
  0x53   : > { %814 = vmatprep.subr.bf16.mxu0 %v1190_v45  ;;  %857 = vmatprep.subr.bf16.mxu1 %v1192_v46  ;;  %v1203_v45 = vcombine.low %v399_v35, %v403_v36  ;;  %v1194_v46 = vcombine.high %v390_v40, %v394_v41  ;;  %v1196_v47 = vcombine.high %v391_v42, %v395_v43  ;;  %v374_v56 = vld [vmem:[%s1534_s5 + $0x10] sm:$0xff]  ;;  %v375_v58 = vld [vmem:[%s1534_s5 + $0x18] sm:$0xff] }
  0x54   : > { %v378_v57 = vld [vmem:[%s1534_s5 + $0x30] sm:$0xff] }
  0x55   : > { %v1177_v1 = vcombine.low %v374_v56, %v378_v57 }
  0x56   : > { %815 = vmatpush1.bf16.msra.mxu0 %v1189_v51  ;;  %858 = vmatpush1.bf16.msra.mxu1 %v1191_v52  ;;  %v387_v51 = vld [vmem:[%s1534_s5 + $0x78] sm:$0xff]  ;;  %v1193_v52 = vcombine.low %v390_v40, %v394_v41 }
  0x57   : > { %816 = vmatprep.subr.bf16.mxu0 %v1182_v53  ;;  %859 = vmatprep.subr.bf16.mxu1 %v1184_v54  ;;  %v1195_v53 = vcombine.low %v391_v42, %v395_v43  ;;  %v1186_v54 = vcombine.high %v382_v48, %v386_v49  ;;  %v1188_v55 = vcombine.high %v383_v50, %v387_v51 }
  0x5a   : > { %817 = vmatpush1.bf16.msra.mxu0 %v1181_v59  ;;  %860 = vmatpush1.bf16.msra.mxu1 %v1183_v60  ;;  %v379_v59 = vld [vmem:[%s1534_s5 + $0x38] sm:$0xff]  ;;  %v1185_v60 = vcombine.low %v382_v48, %v386_v49 }
  0x5b   : > { %818 = vmatprep.subr.bf16.mxu0 %v1174_v61  ;;  %861 = vmatprep.subr.bf16.mxu1 %v1176_v62  ;;  %v1187_v61 = vcombine.low %v383_v50, %v387_v51  ;;  %v1178_v62 = vcombine.high %v374_v56, %v378_v57  ;;  %v1180_v63 = vcombine.high %v375_v58, %v379_v59 }
  0x5c   : > { %v1179_v2 = vcombine.low %v375_v58, %v379_v59 }
  0x5e   : > { %819 = vmatpush1.bf16.msra.mxu0 %v1173_v4  ;;  %862 = vmatpush1.bf16.msra.mxu1 %v1175_v5  ;;  %v439_v4 = vshrl.u32 %v438_v3, 7 }
  0x5f   : > { %890 = vmatprep.subr.bf16.mxu0 %v1234_v6  ;;  %933 = vmatprep.subr.bf16.mxu1 %v1236_v7  ;;  %v436_v6 = vld [vmem:[%s365_s11] sm:$0xff] }
  0x60   : > { %v440_v5 = vsub.s32 0, %v439_v4  ;;  %v448_v7 = vsub.s32 2, %v439_v4  ;;  %v444_v8 = vsub.s32 1, %v439_v4  ;;  %v452_v9 = vsub.s32 3, %v439_v4 }
  0x61   : > { %837 = vmatmul.mubr.bf16.vlgmr.msra.gmra.mxu0 %v1577_v10  ;;  %880 = vmatmul.mubr.bf16.vlgmr.msra.gmra.mxu1 %v1577_v10  ;;  %v468_v40 = vsub.s32 7, %v439_v4 }
  0x62   : > { %891 = vmatpush1.bf16.msra.mxu0 %v1233_v13  ;;  %934 = vmatpush1.bf16.msra.mxu1 %v1235_v14  ;;  %v441_v11 = vrot.slane %v436_v6, %v440_v5  ;;  %v449_v12 = vrot.slane %v436_v6, %v448_v7  ;;  %v445_v13 = vrot.slane %v436_v6, %v444_v8 }
  0x63   : > { %892 = vmatprep.subr.bf16.mxu0 %v1226_v15  ;;  %935 = vmatprep.subr.bf16.mxu1 %v1228_v16  ;;  %v453_v14 = vrot.slane %v436_v6, %v452_v9 }
  0x64   : > { %922 = vmatprep.mubr.bf16.mxu0 %v1326_v0  ;;  %965 = vmatprep.mubr.bf16.mxu1 %v1326_v0  ;;  %v1211_v0 = vcombine.low %v407_v27, %v411_v28 }
  0x66   : > { %893 = vmatpush1.bf16.msra.mxu0 %v1225_v21  ;;  %936 = vmatpush1.bf16.msra.mxu1 %v1227_v22 }
  0x67   : > { %894 = vmatprep.subr.bf16.mxu0 %v1218_v23  ;;  %937 = vmatprep.subr.bf16.mxu1 %v1220_v24 }
  0x6a   : > { %895 = vmatpush1.bf16.msra.mxu0 %v1217_v29  ;;  %938 = vmatpush1.bf16.msra.mxu1 %v1219_v30 }
  0x6b   : > { %896 = vmatprep.subr.bf16.mxu0 %v1210_v31  ;;  %939 = vmatprep.subr.bf16.mxu1 %v1212_v32 }
  0x6e   : > { %897 = vmatpush1.bf16.msra.mxu0 %v1209_v37  ;;  %940 = vmatpush1.bf16.msra.mxu1 %v1211_v0  ;;  %v456_v0 = vsub.s32 4, %v439_v4 }
  0x6f   : > { %898 = vmatprep.subr.bf16.mxu0 %v1202_v38  ;;  %941 = vmatprep.subr.bf16.mxu1 %v1204_v39  ;;  %v464_v38 = vsub.s32 6, %v439_v4  ;;  %v460_v39 = vsub.s32 5, %v439_v4 }
  0x70   : > { %v457_v41 = vrot.slane %v436_v6, %v456_v0 }
  0x71   : > { %v465_v42 = vrot.slane %v436_v6, %v464_v38  ;;  %v461_v43 = vrot.slane %v436_v6, %v460_v39 }
  0x72   : > { %899 = vmatpush1.bf16.msra.mxu0 %v1201_v44  ;;  %942 = vmatpush1.bf16.msra.mxu1 %v1203_v45  ;;  %v469_v45 = vrot.slane %v436_v6, %v468_v40 }
  0x73   : > { %900 = vmatprep.subr.bf16.mxu0 %v1194_v46  ;;  %943 = vmatprep.subr.bf16.mxu1 %v1196_v47 }
  0x76   : > { %901 = vmatpush1.bf16.msra.mxu0 %v1193_v52  ;;  %944 = vmatpush1.bf16.msra.mxu1 %v1195_v53 }
  0x77   : > { %902 = vmatprep.subr.bf16.mxu0 %v1186_v54  ;;  %945 = vmatprep.subr.bf16.mxu1 %v1188_v55 }
  0x7a   : > { %903 = vmatpush1.bf16.msra.mxu0 %v1185_v60  ;;  %946 = vmatpush1.bf16.msra.mxu1 %v1187_v61 }
  0x7b   : > { %904 = vmatprep.subr.bf16.mxu0 %v1178_v62  ;;  %947 = vmatprep.subr.bf16.mxu1 %v1180_v63 }
  0x7e   : > { %905 = vmatpush1.bf16.msra.mxu0 %v1177_v1  ;;  %948 = vmatpush1.bf16.msra.mxu1 %v1179_v2 }
  0x81   : > { %923 = vmatmul.mubr.bf16.vlgmr.msra.gmra.mxu0 %v1577_v10  ;;  %966 = vmatmul.mubr.bf16.vlgmr.msra.gmra.mxu1 %v1577_v10 }
 0x121   : > { %v838_v10 = vpop.f32.mrf.mxu0  ;;  %v881_v16 = vpop.f32.mrf.mxu1 }
 0x122   : > { %v839_v15 = vadd.f32 %v838_v10, %v441_v11  ;;  %v882_v17 = vadd.f32 %v881_v16, %v449_v12 }
 0x123   : > { %v840_v18 = vpop.f32.mrf.mxu0  ;;  %v883_v21 = vpop.f32.mrf.mxu1 }
 0x124   : > { %v976_v19 = vmax.f32 %v839_v15, 0.0  ;;  %v841_v20 = vadd.f32 %v840_v18, %v445_v13  ;;  %v978_v22 = vmax.f32 %v882_v17, 0.0  ;;  %v884_v23 = vadd.f32 %v883_v21, %v453_v14 }
 0x125   : > { %v842_v24 = vpop.f32.mrf.mxu0  ;;  %v885_v27 = vpop.f32.mrf.mxu1 }
 0x126   : > { %992 = vst [vmem:[%s1617_s19] sm:$0xff] %v976_v19  ;;  %v977_v25 = vmax.f32 %v841_v20, 0.0  ;;  %v843_v26 = vadd.f32 %v842_v24, %v441_v11  ;;  %994 = vst [vmem:[%s1617_s19 + $0x10] sm:$0xff] %v978_v22  ;;  %v979_v28 = vmax.f32 %v884_v23, 0.0  ;;  %v886_v29 = vadd.f32 %v885_v27, %v449_v12 }
 0x127   : > { %v844_v30 = vpop.f32.mrf.mxu0  ;;  %v887_v33 = vpop.f32.mrf.mxu1 }
 0x128   : > { %993 = vst [vmem:[%s1617_s19 + $0x8] sm:$0xff] %v977_v25  ;;  %v984_v31 = vmax.f32 %v843_v26, 0.0  ;;  %v845_v32 = vadd.f32 %v844_v30, %v445_v13  ;;  %995 = vst [vmem:[%s1617_s19 + $0x18] sm:$0xff] %v979_v28  ;;  %v986_v34 = vmax.f32 %v886_v29, 0.0  ;;  %v888_v35 = vadd.f32 %v887_v33, %v453_v14 }
 0x12a   : > { %1000 = vst [vmem:[%s1617_s19 + $0x40] sm:$0xff] %v984_v31  ;;  %v985_v36 = vmax.f32 %v845_v32, 0.0  ;;  %1002 = vst [vmem:[%s1617_s19 + $0x50] sm:$0xff] %v986_v34  ;;  %v987_v37 = vmax.f32 %v888_v35, 0.0 }
 0x12c   : > { %1001 = vst [vmem:[%s1617_s19 + $0x48] sm:$0xff] %v985_v36  ;;  %1003 = vst [vmem:[%s1617_s19 + $0x58] sm:$0xff] %v987_v37 }
 0x12d   : > { %v1033_v6 = vld [vmem:[%s1617_s19] sm:$0xff] (%p1382_p6)  ;;  %v1037_v8 = vld [vmem:[%s1617_s19 + $0x10] sm:$0xff] (%p1382_p6) }
 0x12e   : > { %1034 = vst [vmem:[%s1020_s24] sm:$0xff] (%p1382_p6), %v1033_v6  ;;  %1038 = vst [vmem:[%s1020_s24 + $0x10] sm:$0xff] (%p1382_p6), %v1037_v8 }
 0x12f   : > { %v1035_v7 = vld [vmem:[%s1617_s19 + $0x8] sm:$0xff] (%p1382_p6)  ;;  %v1039_v9 = vld [vmem:[%s1617_s19 + $0x18] sm:$0xff] (%p1382_p6) }
 0x130   : > { %1036 = vst [vmem:[%s1020_s24 + $0x8] sm:$0xff] (%p1382_p6), %v1035_v7  ;;  %1040 = vst [vmem:[%s1020_s24 + $0x18] sm:$0xff] (%p1382_p6), %v1039_v9 }
 0x131   : > { %v1049_v14 = vld [vmem:[%s1617_s19 + $0x40] sm:$0xff] (%p1382_p6)  ;;  %v1053_v16 = vld [vmem:[%s1617_s19 + $0x50] sm:$0xff] (%p1382_p6) }
 0x132   : > { %1050 = vst [vmem:[%s1020_s24 + $0x200] sm:$0xff] (%p1382_p6), %v1049_v14  ;;  %1054 = vst [vmem:[%s1020_s24 + $0x210] sm:$0xff] (%p1382_p6), %v1053_v16 }
 0x133   : > { %v1051_v15 = vld [vmem:[%s1617_s19 + $0x48] sm:$0xff] (%p1382_p6)  ;;  %v1055_v17 = vld [vmem:[%s1617_s19 + $0x58] sm:$0xff] (%p1382_p6) }
 0x134   : > { %1052 = vst [vmem:[%s1020_s24 + $0x208] sm:$0xff] (%p1382_p6), %v1051_v15  ;;  %1056 = vst [vmem:[%s1020_s24 + $0x218] sm:$0xff] (%p1382_p6), %v1055_v17 }
 0x141   : > { %v924_v44 = vpop.f32.mrf.mxu0  ;;  %v967_v47 = vpop.f32.mrf.mxu1 }
 0x142   : > { %v925_v46 = vadd.f32 %v924_v44, %v457_v41  ;;  %v968_v48 = vadd.f32 %v967_v47, %v465_v42 }
 0x143   : > { %v926_v49 = vpop.f32.mrf.mxu0  ;;  %v969_v52 = vpop.f32.mrf.mxu1 }
 0x144   : > { %v980_v50 = vmax.f32 %v925_v46, 0.0  ;;  %v927_v51 = vadd.f32 %v926_v49, %v461_v43  ;;  %v982_v53 = vmax.f32 %v968_v48, 0.0  ;;  %v970_v54 = vadd.f32 %v969_v52, %v469_v45 }
 0x145   : > { %v928_v55 = vpop.f32.mrf.mxu0  ;;  %v971_v58 = vpop.f32.mrf.mxu1 }
 0x146   : > { %996 = vst [vmem:[%s1617_s19 + $0x20] sm:$0xff] %v980_v50  ;;  %v981_v56 = vmax.f32 %v927_v51, 0.0  ;;  %v929_v57 = vadd.f32 %v928_v55, %v457_v41  ;;  %998 = vst [vmem:[%s1617_s19 + $0x30] sm:$0xff] %v982_v53  ;;  %v983_v59 = vmax.f32 %v970_v54, 0.0  ;;  %v972_v60 = vadd.f32 %v971_v58, %v465_v42 }
 0x147   : > { %v930_v61 = vpop.f32.mrf.mxu0  ;;  %v973_v1 = vpop.f32.mrf.mxu1 }
 0x148   : > { %997 = vst [vmem:[%s1617_s19 + $0x28] sm:$0xff] %v981_v56  ;;  %v988_v62 = vmax.f32 %v929_v57, 0.0  ;;  %v931_v63 = vadd.f32 %v930_v61, %v461_v43  ;;  %999 = vst [vmem:[%s1617_s19 + $0x38] sm:$0xff] %v983_v59  ;;  %v990_v2 = vmax.f32 %v972_v60, 0.0  ;;  %v974_v3 = vadd.f32 %v973_v1, %v469_v45  ;;  %1014 = sbr.rel (!%p1382_p6) target bundleno = 341 (0x155), region = 59 }
 0x14a   : > { %1004 = vst [vmem:[%s1617_s19 + $0x60] sm:$0xff] %v988_v62  ;;  %v989_v4 = vmax.f32 %v931_v63, 0.0  ;;  %1006 = vst [vmem:[%s1617_s19 + $0x70] sm:$0xff] %v990_v2  ;;  %v991_v5 = vmax.f32 %v974_v3, 0.0 }
 0x14c   : > { %1005 = vst [vmem:[%s1617_s19 + $0x68] sm:$0xff] %v989_v4  ;;  %1007 = vst [vmem:[%s1617_s19 + $0x78] sm:$0xff] %v991_v5 }
 0x14d   : > { %v1041_v11 = vld [vmem:[%s1617_s19 + $0x20] sm:$0xff]  ;;  %v1045_v13 = vld [vmem:[%s1617_s19 + $0x30] sm:$0xff] }
 0x14e   : > { %1042 = vst [vmem:[%s1020_s24 + $0x20] sm:$0xff] %v1041_v11  ;;  %1046 = vst [vmem:[%s1020_s24 + $0x30] sm:$0xff] %v1045_v13 }
 0x14f   : > { %v1043_v12 = vld [vmem:[%s1617_s19 + $0x28] sm:$0xff]  ;;  %v1047_v10 = vld [vmem:[%s1617_s19 + $0x38] sm:$0xff] }
 0x150   : > { %1044 = vst [vmem:[%s1020_s24 + $0x28] sm:$0xff] %v1043_v12  ;;  %1048 = vst [vmem:[%s1020_s24 + $0x38] sm:$0xff] %v1047_v10 }
 0x151   : > { %v1057_v18 = vld [vmem:[%s1617_s19 + $0x60] sm:$0xff]  ;;  %v1061_v20 = vld [vmem:[%s1617_s19 + $0x70] sm:$0xff] }
 0x152   : > { %1058 = vst [vmem:[%s1020_s24 + $0x220] sm:$0xff] %v1057_v18  ;;  %1062 = vst [vmem:[%s1020_s24 + $0x230] sm:$0xff] %v1061_v20 }
 0x153   : > { %v1059_v19 = vld [vmem:[%s1617_s19 + $0x68] sm:$0xff]  ;;  %v1063_v21 = vld [vmem:[%s1617_s19 + $0x78] sm:$0xff] }
 0x154   : > { %1060 = vst [vmem:[%s1020_s24 + $0x228] sm:$0xff] %v1059_v19  ;;  %1064 = vst [vmem:[%s1020_s24 + $0x238] sm:$0xff] %v1063_v21 }
 0x155 PF: > { %s13_s16 = sadd.s32 1, %s1324_s16   ;;  %s1677_s12 = smov %s1312_s13 }
 0x156   : > { %p10_p12 = scmp.ge.s32.totalorder %s13_s16, 10   ;;  %s1678_s13 = smov %s1387_s22 }
 0x157   : > { %s1679_s14 = smov %s1320_s15  ;;  %s1680_s15 = smov %s1682_s17 }
 0x158   :  { %12 = sbr.rel (!%p10_p12) target bundleno = 3 (0x3), region = 119 }

// kernel: vae_forward.15
= control target key start
LH: loop header
LB: loop body
LE: loop exit
PB: predicated region body
PF: predicated region fallthrough
CT: control target
= control target key end

     0   :  { %s2177_s12 = smov 0   ;;  %s2179_s13 = smov 0   ;;  %s2737_s0 = inlined_call_operand.vmem [shape: bf16[32,512], index: 0, kind: input, shape index: {}]   ;;  %s2738_s1 = inlined_call_operand.vmem [shape: bf16[512,1024], index: 1, kind: input, shape index: {}]   ;;  %s2739_s2 = inlined_call_operand.vmem [shape: f32[1,1024], index: 2, kind: input, shape index: {}]   ;;  %s2740_s3 = inlined_call_operand.vmem [shape: f32[32,1024], index: 3, kind: output, shape index: {}]  }
   0x1   :  { %s2181_s14 = smov 0   ;;  %s2183_s15 = smov 0  }
   0x2   :  { %s2185_s16 = smov 0  }
   0x3 LB: > { %s22_s17 = sadd.s32 1, %s2151_s15  ;;  %s1718_s18 = sadd.s32 4294967295, %s2155_s16   ;;  %s2155_s16 = sphi %s2185_s16, %s13_s16   ;;  %s2151_s15 = sphi %s2183_s15, %s2745_s15   ;;  %s2147_s14 = sphi %s2181_s14, %s2744_s14   ;;  %s2143_s13 = sphi %s2179_s13, %s2743_s13   ;;  %s2139_s12 = sphi %s2177_s12, %s2742_s12  }
   0x4   : > { %p23_p0 = scmp.ge.s32.totalorder %s22_s17, 2  ;;  %p65_p1 = scmp.ne.s32.totalorder %s2143_s13, %s2139_s12 }
   0x5   : > { %p66_p2 = scmp.eq.s32.totalorder %s2155_s16, 0  ;;  %p123_p4 = scmp.eq.s32.totalorder %s1718_s18, 1 }
   0x6   : > { %s2747_s17 = smov (%p23_p0, %s22_s17), 0  ;;  %s58_s20 = sadd.s32 1, %s2143_s13 }
   0x7   : > { %p67_p3 = por %p66_p2, %p65_p1  ;;  %s55_s19 = ssub.s32 %s2151_s15, %s2747_s17 }
   0x8   : > { %p56_p5 = scmp.eq.s32.totalorder %s55_s19, 0  ;;  %p2212_p6 = por %p123_p4, %p65_p1 }
   0x9   : > { %p1722_p7 = scmp.ge.s32.totalorder %s2155_s16, 2 }
   0xa   : > { %s2217_s22 = scalar_select %p56_p5, %s2143_s13, %s58_s20  }
   0xb   : > { %155 = sbr.rel (%p1722_p7) target bundleno = 84 (0x54), region = 20 }
  0x10   : > { %158 = sbr.rel (!%p67_p3) target bundleno = 84 (0x54), region = 24  ;;  %s160_s23 = sand.u32 (%p67_p3), 1, %s2143_s13  }
  0x11   : > { %s1871_s24 = sshll.u32 (%p67_p3), %s2151_s15, 4  ;;  %s1723_s25 = sshll.u32 (%p67_p3), %s160_s23, 10 }
  0x12   : > { %s2225_s28 = scalar_lea.vmem (%p67_p3), %s2738_s1, %s1871_s24  ;;  %s2230_s29 = scalar_lea.vmem (%p67_p3), [#allocation2], %s1723_s25 }
  0x13   : > { %v178_v0 = vld [vmem:[%s2225_s28] sm:$0xff] (%p67_p3)  ;;  %v180_v1 = vld [vmem:[%s2225_s28 + $0x8] sm:$0xff] (%p67_p3) }
  0x14   : > { %v182_v2 = vld [vmem:[%s2225_s28 + $0x20] sm:$0xff] (%p67_p3)  ;;  %179 = vst [vmem:[%s2230_s29] sm:$0xff] (%p67_p3), %v178_v0  ;;  %181 = vst [vmem:[%s2230_s29 + $0x8] sm:$0xff] (%p67_p3), %v180_v1  ;;  %v184_v3 = vld [vmem:[%s2225_s28 + $0x28] sm:$0xff] (%p67_p3) }
  0x15   : > { %183 = vst [vmem:[%s2230_s29 + $0x10] sm:$0xff] %v182_v2  ;;  %v186_v4 = vld [vmem:[%s2225_s28 + $0x40] sm:$0xff]  ;;  %v188_v5 = vld [vmem:[%s2225_s28 + $0x48] sm:$0xff]  ;;  %185 = vst [vmem:[%s2230_s29 + $0x18] sm:$0xff] %v184_v3 }
  0x16   : > { %187 = vst [vmem:[%s2230_s29 + $0x20] sm:$0xff] %v186_v4  ;;  %189 = vst [vmem:[%s2230_s29 + $0x28] sm:$0xff] %v188_v5  ;;  %v190_v6 = vld [vmem:[%s2225_s28 + $0x60] sm:$0xff]  ;;  %v192_v7 = vld [vmem:[%s2225_s28 + $0x68] sm:$0xff] }
  0x17   : > { %v194_v8 = vld [vmem:[%s2225_s28 + $0x80] sm:$0xff]  ;;  %191 = vst [vmem:[%s2230_s29 + $0x30] sm:$0xff] %v190_v6  ;;  %193 = vst [vmem:[%s2230_s29 + $0x38] sm:$0xff] %v192_v7  ;;  %v196_v9 = vld [vmem:[%s2225_s28 + $0x88] sm:$0xff] }
  0x18   : > { %195 = vst [vmem:[%s2230_s29 + $0x40] sm:$0xff] %v194_v8  ;;  %v198_v10 = vld [vmem:[%s2225_s28 + $0xa0] sm:$0xff]  ;;  %v200_v11 = vld [vmem:[%s2225_s28 + $0xa8] sm:$0xff]  ;;  %197 = vst [vmem:[%s2230_s29 + $0x48] sm:$0xff] %v196_v9 }
  0x19   : > { %199 = vst [vmem:[%s2230_s29 + $0x50] sm:$0xff] %v198_v10  ;;  %201 = vst [vmem:[%s2230_s29 + $0x58] sm:$0xff] %v200_v11  ;;  %v202_v12 = vld [vmem:[%s2225_s28 + $0xc0] sm:$0xff]  ;;  %v204_v13 = vld [vmem:[%s2225_s28 + $0xc8] sm:$0xff] }
  0x1a   : > { %v206_v14 = vld [vmem:[%s2225_s28 + $0xe0] sm:$0xff]  ;;  %203 = vst [vmem:[%s2230_s29 + $0x60] sm:$0xff] %v202_v12  ;;  %205 = vst [vmem:[%s2230_s29 + $0x68] sm:$0xff] %v204_v13  ;;  %v208_v15 = vld [vmem:[%s2225_s28 + $0xe8] sm:$0xff] }
  0x1b   : > { %207 = vst [vmem:[%s2230_s29 + $0x70] sm:$0xff] %v206_v14  ;;  %v210_v16 = vld [vmem:[%s2225_s28 + $0x100] sm:$0xff]  ;;  %v212_v17 = vld [vmem:[%s2225_s28 + $0x108] sm:$0xff]  ;;  %209 = vst [vmem:[%s2230_s29 + $0x78] sm:$0xff] %v208_v15 }
  0x1c   : > { %211 = vst [vmem:[%s2230_s29 + $0x80] sm:$0xff] %v210_v16  ;;  %213 = vst [vmem:[%s2230_s29 + $0x88] sm:$0xff] %v212_v17  ;;  %v214_v18 = vld [vmem:[%s2225_s28 + $0x120] sm:$0xff]  ;;  %v216_v19 = vld [vmem:[%s2225_s28 + $0x128] sm:$0xff] }
  0x1d   : > { %v218_v20 = vld [vmem:[%s2225_s28 + $0x140] sm:$0xff]  ;;  %215 = vst [vmem:[%s2230_s29 + $0x90] sm:$0xff] %v214_v18  ;;  %217 = vst [vmem:[%s2230_s29 + $0x98] sm:$0xff] %v216_v19  ;;  %v220_v21 = vld [vmem:[%s2225_s28 + $0x148] sm:$0xff] }
  0x1e   : > { %219 = vst [vmem:[%s2230_s29 + $0xa0] sm:$0xff] %v218_v20  ;;  %v222_v22 = vld [vmem:[%s2225_s28 + $0x160] sm:$0xff]  ;;  %v224_v23 = vld [vmem:[%s2225_s28 + $0x168] sm:$0xff]  ;;  %221 = vst [vmem:[%s2230_s29 + $0xa8] sm:$0xff] %v220_v21 }
  0x1f   : > { %223 = vst [vmem:[%s2230_s29 + $0xb0] sm:$0xff] %v222_v22  ;;  %225 = vst [vmem:[%s2230_s29 + $0xb8] sm:$0xff] %v224_v23  ;;  %v226_v24 = vld [vmem:[%s2225_s28 + $0x180] sm:$0xff]  ;;  %v228_v25 = vld [vmem:[%s2225_s28 + $0x188] sm:$0xff] }
  0x20   : > { %v230_v26 = vld [vmem:[%s2225_s28 + $0x1a0] sm:$0xff]  ;;  %227 = vst [vmem:[%s2230_s29 + $0xc0] sm:$0xff] %v226_v24  ;;  %229 = vst [vmem:[%s2230_s29 + $0xc8] sm:$0xff] %v228_v25  ;;  %v232_v27 = vld [vmem:[%s2225_s28 + $0x1a8] sm:$0xff] }
  0x21   : > { %231 = vst [vmem:[%s2230_s29 + $0xd0] sm:$0xff] %v230_v26  ;;  %v234_v28 = vld [vmem:[%s2225_s28 + $0x1c0] sm:$0xff]  ;;  %v236_v29 = vld [vmem:[%s2225_s28 + $0x1c8] sm:$0xff]  ;;  %233 = vst [vmem:[%s2230_s29 + $0xd8] sm:$0xff] %v232_v27 }
  0x22   : > { %235 = vst [vmem:[%s2230_s29 + $0xe0] sm:$0xff] %v234_v28  ;;  %237 = vst [vmem:[%s2230_s29 + $0xe8] sm:$0xff] %v236_v29  ;;  %v238_v30 = vld [vmem:[%s2225_s28 + $0x1e0] sm:$0xff]  ;;  %v240_v31 = vld [vmem:[%s2225_s28 + $0x1e8] sm:$0xff] }
  0x23   : > { %v242_v32 = vld [vmem:[%s2225_s28 + $0x200] sm:$0xff]  ;;  %239 = vst [vmem:[%s2230_s29 + $0xf0] sm:$0xff] %v238_v30  ;;  %241 = vst [vmem:[%s2230_s29 + $0xf8] sm:$0xff] %v240_v31  ;;  %v244_v33 = vld [vmem:[%s2225_s28 + $0x208] sm:$0xff] }
  0x24   : > { %243 = vst [vmem:[%s2230_s29 + $0x100] sm:$0xff] %v242_v32  ;;  %v246_v34 = vld [vmem:[%s2225_s28 + $0x220] sm:$0xff]  ;;  %v248_v35 = vld [vmem:[%s2225_s28 + $0x228] sm:$0xff]  ;;  %245 = vst [vmem:[%s2230_s29 + $0x108] sm:$0xff] %v244_v33 }
  0x25   : > { %247 = vst [vmem:[%s2230_s29 + $0x110] sm:$0xff] %v246_v34  ;;  %249 = vst [vmem:[%s2230_s29 + $0x118] sm:$0xff] %v248_v35  ;;  %v250_v36 = vld [vmem:[%s2225_s28 + $0x240] sm:$0xff]  ;;  %v252_v37 = vld [vmem:[%s2225_s28 + $0x248] sm:$0xff] }
  0x26   : > { %v254_v38 = vld [vmem:[%s2225_s28 + $0x260] sm:$0xff]  ;;  %251 = vst [vmem:[%s2230_s29 + $0x120] sm:$0xff] %v250_v36  ;;  %253 = vst [vmem:[%s2230_s29 + $0x128] sm:$0xff] %v252_v37  ;;  %v256_v39 = vld [vmem:[%s2225_s28 + $0x268] sm:$0xff] }
  0x27   : > { %255 = vst [vmem:[%s2230_s29 + $0x130] sm:$0xff] %v254_v38  ;;  %v258_v40 = vld [vmem:[%s2225_s28 + $0x280] sm:$0xff]  ;;  %v260_v41 = vld [vmem:[%s2225_s28 + $0x288] sm:$0xff]  ;;  %257 = vst [vmem:[%s2230_s29 + $0x138] sm:$0xff] %v256_v39 }
  0x28   : > { %259 = vst [vmem:[%s2230_s29 + $0x140] sm:$0xff] %v258_v40  ;;  %261 = vst [vmem:[%s2230_s29 + $0x148] sm:$0xff] %v260_v41  ;;  %v262_v42 = vld [vmem:[%s2225_s28 + $0x2a0] sm:$0xff]  ;;  %v264_v43 = vld [vmem:[%s2225_s28 + $0x2a8] sm:$0xff] }
  0x29   : > { %v266_v44 = vld [vmem:[%s2225_s28 + $0x2c0] sm:$0xff]  ;;  %263 = vst [vmem:[%s2230_s29 + $0x150] sm:$0xff] %v262_v42  ;;  %265 = vst [vmem:[%s2230_s29 + $0x158] sm:$0xff] %v264_v43  ;;  %v268_v45 = vld [vmem:[%s2225_s28 + $0x2c8] sm:$0xff] }
  0x2a   : > { %267 = vst [vmem:[%s2230_s29 + $0x160] sm:$0xff] %v266_v44  ;;  %v270_v46 = vld [vmem:[%s2225_s28 + $0x2e0] sm:$0xff]  ;;  %v272_v47 = vld [vmem:[%s2225_s28 + $0x2e8] sm:$0xff]  ;;  %269 = vst [vmem:[%s2230_s29 + $0x168] sm:$0xff] %v268_v45 }
  0x2b   : > { %271 = vst [vmem:[%s2230_s29 + $0x170] sm:$0xff] %v270_v46  ;;  %273 = vst [vmem:[%s2230_s29 + $0x178] sm:$0xff] %v272_v47  ;;  %v274_v48 = vld [vmem:[%s2225_s28 + $0x300] sm:$0xff]  ;;  %v276_v49 = vld [vmem:[%s2225_s28 + $0x308] sm:$0xff] }
  0x2c   : > { %v278_v50 = vld [vmem:[%s2225_s28 + $0x320] sm:$0xff]  ;;  %275 = vst [vmem:[%s2230_s29 + $0x180] sm:$0xff] %v274_v48  ;;  %277 = vst [vmem:[%s2230_s29 + $0x188] sm:$0xff] %v276_v49  ;;  %v280_v51 = vld [vmem:[%s2225_s28 + $0x328] sm:$0xff] }
  0x2d   : > { %279 = vst [vmem:[%s2230_s29 + $0x190] sm:$0xff] %v278_v50  ;;  %v282_v52 = vld [vmem:[%s2225_s28 + $0x340] sm:$0xff]  ;;  %v284_v53 = vld [vmem:[%s2225_s28 + $0x348] sm:$0xff]  ;;  %281 = vst [vmem:[%s2230_s29 + $0x198] sm:$0xff] %v280_v51 }
  0x2e   : > { %283 = vst [vmem:[%s2230_s29 + $0x1a0] sm:$0xff] %v282_v52  ;;  %285 = vst [vmem:[%s2230_s29 + $0x1a8] sm:$0xff] %v284_v53  ;;  %v286_v54 = vld [vmem:[%s2225_s28 + $0x360] sm:$0xff]  ;;  %v288_v55 = vld [vmem:[%s2225_s28 + $0x368] sm:$0xff] }
  0x2f   : > { %v290_v56 = vld [vmem:[%s2225_s28 + $0x380] sm:$0xff]  ;;  %287 = vst [vmem:[%s2230_s29 + $0x1b0] sm:$0xff] %v286_v54  ;;  %289 = vst [vmem:[%s2230_s29 + $0x1b8] sm:$0xff] %v288_v55  ;;  %v292_v57 = vld [vmem:[%s2225_s28 + $0x388] sm:$0xff] }
  0x30   : > { %291 = vst [vmem:[%s2230_s29 + $0x1c0] sm:$0xff] %v290_v56  ;;  %v294_v58 = vld [vmem:[%s2225_s28 + $0x3a0] sm:$0xff]  ;;  %v296_v59 = vld [vmem:[%s2225_s28 + $0x3a8] sm:$0xff]  ;;  %293 = vst [vmem:[%s2230_s29 + $0x1c8] sm:$0xff] %v292_v57 }
  0x31   : > { %295 = vst [vmem:[%s2230_s29 + $0x1d0] sm:$0xff] %v294_v58  ;;  %297 = vst [vmem:[%s2230_s29 + $0x1d8] sm:$0xff] %v296_v59  ;;  %v298_v60 = vld [vmem:[%s2225_s28 + $0x3c0] sm:$0xff]  ;;  %v300_v61 = vld [vmem:[%s2225_s28 + $0x3c8] sm:$0xff] }
  0x32   : > { %v302_v62 = vld [vmem:[%s2225_s28 + $0x3e0] sm:$0xff]  ;;  %299 = vst [vmem:[%s2230_s29 + $0x1e0] sm:$0xff] %v298_v60  ;;  %301 = vst [vmem:[%s2230_s29 + $0x1e8] sm:$0xff] %v300_v61  ;;  %v304_v63 = vld [vmem:[%s2225_s28 + $0x3e8] sm:$0xff] }
  0x33   : > { %303 = vst [vmem:[%s2230_s29 + $0x1f0] sm:$0xff] %v302_v62  ;;  %v306_v0 = vld [vmem:[%s2225_s28 + $0x400] sm:$0xff]  ;;  %v308_v1 = vld [vmem:[%s2225_s28 + $0x408] sm:$0xff]  ;;  %305 = vst [vmem:[%s2230_s29 + $0x1f8] sm:$0xff] %v304_v63 }
  0x34   : > { %307 = vst [vmem:[%s2230_s29 + $0x200] sm:$0xff] %v306_v0  ;;  %309 = vst [vmem:[%s2230_s29 + $0x208] sm:$0xff] %v308_v1  ;;  %v310_v2 = vld [vmem:[%s2225_s28 + $0x420] sm:$0xff]  ;;  %v312_v3 = vld [vmem:[%s2225_s28 + $0x428] sm:$0xff] }
  0x35   : > { %v314_v4 = vld [vmem:[%s2225_s28 + $0x440] sm:$0xff]  ;;  %311 = vst [vmem:[%s2230_s29 + $0x210] sm:$0xff] %v310_v2  ;;  %313 = vst [vmem:[%s2230_s29 + $0x218] sm:$0xff] %v312_v3  ;;  %v316_v5 = vld [vmem:[%s2225_s28 + $0x448] sm:$0xff] }
  0x36   : > { %315 = vst [vmem:[%s2230_s29 + $0x220] sm:$0xff] %v314_v4  ;;  %v318_v6 = vld [vmem:[%s2225_s28 + $0x460] sm:$0xff]  ;;  %v320_v7 = vld [vmem:[%s2225_s28 + $0x468] sm:$0xff]  ;;  %317 = vst [vmem:[%s2230_s29 + $0x228] sm:$0xff] %v316_v5 }
  0x37   : > { %319 = vst [vmem:[%s2230_s29 + $0x230] sm:$0xff] %v318_v6  ;;  %321 = vst [vmem:[%s2230_s29 + $0x238] sm:$0xff] %v320_v7  ;;  %v322_v8 = vld [vmem:[%s2225_s28 + $0x480] sm:$0xff]  ;;  %v324_v9 = vld [vmem:[%s2225_s28 + $0x488] sm:$0xff] }
  0x38   : > { %v326_v10 = vld [vmem:[%s2225_s28 + $0x4a0] sm:$0xff]  ;;  %323 = vst [vmem:[%s2230_s29 + $0x240] sm:$0xff] %v322_v8  ;;  %325 = vst [vmem:[%s2230_s29 + $0x248] sm:$0xff] %v324_v9  ;;  %v328_v11 = vld [vmem:[%s2225_s28 + $0x4a8] sm:$0xff] }
  0x39   : > { %327 = vst [vmem:[%s2230_s29 + $0x250] sm:$0xff] %v326_v10  ;;  %v330_v12 = vld [vmem:[%s2225_s28 + $0x4c0] sm:$0xff]  ;;  %v332_v13 = vld [vmem:[%s2225_s28 + $0x4c8] sm:$0xff]  ;;  %329 = vst [vmem:[%s2230_s29 + $0x258] sm:$0xff] %v328_v11 }
  0x3a   : > { %331 = vst [vmem:[%s2230_s29 + $0x260] sm:$0xff] %v330_v12  ;;  %333 = vst [vmem:[%s2230_s29 + $0x268] sm:$0xff] %v332_v13  ;;  %v334_v14 = vld [vmem:[%s2225_s28 + $0x4e0] sm:$0xff]  ;;  %v336_v15 = vld [vmem:[%s2225_s28 + $0x4e8] sm:$0xff] }
  0x3b   : > { %v338_v16 = vld [vmem:[%s2225_s28 + $0x500] sm:$0xff]  ;;  %335 = vst [vmem:[%s2230_s29 + $0x270] sm:$0xff] %v334_v14  ;;  %337 = vst [vmem:[%s2230_s29 + $0x278] sm:$0xff] %v336_v15  ;;  %v340_v17 = vld [vmem:[%s2225_s28 + $0x508] sm:$0xff] }
  0x3c   : > { %339 = vst [vmem:[%s2230_s29 + $0x280] sm:$0xff] %v338_v16  ;;  %v342_v18 = vld [vmem:[%s2225_s28 + $0x520] sm:$0xff]  ;;  %v344_v19 = vld [vmem:[%s2225_s28 + $0x528] sm:$0xff]  ;;  %341 = vst [vmem:[%s2230_s29 + $0x288] sm:$0xff] %v340_v17 }
  0x3d   : > { %343 = vst [vmem:[%s2230_s29 + $0x290] sm:$0xff] %v342_v18  ;;  %345 = vst [vmem:[%s2230_s29 + $0x298] sm:$0xff] %v344_v19  ;;  %v346_v20 = vld [vmem:[%s2225_s28 + $0x540] sm:$0xff]  ;;  %v348_v21 = vld [vmem:[%s2225_s28 + $0x548] sm:$0xff] }
  0x3e   : > { %v350_v22 = vld [vmem:[%s2225_s28 + $0x560] sm:$0xff]  ;;  %347 = vst [vmem:[%s2230_s29 + $0x2a0] sm:$0xff] %v346_v20  ;;  %349 = vst [vmem:[%s2230_s29 + $0x2a8] sm:$0xff] %v348_v21  ;;  %v352_v23 = vld [vmem:[%s2225_s28 + $0x568] sm:$0xff] }
  0x3f   : > { %351 = vst [vmem:[%s2230_s29 + $0x2b0] sm:$0xff] %v350_v22  ;;  %v354_v24 = vld [vmem:[%s2225_s28 + $0x580] sm:$0xff]  ;;  %v356_v25 = vld [vmem:[%s2225_s28 + $0x588] sm:$0xff]  ;;  %353 = vst [vmem:[%s2230_s29 + $0x2b8] sm:$0xff] %v352_v23 }
  0x40   : > { %355 = vst [vmem:[%s2230_s29 + $0x2c0] sm:$0xff] %v354_v24  ;;  %357 = vst [vmem:[%s2230_s29 + $0x2c8] sm:$0xff] %v356_v25  ;;  %v358_v26 = vld [vmem:[%s2225_s28 + $0x5a0] sm:$0xff]  ;;  %v360_v27 = vld [vmem:[%s2225_s28 + $0x5a8] sm:$0xff] }
  0x41   : > { %v362_v28 = vld [vmem:[%s2225_s28 + $0x5c0] sm:$0xff]  ;;  %359 = vst [vmem:[%s2230_s29 + $0x2d0] sm:$0xff] %v358_v26  ;;  %361 = vst [vmem:[%s2230_s29 + $0x2d8] sm:$0xff] %v360_v27  ;;  %v364_v29 = vld [vmem:[%s2225_s28 + $0x5c8] sm:$0xff] }
  0x42   : > { %363 = vst [vmem:[%s2230_s29 + $0x2e0] sm:$0xff] %v362_v28  ;;  %v366_v30 = vld [vmem:[%s2225_s28 + $0x5e0] sm:$0xff]  ;;  %v368_v31 = vld [vmem:[%s2225_s28 + $0x5e8] sm:$0xff]  ;;  %365 = vst [vmem:[%s2230_s29 + $0x2e8] sm:$0xff] %v364_v29 }
  0x43   : > { %367 = vst [vmem:[%s2230_s29 + $0x2f0] sm:$0xff] %v366_v30  ;;  %369 = vst [vmem:[%s2230_s29 + $0x2f8] sm:$0xff] %v368_v31  ;;  %v370_v32 = vld [vmem:[%s2225_s28 + $0x600] sm:$0xff]  ;;  %v372_v33 = vld [vmem:[%s2225_s28 + $0x608] sm:$0xff] }
  0x44   : > { %v374_v34 = vld [vmem:[%s2225_s28 + $0x620] sm:$0xff]  ;;  %371 = vst [vmem:[%s2230_s29 + $0x300] sm:$0xff] %v370_v32  ;;  %373 = vst [vmem:[%s2230_s29 + $0x308] sm:$0xff] %v372_v33  ;;  %v376_v35 = vld [vmem:[%s2225_s28 + $0x628] sm:$0xff] }
  0x45   : > { %375 = vst [vmem:[%s2230_s29 + $0x310] sm:$0xff] %v374_v34  ;;  %v378_v36 = vld [vmem:[%s2225_s28 + $0x640] sm:$0xff]  ;;  %v380_v37 = vld [vmem:[%s2225_s28 + $0x648] sm:$0xff]  ;;  %377 = vst [vmem:[%s2230_s29 + $0x318] sm:$0xff] %v376_v35 }
  0x46   : > { %379 = vst [vmem:[%s2230_s29 + $0x320] sm:$0xff] %v378_v36  ;;  %381 = vst [vmem:[%s2230_s29 + $0x328] sm:$0xff] %v380_v37  ;;  %v382_v38 = vld [vmem:[%s2225_s28 + $0x660] sm:$0xff]  ;;  %v384_v39 = vld [vmem:[%s2225_s28 + $0x668] sm:$0xff] }
  0x47   : > { %v386_v40 = vld [vmem:[%s2225_s28 + $0x680] sm:$0xff]  ;;  %383 = vst [vmem:[%s2230_s29 + $0x330] sm:$0xff] %v382_v38  ;;  %385 = vst [vmem:[%s2230_s29 + $0x338] sm:$0xff] %v384_v39  ;;  %v388_v41 = vld [vmem:[%s2225_s28 + $0x688] sm:$0xff] }
  0x48   : > { %387 = vst [vmem:[%s2230_s29 + $0x340] sm:$0xff] %v386_v40  ;;  %v390_v42 = vld [vmem:[%s2225_s28 + $0x6a0] sm:$0xff]  ;;  %v392_v43 = vld [vmem:[%s2225_s28 + $0x6a8] sm:$0xff]  ;;  %389 = vst [vmem:[%s2230_s29 + $0x348] sm:$0xff] %v388_v41 }
  0x49   : > { %391 = vst [vmem:[%s2230_s29 + $0x350] sm:$0xff] %v390_v42  ;;  %393 = vst [vmem:[%s2230_s29 + $0x358] sm:$0xff] %v392_v43  ;;  %v394_v44 = vld [vmem:[%s2225_s28 + $0x6c0] sm:$0xff]  ;;  %v396_v45 = vld [vmem:[%s2225_s28 + $0x6c8] sm:$0xff] }
  0x4a   : > { %v398_v46 = vld [vmem:[%s2225_s28 + $0x6e0] sm:$0xff]  ;;  %395 = vst [vmem:[%s2230_s29 + $0x360] sm:$0xff] %v394_v44  ;;  %397 = vst [vmem:[%s2230_s29 + $0x368] sm:$0xff] %v396_v45  ;;  %v400_v47 = vld [vmem:[%s2225_s28 + $0x6e8] sm:$0xff] }
  0x4b   : > { %399 = vst [vmem:[%s2230_s29 + $0x370] sm:$0xff] %v398_v46  ;;  %v402_v48 = vld [vmem:[%s2225_s28 + $0x700] sm:$0xff]  ;;  %v404_v49 = vld [vmem:[%s2225_s28 + $0x708] sm:$0xff]  ;;  %401 = vst [vmem:[%s2230_s29 + $0x378] sm:$0xff] %v400_v47 }
  0x4c   : > { %403 = vst [vmem:[%s2230_s29 + $0x380] sm:$0xff] %v402_v48  ;;  %405 = vst [vmem:[%s2230_s29 + $0x388] sm:$0xff] %v404_v49  ;;  %v406_v50 = vld [vmem:[%s2225_s28 + $0x720] sm:$0xff]  ;;  %v408_v51 = vld [vmem:[%s2225_s28 + $0x728] sm:$0xff] }
  0x4d   : > { %v410_v52 = vld [vmem:[%s2225_s28 + $0x740] sm:$0xff]  ;;  %407 = vst [vmem:[%s2230_s29 + $0x390] sm:$0xff] %v406_v50  ;;  %409 = vst [vmem:[%s2230_s29 + $0x398] sm:$0xff] %v408_v51  ;;  %v412_v53 = vld [vmem:[%s2225_s28 + $0x748] sm:$0xff] }
  0x4e   : > { %411 = vst [vmem:[%s2230_s29 + $0x3a0] sm:$0xff] %v410_v52  ;;  %v414_v54 = vld [vmem:[%s2225_s28 + $0x760] sm:$0xff]  ;;  %v416_v55 = vld [vmem:[%s2225_s28 + $0x768] sm:$0xff]  ;;  %413 = vst [vmem:[%s2230_s29 + $0x3a8] sm:$0xff] %v412_v53 }
  0x4f   : > { %415 = vst [vmem:[%s2230_s29 + $0x3b0] sm:$0xff] %v414_v54  ;;  %417 = vst [vmem:[%s2230_s29 + $0x3b8] sm:$0xff] %v416_v55  ;;  %v418_v56 = vld [vmem:[%s2225_s28 + $0x780] sm:$0xff]  ;;  %v420_v57 = vld [vmem:[%s2225_s28 + $0x788] sm:$0xff] }
  0x50   : > { %v422_v58 = vld [vmem:[%s2225_s28 + $0x7a0] sm:$0xff]  ;;  %419 = vst [vmem:[%s2230_s29 + $0x3c0] sm:$0xff] %v418_v56  ;;  %421 = vst [vmem:[%s2230_s29 + $0x3c8] sm:$0xff] %v420_v57  ;;  %v424_v59 = vld [vmem:[%s2225_s28 + $0x7a8] sm:$0xff] }
  0x51   : > { %423 = vst [vmem:[%s2230_s29 + $0x3d0] sm:$0xff] %v422_v58  ;;  %v426_v60 = vld [vmem:[%s2225_s28 + $0x7c0] sm:$0xff]  ;;  %v428_v61 = vld [vmem:[%s2225_s28 + $0x7c8] sm:$0xff]  ;;  %425 = vst [vmem:[%s2230_s29 + $0x3d8] sm:$0xff] %v424_v59 }
  0x52   : > { %427 = vst [vmem:[%s2230_s29 + $0x3e0] sm:$0xff] %v426_v60  ;;  %429 = vst [vmem:[%s2230_s29 + $0x3e8] sm:$0xff] %v428_v61  ;;  %v430_v62 = vld [vmem:[%s2225_s28 + $0x7e0] sm:$0xff]  ;;  %v432_v63 = vld [vmem:[%s2225_s28 + $0x7e8] sm:$0xff] }
  0x53   : > { %431 = vst [vmem:[%s2230_s29 + $0x3f0] sm:$0xff] %v430_v62  ;;  %433 = vst [vmem:[%s2230_s29 + $0x3f8] sm:$0xff] %v432_v63 }
  0x54 PF: > { %p1726_p8 = scmp.ge.s32.totalorder %s2155_s16, 1  ;;  %p446_p9 = scmp.lt.s32.totalorder %s2155_s16, 3 }
  0x56   : > { %p447_p10 = pnand %p1726_p8, %p446_p9 }
  0x57   : > { %s453_s30 = sand.u32 (!%p447_p10), 1, %s2139_s12  }
  0x58   : > { %450 = sbr.rel (%p447_p10) target bundleno = 443 (0x1bb), region = 51  ;;  %s1727_s4 = sshll.u32 (!%p447_p10), %s453_s30, 10 }
  0x59   : > { %s2500_s9 = scalar_lea.vmem (!%p447_p10), [#allocation2], %s1727_s4  ;;  %s1729_s4 = sshll.u32 (!%p447_p10), %s2147_s14, 2 }
  0x5a   : > { %p494_p11 = scmp.lt.s32.totalorder (!%p447_p10), %s1729_s4, 7  ;;  %s1728_s8 = sshll.u32 (!%p447_p10), %s453_s30, 7 }
  0x5d   : > { %v2493_v0 = vld [vmem:[%s2737_s0 + $0x4] ss:$16 sps:$4 sm:$0xff]   ;;  %v2498_v1 = vld [vmem:[%s2737_s0 + $0xc] ss:$16 sps:$4 sm:$0xff]   ;;  %v1917_v4 = vld [vmem:[%s2500_s9 + $0xe0] ss:$16 sps:$4 sm:$0xff]  }
  0x5e   : > { %v1913_v2 = vld [vmem:[%s2500_s9 + $0xe4] ss:$16 sps:$4 sm:$0xff]   ;;  %1370 = vmatprep.mubr.bf16.mxu0 %v2493_v0  ;;  %1423 = vmatprep.mubr.bf16.mxu1 %v2498_v1  ;;  %v1918_v5 = vld [vmem:[%s2500_s9 + $0x2e0] ss:$16 sps:$4 sm:$0xff]   ;;  %s2749_s4 = smov (!%p494_p11, %s1729_s4), 7  ;;  %s1872_s12 = sshll.u32 (%p2212_p6), %s2147_s14, 5 }
  0x5f   : > { %v1915_v3 = vld [vmem:[%s2500_s9 + $0x2e4] ss:$16 sps:$4 sm:$0xff]   ;;  %1338 = vmatprep.subr.bf16.mxu0 %v1913_v2  ;;  %v1923_v8 = vld [vmem:[%s2500_s9 + $0xc0] ss:$16 sps:$4 sm:$0xff]   ;;  %s496_s7 = scalar_lea.vmem %s2739_s2, %s2749_s4  ;;  %s1578_s11 = scalar_lea.vmem (%p2212_p6), %s2740_s3, %s1872_s12 }
  0x60   : > { %1391 = vmatprep.subr.bf16.mxu1 %v1915_v3  ;;  %v1919_v6 = vld [vmem:[%s2500_s9 + $0xc4] ss:$16 sps:$4 sm:$0xff]   ;;  %1339 = vmatpush1.bf16.msra.mxu0 %v1917_v4  ;;  %v1924_v9 = vld [vmem:[%s2500_s9 + $0x2c0] ss:$16 sps:$4 sm:$0xff]   ;;  %v2017_v4 = vld [vmem:[%s2500_s9 + $0xec] ss:$16 sps:$4 sm:$0xff]  }
  0x61   : > { %1392 = vmatpush1.bf16.msra.mxu1 %v1918_v5  ;;  %v1921_v7 = vld [vmem:[%s2500_s9 + $0x2c4] ss:$16 sps:$4 sm:$0xff]   ;;  %1340 = vmatprep.subr.bf16.mxu0 %v1919_v6  ;;  %v1929_v12 = vld [vmem:[%s2500_s9 + $0xa0] ss:$16 sps:$4 sm:$0xff]   ;;  %v2020_v5 = vld [vmem:[%s2500_s9 + $0x2ec] ss:$16 sps:$4 sm:$0xff]  }
  0x62   : > { %1393 = vmatprep.subr.bf16.mxu1 %v1921_v7  ;;  %v1925_v10 = vld [vmem:[%s2500_s9 + $0xa4] ss:$16 sps:$4 sm:$0xff]   ;;  %v1930_v13 = vld [vmem:[%s2500_s9 + $0x2a0] ss:$16 sps:$4 sm:$0xff]   ;;  %v2578_v7 = vld [vmem:[%s2737_s0 + $0x8] ss:$16 sps:$4 sm:$0xff]  }
  0x63   : > { %v1927_v11 = vld [vmem:[%s2500_s9 + $0x2a4] ss:$16 sps:$4 sm:$0xff]   ;;  %v1935_v16 = vld [vmem:[%s2500_s9 + $0x80] ss:$16 sps:$4 sm:$0xff]  }
  0x64   : > { %1341 = vmatpush1.bf16.msra.mxu0 %v1923_v8  ;;  %v1931_v14 = vld [vmem:[%s2500_s9 + $0x84] ss:$16 sps:$4 sm:$0xff]   ;;  %v1936_v17 = vld [vmem:[%s2500_s9 + $0x280] ss:$16 sps:$4 sm:$0xff]   ;;  %v2015_v8 = vld [vmem:[%s2500_s9 + $0xe8] ss:$16 sps:$4 sm:$0xff]  }
  0x65   : > { %1394 = vmatpush1.bf16.msra.mxu1 %v1924_v9  ;;  %1342 = vmatprep.subr.bf16.mxu0 %v1925_v10  ;;  %v1933_v15 = vld [vmem:[%s2500_s9 + $0x284] ss:$16 sps:$4 sm:$0xff]   ;;  %v1941_v20 = vld [vmem:[%s2500_s9 + $0x60] ss:$16 sps:$4 sm:$0xff]   ;;  %v2018_v9 = vld [vmem:[%s2500_s9 + $0x2e8] ss:$16 sps:$4 sm:$0xff]  }
  0x66   : > { %1395 = vmatprep.subr.bf16.mxu1 %v1927_v11  ;;  %v1937_v18 = vld [vmem:[%s2500_s9 + $0x64] ss:$16 sps:$4 sm:$0xff]   ;;  %v1942_v21 = vld [vmem:[%s2500_s9 + $0x260] ss:$16 sps:$4 sm:$0xff]   ;;  %v2023_v10 = vld [vmem:[%s2500_s9 + $0xcc] ss:$16 sps:$4 sm:$0xff]  }
  0x67   : > { %v1939_v19 = vld [vmem:[%s2500_s9 + $0x264] ss:$16 sps:$4 sm:$0xff]   ;;  %v1947_v24 = vld [vmem:[%s2500_s9 + $0x40] ss:$16 sps:$4 sm:$0xff]   ;;  %v2026_v11 = vld [vmem:[%s2500_s9 + $0x2cc] ss:$16 sps:$4 sm:$0xff]  }
  0x68   : > { %1343 = vmatpush1.bf16.msra.mxu0 %v1929_v12  ;;  %v1943_v22 = vld [vmem:[%s2500_s9 + $0x44] ss:$16 sps:$4 sm:$0xff]   ;;  %v1948_v25 = vld [vmem:[%s2500_s9 + $0x240] ss:$16 sps:$4 sm:$0xff]   ;;  %v2021_v12 = vld [vmem:[%s2500_s9 + $0xc8] ss:$16 sps:$4 sm:$0xff]  }
  0x69   : > { %1396 = vmatpush1.bf16.msra.mxu1 %v1930_v13  ;;  %1344 = vmatprep.subr.bf16.mxu0 %v1931_v14  ;;  %v1945_v23 = vld [vmem:[%s2500_s9 + $0x244] ss:$16 sps:$4 sm:$0xff]   ;;  %v1953_v28 = vld [vmem:[%s2500_s9 + $0x20] ss:$16 sps:$4 sm:$0xff]   ;;  %v2024_v13 = vld [vmem:[%s2500_s9 + $0x2c8] ss:$16 sps:$4 sm:$0xff]  }
  0x6a   : > { %1397 = vmatprep.subr.bf16.mxu1 %v1933_v15  ;;  %v1949_v26 = vld [vmem:[%s2500_s9 + $0x24] ss:$16 sps:$4 sm:$0xff]   ;;  %v1954_v29 = vld [vmem:[%s2500_s9 + $0x220] ss:$16 sps:$4 sm:$0xff]   ;;  %v2029_v14 = vld [vmem:[%s2500_s9 + $0xac] ss:$16 sps:$4 sm:$0xff]  }
  0x6b   : > { %v1951_v27 = vld [vmem:[%s2500_s9 + $0x224] ss:$16 sps:$4 sm:$0xff]   ;;  %v1959_v32 = vld [vmem:[%s2500_s9] ss:$16 sps:$4 sm:$0xff]   ;;  %v2032_v15 = vld [vmem:[%s2500_s9 + $0x2ac] ss:$16 sps:$4 sm:$0xff]  }
  0x6c   : > { %1345 = vmatpush1.bf16.msra.mxu0 %v1935_v16  ;;  %v1955_v30 = vld [vmem:[%s2500_s9 + $0x4] ss:$16 sps:$4 sm:$0xff]   ;;  %v1960_v33 = vld [vmem:[%s2500_s9 + $0x200] ss:$16 sps:$4 sm:$0xff]   ;;  %v2027_v16 = vld [vmem:[%s2500_s9 + $0xa8] ss:$16 sps:$4 sm:$0xff]  }
  0x6d   : > { %1398 = vmatpush1.bf16.msra.mxu1 %v1936_v17  ;;  %1346 = vmatprep.subr.bf16.mxu0 %v1937_v18  ;;  %v1957_v31 = vld [vmem:[%s2500_s9 + $0x204] ss:$16 sps:$4 sm:$0xff]   ;;  %v1965_v36 = vld [vmem:[%s2500_s9 + $0x1e0] ss:$16 sps:$4 sm:$0xff]   ;;  %v2030_v17 = vld [vmem:[%s2500_s9 + $0x2a8] ss:$16 sps:$4 sm:$0xff]  }
  0x6e   : > { %1399 = vmatprep.subr.bf16.mxu1 %v1939_v19  ;;  %v1961_v34 = vld [vmem:[%s2500_s9 + $0x1e4] ss:$16 sps:$4 sm:$0xff]   ;;  %v1966_v37 = vld [vmem:[%s2500_s9 + $0x3e0] ss:$16 sps:$4 sm:$0xff]   ;;  %v2035_v18 = vld [vmem:[%s2500_s9 + $0x8c] ss:$16 sps:$4 sm:$0xff]  }
  0x6f   : > { %v1963_v35 = vld [vmem:[%s2500_s9 + $0x3e4] ss:$16 sps:$4 sm:$0xff]   ;;  %v1971_v40 = vld [vmem:[%s2500_s9 + $0x1c0] ss:$16 sps:$4 sm:$0xff]   ;;  %v2038_v19 = vld [vmem:[%s2500_s9 + $0x28c] ss:$16 sps:$4 sm:$0xff]  }
  0x70   : > { %1347 = vmatpush1.bf16.msra.mxu0 %v1941_v20  ;;  %v1967_v38 = vld [vmem:[%s2500_s9 + $0x1c4] ss:$16 sps:$4 sm:$0xff]   ;;  %v1972_v41 = vld [vmem:[%s2500_s9 + $0x3c0] ss:$16 sps:$4 sm:$0xff]   ;;  %v2033_v20 = vld [vmem:[%s2500_s9 + $0x88] ss:$16 sps:$4 sm:$0xff]  }
  0x71   : > { %1400 = vmatpush1.bf16.msra.mxu1 %v1942_v21  ;;  %1348 = vmatprep.subr.bf16.mxu0 %v1943_v22  ;;  %v1969_v39 = vld [vmem:[%s2500_s9 + $0x3c4] ss:$16 sps:$4 sm:$0xff]   ;;  %v1977_v44 = vld [vmem:[%s2500_s9 + $0x1a0] ss:$16 sps:$4 sm:$0xff]   ;;  %v2036_v21 = vld [vmem:[%s2500_s9 + $0x288] ss:$16 sps:$4 sm:$0xff]  }
  0x72   : > { %1401 = vmatprep.subr.bf16.mxu1 %v1945_v23  ;;  %v1973_v42 = vld [vmem:[%s2500_s9 + $0x1a4] ss:$16 sps:$4 sm:$0xff]   ;;  %v1978_v45 = vld [vmem:[%s2500_s9 + $0x3a0] ss:$16 sps:$4 sm:$0xff]   ;;  %v2041_v22 = vld [vmem:[%s2500_s9 + $0x6c] ss:$16 sps:$4 sm:$0xff]  }
  0x73   : > { %v1975_v43 = vld [vmem:[%s2500_s9 + $0x3a4] ss:$16 sps:$4 sm:$0xff]   ;;  %v1983_v48 = vld [vmem:[%s2500_s9 + $0x180] ss:$16 sps:$4 sm:$0xff]   ;;  %v2044_v23 = vld [vmem:[%s2500_s9 + $0x26c] ss:$16 sps:$4 sm:$0xff]  }
  0x74   : > { %1349 = vmatpush1.bf16.msra.mxu0 %v1947_v24  ;;  %v1979_v46 = vld [vmem:[%s2500_s9 + $0x184] ss:$16 sps:$4 sm:$0xff]   ;;  %v1984_v49 = vld [vmem:[%s2500_s9 + $0x380] ss:$16 sps:$4 sm:$0xff]  }
  0x75   : > { %1402 = vmatpush1.bf16.msra.mxu1 %v1948_v25  ;;  %1350 = vmatprep.subr.bf16.mxu0 %v1949_v26  ;;  %v1981_v47 = vld [vmem:[%s2500_s9 + $0x384] ss:$16 sps:$4 sm:$0xff]   ;;  %v1989_v52 = vld [vmem:[%s2500_s9 + $0x160] ss:$16 sps:$4 sm:$0xff]   ;;  %v2039_v25 = vld [vmem:[%s2500_s9 + $0x68] ss:$16 sps:$4 sm:$0xff]  }
  0x76   : > { %1403 = vmatprep.subr.bf16.mxu1 %v1951_v27  ;;  %v1985_v50 = vld [vmem:[%s2500_s9 + $0x164] ss:$16 sps:$4 sm:$0xff]   ;;  %v1990_v53 = vld [vmem:[%s2500_s9 + $0x360] ss:$16 sps:$4 sm:$0xff]   ;;  %v2613_v27 = vld [vmem:[%s2737_s0 + $0x2c] ss:$16 sps:$4 sm:$0xff]  }
  0x77   : > { %v1987_v51 = vld [vmem:[%s2500_s9 + $0x364] ss:$16 sps:$4 sm:$0xff]   ;;  %v1995_v56 = vld [vmem:[%s2500_s9 + $0x140] ss:$16 sps:$4 sm:$0xff]  }
  0x78   : > { %1351 = vmatpush1.bf16.msra.mxu0 %v1953_v28  ;;  %v1991_v54 = vld [vmem:[%s2500_s9 + $0x144] ss:$16 sps:$4 sm:$0xff]   ;;  %v1996_v57 = vld [vmem:[%s2500_s9 + $0x340] ss:$16 sps:$4 sm:$0xff]   ;;  %v2618_v28 = vld [vmem:[%s2737_s0 + $0x28] ss:$16 sps:$4 sm:$0xff]  }
  0x79   : > { %1404 = vmatpush1.bf16.msra.mxu1 %v1954_v29  ;;  %1352 = vmatprep.subr.bf16.mxu0 %v1955_v30  ;;  %v1993_v55 = vld [vmem:[%s2500_s9 + $0x344] ss:$16 sps:$4 sm:$0xff]   ;;  %v2001_v60 = vld [vmem:[%s2500_s9 + $0x120] ss:$16 sps:$4 sm:$0xff]   ;;  %v2042_v29 = vld [vmem:[%s2500_s9 + $0x268] ss:$16 sps:$4 sm:$0xff]  }
  0x7a   : > { %1405 = vmatprep.subr.bf16.mxu1 %v1957_v31  ;;  %v1997_v58 = vld [vmem:[%s2500_s9 + $0x124] ss:$16 sps:$4 sm:$0xff]   ;;  %v2002_v61 = vld [vmem:[%s2500_s9 + $0x320] ss:$16 sps:$4 sm:$0xff]   ;;  %v2047_v30 = vld [vmem:[%s2500_s9 + $0x4c] ss:$16 sps:$4 sm:$0xff]  }
  0x7b   : > { %v1999_v59 = vld [vmem:[%s2500_s9 + $0x324] ss:$16 sps:$4 sm:$0xff]   ;;  %v2007_v2 = vld [vmem:[%s2500_s9 + $0x100] ss:$16 sps:$4 sm:$0xff]   ;;  %v2050_v31 = vld [vmem:[%s2500_s9 + $0x24c] ss:$16 sps:$4 sm:$0xff]  }
  0x7c   : > { %1353 = vmatpush1.bf16.msra.mxu0 %v1959_v32  ;;  %v2003_v62 = vld [vmem:[%s2500_s9 + $0x104] ss:$16 sps:$4 sm:$0xff]   ;;  %v2008_v3 = vld [vmem:[%s2500_s9 + $0x300] ss:$16 sps:$4 sm:$0xff]   ;;  %v2045_v32 = vld [vmem:[%s2500_s9 + $0x48] ss:$16 sps:$4 sm:$0xff]  }
  0x7d   : > { %1406 = vmatpush1.bf16.msra.mxu1 %v1960_v33  ;;  %1354 = vmatprep.subr.bf16.mxu0 %v1961_v34  ;;  %v2005_v63 = vld [vmem:[%s2500_s9 + $0x304] ss:$16 sps:$4 sm:$0xff]   ;;  %v2573_v6 = vld [vmem:[%s2737_s0] ss:$16 sps:$4 sm:$0xff]   ;;  %v2048_v33 = vld [vmem:[%s2500_s9 + $0x248] ss:$16 sps:$4 sm:$0xff]  }
  0x7e   : > { %1407 = vmatprep.subr.bf16.mxu1 %v1963_v35  ;;  %v2601_v24 = vld [vmem:[%s2737_s0 + $0x24] ss:$16 sps:$4 sm:$0xff]   ;;  %v2607_v26 = vld [vmem:[%s2737_s0 + $0x20] ss:$16 sps:$4 sm:$0xff]   ;;  %v2053_v34 = vld [vmem:[%s2500_s9 + $0x2c] ss:$16 sps:$4 sm:$0xff]  }
  0x7f   : > { %v2056_v35 = vld [vmem:[%s2500_s9 + $0x22c] ss:$16 sps:$4 sm:$0xff]  }
  0x80   : > { %1355 = vmatpush2.bf16.msra.mxu0 %v1965_v36  ;;  %v2051_v36 = vld [vmem:[%s2500_s9 + $0x28] ss:$16 sps:$4 sm:$0xff]  }
  0x81   : > { %1408 = vmatpush2.bf16.msra.mxu1 %v1966_v37  ;;  %1356 = vmatprep.subr.bf16.mxu0 %v1967_v38  ;;  %v2054_v37 = vld [vmem:[%s2500_s9 + $0x228] ss:$16 sps:$4 sm:$0xff]   ;;  %v2062_v38 = vld [vmem:[%s2500_s9 + $0x20c] ss:$16 sps:$4 sm:$0xff]  }
  0x82   : > { %1409 = vmatprep.subr.bf16.mxu1 %v1969_v39  ;;  %v2057_v39 = vld [vmem:[%s2500_s9 + $0x8] ss:$16 sps:$4 sm:$0xff]  }
  0x84   : > { %1357 = vmatpush2.bf16.msra.mxu0 %v1971_v40  ;;  %v2060_v40 = vld [vmem:[%s2500_s9 + $0x208] ss:$16 sps:$4 sm:$0xff]  }
  0x85   : > { %1410 = vmatpush2.bf16.msra.mxu1 %v1972_v41  ;;  %1358 = vmatprep.subr.bf16.mxu0 %v1973_v42  ;;  %v2068_v41 = vld [vmem:[%s2500_s9 + $0x3ec] ss:$16 sps:$4 sm:$0xff]   ;;  %v2063_v42 = vld [vmem:[%s2500_s9 + $0x1e8] ss:$16 sps:$4 sm:$0xff]  }
  0x86   : > { %1411 = vmatprep.subr.bf16.mxu1 %v1975_v43  ;;  %v2066_v43 = vld [vmem:[%s2500_s9 + $0x3e8] ss:$16 sps:$4 sm:$0xff]  }
  0x88   : > { %1359 = vmatpush2.bf16.msra.mxu0 %v1977_v44  ;;  %v2071_v44 = vld [vmem:[%s2500_s9 + $0x1cc] ss:$16 sps:$4 sm:$0xff]  }
  0x89   : > { %1412 = vmatpush2.bf16.msra.mxu1 %v1978_v45  ;;  %1360 = vmatprep.subr.bf16.mxu0 %v1979_v46  ;;  %v2074_v45 = vld [vmem:[%s2500_s9 + $0x3cc] ss:$16 sps:$4 sm:$0xff]   ;;  %v2069_v46 = vld [vmem:[%s2500_s9 + $0x1c8] ss:$16 sps:$4 sm:$0xff]  }
  0x8a   : > { %1413 = vmatprep.subr.bf16.mxu1 %v1981_v47  ;;  %v2072_v47 = vld [vmem:[%s2500_s9 + $0x3c8] ss:$16 sps:$4 sm:$0xff]  }
  0x8c   : > { %1361 = vmatpush2.bf16.msra.mxu0 %v1983_v48  ;;  %v2077_v48 = vld [vmem:[%s2500_s9 + $0x1ac] ss:$16 sps:$4 sm:$0xff]  }
  0x8d   : > { %1414 = vmatpush2.bf16.msra.mxu1 %v1984_v49  ;;  %1362 = vmatprep.subr.bf16.mxu0 %v1985_v50  ;;  %v2080_v49 = vld [vmem:[%s2500_s9 + $0x3ac] ss:$16 sps:$4 sm:$0xff]   ;;  %v2075_v50 = vld [vmem:[%s2500_s9 + $0x1a8] ss:$16 sps:$4 sm:$0xff]  }
  0x8e   : > { %1415 = vmatprep.subr.bf16.mxu1 %v1987_v51  ;;  %v2078_v51 = vld [vmem:[%s2500_s9 + $0x3a8] ss:$16 sps:$4 sm:$0xff]  }
  0x90   : > { %1363 = vmatpush2.bf16.msra.mxu0 %v1989_v52  ;;  %v2083_v52 = vld [vmem:[%s2500_s9 + $0x18c] ss:$16 sps:$4 sm:$0xff]  }
  0x91   : > { %1416 = vmatpush2.bf16.msra.mxu1 %v1990_v53  ;;  %1364 = vmatprep.subr.bf16.mxu0 %v1991_v54  ;;  %v2086_v53 = vld [vmem:[%s2500_s9 + $0x38c] ss:$16 sps:$4 sm:$0xff]   ;;  %v2081_v54 = vld [vmem:[%s2500_s9 + $0x188] ss:$16 sps:$4 sm:$0xff]  }
  0x92   : > { %1417 = vmatprep.subr.bf16.mxu1 %v1993_v55  ;;  %v2084_v55 = vld [vmem:[%s2500_s9 + $0x388] ss:$16 sps:$4 sm:$0xff]  }
  0x94   : > { %1365 = vmatpush2.bf16.msra.mxu0 %v1995_v56  ;;  %v2089_v56 = vld [vmem:[%s2500_s9 + $0x16c] ss:$16 sps:$4 sm:$0xff]  }
  0x95   : > { %1418 = vmatpush2.bf16.msra.mxu1 %v1996_v57  ;;  %1366 = vmatprep.subr.bf16.mxu0 %v1997_v58  ;;  %v2092_v57 = vld [vmem:[%s2500_s9 + $0x36c] ss:$16 sps:$4 sm:$0xff]   ;;  %v2087_v58 = vld [vmem:[%s2500_s9 + $0x168] ss:$16 sps:$4 sm:$0xff]  }
  0x96   : > { %1419 = vmatprep.subr.bf16.mxu1 %v1999_v59  ;;  %v2090_v59 = vld [vmem:[%s2500_s9 + $0x368] ss:$16 sps:$4 sm:$0xff]  }
  0x98   : > { %1367 = vmatpush2.bf16.msra.mxu0 %v2001_v60  ;;  %v2101_v60 = vld [vmem:[%s2500_s9 + $0x14c] ss:$16 sps:$4 sm:$0xff]  }
  0x99   : > { %1420 = vmatpush2.bf16.msra.mxu1 %v2002_v61  ;;  %1368 = vmatprep.subr.bf16.mxu0 %v2003_v62  ;;  %v2104_v61 = vld [vmem:[%s2500_s9 + $0x34c] ss:$16 sps:$4 sm:$0xff]   ;;  %v2099_v62 = vld [vmem:[%s2500_s9 + $0x148] ss:$16 sps:$4 sm:$0xff]  }
  0x9a   : > { %1421 = vmatprep.subr.bf16.mxu1 %v2005_v63  ;;  %v2102_v63 = vld [vmem:[%s2500_s9 + $0x348] ss:$16 sps:$4 sm:$0xff]  }
  0x9c   : > { %1369 = vmatpush2.bf16.msra.mxu0 %v2007_v2  ;;  %v2107_v2 = vld [vmem:[%s2500_s9 + $0x12c] ss:$16 sps:$4 sm:$0xff]  }
  0x9d   : > { %1422 = vmatpush2.bf16.msra.mxu1 %v2008_v3  ;;  %1444 = vmatprep.subr.bf16.mxu0 %v2017_v4  ;;  %v2110_v3 = vld [vmem:[%s2500_s9 + $0x32c] ss:$16 sps:$4 sm:$0xff]   ;;  %v2105_v4 = vld [vmem:[%s2500_s9 + $0x128] ss:$16 sps:$4 sm:$0xff]  }
  0x9e   : > { %1497 = vmatprep.subr.bf16.mxu1 %v2020_v5  ;;  %v2108_v5 = vld [vmem:[%s2500_s9 + $0x328] ss:$16 sps:$4 sm:$0xff]  }
  0x9f   : > { %1371 = vmatmul.mubr.bf16.vlgmr.msra.gmra.mxu0 %v2573_v6 }
  0xa0   : > { %1424 = vmatmul.mubr.bf16.vlgmr.msra.gmra.mxu1 %v2578_v7  ;;  %1445 = vmatpush1.bf16.msra.mxu0 %v2015_v8  ;;  %v2113_v8 = vld [vmem:[%s2500_s9 + $0x10c] ss:$16 sps:$4 sm:$0xff]  }
  0xa1   : > { %1498 = vmatpush1.bf16.msra.mxu1 %v2018_v9  ;;  %1446 = vmatprep.subr.bf16.mxu0 %v2023_v10  ;;  %v2116_v9 = vld [vmem:[%s2500_s9 + $0x30c] ss:$16 sps:$4 sm:$0xff]   ;;  %v2111_v10 = vld [vmem:[%s2500_s9 + $0x108] ss:$16 sps:$4 sm:$0xff]  }
  0xa2   : > { %1499 = vmatprep.subr.bf16.mxu1 %v2026_v11  ;;  %1380 = vmatprep.mubr.bf16.mxu0 %v2601_v24  ;;  %v2114_v11 = vld [vmem:[%s2500_s9 + $0x308] ss:$16 sps:$4 sm:$0xff]  }
  0xa3   : > { %1433 = vmatprep.mubr.bf16.mxu1 %v2613_v27 }
  0xa4   : > { %1447 = vmatpush1.bf16.msra.mxu0 %v2021_v12  ;;  %v638_v12 = vlaneseq }
  0xa5   : > { %1500 = vmatpush1.bf16.msra.mxu1 %v2024_v13  ;;  %1448 = vmatprep.subr.bf16.mxu0 %v2029_v14  ;;  %v636_v14 = vld [vmem:[%s496_s7] sm:$0xf] }
  0xa6   : > { %1501 = vmatprep.subr.bf16.mxu1 %v2032_v15  ;;  %v639_v13 = vshrl.u32 %v638_v12, 7 }
  0xa7   : > { %1381 = vmatmul.mubr.bf16.gmra.mxu0 %v2607_v26 }
  0xa8   : > { %1449 = vmatpush1.bf16.msra.mxu0 %v2027_v16  ;;  %1434 = vmatmul.mubr.bf16.gmra.mxu1 %v2618_v28 }
  0xa9   : > { %1502 = vmatpush1.bf16.msra.mxu1 %v2030_v17  ;;  %1450 = vmatprep.subr.bf16.mxu0 %v2035_v18 }
  0xaa   : > { %1503 = vmatprep.subr.bf16.mxu1 %v2038_v19  ;;  %1476 = vmatprep.mubr.bf16.mxu0 %v2493_v0  ;;  %v2059_v0 = vld [vmem:[%s2500_s9 + $0xc] ss:$16 sps:$4 sm:$0xff]  }
  0xab   : > { %1529 = vmatprep.mubr.bf16.mxu1 %v2498_v1  ;;  %v2065_v1 = vld [vmem:[%s2500_s9 + $0x1ec] ss:$16 sps:$4 sm:$0xff]   ;;  %s2682_s9 = scalar_lea.vmem [#allocation3], %s1728_s8 }
  0xac   : > { %1451 = vmatpush1.bf16.msra.mxu0 %v2033_v20 }
  0xad   : > { %1504 = vmatpush1.bf16.msra.mxu1 %v2036_v21  ;;  %1452 = vmatprep.subr.bf16.mxu0 %v2041_v22 }
  0xae   : > { %1505 = vmatprep.subr.bf16.mxu1 %v2044_v23 }
  0xb0   : > { %1453 = vmatpush1.bf16.msra.mxu0 %v2039_v25 }
  0xb1   : > { %1506 = vmatpush1.bf16.msra.mxu1 %v2042_v29  ;;  %1454 = vmatprep.subr.bf16.mxu0 %v2047_v30 }
  0xb2   : > { %1507 = vmatprep.subr.bf16.mxu1 %v2050_v31 }
  0xb4   : > { %1455 = vmatpush1.bf16.msra.mxu0 %v2045_v32 }
  0xb5   : > { %1508 = vmatpush1.bf16.msra.mxu1 %v2048_v33  ;;  %1456 = vmatprep.subr.bf16.mxu0 %v2053_v34 }
  0xb6   : > { %1509 = vmatprep.subr.bf16.mxu1 %v2056_v35 }
  0xb8   : > { %1457 = vmatpush1.bf16.msra.mxu0 %v2051_v36 }
  0xb9   : > { %1510 = vmatpush1.bf16.msra.mxu1 %v2054_v37  ;;  %1458 = vmatprep.subr.bf16.mxu0 %v2059_v0 }
  0xba   : > { %1511 = vmatprep.subr.bf16.mxu1 %v2062_v38 }
  0xbc   : > { %1459 = vmatpush1.bf16.msra.mxu0 %v2057_v39 }
  0xbd   : > { %1512 = vmatpush1.bf16.msra.mxu1 %v2060_v40  ;;  %1460 = vmatprep.subr.bf16.mxu0 %v2065_v1 }
  0xbe   : > { %1513 = vmatprep.subr.bf16.mxu1 %v2068_v41 }
  0xc0   : > { %1461 = vmatpush2.bf16.msra.mxu0 %v2063_v42 }
  0xc1   : > { %1514 = vmatpush2.bf16.msra.mxu1 %v2066_v43  ;;  %1462 = vmatprep.subr.bf16.mxu0 %v2071_v44 }
  0xc2   : > { %1515 = vmatprep.subr.bf16.mxu1 %v2074_v45 }
  0xc4   : > { %1463 = vmatpush2.bf16.msra.mxu0 %v2069_v46 }
  0xc5   : > { %1516 = vmatpush2.bf16.msra.mxu1 %v2072_v47  ;;  %1464 = vmatprep.subr.bf16.mxu0 %v2077_v48  ;;  %v648_v47 = vsub.s32 2, %v639_v13  ;;  %v652_v48 = vsub.s32 3, %v639_v13 }
  0xc6   : > { %1517 = vmatprep.subr.bf16.mxu1 %v2080_v49 }
  0xc7   : > { %v649_v49 = vrot.slane %v636_v14, %v648_v47 }
  0xc8   : > { %1465 = vmatpush2.bf16.msra.mxu0 %v2075_v50  ;;  %v653_v50 = vrot.slane %v636_v14, %v652_v48 }
  0xc9   : > { %1518 = vmatpush2.bf16.msra.mxu1 %v2078_v51  ;;  %1466 = vmatprep.subr.bf16.mxu0 %v2083_v52 }
  0xca   : > { %1519 = vmatprep.subr.bf16.mxu1 %v2086_v53 }
  0xcc   : > { %1467 = vmatpush2.bf16.msra.mxu0 %v2081_v54 }
  0xcd   : > { %1520 = vmatpush2.bf16.msra.mxu1 %v2084_v55  ;;  %1468 = vmatprep.subr.bf16.mxu0 %v2089_v56 }
  0xce   : > { %1521 = vmatprep.subr.bf16.mxu1 %v2092_v57 }
  0xd0   : > { %1469 = vmatpush2.bf16.msra.mxu0 %v2087_v58 }
  0xd1   : > { %1522 = vmatpush2.bf16.msra.mxu1 %v2090_v59  ;;  %1470 = vmatprep.subr.bf16.mxu0 %v2101_v60 }
  0xd2   : > { %1523 = vmatprep.subr.bf16.mxu1 %v2104_v61 }
  0xd4   : > { %1471 = vmatpush2.bf16.msra.mxu0 %v2099_v62 }
  0xd5   : > { %1524 = vmatpush2.bf16.msra.mxu1 %v2102_v63  ;;  %1472 = vmatprep.subr.bf16.mxu0 %v2107_v2 }
  0xd6   : > { %1525 = vmatprep.subr.bf16.mxu1 %v2110_v3 }
  0xd8   : > { %1473 = vmatpush2.bf16.msra.mxu0 %v2105_v4 }
  0xd9   : > { %1526 = vmatpush2.bf16.msra.mxu1 %v2108_v5  ;;  %1474 = vmatprep.subr.bf16.mxu0 %v2113_v8 }
  0xda   : > { %1527 = vmatprep.subr.bf16.mxu1 %v2116_v9 }
  0xdc   : > { %1475 = vmatpush2.bf16.msra.mxu0 %v2111_v10 }
  0xdd   : > { %1528 = vmatpush2.bf16.msra.mxu1 %v2114_v11 }
  0xdf   : > { %1477 = vmatmul.mubr.bf16.vlgmr.msra.gmra.mxu0 %v2573_v6  ;;  %v640_v6 = vsub.s32 0, %v639_v13 }
  0xe0   : > { %1530 = vmatmul.mubr.bf16.vlgmr.msra.gmra.mxu1 %v2578_v7  ;;  %1486 = vmatprep.mubr.bf16.mxu0 %v2601_v24  ;;  %v644_v7 = vsub.s32 1, %v639_v13 }
  0xe1   : > { %1539 = vmatprep.mubr.bf16.mxu1 %v2613_v27  ;;  %v641_v15 = vrot.slane %v636_v14, %v640_v6 }
  0xe2   : > { %v645_v16 = vrot.slane %v636_v14, %v644_v7 }
  0xe7   : > { %1487 = vmatmul.mubr.bf16.gmra.mxu0 %v2607_v26 }
  0xe8   : > { %1540 = vmatmul.mubr.bf16.gmra.mxu1 %v2618_v28 }
 0x15f   : > { %v1372_v17 = vpop.f32.mrf.mxu0 }
 0x160   : > { %v1425_v18 = vpop.f32.mrf.mxu1  ;;  %v1373_v19 = vadd.f32 %v1372_v17, %v641_v15 }
 0x161   : > { %v1374_v20 = vpop.f32.mrf.mxu0 }
 0x162   : > { %v1427_v21 = vpop.f32.mrf.mxu1  ;;  %v1426_v22 = vadd.f32 %v1425_v18, %v1373_v19  ;;  %v1375_v23 = vadd.f32 %v1374_v20, %v645_v16 }
 0x163   : > { %v1376_v24 = vpop.f32.mrf.mxu0 }
 0x164   : > { %v1429_v25 = vpop.f32.mrf.mxu1  ;;  %1550 = vst [vmem:[%s2682_s9] sm:$0xff] %v1426_v22  ;;  %v1428_v26 = vadd.f32 %v1427_v21, %v1375_v23  ;;  %v1377_v27 = vadd.f32 %v1376_v24, %v641_v15 }
 0x165   : > { %v1378_v28 = vpop.f32.mrf.mxu0 }
 0x166   : > { %1551 = vst [vmem:[%s2682_s9 + $0x8] sm:$0xff] %v1428_v26  ;;  %v1430_v29 = vadd.f32 %v1429_v25, %v1377_v27  ;;  %v1379_v30 = vadd.f32 %v1378_v28, %v645_v16  ;;  %v1431_v31 = vpop.f32.mrf.mxu1 }
 0x167   : > { %v1382_v33 = vpop.f32.mrf.mxu0 }
 0x168   : > { %1554 = vst [vmem:[%s2682_s9 + $0x20] sm:$0xff] %v1430_v29  ;;  %v1432_v32 = vadd.f32 %v1431_v31, %v1379_v30  ;;  %v1383_v34 = vadd.f32 %v1382_v33, %v641_v15  ;;  %v1435_v35 = vpop.f32.mrf.mxu1 }
 0x169   : > { %v1384_v36 = vpop.f32.mrf.mxu0 }
 0x16a   : > { %1555 = vst [vmem:[%s2682_s9 + $0x28] sm:$0xff] %v1432_v32  ;;  %v1385_v37 = vadd.f32 %v1384_v36, %v645_v16  ;;  %v1436_v0 = vadd.f32 %v1435_v35, %v1383_v34  ;;  %v1437_v38 = vpop.f32.mrf.mxu1 }
 0x16b   : > { %v1386_v39 = vpop.f32.mrf.mxu0  ;;  %v1591_v21 = vld [vmem:[%s2682_s9] sm:$0xff] (%p2212_p6) }
 0x16c   : > { %1558 = vst [vmem:[%s2682_s9 + $0x40] sm:$0xff] %v1436_v0  ;;  %v1387_v40 = vadd.f32 %v1386_v39, %v641_v15  ;;  %v1438_v1 = vadd.f32 %v1437_v38, %v1385_v37  ;;  %v1439_v41 = vpop.f32.mrf.mxu1  ;;  %1592 = vst [vmem:[%s1578_s11] sm:$0xff] (%p2212_p6), %v1591_v21 }
 0x16d   : > { %v1388_v42 = vpop.f32.mrf.mxu0  ;;  %v1593_v22 = vld [vmem:[%s2682_s9 + $0x8] sm:$0xff] (%p2212_p6) }
 0x16e   : > { %1559 = vst [vmem:[%s2682_s9 + $0x48] sm:$0xff] %v1438_v1  ;;  %v1389_v43 = vadd.f32 %v1388_v42, %v645_v16  ;;  %v1440_v44 = vadd.f32 %v1439_v41, %v1387_v40  ;;  %v1441_v45 = vpop.f32.mrf.mxu1  ;;  %1594 = vst [vmem:[%s1578_s11 + $0x8] sm:$0xff] (%p2212_p6), %v1593_v22 }
 0x16f   : > { %v1599_v25 = vld [vmem:[%s2682_s9 + $0x20] sm:$0xff] (%p2212_p6) }
 0x170   : > { %1562 = vst [vmem:[%s2682_s9 + $0x60] sm:$0xff] %v1440_v44  ;;  %v1442_v46 = vadd.f32 %v1441_v45, %v1389_v43  ;;  %1600 = vst [vmem:[%s1578_s11 + $0x40] sm:$0xff] (%p2212_p6), %v1599_v25 }
 0x171   : > { %v1601_v26 = vld [vmem:[%s2682_s9 + $0x28] sm:$0xff] (%p2212_p6) }
 0x172   : > { %1563 = vst [vmem:[%s2682_s9 + $0x68] sm:$0xff] %v1442_v46  ;;  %1602 = vst [vmem:[%s1578_s11 + $0x48] sm:$0xff] (%p2212_p6), %v1601_v26 }
 0x173   : > { %v1607_v29 = vld [vmem:[%s2682_s9 + $0x40] sm:$0xff] (%p2212_p6) }
 0x174   : > { %1608 = vst [vmem:[%s1578_s11 + $0x80] sm:$0xff] (%p2212_p6), %v1607_v29 }
 0x175   : > { %v1609_v30 = vld [vmem:[%s2682_s9 + $0x48] sm:$0xff] (%p2212_p6) }
 0x176   : > { %1610 = vst [vmem:[%s1578_s11 + $0x88] sm:$0xff] (%p2212_p6), %v1609_v30 }
 0x177   : > { %v1615_v33 = vld [vmem:[%s2682_s9 + $0x60] sm:$0xff] (%p2212_p6) }
 0x178   : > { %1616 = vst [vmem:[%s1578_s11 + $0xc0] sm:$0xff] (%p2212_p6), %v1615_v33 }
 0x179   : > { %v1617_v34 = vld [vmem:[%s2682_s9 + $0x68] sm:$0xff] (%p2212_p6) }
 0x17a   : > { %1618 = vst [vmem:[%s1578_s11 + $0xc8] sm:$0xff] (%p2212_p6), %v1617_v34 }
 0x19f   : > { %v1478_v51 = vpop.f32.mrf.mxu0 }
 0x1a0   : > { %v1531_v52 = vpop.f32.mrf.mxu1  ;;  %v1479_v53 = vadd.f32 %v1478_v51, %v649_v49 }
 0x1a1   : > { %v1480_v54 = vpop.f32.mrf.mxu0 }
 0x1a2   : > { %v1533_v55 = vpop.f32.mrf.mxu1  ;;  %v1532_v56 = vadd.f32 %v1531_v52, %v1479_v53  ;;  %v1481_v57 = vadd.f32 %v1480_v54, %v653_v50 }
 0x1a3   : > { %v1482_v58 = vpop.f32.mrf.mxu0 }
 0x1a4   : > { %v1535_v59 = vpop.f32.mrf.mxu1  ;;  %1552 = vst [vmem:[%s2682_s9 + $0x10] sm:$0xff] %v1532_v56  ;;  %v1534_v60 = vadd.f32 %v1533_v55, %v1481_v57  ;;  %v1483_v61 = vadd.f32 %v1482_v58, %v649_v49 }
 0x1a5   : > { %v1484_v62 = vpop.f32.mrf.mxu0 }
 0x1a6   : > { %v1537_v63 = vpop.f32.mrf.mxu1  ;;  %1553 = vst [vmem:[%s2682_s9 + $0x18] sm:$0xff] %v1534_v60  ;;  %v1536_v2 = vadd.f32 %v1535_v59, %v1483_v61  ;;  %v1485_v3 = vadd.f32 %v1484_v62, %v653_v50 }
 0x1a7   : > { %v1488_v4 = vpop.f32.mrf.mxu0 }
 0x1a8   : > { %v1541_v5 = vpop.f32.mrf.mxu1  ;;  %1556 = vst [vmem:[%s2682_s9 + $0x30] sm:$0xff] %v1536_v2  ;;  %v1538_v8 = vadd.f32 %v1537_v63, %v1485_v3  ;;  %v1489_v9 = vadd.f32 %v1488_v4, %v649_v49 }
 0x1a9   : > { %v1490_v10 = vpop.f32.mrf.mxu0 }
 0x1aa   : > { %v1543_v11 = vpop.f32.mrf.mxu1  ;;  %1557 = vst [vmem:[%s2682_s9 + $0x38] sm:$0xff] %v1538_v8  ;;  %v1542_v12 = vadd.f32 %v1541_v5, %v1489_v9  ;;  %v1491_v13 = vadd.f32 %v1490_v10, %v653_v50 }
 0x1ab   : > { %v1492_v6 = vpop.f32.mrf.mxu0  ;;  %v1595_v23 = vld [vmem:[%s2682_s9 + $0x10] sm:$0xff] (%p2212_p6) }
 0x1ac   : > { %v1545_v14 = vpop.f32.mrf.mxu1  ;;  %1560 = vst [vmem:[%s2682_s9 + $0x50] sm:$0xff] %v1542_v12  ;;  %v1544_v7 = vadd.f32 %v1543_v11, %v1491_v13  ;;  %v1493_v15 = vadd.f32 %v1492_v6, %v649_v49  ;;  %1596 = vst [vmem:[%s1578_s11 + $0x10] sm:$0xff] (%p2212_p6), %v1595_v23 }
 0x1ad   : > { %v1494_v16 = vpop.f32.mrf.mxu0  ;;  %v1597_v24 = vld [vmem:[%s2682_s9 + $0x18] sm:$0xff] (%p2212_p6) }
 0x1ae   : > { %1561 = vst [vmem:[%s2682_s9 + $0x58] sm:$0xff] %v1544_v7  ;;  %v1546_v17 = vadd.f32 %v1545_v14, %v1493_v15  ;;  %v1495_v18 = vadd.f32 %v1494_v16, %v653_v50  ;;  %v1547_v19 = vpop.f32.mrf.mxu1  ;;  %1572 = sbr.rel (!%p2212_p6) target bundleno = 443 (0x1bb), region = 59  ;;  %1598 = vst [vmem:[%s1578_s11 + $0x18] sm:$0xff] (%p2212_p6), %v1597_v24 }
 0x1af   : > { %v1603_v27 = vld [vmem:[%s2682_s9 + $0x30] sm:$0xff] (%p2212_p6) }
 0x1b0   : > { %1564 = vst [vmem:[%s2682_s9 + $0x70] sm:$0xff] %v1546_v17  ;;  %v1548_v20 = vadd.f32 %v1547_v19, %v1495_v18  ;;  %1604 = vst [vmem:[%s1578_s11 + $0x50] sm:$0xff] (%p2212_p6), %v1603_v27 }
 0x1b1   : > { %v1605_v28 = vld [vmem:[%s2682_s9 + $0x38] sm:$0xff] (%p2212_p6) }
 0x1b2   : > { %1565 = vst [vmem:[%s2682_s9 + $0x78] sm:$0xff] %v1548_v20  ;;  %1606 = vst [vmem:[%s1578_s11 + $0x58] sm:$0xff] (%p2212_p6), %v1605_v28 }
 0x1b3   : > { %v1611_v31 = vld [vmem:[%s2682_s9 + $0x50] sm:$0xff] }
 0x1b4   : > { %1612 = vst [vmem:[%s1578_s11 + $0x90] sm:$0xff] %v1611_v31 }
 0x1b5   : > { %v1613_v32 = vld [vmem:[%s2682_s9 + $0x58] sm:$0xff] }
 0x1b6   : > { %1614 = vst [vmem:[%s1578_s11 + $0x98] sm:$0xff] %v1613_v32 }
 0x1b7   : > { %v1619_v35 = vld [vmem:[%s2682_s9 + $0x70] sm:$0xff] }
 0x1b8   : > { %1620 = vst [vmem:[%s1578_s11 + $0xd0] sm:$0xff] %v1619_v35 }
 0x1b9   : > { %v1621_v36 = vld [vmem:[%s2682_s9 + $0x78] sm:$0xff] }
 0x1ba   : > { %1622 = vst [vmem:[%s1578_s11 + $0xd8] sm:$0xff] %v1621_v36 }
 0x1bb PF: > { %s13_s16 = sadd.s32 1, %s2155_s16   ;;  %s2742_s12 = smov %s2143_s13 }
 0x1bc   : > { %p10_p12 = scmp.ge.s32.totalorder %s13_s16, 4   ;;  %s2743_s13 = smov %s2217_s22 }
 0x1bd   : > { %s2744_s14 = smov %s2151_s15  ;;  %s2745_s15 = smov %s2747_s17 }
 0x1be   :  { %12 = sbr.rel (!%p10_p12) target bundleno = 3 (0x3), region = 119 }

// kernel: vae_forward.16
= control target key start
LH: loop header
LB: loop body
LE: loop exit
PB: predicated region body
PF: predicated region fallthrough
CT: control target
= control target key end

     0   :  { %s740_s12 = smov 0   ;;  %s742_s13 = smov 0   ;;  %s998_s0 = inlined_call_operand.vmem [shape: f32[128,256], index: 0, kind: input, shape index: {}]   ;;  %s999_s1 = inlined_call_operand.vmem [shape: f32[1,256], index: 1, kind: input, shape index: {}]   ;;  %s1000_s2 = inlined_call_operand.vmem [shape: f32[1,256], index: 2, kind: input, shape index: {}]   ;;  %s1001_s3 = inlined_call_operand.vmem [shape: f32[128,256], index: 3, kind: output, shape index: {}]  }
   0x1   :  { %s744_s14 = smov 0  }
   0x2 LB: > { %s756_s15 = sadd.s32 4294967295, %s718_s14   ;;  %s759_s16 = sadd.s32 1, %s718_s14   ;;  %s718_s14 = sphi %s744_s14, %s1005_s14   ;;  %s714_s13 = sphi %s742_s13, %s1004_s13   ;;  %s710_s12 = sphi %s740_s12, %s1003_s12  }
   0x3   : > { %s17_s17 = ssub.s32 %s718_s14, %s759_s16  ;;  %s20_s18 = sadd.s32 1, %s714_s13 }
   0x4   : > { %p18_p0 = scmp.eq.s32.totalorder %s17_s17, 0  ;;  %p27_p1 = scmp.ne.s32.totalorder %s714_s13, %s710_s12 }
   0x5   : > { %p28_p2 = scmp.eq.s32.totalorder %s718_s14, 0  ;;  %p109_p3 = scmp.eq.s32.totalorder %s756_s15, 1 }
   0x6   : > { %s769_s19 = scalar_select %p18_p0, %s714_s13, %s20_s18  }
   0x7   : > { %p29_p4 = por %p28_p2, %p27_p1  ;;  %p771_p5 = por %p109_p3, %p27_p1 }
   0x8   : > { %p658_p6 = scmp.ge.s32.totalorder %s718_s14, 2 }
   0xa   : > { %131 = sbr.rel (%p658_p6) target bundleno = 27 (0x1b), region = 16 }
   0xf   : > { %134 = sbr.rel (!%p29_p4) target bundleno = 27 (0x1b), region = 20  ;;  %s136_s21 = sand.u32 (%p29_p4), 1, %s714_s13  }
  0x10   : > { %s660_s22 = sshll.u32 (%p29_p4), %s718_s14, 3  ;;  %s659_s23 = sshll.u32 (%p29_p4), %s136_s21, 7 }
  0x11   : > { %s781_s26 = scalar_lea.vmem (%p29_p4), %s998_s0, %s660_s22  ;;  %s138_s27 = scalar_lea.vmem (%p29_p4), [#allocation2], %s659_s23 }
  0x12   : > { %v199_v0 = vld [vmem:[%s781_s26] sm:$0xff] (%p29_p4)  ;;  %v201_v1 = vld [vmem:[%s781_s26 + $0x10] sm:$0xff] (%p29_p4) }
  0x13   : > { %v203_v2 = vld [vmem:[%s781_s26 + $0x20] sm:$0xff] (%p29_p4)  ;;  %200 = vst [vmem:[%s138_s27] sm:$0xff] (%p29_p4), %v199_v0  ;;  %202 = vst [vmem:[%s138_s27 + $0x8] sm:$0xff] (%p29_p4), %v201_v1  ;;  %v205_v3 = vld [vmem:[%s781_s26 + $0x30] sm:$0xff] (%p29_p4) }
  0x14   : > { %204 = vst [vmem:[%s138_s27 + $0x10] sm:$0xff] %v203_v2  ;;  %v207_v4 = vld [vmem:[%s781_s26 + $0x40] sm:$0xff]  ;;  %v209_v5 = vld [vmem:[%s781_s26 + $0x50] sm:$0xff]  ;;  %206 = vst [vmem:[%s138_s27 + $0x18] sm:$0xff] %v205_v3 }
  0x15   : > { %208 = vst [vmem:[%s138_s27 + $0x20] sm:$0xff] %v207_v4  ;;  %210 = vst [vmem:[%s138_s27 + $0x28] sm:$0xff] %v209_v5  ;;  %v211_v6 = vld [vmem:[%s781_s26 + $0x60] sm:$0xff]  ;;  %v213_v7 = vld [vmem:[%s781_s26 + $0x70] sm:$0xff] }
  0x16   : > { %v215_v8 = vld [vmem:[%s781_s26 + $0x80] sm:$0xff]  ;;  %212 = vst [vmem:[%s138_s27 + $0x30] sm:$0xff] %v211_v6  ;;  %214 = vst [vmem:[%s138_s27 + $0x38] sm:$0xff] %v213_v7  ;;  %v217_v9 = vld [vmem:[%s781_s26 + $0x90] sm:$0xff] }
  0x17   : > { %216 = vst [vmem:[%s138_s27 + $0x40] sm:$0xff] %v215_v8  ;;  %v219_v10 = vld [vmem:[%s781_s26 + $0xa0] sm:$0xff]  ;;  %v221_v11 = vld [vmem:[%s781_s26 + $0xb0] sm:$0xff]  ;;  %218 = vst [vmem:[%s138_s27 + $0x48] sm:$0xff] %v217_v9 }
  0x18   : > { %220 = vst [vmem:[%s138_s27 + $0x50] sm:$0xff] %v219_v10  ;;  %222 = vst [vmem:[%s138_s27 + $0x58] sm:$0xff] %v221_v11  ;;  %v223_v12 = vld [vmem:[%s781_s26 + $0xc0] sm:$0xff]  ;;  %v225_v13 = vld [vmem:[%s781_s26 + $0xd0] sm:$0xff] }
  0x19   : > { %v227_v14 = vld [vmem:[%s781_s26 + $0xe0] sm:$0xff]  ;;  %224 = vst [vmem:[%s138_s27 + $0x60] sm:$0xff] %v223_v12  ;;  %226 = vst [vmem:[%s138_s27 + $0x68] sm:$0xff] %v225_v13  ;;  %v229_v15 = vld [vmem:[%s781_s26 + $0xf0] sm:$0xff] }
  0x1a   : > { %228 = vst [vmem:[%s138_s27 + $0x70] sm:$0xff] %v227_v14  ;;  %230 = vst [vmem:[%s138_s27 + $0x78] sm:$0xff] %v229_v15 }
  0x1b PF: > { %p661_p7 = scmp.ge.s32.totalorder %s718_s14, 1  ;;  %p247_p8 = scmp.lt.s32.totalorder %s718_s14, 3 }
  0x1d   : > { %p248_p9 = pnand %p661_p7, %p247_p8 }
  0x1e   : > { %s254_s28 = sand.u32 (!%p248_p9), 1, %s710_s12   ;;  %p282_p10 = scmp.lt.s32.totalorder (!%p248_p9), %s756_s15, 1 }
  0x1f   : > { %251 = sbr.rel (%p248_p9) target bundleno = 130 (0x82), region = 66  ;;  %s802_s29 = sshll.u32 (!%p248_p9), %s254_s28, 7 }
  0x20   : > { %s805_s30 = scalar_lea.vmem (!%p248_p9), [#allocation2], %s802_s29  ;;  %s948_s11 = scalar_lea.vmem (!%p248_p9), [#allocation3], %s802_s29 }
  0x24   : > { %v808_v16 = vld [vmem:[%s805_s30] sm:$0xff]  ;;  %v811_v17 = vld [vmem:[%s805_s30 + $0x8] sm:$0xff]  ;;  %v814_v18 = vld [vmem:[%s805_s30 + $0x10] sm:$0xff]  ;;  %s283_s4 = scalar_select %p282_p10, %s756_s15, 1 }
  0x25   : > { %v817_v19 = vld [vmem:[%s805_s30 + $0x18] sm:$0xff]  ;;  %v304_v20 = vadd.f32 %v811_v17, %v808_v16  ;;  %v325_v21 = vmul.f32 %v808_v16, %v808_v16  ;;  %v326_v22 = vmul.f32 %v811_v17, %v811_v17  ;;  %v327_v23 = vmul.f32 %v814_v18, %v814_v18  ;;  %v828_v24 = vld [vmem:[%s805_s30 + $0x20] sm:$0xff]  ;;  %v834_v28 = vld [vmem:[%s805_s30 + $0x28] sm:$0xff]  ;;  %s667_s12 = sshll.u32 (%p771_p5), %s756_s15, 3 }
  0x26   : > { %v328_v26 = vmul.f32 %v817_v19, %v817_v19  ;;  %v329_v30 = vmul.f32 %v828_v24, %v828_v24  ;;  %v840_v32 = vld [vmem:[%s805_s30 + $0x30] sm:$0xff]  ;;  %v330_v34 = vmul.f32 %v834_v28, %v834_v28  ;;  %v846_v36 = vld [vmem:[%s805_s30 + $0x38] sm:$0xff]  ;;  %v852_v40 = vld [vmem:[%s805_s30 + $0x40] sm:$0xff]  ;;  %s284_s7 = scalar_lea.vmem %s999_s1, %s283_s4  ;;  %s287_s10 = scalar_lea.vmem %s1000_s2, %s283_s4 }
  0x27   : > { %v305_v25 = vadd.f32 %v304_v20, %v814_v18  ;;  %v341_v27 = vadd.f32 %v326_v22, %v325_v21  ;;  %v331_v38 = vmul.f32 %v840_v32, %v840_v32  ;;  %v332_v42 = vmul.f32 %v846_v36, %v846_v36  ;;  %v858_v44 = vld [vmem:[%s805_s30 + $0x48] sm:$0xff]  ;;  %v864_v48 = vld [vmem:[%s805_s30 + $0x50] sm:$0xff]  ;;  %v870_v52 = vld [vmem:[%s805_s30 + $0x58] sm:$0xff]  ;;  %s487_s18 = scalar_lea.vmem (%p771_p5), %s1001_s3, %s667_s12 }
  0x28   : > { %v333_v46 = vmul.f32 %v852_v40, %v852_v40  ;;  %v334_v50 = vmul.f32 %v858_v44, %v858_v44  ;;  %v335_v54 = vmul.f32 %v864_v48, %v864_v48  ;;  %v876_v56 = vld [vmem:[%s805_s30 + $0x60] sm:$0xff]  ;;  %v336_v58 = vmul.f32 %v870_v52, %v870_v52  ;;  %v882_v60 = vld [vmem:[%s805_s30 + $0x68] sm:$0xff]  ;;  %v888_v0 = vld [vmem:[%s805_s30 + $0x70] sm:$0xff] }
  0x29   : > { %v306_v29 = vadd.f32 %v305_v25, %v817_v19  ;;  %v342_v31 = vadd.f32 %v341_v27, %v327_v23  ;;  %v337_v62 = vmul.f32 %v876_v56, %v876_v56  ;;  %v338_v2 = vmul.f32 %v882_v60, %v882_v60  ;;  %v894_v4 = vld [vmem:[%s805_s30 + $0x78] sm:$0xff] }
  0x2a   : > { %v339_v6 = vmul.f32 %v888_v0, %v888_v0  ;;  %v340_v9 = vmul.f32 %v894_v4, %v894_v4 }
  0x2b   : > { %v307_v33 = vadd.f32 %v306_v29, %v828_v24  ;;  %v343_v35 = vadd.f32 %v342_v31, %v328_v26 }
  0x2d   : > { %v308_v37 = vadd.f32 %v307_v33, %v834_v28  ;;  %v344_v39 = vadd.f32 %v343_v35, %v329_v30 }
  0x2f   : > { %v309_v41 = vadd.f32 %v308_v37, %v840_v32  ;;  %v345_v43 = vadd.f32 %v344_v39, %v330_v34 }
  0x31   : > { %v310_v45 = vadd.f32 %v309_v41, %v846_v36  ;;  %v346_v47 = vadd.f32 %v345_v43, %v331_v38 }
  0x33   : > { %v311_v49 = vadd.f32 %v310_v45, %v852_v40  ;;  %v347_v51 = vadd.f32 %v346_v47, %v332_v42 }
  0x35   : > { %v312_v53 = vadd.f32 %v311_v49, %v858_v44  ;;  %v348_v55 = vadd.f32 %v347_v51, %v333_v46 }
  0x37   : > { %v313_v57 = vadd.f32 %v312_v53, %v864_v48  ;;  %v349_v59 = vadd.f32 %v348_v55, %v334_v50 }
  0x39   : > { %v314_v61 = vadd.f32 %v313_v57, %v870_v52  ;;  %v350_v63 = vadd.f32 %v349_v59, %v335_v54  ;;  %v665_v54 = vld [vmem:[%s287_s10] ss:$0 sm:$0xff] }
  0x3b   : > { %v315_v1 = vadd.f32 %v314_v61, %v876_v56  ;;  %v351_v3 = vadd.f32 %v350_v63, %v336_v58 }
  0x3d   : > { %v316_v5 = vadd.f32 %v315_v1, %v882_v60  ;;  %v352_v7 = vadd.f32 %v351_v3, %v337_v62 }
  0x3f   : > { %v317_v8 = vadd.f32 %v316_v5, %v888_v0  ;;  %v353_v10 = vadd.f32 %v352_v7, %v338_v2 }
  0x41   : > { %v318_v11 = vadd.f32 %v317_v8, %v894_v4  ;;  %v354_v12 = vadd.f32 %v353_v10, %v339_v6 }
  0x43   : > { %v319_v13 = vrot.slane %v318_v11, 4  ;;  %v355_v14 = vadd.f32 %v354_v12, %v340_v9 }
  0x45   : > { %v320_v15 = vadd.f32 %v319_v13, %v318_v11  ;;  %v356_v20 = vrot.slane %v355_v14, 4 }
  0x47   : > { %v321_v21 = vrot.slane %v320_v15, 2  ;;  %v357_v22 = vadd.f32 %v356_v20, %v355_v14 }
  0x49   : > { %v322_v23 = vadd.f32 %v321_v21, %v320_v15  ;;  %v358_v25 = vrot.slane %v357_v22, 2 }
  0x4b   : > { %v323_v26 = vrot.slane %v322_v23, 1  ;;  %v359_v27 = vadd.f32 %v358_v25, %v357_v22 }
  0x4d   : > { %v324_v29 = vadd.f32 %v323_v26, %v322_v23  ;;  %v360_v30 = vrot.slane %v359_v27, 1 }
  0x4f   : > { %v903_v31 = vmul.f32 0.0078125, %v324_v29  ;;  %v361_v33 = vadd.f32 %v360_v30, %v359_v27 }
  0x51   : > { %v365_v34 = vmul.f32 %v903_v31, %v903_v31  ;;  %v364_v35 = vmul.f32 0.0078125, %v361_v33  ;;  %v369_v39 = vsub.f32 %v808_v16, %v903_v31  ;;  %v370_v41 = vsub.f32 %v811_v17, %v903_v31 }
  0x52   : > { %v371_v42 = vsub.f32 %v814_v18, %v903_v31  ;;  %v372_v43 = vsub.f32 %v817_v19, %v903_v31  ;;  %v373_v45 = vsub.f32 %v828_v24, %v903_v31  ;;  %v374_v46 = vsub.f32 %v834_v28, %v903_v31 }
  0x53   : > { %v366_v37 = vsub.f32 %v364_v35, %v365_v34  ;;  %v375_v47 = vsub.f32 %v840_v32, %v903_v31  ;;  %v376_v16 = vsub.f32 %v846_v36, %v903_v31  ;;  %v377_v17 = vsub.f32 %v852_v40, %v903_v31  ;;  %v664_v32 = vld [vmem:[%s284_s7] ss:$0 sm:$0xff] }
  0x54   : > { %v378_v18 = vsub.f32 %v858_v44, %v903_v31  ;;  %v379_v19 = vsub.f32 %v864_v48, %v903_v31  ;;  %v380_v24 = vsub.f32 %v870_v52, %v903_v31  ;;  %v381_v36 = vsub.f32 %v876_v56, %v903_v31 }
  0x55   : > { %v367_v38 = vadd.f32 1e-05, %v366_v37  ;;  %v382_v49 = vsub.f32 %v882_v60, %v903_v31  ;;  %v383_v40 = vsub.f32 %v888_v0, %v903_v31  ;;  %v384_v44 = vsub.f32 %v894_v4, %v903_v31 }
  0x57   : > { %694 = vrsqrt.f32 %v367_v38 }
  0x64   : > { %v695_v28 = vpop.eup %694 }
  0x65   : > { %v385_v50 = vmul.f32 %v695_v28, %v369_v39  ;;  %v386_v51 = vmul.f32 %v695_v28, %v370_v41  ;;  %v387_v48 = vmul.f32 %v695_v28, %v371_v42  ;;  %v388_v53 = vmul.f32 %v695_v28, %v372_v43 }
  0x66   : > { %v389_v52 = vmul.f32 %v695_v28, %v373_v45  ;;  %v390_v55 = vmul.f32 %v695_v28, %v374_v46  ;;  %v391_v57 = vmul.f32 %v695_v28, %v375_v47  ;;  %v392_v58 = vmul.f32 %v695_v28, %v376_v16 }
  0x67   : > { %v408_v59 = vmul.f32 %v664_v32, %v385_v50  ;;  %v409_v56 = vmul.f32 %v664_v32, %v386_v51  ;;  %v410_v61 = vmul.f32 %v664_v32, %v387_v48  ;;  %v411_v62 = vmul.f32 %v664_v32, %v388_v53 }
  0x68   : > { %v412_v60 = vmul.f32 %v664_v32, %v389_v52  ;;  %v413_v63 = vmul.f32 %v664_v32, %v390_v55  ;;  %v414_v1 = vmul.f32 %v664_v32, %v391_v57  ;;  %v415_v0 = vmul.f32 %v664_v32, %v392_v58 }
  0x69   : > { %v431_v2 = vadd.f32 %v665_v54, %v408_v59  ;;  %v432_v3 = vadd.f32 %v665_v54, %v409_v56  ;;  %v433_v4 = vadd.f32 %v665_v54, %v410_v61  ;;  %v434_v5 = vadd.f32 %v665_v54, %v411_v62 }
  0x6a   : > { %v435_v6 = vadd.f32 %v665_v54, %v412_v60  ;;  %v436_v7 = vadd.f32 %v665_v54, %v413_v63  ;;  %v437_v8 = vadd.f32 %v665_v54, %v414_v1  ;;  %v438_v9 = vadd.f32 %v665_v54, %v415_v0 }
  0x6b   : > { %v447_v10 = vmax.f32 %v431_v2, 0.0  ;;  %v448_v11 = vmax.f32 %v432_v3, 0.0  ;;  %v449_v12 = vmax.f32 %v433_v4, 0.0  ;;  %v450_v13 = vmax.f32 %v434_v5, 0.0 }
  0x6c   : > { %v451_v14 = vmax.f32 %v435_v6, 0.0  ;;  %v452_v15 = vmax.f32 %v436_v7, 0.0  ;;  %v453_v20 = vmax.f32 %v437_v8, 0.0  ;;  %v454_v21 = vmax.f32 %v438_v9, 0.0 }
  0x6d   : > { %463 = vst [vmem:[%s948_s11] sm:$0xff] %v447_v10  ;;  %464 = vst [vmem:[%s948_s11 + $0x8] sm:$0xff] %v448_v11  ;;  %v393_v22 = vmul.f32 %v695_v28, %v377_v17  ;;  %v394_v23 = vmul.f32 %v695_v28, %v378_v18  ;;  %v395_v25 = vmul.f32 %v695_v28, %v379_v19 }
  0x6e   : > { %465 = vst [vmem:[%s948_s11 + $0x10] sm:$0xff] %v449_v12  ;;  %466 = vst [vmem:[%s948_s11 + $0x18] sm:$0xff] %v450_v13  ;;  %v396_v26 = vmul.f32 %v695_v28, %v380_v24  ;;  %v397_v27 = vmul.f32 %v695_v28, %v381_v36  ;;  %v398_v29 = vmul.f32 %v695_v28, %v382_v49 }
  0x6f   : > { %467 = vst [vmem:[%s948_s11 + $0x20] sm:$0xff] %v451_v14  ;;  %468 = vst [vmem:[%s948_s11 + $0x28] sm:$0xff] %v452_v15  ;;  %v399_v30 = vmul.f32 %v695_v28, %v383_v40  ;;  %v400_v31 = vmul.f32 %v695_v28, %v384_v44  ;;  %v416_v33 = vmul.f32 %v664_v32, %v393_v22 }
  0x70   : > { %469 = vst [vmem:[%s948_s11 + $0x30] sm:$0xff] %v453_v20  ;;  %470 = vst [vmem:[%s948_s11 + $0x38] sm:$0xff] %v454_v21  ;;  %v417_v34 = vmul.f32 %v664_v32, %v394_v23  ;;  %v418_v35 = vmul.f32 %v664_v32, %v395_v25  ;;  %v419_v37 = vmul.f32 %v664_v32, %v396_v26 }
  0x71   : > { %v420_v38 = vmul.f32 %v664_v32, %v397_v27  ;;  %v421_v39 = vmul.f32 %v664_v32, %v398_v29  ;;  %v422_v41 = vmul.f32 %v664_v32, %v399_v30  ;;  %v423_v42 = vmul.f32 %v664_v32, %v400_v31 }
  0x72   : > { %v439_v43 = vadd.f32 %v665_v54, %v416_v33  ;;  %v440_v45 = vadd.f32 %v665_v54, %v417_v34  ;;  %v441_v46 = vadd.f32 %v665_v54, %v418_v35  ;;  %v442_v47 = vadd.f32 %v665_v54, %v419_v37 }
  0x73   : > { %v443_v16 = vadd.f32 %v665_v54, %v420_v38  ;;  %v444_v17 = vadd.f32 %v665_v54, %v421_v39  ;;  %v445_v18 = vadd.f32 %v665_v54, %v422_v41  ;;  %v446_v19 = vadd.f32 %v665_v54, %v423_v42 }
  0x74   : > { %v455_v24 = vmax.f32 %v439_v43, 0.0  ;;  %v456_v28 = vmax.f32 %v440_v45, 0.0  ;;  %v457_v36 = vmax.f32 %v441_v46, 0.0  ;;  %v458_v32 = vmax.f32 %v442_v47, 0.0  ;;  %v546_v51 = vld [vmem:[%s948_s11] sm:$0xff] (%p771_p5)  ;;  %v548_v48 = vld [vmem:[%s948_s11 + $0x8] sm:$0xff] (%p771_p5) }
  0x75   : > { %v459_v49 = vmax.f32 %v443_v16, 0.0  ;;  %v460_v40 = vmax.f32 %v444_v17, 0.0  ;;  %v461_v44 = vmax.f32 %v445_v18, 0.0  ;;  %v462_v50 = vmax.f32 %v446_v19, 0.0  ;;  %485 = sbr.rel (!%p771_p5) target bundleno = 130 (0x82), region = 74  ;;  %v550_v53 = vld [vmem:[%s948_s11 + $0x10] sm:$0xff] (%p771_p5)  ;;  %547 = vst [vmem:[%s487_s18] sm:$0xff] (%p771_p5), %v546_v51 }
  0x76   : > { %471 = vst [vmem:[%s948_s11 + $0x40] sm:$0xff] %v455_v24  ;;  %472 = vst [vmem:[%s948_s11 + $0x48] sm:$0xff] %v456_v28  ;;  %v552_v54 = vld [vmem:[%s948_s11 + $0x18] sm:$0xff] (%p771_p5)  ;;  %v554_v52 = vld [vmem:[%s948_s11 + $0x20] sm:$0xff] (%p771_p5) }
  0x77   : > { %473 = vst [vmem:[%s948_s11 + $0x50] sm:$0xff] %v457_v36  ;;  %474 = vst [vmem:[%s948_s11 + $0x58] sm:$0xff] %v458_v32  ;;  %v556_v55 = vld [vmem:[%s948_s11 + $0x28] sm:$0xff] (%p771_p5)  ;;  %v558_v57 = vld [vmem:[%s948_s11 + $0x30] sm:$0xff] (%p771_p5) }
  0x78   : > { %475 = vst [vmem:[%s948_s11 + $0x60] sm:$0xff] %v459_v49  ;;  %476 = vst [vmem:[%s948_s11 + $0x68] sm:$0xff] %v460_v40  ;;  %v560_v58 = vld [vmem:[%s948_s11 + $0x38] sm:$0xff] (%p771_p5) }
  0x79   : > { %477 = vst [vmem:[%s948_s11 + $0x70] sm:$0xff] %v461_v44  ;;  %478 = vst [vmem:[%s948_s11 + $0x78] sm:$0xff] %v462_v50 }
  0x7a   : > { %549 = vst [vmem:[%s487_s18 + $0x10] sm:$0xff] %v548_v48  ;;  %551 = vst [vmem:[%s487_s18 + $0x20] sm:$0xff] %v550_v53 }
  0x7b   : > { %553 = vst [vmem:[%s487_s18 + $0x30] sm:$0xff] %v552_v54  ;;  %555 = vst [vmem:[%s487_s18 + $0x40] sm:$0xff] %v554_v52 }
  0x7c   : > { %557 = vst [vmem:[%s487_s18 + $0x50] sm:$0xff] %v556_v55  ;;  %559 = vst [vmem:[%s487_s18 + $0x60] sm:$0xff] %v558_v57 }
  0x7d   : > { %v562_v59 = vld [vmem:[%s948_s11 + $0x40] sm:$0xff]  ;;  %561 = vst [vmem:[%s487_s18 + $0x70] sm:$0xff] %v560_v58  ;;  %v564_v56 = vld [vmem:[%s948_s11 + $0x48] sm:$0xff] }
  0x7e   : > { %563 = vst [vmem:[%s487_s18 + $0x80] sm:$0xff] %v562_v59  ;;  %v566_v61 = vld [vmem:[%s948_s11 + $0x50] sm:$0xff]  ;;  %v568_v62 = vld [vmem:[%s948_s11 + $0x58] sm:$0xff]  ;;  %565 = vst [vmem:[%s487_s18 + $0x90] sm:$0xff] %v564_v56 }
  0x7f   : > { %567 = vst [vmem:[%s487_s18 + $0xa0] sm:$0xff] %v566_v61  ;;  %569 = vst [vmem:[%s487_s18 + $0xb0] sm:$0xff] %v568_v62  ;;  %v570_v60 = vld [vmem:[%s948_s11 + $0x60] sm:$0xff]  ;;  %v572_v63 = vld [vmem:[%s948_s11 + $0x68] sm:$0xff] }
  0x80   : > { %v574_v1 = vld [vmem:[%s948_s11 + $0x70] sm:$0xff]  ;;  %571 = vst [vmem:[%s487_s18 + $0xc0] sm:$0xff] %v570_v60  ;;  %573 = vst [vmem:[%s487_s18 + $0xd0] sm:$0xff] %v572_v63  ;;  %v576_v0 = vld [vmem:[%s948_s11 + $0x78] sm:$0xff] }
  0x81   : > { %575 = vst [vmem:[%s487_s18 + $0xe0] sm:$0xff] %v574_v1  ;;  %577 = vst [vmem:[%s487_s18 + $0xf0] sm:$0xff] %v576_v0 }
  0x82 PF: > { %p10_p11 = scmp.ge.s32.totalorder %s759_s16, 4   ;;  %s1003_s12 = smov %s714_s13 }
  0x83   : > { %s1004_s13 = smov %s769_s19  ;;  %s1005_s14 = smov %s759_s16 }
  0x84   :  { %12 = sbr.rel (!%p10_p11) target bundleno = 2 (0x2), region = 149 }

// kernel: tile.23
= control target key start
LH: loop header
LB: loop body
LE: loop exit
PB: predicated region body
PF: predicated region fallthrough
CT: control target
= control target key end

     0   :  { %s22_s0 = inlined_call_operand.vmem [shape: f32[128], index: 0, kind: input, shape index: {}]   ;;  %s23_s1 = inlined_call_operand.vmem [shape: f32[4,128], index: 1, kind: output, shape index: {}]  }
   0x1   :  { %v4_v0 = vld [vmem:[%s22_s0] ss:$0 sm:$0xff] }
   0x2   :  { %5 = vst [vmem:[%s23_s1] sm:$0xf] %v4_v0 }

// kernel: vae_forward.17
= control target key start
LH: loop header
LB: loop body
LE: loop exit
PB: predicated region body
PF: predicated region fallthrough
CT: control target
= control target key end

     0   :  { %s1286_s12 = smov 0   ;;  %s1288_s13 = smov 0   ;;  %s1652_s0 = inlined_call_operand.vmem [shape: bf16[128,256], index: 0, kind: input, shape index: {}]   ;;  %s1653_s1 = inlined_call_operand.vmem [shape: bf16[256,512], index: 1, kind: input, shape index: {}]   ;;  %s1654_s2 = inlined_call_operand.vmem [shape: f32[1,512], index: 2, kind: input, shape index: {}]   ;;  %s1655_s3 = inlined_call_operand.vmem [shape: f32[128,512], index: 3, kind: output, shape index: {}]  }
   0x1   :  { %s1290_s14 = smov 0   ;;  %s1292_s15 = smov 0  }
   0x2   :  { %s1294_s16 = smov 0  }
   0x3 LB: > { %s22_s17 = sadd.s32 1, %s1260_s15  ;;  %s1015_s18 = sadd.s32 4294967295, %s1264_s16   ;;  %s1264_s16 = sphi %s1294_s16, %s13_s16   ;;  %s1260_s15 = sphi %s1292_s15, %s1660_s15   ;;  %s1256_s14 = sphi %s1290_s14, %s1659_s14   ;;  %s1252_s13 = sphi %s1288_s13, %s1658_s13   ;;  %s1248_s12 = sphi %s1286_s12, %s1657_s12  }
   0x4   : > { %p23_p0 = scmp.ge.s32.totalorder %s22_s17, 2  ;;  %p65_p1 = scmp.ne.s32.totalorder %s1252_s13, %s1248_s12 }
   0x5   : > { %p66_p2 = scmp.eq.s32.totalorder %s1264_s16, 0  ;;  %p123_p4 = scmp.eq.s32.totalorder %s1015_s18, 1 }
   0x6   : > { %s1662_s17 = smov (%p23_p0, %s22_s17), 0  ;;  %s58_s20 = sadd.s32 1, %s1252_s13 }
   0x7   : > { %p67_p3 = por %p66_p2, %p65_p1  ;;  %s55_s19 = ssub.s32 %s1260_s15, %s1662_s17 }
   0x8   : > { %p56_p5 = scmp.eq.s32.totalorder %s55_s19, 0  ;;  %p1321_p6 = por %p123_p4, %p65_p1 }
   0x9   : > { %p1019_p7 = scmp.ge.s32.totalorder %s1264_s16, 2 }
   0xa   : > { %s1326_s22 = scalar_select %p56_p5, %s1252_s13, %s58_s20  }
   0xb   : > { %155 = sbr.rel (%p1019_p7) target bundleno = 36 (0x24), region = 20 }
  0x10   : > { %158 = sbr.rel (!%p67_p3) target bundleno = 36 (0x24), region = 24  ;;  %s160_s23 = sand.u32 (%p67_p3), 1, %s1252_s13  }
  0x11   : > { %s1080_s24 = sshll.u32 (%p67_p3), %s1260_s15, 3  ;;  %s1020_s25 = sshll.u32 (%p67_p3), %s160_s23, 8 }
  0x12   : > { %s1334_s28 = scalar_lea.vmem (%p67_p3), %s1653_s1, %s1080_s24  ;;  %s1339_s29 = scalar_lea.vmem (%p67_p3), [#allocation2], %s1020_s25 }
  0x13   : > { %v256_v0 = vld [vmem:[%s1334_s28] sm:$0xff] (%p67_p3)  ;;  %v258_v1 = vld [vmem:[%s1334_s28 + $0x10] sm:$0xff] (%p67_p3) }
  0x14   : > { %v260_v2 = vld [vmem:[%s1334_s28 + $0x20] sm:$0xff] (%p67_p3)  ;;  %257 = vst [vmem:[%s1339_s29] sm:$0xff] (%p67_p3), %v256_v0  ;;  %259 = vst [vmem:[%s1339_s29 + $0x8] sm:$0xff] (%p67_p3), %v258_v1  ;;  %v262_v3 = vld [vmem:[%s1334_s28 + $0x30] sm:$0xff] (%p67_p3) }
  0x15   : > { %261 = vst [vmem:[%s1339_s29 + $0x10] sm:$0xff] %v260_v2  ;;  %v264_v4 = vld [vmem:[%s1334_s28 + $0x40] sm:$0xff]  ;;  %v266_v5 = vld [vmem:[%s1334_s28 + $0x50] sm:$0xff]  ;;  %263 = vst [vmem:[%s1339_s29 + $0x18] sm:$0xff] %v262_v3 }
  0x16   : > { %265 = vst [vmem:[%s1339_s29 + $0x20] sm:$0xff] %v264_v4  ;;  %267 = vst [vmem:[%s1339_s29 + $0x28] sm:$0xff] %v266_v5  ;;  %v268_v6 = vld [vmem:[%s1334_s28 + $0x60] sm:$0xff]  ;;  %v270_v7 = vld [vmem:[%s1334_s28 + $0x70] sm:$0xff] }
  0x17   : > { %v272_v8 = vld [vmem:[%s1334_s28 + $0x80] sm:$0xff]  ;;  %269 = vst [vmem:[%s1339_s29 + $0x30] sm:$0xff] %v268_v6  ;;  %271 = vst [vmem:[%s1339_s29 + $0x38] sm:$0xff] %v270_v7  ;;  %v274_v9 = vld [vmem:[%s1334_s28 + $0x90] sm:$0xff] }
  0x18   : > { %273 = vst [vmem:[%s1339_s29 + $0x40] sm:$0xff] %v272_v8  ;;  %v276_v10 = vld [vmem:[%s1334_s28 + $0xa0] sm:$0xff]  ;;  %v278_v11 = vld [vmem:[%s1334_s28 + $0xb0] sm:$0xff]  ;;  %275 = vst [vmem:[%s1339_s29 + $0x48] sm:$0xff] %v274_v9 }
  0x19   : > { %277 = vst [vmem:[%s1339_s29 + $0x50] sm:$0xff] %v276_v10  ;;  %279 = vst [vmem:[%s1339_s29 + $0x58] sm:$0xff] %v278_v11  ;;  %v280_v12 = vld [vmem:[%s1334_s28 + $0xc0] sm:$0xff]  ;;  %v282_v13 = vld [vmem:[%s1334_s28 + $0xd0] sm:$0xff] }
  0x1a   : > { %v284_v14 = vld [vmem:[%s1334_s28 + $0xe0] sm:$0xff]  ;;  %281 = vst [vmem:[%s1339_s29 + $0x60] sm:$0xff] %v280_v12  ;;  %283 = vst [vmem:[%s1339_s29 + $0x68] sm:$0xff] %v282_v13  ;;  %v286_v15 = vld [vmem:[%s1334_s28 + $0xf0] sm:$0xff] }
  0x1b   : > { %285 = vst [vmem:[%s1339_s29 + $0x70] sm:$0xff] %v284_v14  ;;  %v288_v16 = vld [vmem:[%s1334_s28 + $0x100] sm:$0xff]  ;;  %v290_v17 = vld [vmem:[%s1334_s28 + $0x110] sm:$0xff]  ;;  %287 = vst [vmem:[%s1339_s29 + $0x78] sm:$0xff] %v286_v15 }
  0x1c   : > { %289 = vst [vmem:[%s1339_s29 + $0x80] sm:$0xff] %v288_v16  ;;  %291 = vst [vmem:[%s1339_s29 + $0x88] sm:$0xff] %v290_v17  ;;  %v292_v18 = vld [vmem:[%s1334_s28 + $0x120] sm:$0xff]  ;;  %v294_v19 = vld [vmem:[%s1334_s28 + $0x130] sm:$0xff] }
  0x1d   : > { %v296_v20 = vld [vmem:[%s1334_s28 + $0x140] sm:$0xff]  ;;  %293 = vst [vmem:[%s1339_s29 + $0x90] sm:$0xff] %v292_v18  ;;  %295 = vst [vmem:[%s1339_s29 + $0x98] sm:$0xff] %v294_v19  ;;  %v298_v21 = vld [vmem:[%s1334_s28 + $0x150] sm:$0xff] }
  0x1e   : > { %297 = vst [vmem:[%s1339_s29 + $0xa0] sm:$0xff] %v296_v20  ;;  %v300_v22 = vld [vmem:[%s1334_s28 + $0x160] sm:$0xff]  ;;  %v302_v23 = vld [vmem:[%s1334_s28 + $0x170] sm:$0xff]  ;;  %299 = vst [vmem:[%s1339_s29 + $0xa8] sm:$0xff] %v298_v21 }
  0x1f   : > { %301 = vst [vmem:[%s1339_s29 + $0xb0] sm:$0xff] %v300_v22  ;;  %303 = vst [vmem:[%s1339_s29 + $0xb8] sm:$0xff] %v302_v23  ;;  %v304_v24 = vld [vmem:[%s1334_s28 + $0x180] sm:$0xff]  ;;  %v306_v25 = vld [vmem:[%s1334_s28 + $0x190] sm:$0xff] }
  0x20   : > { %v308_v26 = vld [vmem:[%s1334_s28 + $0x1a0] sm:$0xff]  ;;  %305 = vst [vmem:[%s1339_s29 + $0xc0] sm:$0xff] %v304_v24  ;;  %307 = vst [vmem:[%s1339_s29 + $0xc8] sm:$0xff] %v306_v25  ;;  %v310_v27 = vld [vmem:[%s1334_s28 + $0x1b0] sm:$0xff] }
  0x21   : > { %309 = vst [vmem:[%s1339_s29 + $0xd0] sm:$0xff] %v308_v26  ;;  %v312_v28 = vld [vmem:[%s1334_s28 + $0x1c0] sm:$0xff]  ;;  %v314_v29 = vld [vmem:[%s1334_s28 + $0x1d0] sm:$0xff]  ;;  %311 = vst [vmem:[%s1339_s29 + $0xd8] sm:$0xff] %v310_v27 }
  0x22   : > { %313 = vst [vmem:[%s1339_s29 + $0xe0] sm:$0xff] %v312_v28  ;;  %315 = vst [vmem:[%s1339_s29 + $0xe8] sm:$0xff] %v314_v29  ;;  %v316_v30 = vld [vmem:[%s1334_s28 + $0x1e0] sm:$0xff]  ;;  %v318_v31 = vld [vmem:[%s1334_s28 + $0x1f0] sm:$0xff] }
  0x23   : > { %317 = vst [vmem:[%s1339_s29 + $0xf0] sm:$0xff] %v316_v30  ;;  %319 = vst [vmem:[%s1339_s29 + $0xf8] sm:$0xff] %v318_v31 }
  0x24 PF: > { %p1023_p8 = scmp.ge.s32.totalorder %s1264_s16, 1  ;;  %p332_p9 = scmp.lt.s32.totalorder %s1264_s16, 3 }
  0x26   : > { %p333_p10 = pnand %p1023_p8, %p332_p9 }
  0x27   : > { %s339_s30 = sand.u32 (!%p333_p10), 1, %s1248_s12   ;;  %s1026_s26 = sshll.u32 (!%p333_p10), %s1256_s14, 1 }
  0x28   : > { %336 = sbr.rel (%p333_p10) target bundleno = 346 (0x15a), region = 66  ;;  %s1405_s4 = sshll.u32 (!%p333_p10), %s339_s30, 8 }
  0x29   : > { %s1414_s9 = scalar_lea.vmem (!%p333_p10), [#allocation2], %s1405_s4  ;;  %p380_p11 = scmp.lt.s32.totalorder (!%p333_p10), %s1026_s26, 3 }
  0x2a   : > { %s1501_s30 = scalar_lea.vmem (!%p333_p10), [#allocation3], %s1405_s4 }
  0x2d   : > { %v1204_v32 = vld [vmem:[%s1652_s0 + $0x4] ss:$8 sps:$4 sm:$0xff]   ;;  %v1154_v34 = vld [vmem:[%s1414_s9 + $0x74] ss:$8 sps:$4 sm:$0xff]   ;;  %v1156_v35 = vld [vmem:[%s1414_s9 + $0x70] ss:$8 sps:$4 sm:$0xff]   ;;  %v436_v16 = vlaneseq }
  0x2e   : > { %v1207_v33 = vld [vmem:[%s1652_s0 + $0x44] ss:$8 sps:$4 sm:$0xff]   ;;  %718 = vmatprep.mubr.bf16.mxu0 %v1204_v32  ;;  %686 = vmatprep.subr.bf16.mxu0 %v1154_v34  ;;  %v1159_v37 = vld [vmem:[%s1414_s9 + $0x60] ss:$8 sps:$4 sm:$0xff]   ;;  %v1160_v38 = vld [vmem:[%s1414_s9 + $0x54] ss:$8 sps:$4 sm:$0xff]  }
  0x2f   : > { %758 = vmatprep.mubr.bf16.mxu1 %v1207_v33  ;;  %1082 = vmatprep.subr.bf16.mxu1 %v1154_v34  ;;  %v1157_v36 = vld [vmem:[%s1414_s9 + $0x64] ss:$8 sps:$4 sm:$0xff]   ;;  %v1162_v39 = vld [vmem:[%s1414_s9 + $0x50] ss:$8 sps:$4 sm:$0xff]   ;;  %v1165_v41 = vld [vmem:[%s1414_s9 + $0x40] ss:$8 sps:$4 sm:$0xff]  }
  0x30   : > { %687 = vmatpush1.bf16.msra.mxu0 %v1156_v35  ;;  %1098 = vmatpush1.bf16.msra.mxu1 %v1156_v35  ;;  %v1163_v40 = vld [vmem:[%s1414_s9 + $0x44] ss:$8 sps:$4 sm:$0xff]   ;;  %v1166_v42 = vld [vmem:[%s1414_s9 + $0x34] ss:$8 sps:$4 sm:$0xff]   ;;  %v1168_v43 = vld [vmem:[%s1414_s9 + $0x30] ss:$8 sps:$4 sm:$0xff]  }
  0x31   : > { %688 = vmatprep.subr.bf16.mxu0 %v1157_v36  ;;  %1083 = vmatprep.subr.bf16.mxu1 %v1157_v36  ;;  %v1169_v44 = vld [vmem:[%s1414_s9 + $0x24] ss:$8 sps:$4 sm:$0xff]   ;;  %v1171_v45 = vld [vmem:[%s1414_s9 + $0x20] ss:$8 sps:$4 sm:$0xff]   ;;  %v1172_v46 = vld [vmem:[%s1414_s9 + $0x14] ss:$8 sps:$4 sm:$0xff]  }
  0x32   : > { %v1174_v47 = vld [vmem:[%s1414_s9 + $0x10] ss:$8 sps:$4 sm:$0xff]   ;;  %v1175_v48 = vld [vmem:[%s1414_s9 + $0x4] ss:$8 sps:$4 sm:$0xff]   ;;  %v1177_v49 = vld [vmem:[%s1414_s9] ss:$8 sps:$4 sm:$0xff]  }
  0x33   : > { %v1178_v50 = vld [vmem:[%s1414_s9 + $0xf4] ss:$8 sps:$4 sm:$0xff]   ;;  %v1180_v51 = vld [vmem:[%s1414_s9 + $0xf0] ss:$8 sps:$4 sm:$0xff]   ;;  %v1181_v52 = vld [vmem:[%s1414_s9 + $0xe4] ss:$8 sps:$4 sm:$0xff]  }
  0x34   : > { %689 = vmatpush1.bf16.msra.mxu0 %v1159_v37  ;;  %1099 = vmatpush1.bf16.msra.mxu1 %v1159_v37  ;;  %v1183_v53 = vld [vmem:[%s1414_s9 + $0xe0] ss:$8 sps:$4 sm:$0xff]   ;;  %v1184_v54 = vld [vmem:[%s1414_s9 + $0xd4] ss:$8 sps:$4 sm:$0xff]   ;;  %v1186_v55 = vld [vmem:[%s1414_s9 + $0xd0] ss:$8 sps:$4 sm:$0xff]  }
  0x35   : > { %690 = vmatprep.subr.bf16.mxu0 %v1160_v38  ;;  %1084 = vmatprep.subr.bf16.mxu1 %v1160_v38  ;;  %v1187_v56 = vld [vmem:[%s1414_s9 + $0xc4] ss:$8 sps:$4 sm:$0xff]   ;;  %v1189_v57 = vld [vmem:[%s1414_s9 + $0xc0] ss:$8 sps:$4 sm:$0xff]   ;;  %v1190_v58 = vld [vmem:[%s1414_s9 + $0xb4] ss:$8 sps:$4 sm:$0xff]  }
  0x36   : > { %v1192_v59 = vld [vmem:[%s1414_s9 + $0xb0] ss:$8 sps:$4 sm:$0xff]   ;;  %v1193_v60 = vld [vmem:[%s1414_s9 + $0xa4] ss:$8 sps:$4 sm:$0xff]   ;;  %v1195_v61 = vld [vmem:[%s1414_s9 + $0xa0] ss:$8 sps:$4 sm:$0xff]  }
  0x37   : > { %v1196_v62 = vld [vmem:[%s1414_s9 + $0x94] ss:$8 sps:$4 sm:$0xff]   ;;  %v1198_v63 = vld [vmem:[%s1414_s9 + $0x90] ss:$8 sps:$4 sm:$0xff]   ;;  %v1199_v0 = vld [vmem:[%s1414_s9 + $0x84] ss:$8 sps:$4 sm:$0xff]  }
  0x38   : > { %691 = vmatpush1.bf16.msra.mxu0 %v1162_v39  ;;  %1100 = vmatpush1.bf16.msra.mxu1 %v1162_v39  ;;  %v1201_v1 = vld [vmem:[%s1414_s9 + $0x80] ss:$8 sps:$4 sm:$0xff]   ;;  %v1208_v4 = vld [vmem:[%s1652_s0 + $0x14] ss:$8 sps:$4 sm:$0xff]   ;;  %v1212_v6 = vld [vmem:[%s1652_s0 + $0x10] ss:$8 sps:$4 sm:$0xff]  }
  0x39   : > { %692 = vmatprep.subr.bf16.mxu0 %v1163_v40  ;;  %1085 = vmatprep.subr.bf16.mxu1 %v1163_v40  ;;  %v1202_v2 = vld [vmem:[%s1652_s0] ss:$8 sps:$4 sm:$0xff]   ;;  %v1210_v5 = vld [vmem:[%s1652_s0 + $0x54] ss:$8 sps:$4 sm:$0xff]   ;;  %v1213_v7 = vld [vmem:[%s1652_s0 + $0x50] ss:$8 sps:$4 sm:$0xff]  }
  0x3a   : > { %v1205_v3 = vld [vmem:[%s1652_s0 + $0x40] ss:$8 sps:$4 sm:$0xff]   ;;  %v1214_v8 = vld [vmem:[%s1652_s0 + $0x24] ss:$8 sps:$4 sm:$0xff]   ;;  %v1220_v12 = vld [vmem:[%s1652_s0 + $0x34] ss:$8 sps:$4 sm:$0xff]  }
  0x3b   : > { %v1216_v9 = vld [vmem:[%s1652_s0 + $0x64] ss:$8 sps:$4 sm:$0xff]   ;;  %v1218_v10 = vld [vmem:[%s1652_s0 + $0x20] ss:$8 sps:$4 sm:$0xff]   ;;  %v1222_v13 = vld [vmem:[%s1652_s0 + $0x74] ss:$8 sps:$4 sm:$0xff]  }
  0x3c   : > { %693 = vmatpush1.bf16.msra.mxu0 %v1165_v41  ;;  %1101 = vmatpush1.bf16.msra.mxu1 %v1165_v41  ;;  %v1219_v11 = vld [vmem:[%s1652_s0 + $0x60] ss:$8 sps:$4 sm:$0xff]   ;;  %v1224_v14 = vld [vmem:[%s1652_s0 + $0x30] ss:$8 sps:$4 sm:$0xff]   ;;  %s1664_s26 = smov (!%p380_p11, %s1026_s26), 3  ;;  %v437_v17 = vshrl.u32 %v436_v16, 7 }
  0x3d   : > { %694 = vmatprep.subr.bf16.mxu0 %v1166_v42  ;;  %1086 = vmatprep.subr.bf16.mxu1 %v1166_v42  ;;  %v1225_v15 = vld [vmem:[%s1652_s0 + $0x70] ss:$8 sps:$4 sm:$0xff]   ;;  %s382_s29 = scalar_lea.vmem %s1654_s2, %s1664_s26  ;;  %s1081_s4 = sshll.u32 (%p1321_p6), %s1256_s14, 4 }
  0x3e   : > { %v438_v18 = vsub.s32 0, %v437_v17  ;;  %v434_v19 = vld [vmem:[%s382_s29] sm:$0x3]  ;;  %v442_v20 = vsub.s32 1, %v437_v17  ;;  %s1574_s7 = scalar_lea.vmem (%p1321_p6), %s1655_s3, %s1081_s4 }
  0x40   : > { %695 = vmatpush1.bf16.msra.mxu0 %v1168_v43  ;;  %1102 = vmatpush1.bf16.msra.mxu1 %v1168_v43  ;;  %v1494_v21 = vrot.slane %v434_v19, %v438_v18  ;;  %v1496_v22 = vrot.slane %v434_v19, %v442_v20 }
  0x41   : > { %696 = vmatprep.subr.bf16.mxu0 %v1169_v44  ;;  %1087 = vmatprep.subr.bf16.mxu1 %v1169_v44 }
  0x44   : > { %697 = vmatpush1.bf16.msra.mxu0 %v1171_v45  ;;  %1103 = vmatpush1.bf16.msra.mxu1 %v1171_v45 }
  0x45   : > { %698 = vmatprep.subr.bf16.mxu0 %v1172_v46  ;;  %1088 = vmatprep.subr.bf16.mxu1 %v1172_v46 }
  0x48   : > { %699 = vmatpush1.bf16.msra.mxu0 %v1174_v47  ;;  %1104 = vmatpush1.bf16.msra.mxu1 %v1174_v47 }
  0x49   : > { %700 = vmatprep.subr.bf16.mxu0 %v1175_v48  ;;  %1089 = vmatprep.subr.bf16.mxu1 %v1175_v48 }
  0x4c   : > { %701 = vmatpush1.bf16.msra.mxu0 %v1177_v49  ;;  %1105 = vmatpush1.bf16.msra.mxu1 %v1177_v49 }
  0x4d   : > { %702 = vmatprep.subr.bf16.mxu0 %v1178_v50  ;;  %1090 = vmatprep.subr.bf16.mxu1 %v1178_v50 }
  0x50   : > { %703 = vmatpush2.bf16.msra.mxu0 %v1180_v51  ;;  %1106 = vmatpush2.bf16.msra.mxu1 %v1180_v51 }
  0x51   : > { %704 = vmatprep.subr.bf16.mxu0 %v1181_v52  ;;  %1091 = vmatprep.subr.bf16.mxu1 %v1181_v52 }
  0x54   : > { %705 = vmatpush2.bf16.msra.mxu0 %v1183_v53  ;;  %1107 = vmatpush2.bf16.msra.mxu1 %v1183_v53 }
  0x55   : > { %706 = vmatprep.subr.bf16.mxu0 %v1184_v54  ;;  %1092 = vmatprep.subr.bf16.mxu1 %v1184_v54 }
  0x58   : > { %707 = vmatpush2.bf16.msra.mxu0 %v1186_v55  ;;  %1108 = vmatpush2.bf16.msra.mxu1 %v1186_v55 }
  0x59   : > { %708 = vmatprep.subr.bf16.mxu0 %v1187_v56  ;;  %1093 = vmatprep.subr.bf16.mxu1 %v1187_v56 }
  0x5c   : > { %709 = vmatpush2.bf16.msra.mxu0 %v1189_v57  ;;  %1109 = vmatpush2.bf16.msra.mxu1 %v1189_v57 }
  0x5d   : > { %710 = vmatprep.subr.bf16.mxu0 %v1190_v58  ;;  %1094 = vmatprep.subr.bf16.mxu1 %v1190_v58 }
  0x60   : > { %711 = vmatpush2.bf16.msra.mxu0 %v1192_v59  ;;  %1110 = vmatpush2.bf16.msra.mxu1 %v1192_v59 }
  0x61   : > { %712 = vmatprep.subr.bf16.mxu0 %v1193_v60  ;;  %1095 = vmatprep.subr.bf16.mxu1 %v1193_v60 }
  0x64   : > { %713 = vmatpush2.bf16.msra.mxu0 %v1195_v61  ;;  %1111 = vmatpush2.bf16.msra.mxu1 %v1195_v61 }
  0x65   : > { %714 = vmatprep.subr.bf16.mxu0 %v1196_v62  ;;  %1096 = vmatprep.subr.bf16.mxu1 %v1196_v62 }
  0x68   : > { %715 = vmatpush2.bf16.msra.mxu0 %v1198_v63  ;;  %1112 = vmatpush2.bf16.msra.mxu1 %v1198_v63 }
  0x69   : > { %716 = vmatprep.subr.bf16.mxu0 %v1199_v0  ;;  %1097 = vmatprep.subr.bf16.mxu1 %v1199_v0 }
  0x6c   : > { %717 = vmatpush2.bf16.msra.mxu0 %v1201_v1  ;;  %1113 = vmatpush2.bf16.msra.mxu1 %v1201_v1 }
  0x6f   : > { %719 = vmatmul.mubr.bf16.vlgmr.msra.gmra.mxu0 %v1202_v2  ;;  %759 = vmatmul.mubr.bf16.vlgmr.msra.gmra.mxu1 %v1205_v3 }
  0x70   : > { %728 = vmatprep.mubr.bf16.mxu0 %v1208_v4  ;;  %768 = vmatprep.mubr.bf16.mxu1 %v1210_v5 }
  0x77   : > { %729 = vmatmul.mubr.bf16.gmra.mxu0 %v1212_v6  ;;  %769 = vmatmul.mubr.bf16.gmra.mxu1 %v1213_v7 }
  0x78   : > { %738 = vmatprep.mubr.bf16.mxu0 %v1214_v8  ;;  %778 = vmatprep.mubr.bf16.mxu1 %v1216_v9 }
  0x7f   : > { %739 = vmatmul.mubr.bf16.gmra.mxu0 %v1218_v10  ;;  %779 = vmatmul.mubr.bf16.gmra.mxu1 %v1219_v11 }
  0x80   : > { %748 = vmatprep.mubr.bf16.mxu0 %v1220_v12  ;;  %788 = vmatprep.mubr.bf16.mxu1 %v1222_v13 }
  0x87   : > { %749 = vmatmul.mubr.bf16.gmra.mxu0 %v1224_v14  ;;  %789 = vmatmul.mubr.bf16.gmra.mxu1 %v1225_v15 }
 0x12f   : > { %v720_v23 = vpop.f32.mrf.mxu0  ;;  %v760_v24 = vpop.f32.mrf.mxu1 }
 0x130   : > { %v721_v25 = vadd.f32 %v720_v23, %v1494_v21  ;;  %v761_v26 = vadd.f32 %v760_v24, %v1494_v21 }
 0x131   : > { %v722_v27 = vpop.f32.mrf.mxu0  ;;  %v762_v28 = vpop.f32.mrf.mxu1 }
 0x132   : > { %799 = vst [vmem:[%s1501_s30] sm:$0xff] %v721_v25  ;;  %815 = vst [vmem:[%s1501_s30 + $0x80] sm:$0xff] %v761_v26  ;;  %v723_v29 = vadd.f32 %v722_v27, %v1496_v22  ;;  %v763_v30 = vadd.f32 %v762_v28, %v1496_v22 }
 0x133   : > { %v724_v31 = vpop.f32.mrf.mxu0  ;;  %v764_v32 = vpop.f32.mrf.mxu1 }
 0x134   : > { %800 = vst [vmem:[%s1501_s30 + $0x8] sm:$0xff] %v723_v29  ;;  %816 = vst [vmem:[%s1501_s30 + $0x88] sm:$0xff] %v763_v30  ;;  %v725_v33 = vadd.f32 %v724_v31, %v1494_v21  ;;  %v765_v34 = vadd.f32 %v764_v32, %v1494_v21 }
 0x135   : > { %v726_v35 = vpop.f32.mrf.mxu0  ;;  %v766_v36 = vpop.f32.mrf.mxu1 }
 0x136   : > { %801 = vst [vmem:[%s1501_s30 + $0x10] sm:$0xff] %v725_v33  ;;  %817 = vst [vmem:[%s1501_s30 + $0x90] sm:$0xff] %v765_v34  ;;  %v727_v37 = vadd.f32 %v726_v35, %v1496_v22  ;;  %v767_v38 = vadd.f32 %v766_v36, %v1496_v22 }
 0x137   : > { %v730_v39 = vpop.f32.mrf.mxu0  ;;  %v770_v40 = vpop.f32.mrf.mxu1 }
 0x138   : > { %802 = vst [vmem:[%s1501_s30 + $0x18] sm:$0xff] %v727_v37  ;;  %818 = vst [vmem:[%s1501_s30 + $0x98] sm:$0xff] %v767_v38  ;;  %v731_v41 = vadd.f32 %v730_v39, %v1494_v21  ;;  %v771_v42 = vadd.f32 %v770_v40, %v1494_v21 }
 0x139   : > { %v732_v43 = vpop.f32.mrf.mxu0  ;;  %v772_v44 = vpop.f32.mrf.mxu1  ;;  %v888_v39 = vld [vmem:[%s1501_s30 + $0x80] sm:$0xff] (%p1321_p6) }
 0x13a   : > { %803 = vst [vmem:[%s1501_s30 + $0x20] sm:$0xff] %v731_v41  ;;  %819 = vst [vmem:[%s1501_s30 + $0xa0] sm:$0xff] %v771_v42  ;;  %v733_v45 = vadd.f32 %v732_v43, %v1496_v22  ;;  %v773_v46 = vadd.f32 %v772_v44, %v1496_v22 }
 0x13b   : > { %v734_v47 = vpop.f32.mrf.mxu0  ;;  %v774_v48 = vpop.f32.mrf.mxu1  ;;  %v858_v25 = vld [vmem:[%s1501_s30 + $0x8] sm:$0xff] (%p1321_p6)  ;;  %889 = vst [vmem:[%s1574_s7 + $0x100] sm:$0xff] (%p1321_p6), %v888_v39 }
 0x13c   : > { %804 = vst [vmem:[%s1501_s30 + $0x28] sm:$0xff] %v733_v45  ;;  %820 = vst [vmem:[%s1501_s30 + $0xa8] sm:$0xff] %v773_v46  ;;  %v735_v49 = vadd.f32 %v734_v47, %v1494_v21  ;;  %v775_v50 = vadd.f32 %v774_v48, %v1494_v21  ;;  %v890_v40 = vld [vmem:[%s1501_s30 + $0x88] sm:$0xff] (%p1321_p6) }
 0x13d   : > { %v736_v51 = vpop.f32.mrf.mxu0  ;;  %v776_v52 = vpop.f32.mrf.mxu1  ;;  %v860_v26 = vld [vmem:[%s1501_s30 + $0x10] sm:$0xff] (%p1321_p6)  ;;  %859 = vst [vmem:[%s1574_s7 + $0x8] sm:$0xff] (%p1321_p6), %v858_v25  ;;  %891 = vst [vmem:[%s1574_s7 + $0x108] sm:$0xff] (%p1321_p6), %v890_v40 }
 0x13e   : > { %805 = vst [vmem:[%s1501_s30 + $0x30] sm:$0xff] %v735_v49  ;;  %821 = vst [vmem:[%s1501_s30 + $0xb0] sm:$0xff] %v775_v50  ;;  %v737_v53 = vadd.f32 %v736_v51, %v1496_v22  ;;  %v777_v54 = vadd.f32 %v776_v52, %v1496_v22  ;;  %v892_v41 = vld [vmem:[%s1501_s30 + $0x90] sm:$0xff] (%p1321_p6) }
 0x13f   : > { %v740_v55 = vpop.f32.mrf.mxu0  ;;  %v780_v56 = vpop.f32.mrf.mxu1  ;;  %861 = vst [vmem:[%s1574_s7 + $0x20] sm:$0xff] (%p1321_p6), %v860_v26  ;;  %v894_v42 = vld [vmem:[%s1501_s30 + $0x98] sm:$0xff] (%p1321_p6)  ;;  %893 = vst [vmem:[%s1574_s7 + $0x120] sm:$0xff] (%p1321_p6), %v892_v41 }
 0x140   : > { %806 = vst [vmem:[%s1501_s30 + $0x38] sm:$0xff] %v737_v53  ;;  %822 = vst [vmem:[%s1501_s30 + $0xb8] sm:$0xff] %v777_v54  ;;  %v741_v57 = vadd.f32 %v740_v55, %v1494_v21  ;;  %v781_v58 = vadd.f32 %v780_v56, %v1494_v21 }
 0x141   : > { %v742_v59 = vpop.f32.mrf.mxu0  ;;  %v782_v60 = vpop.f32.mrf.mxu1  ;;  %v864_v27 = vld [vmem:[%s1501_s30 + $0x20] sm:$0xff] (%p1321_p6)  ;;  %895 = vst [vmem:[%s1574_s7 + $0x128] sm:$0xff] (%p1321_p6), %v894_v42 }
 0x142   : > { %807 = vst [vmem:[%s1501_s30 + $0x40] sm:$0xff] %v741_v57  ;;  %823 = vst [vmem:[%s1501_s30 + $0xc0] sm:$0xff] %v781_v58  ;;  %v743_v61 = vadd.f32 %v742_v59, %v1496_v22  ;;  %v783_v62 = vadd.f32 %v782_v60, %v1496_v22  ;;  %v896_v43 = vld [vmem:[%s1501_s30 + $0xa0] sm:$0xff] (%p1321_p6) }
 0x143   : > { %v744_v63 = vpop.f32.mrf.mxu0  ;;  %v784_v0 = vpop.f32.mrf.mxu1  ;;  %v866_v28 = vld [vmem:[%s1501_s30 + $0x28] sm:$0xff] (%p1321_p6)  ;;  %865 = vst [vmem:[%s1574_s7 + $0x40] sm:$0xff] (%p1321_p6), %v864_v27  ;;  %897 = vst [vmem:[%s1574_s7 + $0x140] sm:$0xff] (%p1321_p6), %v896_v43 }
 0x144   : > { %808 = vst [vmem:[%s1501_s30 + $0x48] sm:$0xff] %v743_v61  ;;  %824 = vst [vmem:[%s1501_s30 + $0xc8] sm:$0xff] %v783_v62  ;;  %v745_v1 = vadd.f32 %v744_v63, %v1494_v21  ;;  %v785_v2 = vadd.f32 %v784_v0, %v1494_v21  ;;  %v898_v44 = vld [vmem:[%s1501_s30 + $0xa8] sm:$0xff] (%p1321_p6) }
 0x145   : > { %v746_v3 = vpop.f32.mrf.mxu0  ;;  %v786_v4 = vpop.f32.mrf.mxu1  ;;  %867 = vst [vmem:[%s1574_s7 + $0x48] sm:$0xff] (%p1321_p6), %v866_v28  ;;  %v868_v29 = vld [vmem:[%s1501_s30 + $0x30] sm:$0xff] (%p1321_p6)  ;;  %899 = vst [vmem:[%s1574_s7 + $0x148] sm:$0xff] (%p1321_p6), %v898_v44 }
 0x146   : > { %809 = vst [vmem:[%s1501_s30 + $0x50] sm:$0xff] %v745_v1  ;;  %825 = vst [vmem:[%s1501_s30 + $0xd0] sm:$0xff] %v785_v2  ;;  %v747_v5 = vadd.f32 %v746_v3, %v1496_v22  ;;  %v787_v6 = vadd.f32 %v786_v4, %v1496_v22  ;;  %v900_v45 = vld [vmem:[%s1501_s30 + $0xb0] sm:$0xff] (%p1321_p6) }
 0x147   : > { %v750_v7 = vpop.f32.mrf.mxu0  ;;  %v790_v8 = vpop.f32.mrf.mxu1  ;;  %v870_v30 = vld [vmem:[%s1501_s30 + $0x38] sm:$0xff] (%p1321_p6)  ;;  %869 = vst [vmem:[%s1574_s7 + $0x60] sm:$0xff] (%p1321_p6), %v868_v29  ;;  %901 = vst [vmem:[%s1574_s7 + $0x160] sm:$0xff] (%p1321_p6), %v900_v45 }
 0x148   : > { %810 = vst [vmem:[%s1501_s30 + $0x58] sm:$0xff] %v747_v5  ;;  %826 = vst [vmem:[%s1501_s30 + $0xd8] sm:$0xff] %v787_v6  ;;  %v751_v9 = vadd.f32 %v750_v7, %v1494_v21  ;;  %v791_v10 = vadd.f32 %v790_v8, %v1494_v21  ;;  %v902_v46 = vld [vmem:[%s1501_s30 + $0xb8] sm:$0xff] (%p1321_p6) }
 0x149   : > { %v752_v11 = vpop.f32.mrf.mxu0  ;;  %v792_v12 = vpop.f32.mrf.mxu1  ;;  %v872_v31 = vld [vmem:[%s1501_s30 + $0x40] sm:$0xff] (%p1321_p6)  ;;  %871 = vst [vmem:[%s1574_s7 + $0x68] sm:$0xff] (%p1321_p6), %v870_v30  ;;  %903 = vst [vmem:[%s1574_s7 + $0x168] sm:$0xff] (%p1321_p6), %v902_v46 }
 0x14a   : > { %811 = vst [vmem:[%s1501_s30 + $0x60] sm:$0xff] %v751_v9  ;;  %827 = vst [vmem:[%s1501_s30 + $0xe0] sm:$0xff] %v791_v10  ;;  %v753_v13 = vadd.f32 %v752_v11, %v1496_v22  ;;  %v793_v14 = vadd.f32 %v792_v12, %v1496_v22  ;;  %v904_v47 = vld [vmem:[%s1501_s30 + $0xc0] sm:$0xff] (%p1321_p6) }
 0x14b   : > { %v754_v15 = vpop.f32.mrf.mxu0  ;;  %v794_v16 = vpop.f32.mrf.mxu1  ;;  %873 = vst [vmem:[%s1574_s7 + $0x80] sm:$0xff] (%p1321_p6), %v872_v31  ;;  %v874_v32 = vld [vmem:[%s1501_s30 + $0x48] sm:$0xff] (%p1321_p6)  ;;  %905 = vst [vmem:[%s1574_s7 + $0x180] sm:$0xff] (%p1321_p6), %v904_v47 }
 0x14c   : > { %812 = vst [vmem:[%s1501_s30 + $0x68] sm:$0xff] %v753_v13  ;;  %828 = vst [vmem:[%s1501_s30 + $0xe8] sm:$0xff] %v793_v14  ;;  %v755_v17 = vadd.f32 %v754_v15, %v1494_v21  ;;  %v795_v18 = vadd.f32 %v794_v16, %v1494_v21  ;;  %837 = sbr.rel (!%p1321_p6) target bundleno = 346 (0x15a), region = 74  ;;  %v856_v21 = vld [vmem:[%s1501_s30] sm:$0xff] (%p1321_p6)  ;;  %v906_v48 = vld [vmem:[%s1501_s30 + $0xc8] sm:$0xff] (%p1321_p6) }
 0x14d   : > { %v756_v19 = vpop.f32.mrf.mxu0  ;;  %v796_v20 = vpop.f32.mrf.mxu1  ;;  %857 = vst [vmem:[%s1574_s7] sm:$0xff] (%p1321_p6), %v856_v21  ;;  %v876_v33 = vld [vmem:[%s1501_s30 + $0x50] sm:$0xff] (%p1321_p6)  ;;  %875 = vst [vmem:[%s1574_s7 + $0x88] sm:$0xff] (%p1321_p6), %v874_v32 }
 0x14e   : > { %813 = vst [vmem:[%s1501_s30 + $0x70] sm:$0xff] %v755_v17  ;;  %829 = vst [vmem:[%s1501_s30 + $0xf0] sm:$0xff] %v795_v18  ;;  %v757_v23 = vadd.f32 %v756_v19, %v1496_v22  ;;  %v797_v24 = vadd.f32 %v796_v20, %v1496_v22  ;;  %v862_v22 = vld [vmem:[%s1501_s30 + $0x18] sm:$0xff] (%p1321_p6)  ;;  %v908_v49 = vld [vmem:[%s1501_s30 + $0xd0] sm:$0xff] (%p1321_p6) }
 0x14f   : > { %863 = vst [vmem:[%s1574_s7 + $0x28] sm:$0xff] (%p1321_p6), %v862_v22  ;;  %v878_v34 = vld [vmem:[%s1501_s30 + $0x58] sm:$0xff] (%p1321_p6)  ;;  %877 = vst [vmem:[%s1574_s7 + $0xa0] sm:$0xff] (%p1321_p6), %v876_v33 }
 0x150   : > { %814 = vst [vmem:[%s1501_s30 + $0x78] sm:$0xff] %v757_v23  ;;  %830 = vst [vmem:[%s1501_s30 + $0xf8] sm:$0xff] %v797_v24  ;;  %v910_v50 = vld [vmem:[%s1501_s30 + $0xd8] sm:$0xff] (%p1321_p6) }
 0x151   : > { %879 = vst [vmem:[%s1574_s7 + $0xa8] sm:$0xff] %v878_v34  ;;  %v880_v35 = vld [vmem:[%s1501_s30 + $0x60] sm:$0xff]  ;;  %907 = vst [vmem:[%s1574_s7 + $0x188] sm:$0xff] %v906_v48 }
 0x152   : > { %881 = vst [vmem:[%s1574_s7 + $0xc0] sm:$0xff] %v880_v35  ;;  %909 = vst [vmem:[%s1574_s7 + $0x1a0] sm:$0xff] %v908_v49  ;;  %v912_v51 = vld [vmem:[%s1501_s30 + $0xe0] sm:$0xff] }
 0x153   : > { %v882_v36 = vld [vmem:[%s1501_s30 + $0x68] sm:$0xff]  ;;  %911 = vst [vmem:[%s1574_s7 + $0x1a8] sm:$0xff] %v910_v50  ;;  %913 = vst [vmem:[%s1574_s7 + $0x1c0] sm:$0xff] %v912_v51 }
 0x154   : > { %883 = vst [vmem:[%s1574_s7 + $0xc8] sm:$0xff] %v882_v36  ;;  %v914_v52 = vld [vmem:[%s1501_s30 + $0xe8] sm:$0xff] }
 0x155   : > { %v884_v37 = vld [vmem:[%s1501_s30 + $0x70] sm:$0xff]  ;;  %915 = vst [vmem:[%s1574_s7 + $0x1c8] sm:$0xff] %v914_v52 }
 0x156   : > { %885 = vst [vmem:[%s1574_s7 + $0xe0] sm:$0xff] %v884_v37  ;;  %v916_v53 = vld [vmem:[%s1501_s30 + $0xf0] sm:$0xff] }
 0x157   : > { %v886_v38 = vld [vmem:[%s1501_s30 + $0x78] sm:$0xff]  ;;  %917 = vst [vmem:[%s1574_s7 + $0x1e0] sm:$0xff] %v916_v53 }
 0x158   : > { %887 = vst [vmem:[%s1574_s7 + $0xe8] sm:$0xff] %v886_v38  ;;  %v918_v54 = vld [vmem:[%s1501_s30 + $0xf8] sm:$0xff] }
 0x159   : > { %919 = vst [vmem:[%s1574_s7 + $0x1e8] sm:$0xff] %v918_v54 }
 0x15a PF: > { %s13_s16 = sadd.s32 1, %s1264_s16   ;;  %s1657_s12 = smov %s1252_s13 }
 0x15b   : > { %p10_p12 = scmp.ge.s32.totalorder %s13_s16, 4   ;;  %s1658_s13 = smov %s1326_s22 }
 0x15c   : > { %s1659_s14 = smov %s1260_s15  ;;  %s1660_s15 = smov %s1662_s17 }
 0x15d   :  { %12 = sbr.rel (!%p10_p12) target bundleno = 3 (0x3), region = 134 }

// kernel: vae_forward.18
= control target key start
LH: loop header
LB: loop body
LE: loop exit
PB: predicated region body
PF: predicated region fallthrough
CT: control target
= control target key end

     0   :  { %s1945_s0 = inlined_call_operand.vmem [shape: f32[512,128], index: 0, kind: input, shape index: {}]   ;;  %s1946_s1 = inlined_call_operand.vmem [shape: f32[1,128], index: 1, kind: input, shape index: {}]   ;;  %s1947_s2 = inlined_call_operand.vmem [shape: f32[1,128], index: 2, kind: input, shape index: {}]   ;;  %s1948_s3 = inlined_call_operand.vmem [shape: f32[512,128], index: 3, kind: output, shape index: {}]  }
   0x1   :  { %v716_v0 = vld [vmem:[%s1945_s0] sm:$0xff]  ;;  %v721_v1 = vld [vmem:[%s1945_s0 + $0x8] sm:$0xff]  ;;  %v726_v2 = vld [vmem:[%s1945_s0 + $0x10] sm:$0xff] }
   0x2   :  { %v731_v3 = vld [vmem:[%s1945_s0 + $0x18] sm:$0xff]  ;;  %v78_v4 = vadd.f32 %v721_v1, %v716_v0  ;;  %v147_v5 = vmul.f32 %v716_v0, %v716_v0  ;;  %v148_v6 = vmul.f32 %v721_v1, %v721_v1  ;;  %v149_v7 = vmul.f32 %v726_v2, %v726_v2  ;;  %v744_v8 = vld [vmem:[%s1945_s0 + $0x20] sm:$0xff]  ;;  %v752_v12 = vld [vmem:[%s1945_s0 + $0x28] sm:$0xff] }
   0x3   :  { %v150_v10 = vmul.f32 %v731_v3, %v731_v3  ;;  %v151_v14 = vmul.f32 %v744_v8, %v744_v8  ;;  %v760_v16 = vld [vmem:[%s1945_s0 + $0x30] sm:$0xff]  ;;  %v152_v18 = vmul.f32 %v752_v12, %v752_v12  ;;  %v768_v20 = vld [vmem:[%s1945_s0 + $0x38] sm:$0xff]  ;;  %v776_v24 = vld [vmem:[%s1945_s0 + $0x40] sm:$0xff] }
   0x4   :  { %v79_v9 = vadd.f32 %v78_v4, %v726_v2  ;;  %v211_v11 = vadd.f32 %v148_v6, %v147_v5  ;;  %v153_v22 = vmul.f32 %v760_v16, %v760_v16  ;;  %v154_v26 = vmul.f32 %v768_v20, %v768_v20  ;;  %v784_v28 = vld [vmem:[%s1945_s0 + $0x48] sm:$0xff]  ;;  %v792_v32 = vld [vmem:[%s1945_s0 + $0x50] sm:$0xff]  ;;  %v800_v36 = vld [vmem:[%s1945_s0 + $0x58] sm:$0xff] }
   0x5   :  { %v155_v30 = vmul.f32 %v776_v24, %v776_v24  ;;  %v156_v34 = vmul.f32 %v784_v28, %v784_v28  ;;  %v157_v38 = vmul.f32 %v792_v32, %v792_v32  ;;  %v808_v40 = vld [vmem:[%s1945_s0 + $0x60] sm:$0xff]  ;;  %v158_v42 = vmul.f32 %v800_v36, %v800_v36  ;;  %v816_v44 = vld [vmem:[%s1945_s0 + $0x68] sm:$0xff]  ;;  %v824_v48 = vld [vmem:[%s1945_s0 + $0x70] sm:$0xff] }
   0x6   :  { %v80_v13 = vadd.f32 %v79_v9, %v731_v3  ;;  %v212_v15 = vadd.f32 %v211_v11, %v149_v7  ;;  %v159_v46 = vmul.f32 %v808_v40, %v808_v40  ;;  %v160_v50 = vmul.f32 %v816_v44, %v816_v44  ;;  %v832_v52 = vld [vmem:[%s1945_s0 + $0x78] sm:$0xff]  ;;  %v840_v56 = vld [vmem:[%s1945_s0 + $0x80] sm:$0xff]  ;;  %v848_v60 = vld [vmem:[%s1945_s0 + $0x88] sm:$0xff] }
   0x7   :  { %v161_v54 = vmul.f32 %v824_v48, %v824_v48  ;;  %v162_v58 = vmul.f32 %v832_v52, %v832_v52  ;;  %v163_v62 = vmul.f32 %v840_v56, %v840_v56  ;;  %v856_v4 = vld [vmem:[%s1945_s0 + $0x90] sm:$0xff]  ;;  %v164_v6 = vmul.f32 %v848_v60, %v848_v60  ;;  %v864_v9 = vld [vmem:[%s1945_s0 + $0x98] sm:$0xff] }
   0x8   :  { %v81_v17 = vadd.f32 %v80_v13, %v744_v8  ;;  %v213_v19 = vadd.f32 %v212_v15, %v150_v10  ;;  %v165_v11 = vmul.f32 %v856_v4, %v856_v4 }
   0xa   :  { %v82_v21 = vadd.f32 %v81_v17, %v752_v12  ;;  %v214_v23 = vadd.f32 %v213_v19, %v151_v14  ;;  %v872_v14 = vld [vmem:[%s1945_s0 + $0xa0] sm:$0xff]  ;;  %v166_v17 = vmul.f32 %v864_v9, %v864_v9  ;;  %v880_v19 = vld [vmem:[%s1945_s0 + $0xa8] sm:$0xff] }
   0xc   :  { %v83_v25 = vadd.f32 %v82_v21, %v760_v16  ;;  %v215_v27 = vadd.f32 %v214_v23, %v152_v18 }
   0xe   :  { %v84_v29 = vadd.f32 %v83_v25, %v768_v20  ;;  %v216_v31 = vadd.f32 %v215_v27, %v153_v22  ;;  %v167_v22 = vmul.f32 %v872_v14, %v872_v14  ;;  %v888_v25 = vld [vmem:[%s1945_s0 + $0xb0] sm:$0xff]  ;;  %v168_v27 = vmul.f32 %v880_v19, %v880_v19 }
  0x10   :  { %v85_v33 = vadd.f32 %v84_v29, %v776_v24  ;;  %v217_v35 = vadd.f32 %v216_v31, %v154_v26 }
  0x12   :  { %v86_v37 = vadd.f32 %v85_v33, %v784_v28  ;;  %v218_v39 = vadd.f32 %v217_v35, %v155_v30  ;;  %v896_v30 = vld [vmem:[%s1945_s0 + $0xb8] sm:$0xff]  ;;  %v169_v33 = vmul.f32 %v888_v25, %v888_v25  ;;  %v904_v35 = vld [vmem:[%s1945_s0 + $0xc0] sm:$0xff] }
  0x14   :  { %v87_v41 = vadd.f32 %v86_v37, %v792_v32  ;;  %v219_v43 = vadd.f32 %v218_v39, %v156_v34 }
  0x16   :  { %v88_v45 = vadd.f32 %v87_v41, %v800_v36  ;;  %v220_v47 = vadd.f32 %v219_v43, %v157_v38  ;;  %v170_v38 = vmul.f32 %v896_v30, %v896_v30  ;;  %v912_v41 = vld [vmem:[%s1945_s0 + $0xc8] sm:$0xff]  ;;  %v171_v43 = vmul.f32 %v904_v35, %v904_v35 }
  0x18   :  { %v89_v49 = vadd.f32 %v88_v45, %v808_v40  ;;  %v221_v51 = vadd.f32 %v220_v47, %v158_v42 }
  0x1a   :  { %v90_v53 = vadd.f32 %v89_v49, %v816_v44  ;;  %v222_v55 = vadd.f32 %v221_v51, %v159_v46  ;;  %v920_v46 = vld [vmem:[%s1945_s0 + $0xd0] sm:$0xff]  ;;  %v172_v49 = vmul.f32 %v912_v41, %v912_v41  ;;  %v928_v51 = vld [vmem:[%s1945_s0 + $0xd8] sm:$0xff] }
  0x1c   :  { %v91_v57 = vadd.f32 %v90_v53, %v824_v48  ;;  %v223_v59 = vadd.f32 %v222_v55, %v160_v50 }
  0x1e   :  { %v92_v61 = vadd.f32 %v91_v57, %v832_v52  ;;  %v224_v63 = vadd.f32 %v223_v59, %v161_v54  ;;  %v173_v54 = vmul.f32 %v920_v46, %v920_v46  ;;  %v936_v57 = vld [vmem:[%s1945_s0 + $0xe0] sm:$0xff]  ;;  %v174_v59 = vmul.f32 %v928_v51, %v928_v51 }
  0x20   :  { %v93_v5 = vadd.f32 %v92_v61, %v840_v56  ;;  %v225_v7 = vadd.f32 %v224_v63, %v162_v58 }
  0x22   :  { %v94_v10 = vadd.f32 %v93_v5, %v848_v60  ;;  %v226_v13 = vadd.f32 %v225_v7, %v163_v62  ;;  %v944_v62 = vld [vmem:[%s1945_s0 + $0xe8] sm:$0xff]  ;;  %v175_v5 = vmul.f32 %v936_v57, %v936_v57  ;;  %v952_v7 = vld [vmem:[%s1945_s0 + $0xf0] sm:$0xff] }
  0x24   :  { %v95_v15 = vadd.f32 %v94_v10, %v856_v4  ;;  %v227_v18 = vadd.f32 %v226_v13, %v164_v6 }
  0x26   :  { %v96_v21 = vadd.f32 %v95_v15, %v864_v9  ;;  %v228_v23 = vadd.f32 %v227_v18, %v165_v11  ;;  %v176_v11 = vmul.f32 %v944_v62, %v944_v62  ;;  %v960_v15 = vld [vmem:[%s1945_s0 + $0xf8] sm:$0xff]  ;;  %v177_v18 = vmul.f32 %v952_v7, %v952_v7 }
  0x28   :  { %v97_v26 = vadd.f32 %v96_v21, %v872_v14  ;;  %v229_v29 = vadd.f32 %v228_v23, %v166_v17 }
  0x2a   :  { %v98_v31 = vadd.f32 %v97_v26, %v880_v19  ;;  %v230_v34 = vadd.f32 %v229_v29, %v167_v22  ;;  %v968_v22 = vld [vmem:[%s1945_s0 + $0x100] sm:$0xff]  ;;  %v178_v26 = vmul.f32 %v960_v15, %v960_v15  ;;  %v976_v29 = vld [vmem:[%s1945_s0 + $0x108] sm:$0xff] }
  0x2c   :  { %v99_v37 = vadd.f32 %v98_v31, %v888_v25  ;;  %v231_v39 = vadd.f32 %v230_v34, %v168_v27 }
  0x2e   :  { %v100_v42 = vadd.f32 %v99_v37, %v896_v30  ;;  %v232_v45 = vadd.f32 %v231_v39, %v169_v33  ;;  %v179_v33 = vmul.f32 %v968_v22, %v968_v22  ;;  %v984_v37 = vld [vmem:[%s1945_s0 + $0x110] sm:$0xff]  ;;  %v180_v39 = vmul.f32 %v976_v29, %v976_v29 }
  0x30   :  { %v101_v47 = vadd.f32 %v100_v42, %v904_v35  ;;  %v233_v50 = vadd.f32 %v232_v45, %v170_v38 }
  0x32   :  { %v102_v53 = vadd.f32 %v101_v47, %v912_v41  ;;  %v234_v55 = vadd.f32 %v233_v50, %v171_v43  ;;  %v992_v43 = vld [vmem:[%s1945_s0 + $0x118] sm:$0xff]  ;;  %v181_v47 = vmul.f32 %v984_v37, %v984_v37  ;;  %v1000_v50 = vld [vmem:[%s1945_s0 + $0x120] sm:$0xff] }
  0x34   :  { %v103_v58 = vadd.f32 %v102_v53, %v920_v46  ;;  %v235_v61 = vadd.f32 %v234_v55, %v172_v49 }
  0x36   :  { %v104_v63 = vadd.f32 %v103_v58, %v928_v51  ;;  %v236_v6 = vadd.f32 %v235_v61, %v173_v54  ;;  %v182_v54 = vmul.f32 %v992_v43, %v992_v43  ;;  %v1008_v58 = vld [vmem:[%s1945_s0 + $0x128] sm:$0xff]  ;;  %v183_v61 = vmul.f32 %v1000_v50, %v1000_v50 }
  0x38   :  { %v105_v10 = vadd.f32 %v104_v63, %v936_v57  ;;  %v237_v13 = vadd.f32 %v236_v6, %v174_v59 }
  0x3a   :  { %v106_v17 = vadd.f32 %v105_v10, %v944_v62  ;;  %v238_v21 = vadd.f32 %v237_v13, %v175_v5  ;;  %v1016_v5 = vld [vmem:[%s1945_s0 + $0x130] sm:$0xff]  ;;  %v184_v10 = vmul.f32 %v1008_v58, %v1008_v58  ;;  %v1024_v13 = vld [vmem:[%s1945_s0 + $0x138] sm:$0xff] }
  0x3c   :  { %v107_v23 = vadd.f32 %v106_v17, %v952_v7  ;;  %v239_v27 = vadd.f32 %v238_v21, %v176_v11 }
  0x3e   :  { %v108_v31 = vadd.f32 %v107_v23, %v960_v15  ;;  %v240_v34 = vadd.f32 %v239_v27, %v177_v18  ;;  %v185_v18 = vmul.f32 %v1016_v5, %v1016_v5  ;;  %v1032_v23 = vld [vmem:[%s1945_s0 + $0x140] sm:$0xff]  ;;  %v186_v27 = vmul.f32 %v1024_v13, %v1024_v13 }
  0x40   :  { %v109_v38 = vadd.f32 %v108_v31, %v968_v22  ;;  %v241_v42 = vadd.f32 %v240_v34, %v178_v26 }
  0x42   :  { %v110_v45 = vadd.f32 %v109_v38, %v976_v29  ;;  %v242_v49 = vadd.f32 %v241_v42, %v179_v33  ;;  %v1040_v33 = vld [vmem:[%s1945_s0 + $0x148] sm:$0xff]  ;;  %v187_v38 = vmul.f32 %v1032_v23, %v1032_v23  ;;  %v1048_v42 = vld [vmem:[%s1945_s0 + $0x150] sm:$0xff] }
  0x43   :  { %1994 = vst [vmem:[#allocation2_spill] sm:$0xff] %v1040_v33  ;;  %1995 = vst [vmem:[#allocation3_spill] sm:$0xff] %v1048_v42 }
  0x44   :  { %v111_v53 = vadd.f32 %v110_v45, %v984_v37  ;;  %v243_v55 = vadd.f32 %v242_v49, %v180_v39 }
  0x46   :  { %v112_v59 = vadd.f32 %v111_v53, %v992_v43  ;;  %v244_v63 = vadd.f32 %v243_v55, %v181_v47  ;;  %v188_v47 = vmul.f32 %v1040_v33, %v1040_v33  ;;  %v1056_v53 = vld [vmem:[%s1945_s0 + $0x158] sm:$0xff]  ;;  %v189_v55 = vmul.f32 %v1048_v42, %v1048_v42 }
  0x47   :  { %1996 = vst [vmem:[#allocation4_spill] sm:$0xff] %v1056_v53 }
  0x48   :  { %v113_v6 = vadd.f32 %v112_v59, %v1000_v50  ;;  %v245_v11 = vadd.f32 %v244_v63, %v182_v54 }
  0x4a   :  { %v114_v17 = vadd.f32 %v113_v6, %v1008_v58  ;;  %v246_v21 = vadd.f32 %v245_v11, %v183_v61  ;;  %v1064_v61 = vld [vmem:[%s1945_s0 + $0x160] sm:$0xff]  ;;  %v190_v6 = vmul.f32 %v1056_v53, %v1056_v53  ;;  %v1072_v11 = vld [vmem:[%s1945_s0 + $0x168] sm:$0xff] }
  0x4b   :  { %1997 = vst [vmem:[#allocation5_spill] sm:$0xff] %v1064_v61  ;;  %1998 = vst [vmem:[#allocation6_spill] sm:$0xff] %v1072_v11 }
  0x4c   :  { %v115_v26 = vadd.f32 %v114_v17, %v1016_v5  ;;  %v247_v31 = vadd.f32 %v246_v21, %v184_v10 }
  0x4e   :  { %v116_v34 = vadd.f32 %v115_v26, %v1024_v13  ;;  %v248_v39 = vadd.f32 %v247_v31, %v185_v18  ;;  %v191_v18 = vmul.f32 %v1064_v61, %v1064_v61  ;;  %v1080_v26 = vld [vmem:[%s1945_s0 + $0x170] sm:$0xff]  ;;  %v192_v31 = vmul.f32 %v1072_v11, %v1072_v11 }
  0x4f   :  { %1999 = vst [vmem:[#allocation7_spill] sm:$0xff] %v1080_v26 }
  0x50   :  { %v117_v45 = vadd.f32 %v116_v34, %v1032_v23  ;;  %v249_v49 = vadd.f32 %v248_v39, %v186_v27 }
  0x52   :  { %v118_v54 = vadd.f32 %v117_v45, %v1040_v33  ;;  %v250_v59 = vadd.f32 %v249_v49, %v187_v38  ;;  %v1088_v38 = vld [vmem:[%s1945_s0 + $0x178] sm:$0xff]  ;;  %v193_v45 = vmul.f32 %v1080_v26, %v1080_v26  ;;  %v1096_v49 = vld [vmem:[%s1945_s0 + $0x180] sm:$0xff] }
  0x53   :  { %2000 = vst [vmem:[#allocation8_spill] sm:$0xff] %v1088_v38  ;;  %2001 = vst [vmem:[#allocation9_spill] sm:$0xff] %v1096_v49 }
  0x54   :  { %v119_v63 = vadd.f32 %v118_v54, %v1048_v42  ;;  %v251_v10 = vadd.f32 %v250_v59, %v188_v47 }
  0x56   :  { %v120_v17 = vadd.f32 %v119_v63, %v1056_v53  ;;  %v252_v21 = vadd.f32 %v251_v10, %v189_v55  ;;  %v194_v55 = vmul.f32 %v1088_v38, %v1088_v38  ;;  %v1104_v63 = vld [vmem:[%s1945_s0 + $0x188] sm:$0xff]  ;;  %v195_v10 = vmul.f32 %v1096_v49, %v1096_v49 }
  0x57   :  { %2002 = vst [vmem:[#allocation10_spill] sm:$0xff] %v1104_v63 }
  0x58   :  { %v121_v27 = vadd.f32 %v120_v17, %v1064_v61  ;;  %v253_v34 = vadd.f32 %v252_v21, %v190_v6 }
  0x5a   :  { %v122_v39 = vadd.f32 %v121_v27, %v1072_v11  ;;  %v254_v47 = vadd.f32 %v253_v34, %v191_v18  ;;  %v1112_v18 = vld [vmem:[%s1945_s0 + $0x190] sm:$0xff]  ;;  %v196_v27 = vmul.f32 %v1104_v63, %v1104_v63  ;;  %v1120_v34 = vld [vmem:[%s1945_s0 + $0x198] sm:$0xff] }
  0x5b   :  { %2003 = vst [vmem:[#allocation11_spill] sm:$0xff] %v1112_v18  ;;  %2004 = vst [vmem:[#allocation12_spill] sm:$0xff] %v1120_v34 }
  0x5c   :  { %v123_v54 = vadd.f32 %v122_v39, %v1080_v26  ;;  %v255_v59 = vadd.f32 %v254_v47, %v192_v31 }
  0x5e   :  { %v124_v6 = vadd.f32 %v123_v54, %v1088_v38  ;;  %v256_v17 = vadd.f32 %v255_v59, %v193_v45  ;;  %v197_v45 = vmul.f32 %v1112_v18, %v1112_v18  ;;  %v1128_v54 = vld [vmem:[%s1945_s0 + $0x1a0] sm:$0xff] }
  0x5f   :  { %2005 = vst [vmem:[#allocation13_spill] sm:$0xff] %v1128_v54 }
  0x60   :  { %v125_v21 = vadd.f32 %v124_v6, %v1096_v49  ;;  %v257_v31 = vadd.f32 %v256_v17, %v194_v55  ;;  %v198_v55 = vmul.f32 %v1120_v34, %v1120_v34  ;;  %v1136_v17 = vld [vmem:[%s1945_s0 + $0x1a8] sm:$0xff] }
  0x61   :  { %2006 = vst [vmem:[#allocation14_spill] sm:$0xff] %v1136_v17 }
  0x62   :  { %v126_v39 = vadd.f32 %v125_v21, %v1104_v63  ;;  %v258_v47 = vadd.f32 %v257_v31, %v195_v10  ;;  %v199_v10 = vmul.f32 %v1128_v54, %v1128_v54  ;;  %v1144_v63 = vld [vmem:[%s1945_s0 + $0x1b0] sm:$0xff] }
  0x63   :  { %2007 = vst [vmem:[#allocation15_spill] sm:$0xff] %v1144_v63 }
  0x64   :  { %v127_v59 = vadd.f32 %v126_v39, %v1112_v18  ;;  %v259_v6 = vadd.f32 %v258_v47, %v196_v27  ;;  %v200_v27 = vmul.f32 %v1136_v17, %v1136_v17  ;;  %v1152_v18 = vld [vmem:[%s1945_s0 + $0x1b8] sm:$0xff] }
  0x65   :  { %2008 = vst [vmem:[#allocation16_spill] sm:$0xff] %v1152_v18 }
  0x66   :  { %v128_v21 = vadd.f32 %v127_v59, %v1120_v34  ;;  %v260_v31 = vadd.f32 %v259_v6, %v197_v45  ;;  %v201_v45 = vmul.f32 %v1144_v63, %v1144_v63  ;;  %v1160_v34 = vld [vmem:[%s1945_s0 + $0x1c0] sm:$0xff] }
  0x67   :  { %2009 = vst [vmem:[#allocation17_spill] sm:$0xff] %v1160_v34 }
  0x68   :  { %v129_v39 = vadd.f32 %v128_v21, %v1128_v54  ;;  %v261_v47 = vadd.f32 %v260_v31, %v198_v55  ;;  %v202_v55 = vmul.f32 %v1152_v18, %v1152_v18  ;;  %v1168_v54 = vld [vmem:[%s1945_s0 + $0x1c8] sm:$0xff] }
  0x69   :  { %2010 = vst [vmem:[#allocation18_spill] sm:$0xff] %v1168_v54 }
  0x6a   :  { %v130_v59 = vadd.f32 %v129_v39, %v1136_v17  ;;  %v262_v6 = vadd.f32 %v261_v47, %v199_v10  ;;  %v203_v10 = vmul.f32 %v1160_v34, %v1160_v34  ;;  %v1176_v17 = vld [vmem:[%s1945_s0 + $0x1d0] sm:$0xff] }
  0x6b   :  { %2011 = vst [vmem:[#allocation19_spill] sm:$0xff] %v1176_v17 }
  0x6c   :  { %v131_v21 = vadd.f32 %v130_v59, %v1144_v63  ;;  %v263_v31 = vadd.f32 %v262_v6, %v200_v27  ;;  %v204_v27 = vmul.f32 %v1168_v54, %v1168_v54  ;;  %v1184_v63 = vld [vmem:[%s1945_s0 + $0x1d8] sm:$0xff] }
  0x6d   :  { %2012 = vst [vmem:[#allocation20_spill] sm:$0xff] %v1184_v63 }
  0x6e   :  { %v132_v39 = vadd.f32 %v131_v21, %v1152_v18  ;;  %v264_v47 = vadd.f32 %v263_v31, %v201_v45  ;;  %v205_v45 = vmul.f32 %v1176_v17, %v1176_v17  ;;  %v1192_v18 = vld [vmem:[%s1945_s0 + $0x1e0] sm:$0xff] }
  0x6f   :  { %2013 = vst [vmem:[#allocation21_spill] sm:$0xff] %v1192_v18 }
  0x70   :  { %v133_v59 = vadd.f32 %v132_v39, %v1160_v34  ;;  %v265_v6 = vadd.f32 %v264_v47, %v202_v55  ;;  %v206_v55 = vmul.f32 %v1184_v63, %v1184_v63  ;;  %v1200_v34 = vld [vmem:[%s1945_s0 + $0x1e8] sm:$0xff] }
  0x71   :  { %2014 = vst [vmem:[#allocation22_spill] sm:$0xff] %v1200_v34 }
  0x72   :  { %v134_v21 = vadd.f32 %v133_v59, %v1168_v54  ;;  %v266_v31 = vadd.f32 %v265_v6, %v203_v10  ;;  %v207_v10 = vmul.f32 %v1192_v18, %v1192_v18  ;;  %v1208_v54 = vld [vmem:[%s1945_s0 + $0x1f0] sm:$0xff] }
  0x73   :  { %2015 = vst [vmem:[#allocation23_spill] sm:$0xff] %v1208_v54 }
  0x74   :  { %v135_v39 = vadd.f32 %v134_v21, %v1176_v17  ;;  %v267_v47 = vadd.f32 %v266_v31, %v204_v27  ;;  %v208_v27 = vmul.f32 %v1200_v34, %v1200_v34  ;;  %v1216_v17 = vld [vmem:[%s1945_s0 + $0x1f8] sm:$0xff] }
  0x75   :  { %2016 = vst [vmem:[#allocation24_spill] sm:$0xff] %v1216_v17 }
  0x76   :  { %v136_v59 = vadd.f32 %v135_v39, %v1184_v63  ;;  %v268_v6 = vadd.f32 %v267_v47, %v205_v45  ;;  %v209_v45 = vmul.f32 %v1208_v54, %v1208_v54 }
  0x78   :  { %v137_v21 = vadd.f32 %v136_v59, %v1192_v18  ;;  %v269_v31 = vadd.f32 %v268_v6, %v206_v55  ;;  %v210_v59 = vmul.f32 %v1216_v17, %v1216_v17 }
  0x7a   :  { %v138_v39 = vadd.f32 %v137_v21, %v1200_v34  ;;  %v270_v47 = vadd.f32 %v269_v31, %v207_v10 }
  0x7c   :  { %v139_v63 = vadd.f32 %v138_v39, %v1208_v54  ;;  %v271_v18 = vadd.f32 %v270_v47, %v208_v27 }
  0x7e   :  { %v140_v49 = vadd.f32 %v139_v63, %v1216_v17  ;;  %v272_v55 = vadd.f32 %v271_v18, %v209_v45 }
  0x80   :  { %v141_v6 = vrot.slane %v140_v49, 4  ;;  %v273_v38 = vadd.f32 %v272_v55, %v210_v59 }
  0x82   :  { %v142_v26 = vadd.f32 %v141_v6, %v140_v49  ;;  %v274_v11 = vrot.slane %v273_v38, 4  ;;  %v1354_v49 = vld [vmem:[%s1946_s1] ss:$0 sm:$0xff] }
  0x84   :  { %v143_v61 = vrot.slane %v142_v26, 2  ;;  %v275_v53 = vadd.f32 %v274_v11, %v273_v38 }
  0x86   :  { %v144_v21 = vadd.f32 %v143_v61, %v142_v26  ;;  %v276_v34 = vrot.slane %v275_v53, 2 }
  0x88   :  { %v145_v42 = vrot.slane %v144_v21, 1  ;;  %v277_v33 = vadd.f32 %v276_v34, %v275_v53 }
  0x8a   :  { %v146_v10 = vadd.f32 %v145_v42, %v144_v21  ;;  %v278_v31 = vrot.slane %v277_v33, 1  ;;  %v2018_v21 = vld [vmem:[#allocation3_spill] sm:$0xff] }
  0x8c   :  { %v1225_v39 = vmul.f32 0.001953125, %v146_v10  ;;  %v279_v54 = vadd.f32 %v278_v31, %v277_v33  ;;  %v2019_v10 = vld [vmem:[#allocation4_spill] sm:$0xff]  ;;  %v2020_v31 = vld [vmem:[#allocation5_spill] sm:$0xff] }
  0x8e   :  { %v283_v27 = vmul.f32 %v1225_v39, %v1225_v39  ;;  %v282_v63 = vmul.f32 0.001953125, %v279_v54  ;;  %v2039_v45 = vsub.f32 %v716_v0, %v1225_v39  ;;  %v2040_v42 = vsub.f32 %v721_v1, %v1225_v39  ;;  %v1383_v0 = vld [vmem:[%s1947_s2] ss:$0 sm:$0xff] }
  0x8f   :  { %v2041_v11 = vsub.f32 %v726_v2, %v1225_v39  ;;  %v2042_v33 = vsub.f32 %v731_v3, %v1225_v39  ;;  %v2043_v1 = vsub.f32 %v744_v8, %v1225_v39  ;;  %v2044_v2 = vsub.f32 %v752_v12, %v1225_v39 }
  0x90   :  { %v284_v18 = vsub.f32 %v282_v63, %v283_v27  ;;  %v2021_v27 = vld [vmem:[#allocation6_spill] sm:$0xff]  ;;  %v2045_v3 = vsub.f32 %v760_v16, %v1225_v39 }
  0x92   :  { %v285_v61 = vadd.f32 1e-05, %v284_v18 }
  0x94   :  { %691 = vrsqrt.f32 %v285_v61  ;;  %v2017_v61 = vld [vmem:[#allocation2_spill] sm:$0xff] }
  0xa1   :  { %v1349_v18 = vpop.eup %691 }
  0xa2   :  { %v351_v53 = vmul.f32 %v1349_v18, %v2039_v45  ;;  %v352_v38 = vmul.f32 %v1349_v18, %v2040_v42  ;;  %v353_v26 = vmul.f32 %v1349_v18, %v2041_v11  ;;  %v354_v47 = vmul.f32 %v1349_v18, %v2042_v33 }
  0xa3   :  { %v355_v42 = vmul.f32 %v1349_v18, %v2043_v1  ;;  %v356_v11 = vmul.f32 %v1349_v18, %v2044_v2  ;;  %v357_v33 = vmul.f32 %v1349_v18, %v2045_v3  ;;  %v2046_v45 = vsub.f32 %v768_v20, %v1225_v39 }
  0xa4   :  { %v422_v59 = vmul.f32 %v1354_v49, %v351_v53  ;;  %v423_v8 = vmul.f32 %v1354_v49, %v352_v38  ;;  %v424_v1 = vmul.f32 %v1354_v49, %v353_v26  ;;  %v425_v12 = vmul.f32 %v1354_v49, %v354_v47 }
  0xa5   :  { %v358_v17 = vmul.f32 %v1349_v18, %v2046_v45  ;;  %v426_v2 = vmul.f32 %v1354_v49, %v355_v42  ;;  %v427_v55 = vmul.f32 %v1354_v49, %v356_v11  ;;  %v428_v16 = vmul.f32 %v1354_v49, %v357_v33 }
  0xa6   :  { %v493_v20 = vadd.f32 %v1383_v0, %v422_v59  ;;  %v494_v45 = vadd.f32 %v1383_v0, %v423_v8  ;;  %v495_v53 = vadd.f32 %v1383_v0, %v424_v1  ;;  %v496_v38 = vadd.f32 %v1383_v0, %v425_v12 }
  0xa7   :  { %v429_v3 = vmul.f32 %v1354_v49, %v358_v17  ;;  %v497_v26 = vadd.f32 %v1383_v0, %v426_v2  ;;  %v498_v47 = vadd.f32 %v1383_v0, %v427_v55  ;;  %v499_v42 = vadd.f32 %v1383_v0, %v428_v16 }
  0xa8   :  { %v557_v6 = vmax.f32 %v493_v20, 0.0  ;;  %v558_v33 = vmax.f32 %v494_v45, 0.0  ;;  %v559_v34 = vmax.f32 %v495_v53, 0.0  ;;  %v560_v17 = vmax.f32 %v496_v38, 0.0 }
  0xa9   :  { %v500_v11 = vadd.f32 %v1383_v0, %v429_v3  ;;  %v561_v54 = vmax.f32 %v497_v26, 0.0  ;;  %v562_v59 = vmax.f32 %v498_v47, 0.0  ;;  %v563_v63 = vmax.f32 %v499_v42, 0.0 }
  0xaa   :  { %621 = vst [vmem:[%s1948_s3] sm:$0xff] %v557_v6  ;;  %622 = vst [vmem:[%s1948_s3 + $0x8] sm:$0xff] %v558_v33  ;;  %v2047_v55 = vsub.f32 %v776_v24, %v1225_v39  ;;  %v2048_v6 = vsub.f32 %v784_v28, %v1225_v39  ;;  %v2049_v2 = vsub.f32 %v792_v32, %v1225_v39 }
  0xab   :  { %v564_v8 = vmax.f32 %v500_v11, 0.0  ;;  %623 = vst [vmem:[%s1948_s3 + $0x10] sm:$0xff] %v559_v34  ;;  %624 = vst [vmem:[%s1948_s3 + $0x18] sm:$0xff] %v560_v17  ;;  %v2050_v34 = vsub.f32 %v800_v36, %v1225_v39  ;;  %v2051_v24 = vsub.f32 %v808_v40, %v1225_v39  ;;  %v2052_v32 = vsub.f32 %v816_v44, %v1225_v39 }
  0xac   :  { %v359_v1 = vmul.f32 %v1349_v18, %v2047_v55  ;;  %v360_v12 = vmul.f32 %v1349_v18, %v2048_v6  ;;  %v361_v16 = vmul.f32 %v1349_v18, %v2049_v2  ;;  %625 = vst [vmem:[%s1948_s3 + $0x20] sm:$0xff] %v561_v54  ;;  %626 = vst [vmem:[%s1948_s3 + $0x28] sm:$0xff] %v562_v59 }
  0xad   :  { %v362_v3 = vmul.f32 %v1349_v18, %v2050_v34  ;;  %627 = vst [vmem:[%s1948_s3 + $0x30] sm:$0xff] %v563_v63  ;;  %628 = vst [vmem:[%s1948_s3 + $0x38] sm:$0xff] %v564_v8  ;;  %v363_v28 = vmul.f32 %v1349_v18, %v2051_v24  ;;  %v364_v36 = vmul.f32 %v1349_v18, %v2052_v32 }
  0xae   :  { %v2053_v54 = vsub.f32 %v824_v48, %v1225_v39  ;;  %v2054_v63 = vsub.f32 %v832_v52, %v1225_v39  ;;  %v430_v53 = vmul.f32 %v1354_v49, %v359_v1  ;;  %v431_v40 = vmul.f32 %v1354_v49, %v360_v12 }
  0xaf   :  { %v432_v38 = vmul.f32 %v1354_v49, %v361_v16  ;;  %v433_v44 = vmul.f32 %v1354_v49, %v362_v3  ;;  %v434_v26 = vmul.f32 %v1354_v49, %v363_v28  ;;  %v435_v47 = vmul.f32 %v1354_v49, %v364_v36 }
  0xb0   :  { %v365_v20 = vmul.f32 %v1349_v18, %v2053_v54  ;;  %v366_v45 = vmul.f32 %v1349_v18, %v2054_v63  ;;  %v501_v52 = vadd.f32 %v1383_v0, %v430_v53  ;;  %v502_v11 = vadd.f32 %v1383_v0, %v431_v40 }
  0xb1   :  { %v503_v33 = vadd.f32 %v1383_v0, %v432_v38  ;;  %v504_v17 = vadd.f32 %v1383_v0, %v433_v44  ;;  %v505_v59 = vadd.f32 %v1383_v0, %v434_v26  ;;  %v506_v8 = vadd.f32 %v1383_v0, %v435_v47 }
  0xb2   :  { %v436_v48 = vmul.f32 %v1354_v49, %v365_v20  ;;  %v437_v42 = vmul.f32 %v1354_v49, %v366_v45  ;;  %v565_v6 = vmax.f32 %v501_v52, 0.0  ;;  %v566_v12 = vmax.f32 %v502_v11, 0.0 }
  0xb3   :  { %v567_v2 = vmax.f32 %v503_v33, 0.0  ;;  %v568_v16 = vmax.f32 %v504_v17, 0.0  ;;  %v569_v34 = vmax.f32 %v505_v59, 0.0  ;;  %v570_v3 = vmax.f32 %v506_v8, 0.0 }
  0xb4   :  { %v507_v55 = vadd.f32 %v1383_v0, %v436_v48  ;;  %v508_v1 = vadd.f32 %v1383_v0, %v437_v42  ;;  %629 = vst [vmem:[%s1948_s3 + $0x40] sm:$0xff] %v565_v6  ;;  %630 = vst [vmem:[%s1948_s3 + $0x48] sm:$0xff] %v566_v12  ;;  %v2055_v32 = vsub.f32 %v840_v56, %v1225_v39 }
  0xb5   :  { %631 = vst [vmem:[%s1948_s3 + $0x50] sm:$0xff] %v567_v2  ;;  %632 = vst [vmem:[%s1948_s3 + $0x58] sm:$0xff] %v568_v16  ;;  %v2056_v54 = vsub.f32 %v848_v60, %v1225_v39  ;;  %v2057_v63 = vsub.f32 %v856_v4, %v1225_v39  ;;  %v2058_v53 = vsub.f32 %v864_v9, %v1225_v39 }
  0xb6   :  { %v571_v24 = vmax.f32 %v507_v55, 0.0  ;;  %v572_v28 = vmax.f32 %v508_v1, 0.0  ;;  %v367_v36 = vmul.f32 %v1349_v18, %v2055_v32  ;;  %633 = vst [vmem:[%s1948_s3 + $0x60] sm:$0xff] %v569_v34  ;;  %634 = vst [vmem:[%s1948_s3 + $0x68] sm:$0xff] %v570_v3  ;;  %v2059_v56 = vsub.f32 %v872_v14, %v1225_v39 }
  0xb7   :  { %v368_v20 = vmul.f32 %v1349_v18, %v2056_v54  ;;  %v369_v45 = vmul.f32 %v1349_v18, %v2057_v63  ;;  %v370_v40 = vmul.f32 %v1349_v18, %v2058_v53  ;;  %v2060_v4 = vsub.f32 %v880_v19, %v1225_v39 }
  0xb8   :  { %635 = vst [vmem:[%s1948_s3 + $0x70] sm:$0xff] %v571_v24  ;;  %636 = vst [vmem:[%s1948_s3 + $0x78] sm:$0xff] %v572_v28  ;;  %v371_v60 = vmul.f32 %v1349_v18, %v2059_v56  ;;  %v2061_v38 = vsub.f32 %v888_v25, %v1225_v39  ;;  %v2062_v26 = vsub.f32 %v896_v30, %v1225_v39 }
  0xb9   :  { %v372_v9 = vmul.f32 %v1349_v18, %v2060_v4  ;;  %v438_v48 = vmul.f32 %v1354_v49, %v367_v36  ;;  %v439_v14 = vmul.f32 %v1354_v49, %v368_v20  ;;  %v440_v42 = vmul.f32 %v1354_v49, %v369_v45 }
  0xba   :  { %v373_v44 = vmul.f32 %v1349_v18, %v2061_v38  ;;  %v374_v47 = vmul.f32 %v1349_v18, %v2062_v26  ;;  %v441_v19 = vmul.f32 %v1354_v49, %v370_v40  ;;  %v442_v52 = vmul.f32 %v1354_v49, %v371_v60 }
  0xbb   :  { %v443_v11 = vmul.f32 %v1354_v49, %v372_v9  ;;  %v509_v30 = vadd.f32 %v1383_v0, %v438_v48  ;;  %v510_v17 = vadd.f32 %v1383_v0, %v439_v14  ;;  %v511_v59 = vadd.f32 %v1383_v0, %v440_v42 }
  0xbc   :  { %v444_v25 = vmul.f32 %v1354_v49, %v373_v44  ;;  %v445_v33 = vmul.f32 %v1354_v49, %v374_v47  ;;  %v512_v8 = vadd.f32 %v1383_v0, %v441_v19  ;;  %v513_v55 = vadd.f32 %v1383_v0, %v442_v52 }
  0xbd   :  { %v514_v1 = vadd.f32 %v1383_v0, %v443_v11  ;;  %v573_v2 = vmax.f32 %v509_v30, 0.0  ;;  %v574_v16 = vmax.f32 %v510_v17, 0.0  ;;  %v575_v34 = vmax.f32 %v511_v59, 0.0 }
  0xbe   :  { %v515_v6 = vadd.f32 %v1383_v0, %v444_v25  ;;  %v516_v12 = vadd.f32 %v1383_v0, %v445_v33  ;;  %v576_v3 = vmax.f32 %v512_v8, 0.0  ;;  %v577_v24 = vmax.f32 %v513_v55, 0.0 }
  0xbf   :  { %v578_v28 = vmax.f32 %v514_v1, 0.0  ;;  %637 = vst [vmem:[%s1948_s3 + $0x80] sm:$0xff] %v573_v2  ;;  %638 = vst [vmem:[%s1948_s3 + $0x88] sm:$0xff] %v574_v16  ;;  %v2063_v54 = vsub.f32 %v904_v35, %v1225_v39  ;;  %v2064_v63 = vsub.f32 %v912_v41, %v1225_v39  ;;  %v2065_v53 = vsub.f32 %v920_v46, %v1225_v39 }
  0xc0   :  { %v579_v32 = vmax.f32 %v515_v6, 0.0  ;;  %v580_v36 = vmax.f32 %v516_v12, 0.0  ;;  %639 = vst [vmem:[%s1948_s3 + $0x90] sm:$0xff] %v575_v34  ;;  %640 = vst [vmem:[%s1948_s3 + $0x98] sm:$0xff] %v576_v3  ;;  %v2066_v56 = vsub.f32 %v928_v51, %v1225_v39  ;;  %v2067_v35 = vsub.f32 %v936_v57, %v1225_v39 }
  0xc1   :  { %v375_v20 = vmul.f32 %v1349_v18, %v2063_v54  ;;  %v376_v45 = vmul.f32 %v1349_v18, %v2064_v63  ;;  %v377_v40 = vmul.f32 %v1349_v18, %v2065_v53  ;;  %641 = vst [vmem:[%s1948_s3 + $0xa0] sm:$0xff] %v577_v24  ;;  %642 = vst [vmem:[%s1948_s3 + $0xa8] sm:$0xff] %v578_v28 }
  0xc2   :  { %v378_v60 = vmul.f32 %v1349_v18, %v2066_v56  ;;  %643 = vst [vmem:[%s1948_s3 + $0xb0] sm:$0xff] %v579_v32  ;;  %644 = vst [vmem:[%s1948_s3 + $0xb8] sm:$0xff] %v580_v36  ;;  %v379_v41 = vmul.f32 %v1349_v18, %v2067_v35  ;;  %v2068_v46 = vsub.f32 %v944_v62, %v1225_v39 }
  0xc3   :  { %v2069_v4 = vsub.f32 %v952_v7, %v1225_v39  ;;  %v2070_v38 = vsub.f32 %v960_v15, %v1225_v39  ;;  %v446_v26 = vmul.f32 %v1354_v49, %v375_v20  ;;  %v447_v57 = vmul.f32 %v1354_v49, %v376_v45 }
  0xc4   :  { %v380_v51 = vmul.f32 %v1349_v18, %v2068_v46  ;;  %v448_v47 = vmul.f32 %v1354_v49, %v377_v40  ;;  %v449_v62 = vmul.f32 %v1354_v49, %v378_v60  ;;  %v450_v48 = vmul.f32 %v1354_v49, %v379_v41 }
  0xc5   :  { %v381_v9 = vmul.f32 %v1349_v18, %v2069_v4  ;;  %v382_v44 = vmul.f32 %v1349_v18, %v2070_v38  ;;  %v517_v15 = vadd.f32 %v1383_v0, %v446_v26  ;;  %v518_v19 = vadd.f32 %v1383_v0, %v447_v57 }
  0xc6   :  { %v451_v14 = vmul.f32 %v1354_v49, %v380_v51  ;;  %v519_v52 = vadd.f32 %v1383_v0, %v448_v47  ;;  %v520_v11 = vadd.f32 %v1383_v0, %v449_v62  ;;  %v521_v25 = vadd.f32 %v1383_v0, %v450_v48 }
  0xc7   :  { %v452_v7 = vmul.f32 %v1354_v49, %v381_v9  ;;  %v453_v42 = vmul.f32 %v1354_v49, %v382_v44  ;;  %v581_v59 = vmax.f32 %v517_v15, 0.0  ;;  %v582_v8 = vmax.f32 %v518_v19, 0.0 }
  0xc8   :  { %v522_v33 = vadd.f32 %v1383_v0, %v451_v14  ;;  %v583_v55 = vmax.f32 %v519_v52, 0.0  ;;  %v584_v1 = vmax.f32 %v520_v11, 0.0  ;;  %v585_v6 = vmax.f32 %v521_v25, 0.0 }
  0xc9   :  { %v523_v30 = vadd.f32 %v1383_v0, %v452_v7  ;;  %v524_v17 = vadd.f32 %v1383_v0, %v453_v42  ;;  %645 = vst [vmem:[%s1948_s3 + $0xc0] sm:$0xff] %v581_v59  ;;  %646 = vst [vmem:[%s1948_s3 + $0xc8] sm:$0xff] %v582_v8  ;;  %v2071_v34 = vsub.f32 %v968_v22, %v1225_v39 }
  0xca   :  { %v586_v12 = vmax.f32 %v522_v33, 0.0  ;;  %647 = vst [vmem:[%s1948_s3 + $0xd0] sm:$0xff] %v583_v55  ;;  %648 = vst [vmem:[%s1948_s3 + $0xd8] sm:$0xff] %v584_v1  ;;  %v2072_v24 = vsub.f32 %v976_v29, %v1225_v39  ;;  %v2073_v32 = vsub.f32 %v984_v37, %v1225_v39  ;;  %v2074_v54 = vsub.f32 %v992_v43, %v1225_v39  ;;  %v2085_v55 = vld [vmem:[#allocation7_spill] sm:$0xff] }
  0xcb   :  { %v587_v2 = vmax.f32 %v523_v30, 0.0  ;;  %v588_v16 = vmax.f32 %v524_v17, 0.0  ;;  %v383_v3 = vmul.f32 %v1349_v18, %v2071_v34  ;;  %649 = vst [vmem:[%s1948_s3 + $0xe0] sm:$0xff] %v585_v6  ;;  %v2075_v22 = vsub.f32 %v1000_v50, %v1225_v39 }
  0xcc   :  { %v384_v28 = vmul.f32 %v1349_v18, %v2072_v24  ;;  %v385_v36 = vmul.f32 %v1349_v18, %v2073_v32  ;;  %v386_v20 = vmul.f32 %v1349_v18, %v2074_v54  ;;  %650 = vst [vmem:[%s1948_s3 + $0xe8] sm:$0xff] %v586_v12  ;;  %v2076_v37 = vsub.f32 %v1008_v58, %v1225_v39  ;;  %v2087_v12 = vld [vmem:[#allocation8_spill] sm:$0xff] }
  0xcd   :  { %651 = vst [vmem:[%s1948_s3 + $0xf0] sm:$0xff] %v587_v2  ;;  %652 = vst [vmem:[%s1948_s3 + $0xf8] sm:$0xff] %v588_v16  ;;  %v387_v29 = vmul.f32 %v1349_v18, %v2075_v22  ;;  %v2077_v63 = vsub.f32 %v1016_v5, %v1225_v39  ;;  %v2078_v53 = vsub.f32 %v1024_v13, %v1225_v39 }
  0xce   :  { %v388_v43 = vmul.f32 %v1349_v18, %v2076_v37  ;;  %v454_v56 = vmul.f32 %v1354_v49, %v383_v3  ;;  %v455_v50 = vmul.f32 %v1354_v49, %v384_v28  ;;  %v456_v60 = vmul.f32 %v1354_v49, %v385_v36 }
  0xcf   :  { %v389_v45 = vmul.f32 %v1349_v18, %v2077_v63  ;;  %v390_v40 = vmul.f32 %v1349_v18, %v2078_v53  ;;  %v457_v58 = vmul.f32 %v1354_v49, %v386_v20  ;;  %v458_v35 = vmul.f32 %v1354_v49, %v387_v29 }
  0xd0   :  { %v459_v41 = vmul.f32 %v1354_v49, %v388_v43  ;;  %v525_v13 = vadd.f32 %v1383_v0, %v454_v56  ;;  %v526_v51 = vadd.f32 %v1383_v0, %v455_v50  ;;  %v527_v4 = vadd.f32 %v1383_v0, %v456_v60 }
  0xd1   :  { %v460_v5 = vmul.f32 %v1354_v49, %v389_v45  ;;  %v461_v46 = vmul.f32 %v1354_v49, %v390_v40  ;;  %v528_v9 = vadd.f32 %v1383_v0, %v457_v58  ;;  %v529_v38 = vadd.f32 %v1383_v0, %v458_v35 }
  0xd2   :  { %v530_v44 = vadd.f32 %v1383_v0, %v459_v41  ;;  %v589_v47 = vmax.f32 %v525_v13, 0.0  ;;  %v590_v62 = vmax.f32 %v526_v51, 0.0  ;;  %v591_v48 = vmax.f32 %v527_v4, 0.0  ;;  %v2091_v51 = vld [vmem:[#allocation10_spill] sm:$0xff] }
  0xd3   :  { %v531_v26 = vadd.f32 %v1383_v0, %v460_v5  ;;  %v532_v57 = vadd.f32 %v1383_v0, %v461_v46  ;;  %v592_v14 = vmax.f32 %v528_v9, 0.0  ;;  %v593_v7 = vmax.f32 %v529_v38, 0.0  ;;  %v2089_v5 = vld [vmem:[#allocation9_spill] sm:$0xff]  ;;  %v2093_v38 = vld [vmem:[#allocation11_spill] sm:$0xff] }
  0xd4   :  { %v594_v42 = vmax.f32 %v530_v44, 0.0  ;;  %653 = vst [vmem:[%s1948_s3 + $0x100] sm:$0xff] %v589_v47  ;;  %654 = vst [vmem:[%s1948_s3 + $0x108] sm:$0xff] %v590_v62  ;;  %v2079_v52 = vsub.f32 %v1032_v23, %v1225_v39  ;;  %v2080_v25 = vsub.f32 %v2017_v61, %v1225_v39  ;;  %v2081_v30 = vsub.f32 %v2018_v21, %v1225_v39 }
  0xd5   :  { %v595_v15 = vmax.f32 %v531_v26, 0.0  ;;  %v596_v19 = vmax.f32 %v532_v57, 0.0  ;;  %655 = vst [vmem:[%s1948_s3 + $0x110] sm:$0xff] %v591_v48  ;;  %656 = vst [vmem:[%s1948_s3 + $0x118] sm:$0xff] %v592_v14  ;;  %v2082_v59 = vsub.f32 %v2019_v10, %v1225_v39  ;;  %v2083_v23 = vsub.f32 %v2020_v31, %v1225_v39  ;;  %v2095_v57 = vld [vmem:[#allocation12_spill] sm:$0xff]  ;;  %v2097_v48 = vld [vmem:[#allocation13_spill] sm:$0xff] }
  0xd6   :  { %v391_v11 = vmul.f32 %v1349_v18, %v2079_v52  ;;  %v392_v33 = vmul.f32 %v1349_v18, %v2080_v25  ;;  %v393_v17 = vmul.f32 %v1349_v18, %v2081_v30  ;;  %657 = vst [vmem:[%s1948_s3 + $0x120] sm:$0xff] %v593_v7  ;;  %658 = vst [vmem:[%s1948_s3 + $0x128] sm:$0xff] %v594_v42  ;;  %v2099_v42 = vld [vmem:[#allocation14_spill] sm:$0xff]  ;;  %v2101_v52 = vld [vmem:[#allocation15_spill] sm:$0xff] }
  0xd7   :  { %v394_v8 = vmul.f32 %v1349_v18, %v2082_v59  ;;  %659 = vst [vmem:[%s1948_s3 + $0x130] sm:$0xff] %v595_v15  ;;  %660 = vst [vmem:[%s1948_s3 + $0x138] sm:$0xff] %v596_v19  ;;  %v395_v21 = vmul.f32 %v1349_v18, %v2083_v23  ;;  %v2084_v10 = vsub.f32 %v2021_v27, %v1225_v39 }
  0xd8   :  { %v2086_v1 = vsub.f32 %v2085_v55, %v1225_v39  ;;  %v2088_v2 = vsub.f32 %v2087_v12, %v1225_v39  ;;  %v462_v34 = vmul.f32 %v1354_v49, %v391_v11  ;;  %v463_v31 = vmul.f32 %v1354_v49, %v392_v33  ;;  %v2103_v33 = vld [vmem:[#allocation16_spill] sm:$0xff] }
  0xd9   :  { %v396_v61 = vmul.f32 %v1349_v18, %v2084_v10  ;;  %v464_v3 = vmul.f32 %v1354_v49, %v393_v17  ;;  %v465_v27 = vmul.f32 %v1354_v49, %v394_v8  ;;  %v466_v24 = vmul.f32 %v1354_v49, %v395_v21 }
  0xda   :  { %v397_v6 = vmul.f32 %v1349_v18, %v2086_v1  ;;  %v398_v16 = vmul.f32 %v1349_v18, %v2088_v2  ;;  %v533_v54 = vadd.f32 %v1383_v0, %v462_v34  ;;  %v534_v20 = vadd.f32 %v1383_v0, %v463_v31 }
  0xdb   :  { %v467_v28 = vmul.f32 %v1354_v49, %v396_v61  ;;  %v535_v22 = vadd.f32 %v1383_v0, %v464_v3  ;;  %v536_v29 = vadd.f32 %v1383_v0, %v465_v27  ;;  %v537_v37 = vadd.f32 %v1383_v0, %v466_v24 }
  0xdc   :  { %v468_v32 = vmul.f32 %v1354_v49, %v397_v6  ;;  %v469_v36 = vmul.f32 %v1354_v49, %v398_v16  ;;  %v597_v53 = vmax.f32 %v533_v54, 0.0  ;;  %v598_v40 = vmax.f32 %v534_v20, 0.0 }
  0xdd   :  { %v538_v43 = vadd.f32 %v1383_v0, %v467_v28  ;;  %v599_v56 = vmax.f32 %v535_v22, 0.0  ;;  %v600_v50 = vmax.f32 %v536_v29, 0.0  ;;  %v601_v60 = vmax.f32 %v537_v37, 0.0  ;;  %v2105_v37 = vld [vmem:[#allocation17_spill] sm:$0xff] }
  0xde   :  { %v539_v63 = vadd.f32 %v1383_v0, %v468_v32  ;;  %v540_v45 = vadd.f32 %v1383_v0, %v469_v36  ;;  %661 = vst [vmem:[%s1948_s3 + $0x140] sm:$0xff] %v597_v53  ;;  %662 = vst [vmem:[%s1948_s3 + $0x148] sm:$0xff] %v598_v40  ;;  %v2090_v46 = vsub.f32 %v2089_v5, %v1225_v39  ;;  %v2113_v5 = vld [vmem:[#allocation21_spill] sm:$0xff] }
  0xdf   :  { %v602_v58 = vmax.f32 %v538_v43, 0.0  ;;  %663 = vst [vmem:[%s1948_s3 + $0x150] sm:$0xff] %v599_v56  ;;  %664 = vst [vmem:[%s1948_s3 + $0x158] sm:$0xff] %v600_v50  ;;  %v2092_v4 = vsub.f32 %v2091_v51, %v1225_v39  ;;  %v2094_v44 = vsub.f32 %v2093_v38, %v1225_v39  ;;  %v2096_v47 = vsub.f32 %v2095_v57, %v1225_v39  ;;  %v2109_v56 = vld [vmem:[#allocation19_spill] sm:$0xff]  ;;  %v2115_v51 = vld [vmem:[#allocation22_spill] sm:$0xff] }
  0xe0   :  { %v603_v35 = vmax.f32 %v539_v63, 0.0  ;;  %v604_v41 = vmax.f32 %v540_v45, 0.0  ;;  %v399_v13 = vmul.f32 %v1349_v18, %v2090_v46  ;;  %665 = vst [vmem:[%s1948_s3 + $0x160] sm:$0xff] %v601_v60  ;;  %v2098_v14 = vsub.f32 %v2097_v48, %v1225_v39  ;;  %v2107_v45 = vld [vmem:[#allocation18_spill] sm:$0xff]  ;;  %v2117_v38 = vld [vmem:[#allocation23_spill] sm:$0xff]  ;;  %v2119_v57 = vld [vmem:[#allocation24_spill] sm:$0xff] }
  0xe1   :  { %v400_v9 = vmul.f32 %v1349_v18, %v2092_v4  ;;  %v401_v26 = vmul.f32 %v1349_v18, %v2094_v44  ;;  %v402_v62 = vmul.f32 %v1349_v18, %v2096_v47  ;;  %666 = vst [vmem:[%s1948_s3 + $0x168] sm:$0xff] %v602_v58  ;;  %v2100_v15 = vsub.f32 %v2099_v42, %v1225_v39  ;;  %v2111_v58 = vld [vmem:[#allocation20_spill] sm:$0xff] }
  0xe2   :  { %667 = vst [vmem:[%s1948_s3 + $0x170] sm:$0xff] %v603_v35  ;;  %668 = vst [vmem:[%s1948_s3 + $0x178] sm:$0xff] %v604_v41  ;;  %v403_v7 = vmul.f32 %v1349_v18, %v2098_v14  ;;  %v2102_v11 = vsub.f32 %v2101_v52, %v1225_v39  ;;  %v2104_v30 = vsub.f32 %v2103_v33, %v1225_v39 }
  0xe3   :  { %v404_v19 = vmul.f32 %v1349_v18, %v2100_v15  ;;  %v470_v59 = vmul.f32 %v1354_v49, %v399_v13  ;;  %v471_v8 = vmul.f32 %v1354_v49, %v400_v9  ;;  %v472_v23 = vmul.f32 %v1354_v49, %v401_v26 }
  0xe4   :  { %v405_v25 = vmul.f32 %v1349_v18, %v2102_v11  ;;  %v406_v17 = vmul.f32 %v1349_v18, %v2104_v30  ;;  %v473_v21 = vmul.f32 %v1354_v49, %v402_v62  ;;  %v474_v10 = vmul.f32 %v1354_v49, %v403_v7 }
  0xe5   :  { %v475_v61 = vmul.f32 %v1354_v49, %v404_v19  ;;  %v541_v6 = vadd.f32 %v1383_v0, %v470_v59  ;;  %v542_v12 = vadd.f32 %v1383_v0, %v471_v8  ;;  %v543_v2 = vadd.f32 %v1383_v0, %v472_v23 }
  0xe6   :  { %v476_v55 = vmul.f32 %v1354_v49, %v405_v25  ;;  %v477_v1 = vmul.f32 %v1354_v49, %v406_v17  ;;  %v544_v16 = vadd.f32 %v1383_v0, %v473_v21  ;;  %v545_v34 = vadd.f32 %v1383_v0, %v474_v10 }
  0xe7   :  { %v546_v31 = vadd.f32 %v1383_v0, %v475_v61  ;;  %v605_v24 = vmax.f32 %v541_v6, 0.0  ;;  %v606_v28 = vmax.f32 %v542_v12, 0.0  ;;  %v607_v32 = vmax.f32 %v543_v2, 0.0 }
  0xe8   :  { %v547_v3 = vadd.f32 %v1383_v0, %v476_v55  ;;  %v548_v27 = vadd.f32 %v1383_v0, %v477_v1  ;;  %v608_v36 = vmax.f32 %v544_v16, 0.0  ;;  %v609_v54 = vmax.f32 %v545_v34, 0.0 }
  0xe9   :  { %v610_v20 = vmax.f32 %v546_v31, 0.0  ;;  %669 = vst [vmem:[%s1948_s3 + $0x180] sm:$0xff] %v605_v24  ;;  %670 = vst [vmem:[%s1948_s3 + $0x188] sm:$0xff] %v606_v28  ;;  %v2106_v43 = vsub.f32 %v2105_v37, %v1225_v39  ;;  %v2108_v53 = vsub.f32 %v2107_v45, %v1225_v39  ;;  %v2110_v50 = vsub.f32 %v2109_v56, %v1225_v39 }
  0xea   :  { %v611_v22 = vmax.f32 %v547_v3, 0.0  ;;  %v612_v29 = vmax.f32 %v548_v27, 0.0  ;;  %671 = vst [vmem:[%s1948_s3 + $0x190] sm:$0xff] %v607_v32  ;;  %672 = vst [vmem:[%s1948_s3 + $0x198] sm:$0xff] %v608_v36  ;;  %v2112_v35 = vsub.f32 %v2111_v58, %v1225_v39  ;;  %v2114_v46 = vsub.f32 %v2113_v5, %v1225_v39 }
  0xeb   :  { %v407_v63 = vmul.f32 %v1349_v18, %v2106_v43  ;;  %v408_v40 = vmul.f32 %v1349_v18, %v2108_v53  ;;  %v409_v60 = vmul.f32 %v1349_v18, %v2110_v50  ;;  %673 = vst [vmem:[%s1948_s3 + $0x1a0] sm:$0xff] %v609_v54  ;;  %674 = vst [vmem:[%s1948_s3 + $0x1a8] sm:$0xff] %v610_v20 }
  0xec   :  { %v410_v41 = vmul.f32 %v1349_v18, %v2112_v35  ;;  %675 = vst [vmem:[%s1948_s3 + $0x1b0] sm:$0xff] %v611_v22  ;;  %676 = vst [vmem:[%s1948_s3 + $0x1b8] sm:$0xff] %v612_v29  ;;  %v411_v13 = vmul.f32 %v1349_v18, %v2114_v46  ;;  %v2116_v4 = vsub.f32 %v2115_v51, %v1225_v39 }
  0xed   :  { %v2118_v44 = vsub.f32 %v2117_v38, %v1225_v39  ;;  %v2120_v47 = vsub.f32 %v2119_v57, %v1225_v39  ;;  %v478_v48 = vmul.f32 %v1354_v49, %v407_v63  ;;  %v479_v14 = vmul.f32 %v1354_v49, %v408_v40 }
  0xee   :  { %v412_v9 = vmul.f32 %v1349_v18, %v2116_v4  ;;  %v480_v7 = vmul.f32 %v1354_v49, %v409_v60  ;;  %v481_v42 = vmul.f32 %v1354_v49, %v410_v41  ;;  %v482_v15 = vmul.f32 %v1354_v49, %v411_v13 }
  0xef   :  { %v413_v26 = vmul.f32 %v1349_v18, %v2118_v44  ;;  %v414_v62 = vmul.f32 %v1349_v18, %v2120_v47  ;;  %v549_v39 = vadd.f32 %v1383_v0, %v478_v48  ;;  %v550_v18 = vadd.f32 %v1383_v0, %v479_v14 }
  0xf0   :  { %v483_v19 = vmul.f32 %v1354_v49, %v412_v9  ;;  %v551_v25 = vadd.f32 %v1383_v0, %v480_v7  ;;  %v552_v33 = vadd.f32 %v1383_v0, %v481_v42  ;;  %v553_v30 = vadd.f32 %v1383_v0, %v482_v15 }
  0xf1   :  { %v484_v52 = vmul.f32 %v1354_v49, %v413_v26  ;;  %v485_v11 = vmul.f32 %v1354_v49, %v414_v62  ;;  %v613_v23 = vmax.f32 %v549_v39, 0.0  ;;  %v614_v21 = vmax.f32 %v550_v18, 0.0 }
  0xf2   :  { %v554_v17 = vadd.f32 %v1383_v0, %v483_v19  ;;  %v615_v10 = vmax.f32 %v551_v25, 0.0  ;;  %v616_v49 = vmax.f32 %v552_v33, 0.0  ;;  %v617_v61 = vmax.f32 %v553_v30, 0.0 }
  0xf3   :  { %v555_v59 = vadd.f32 %v1383_v0, %v484_v52  ;;  %v556_v8 = vadd.f32 %v1383_v0, %v485_v11  ;;  %677 = vst [vmem:[%s1948_s3 + $0x1c0] sm:$0xff] %v613_v23  ;;  %678 = vst [vmem:[%s1948_s3 + $0x1c8] sm:$0xff] %v614_v21 }
  0xf4   :  { %v618_v55 = vmax.f32 %v554_v17, 0.0  ;;  %679 = vst [vmem:[%s1948_s3 + $0x1d0] sm:$0xff] %v615_v10  ;;  %680 = vst [vmem:[%s1948_s3 + $0x1d8] sm:$0xff] %v616_v49 }
  0xf5   :  { %v619_v1 = vmax.f32 %v555_v59, 0.0  ;;  %v620_v6 = vmax.f32 %v556_v8, 0.0  ;;  %681 = vst [vmem:[%s1948_s3 + $0x1e0] sm:$0xff] %v617_v61 }
  0xf6   :  { %682 = vst [vmem:[%s1948_s3 + $0x1e8] sm:$0xff] %v618_v55 }
  0xf7   :  { %683 = vst [vmem:[%s1948_s3 + $0x1f0] sm:$0xff] %v619_v1  ;;  %684 = vst [vmem:[%s1948_s3 + $0x1f8] sm:$0xff] %v620_v6 }

// kernel: tile.28
= control target key start
LH: loop header
LB: loop body
LE: loop exit
PB: predicated region body
PF: predicated region fallthrough
CT: control target
= control target key end

     0   :  { %s22_s0 = inlined_call_operand.vmem [shape: f32[3], index: 0, kind: input, shape index: {}]   ;;  %s23_s1 = inlined_call_operand.vmem [shape: f32[4,3], index: 1, kind: output, shape index: {}]  }
   0x1   :  { %v4_v0 = vld [vmem:[%s22_s0] ss:$0 sm:$0xff] }
   0x2   :  { %5 = vst [vmem:[%s23_s1] sm:$0xf] %v4_v0 }

// kernel: tile.29
= control target key start
LH: loop header
LB: loop body
LE: loop exit
PB: predicated region body
PF: predicated region fallthrough
CT: control target
= control target key end

     0   :  { %vm8_vm0 = vcmask 23552   ;;  %s40_s8 = smov 3   ;;  %s41_s9 = smov 6   ;;  %vm14_vm1 = vcmask 97352   ;;  %vm20_vm2 = vcmask 72752   ;;  %vm26_vm3 = vcmask 48152   ;;  %s58_s0 = inlined_call_operand.vmem [shape: f32[4,3], index: 0, kind: input, shape index: {}]   ;;  %s59_s1 = inlined_call_operand.vmem [shape: f32[12], index: 1, kind: output, shape index: {}]  }
   0x1   :  { %v5_v0 = vld [vmem:[%s58_s0] sm:$0xf]  ;;  %s39_s0 = smov 9  }
   0x2   :  { %6 = vst [vmem:[#allocation1] sm:$0xf] %v5_v0 }
   0x9   :  { %v11_v1 = vld [vmem:[#allocation1 + $0x3] sm:$0x1]   ;;  %v23_v2 = vld [vmem:[#allocation1 + $0x1] sm:$0x1]   ;;  %v7_v3 = vld [vmem:[#allocation1] sm:$0x1]  }
   0xa   :  { %12 = vrot.lane.b32.xlu0 %v11_v1, %s39_s0  ;;  %24 = vrot.lane.b32.xlu1 %v23_v2, %s40_s8  ;;  %v17_v4 = vld [vmem:[#allocation1 + $0x2] sm:$0x1]   ;;  %9 = vst.msk [vmem:[#allocation0] sm:$0x1] %vm8_vm0, %v7_v3  }
   0xe   :  { %18 = vrot.lane.b32.xlu0 %v17_v4, %s41_s9 }
  0x7c   :  { %v13_v5 = vpop.permute.xlu0 %12   ;;  %v25_v6 = vpop.permute.xlu1 %24  }
  0x7d   :  { %15 = vst.msk [vmem:[#allocation0] sm:$0x1] %vm14_vm1, %v13_v5  }
  0x80   :  { %v19_v7 = vpop.permute.xlu0 %18  }
  0x81   :  { %21 = vst.msk [vmem:[#allocation0] sm:$0x1] %vm20_vm2, %v19_v7  }
  0x82   :  { %27 = vst.msk [vmem:[#allocation0] sm:$0x1] %vm26_vm3, %v25_v6  }
  0x89   :  { %v32_v8 = vld [vmem:[#allocation0] sm:$0x1] }
  0x8a   :  { %35 = vst [vmem:[%s59_s1] sm:$0x1] %v32_v8 }

// kernel: vae_forward.19
= control target key start
LH: loop header
LB: loop body
LE: loop exit
PB: predicated region body
PF: predicated region fallthrough
CT: control target
= control target key end

     0   :  { %s1258_s12 = smov 0   ;;  %s1260_s13 = smov 0   ;;  %s1408_s0 = inlined_call_operand.vmem [shape: bf16[512,128], index: 0, kind: input, shape index: {}]   ;;  %s1409_s1 = inlined_call_operand.vmem [shape: bf16[128,128], index: 1, kind: input, shape index: {}]   ;;  %s1410_s2 = inlined_call_operand.vmem [shape: f32[1,128], index: 2, kind: input, shape index: {}]   ;;  %s1411_s3 = inlined_call_operand.vmem [shape: f32[512,128], index: 3, kind: output, shape index: {}]  }
   0x1   :  { %s1262_s14 = smov 0  }
   0x2 LB: > { %s25_s15 = sadd.s32 1, %s1232_s13  ;;  %p918_p0 = scmp.ge.s32.totalorder %s1236_s14, 1  ;;  %s1236_s14 = sphi %s1262_s14, %s13_s14   ;;  %s1232_s13 = sphi %s1260_s13, %s1413_s13   ;;  %s1228_s12 = sphi %s1258_s12, %s1412_s12  }
   0x3   : > { %p27_p1 = scmp.ge.s32.totalorder %s25_s15, 2  ;;  %p169_p2 = scmp.lt.s32.totalorder %s1236_s14, 3 }
   0x5   : > { %s1415_s15 = smov (%p27_p1, %s25_s15), 0  ;;  %p170_p3 = pnand %p918_p0, %p169_p2 }
   0x6   : > { %s919_s18 = sshll.u32 (!%p170_p3), %s1228_s12, 5 }
   0x7   : > { %173 = sbr.rel (%p170_p3) target bundleno = 327 (0x147), region = 32  ;;  %p204_p4 = scmp.lt.s32.totalorder (!%p170_p3), %s919_s18, 63 }
   0xc   : > { %v1062_v0 = vld [vmem:[%s1409_s1 + $0x38] sm:$0xff]   ;;  %v1063_v1 = vld [vmem:[%s1409_s1 + $0x30] sm:$0xff]   ;;  %s1417_s18 = smov (!%p204_p4, %s919_s18), 63  ;;  %v1064_v2 = vld [vmem:[%s1409_s1 + $0x28] sm:$0xff]  }
   0xd   : > { %974 = vmatprep.subr.bf16.mxu0 %v1062_v0  ;;  %1022 = vmatprep.subr.bf16.mxu1 %v1062_v0  ;;  %s920_s23 = sshll.u32 %s1417_s18, 2  ;;  %v1065_v3 = vld [vmem:[%s1409_s1 + $0x20] sm:$0xff]   ;;  %v1066_v6 = vld [vmem:[%s1409_s1 + $0x18] sm:$0xff]   ;;  %v1067_v7 = vld [vmem:[%s1409_s1 + $0x10] sm:$0xff]   ;;  %s922_s12 = sshll.u32 %s1417_s18, 3 }
   0xe   : > { %975 = vmatpush3.bf16.msra.mxu0 %v1062_v0  ;;  %1030 = vmatpush3.bf16.msra.mxu1 %v1062_v0  ;;  %s1291_s26 = scalar_lea.vmem %s1408_s0, %s920_s23  ;;  %v1068_v8 = vld [vmem:[%s1409_s1 + $0x8] sm:$0xff]   ;;  %v1069_v9 = vld [vmem:[%s1409_s1] sm:$0xff]   ;;  %s1355_s18 = scalar_lea.vmem %s1411_s3, %s922_s12 }
   0xf   : > { %976 = vmatprep.subr.bf16.mxu0 %v1063_v1  ;;  %1023 = vmatprep.subr.bf16.mxu1 %v1063_v1  ;;  %v1070_v4 = vld [vmem:[%s1291_s26] sm:$0xff]   ;;  %v1072_v10 = vld [vmem:[%s1291_s26 + $0x8] sm:$0xff]   ;;  %v1074_v12 = vld [vmem:[%s1291_s26 + $0x10] sm:$0xff]  }
  0x10   : > { %v1071_v5 = vld [vmem:[%s1291_s26 + $0x40] sm:$0xff]   ;;  %990 = vmatprep.mubr.bf16.mxu0 %v1070_v4  ;;  %v1073_v11 = vld [vmem:[%s1291_s26 + $0x48] sm:$0xff]   ;;  %v1075_v13 = vld [vmem:[%s1291_s26 + $0x50] sm:$0xff]  }
  0x11   : > { %1006 = vmatprep.mubr.bf16.mxu1 %v1071_v5  ;;  %v1076_v14 = vld [vmem:[%s1291_s26 + $0x18] sm:$0xff]   ;;  %v1078_v16 = vld [vmem:[%s1291_s26 + $0x20] sm:$0xff]   ;;  %v1080_v18 = vld [vmem:[%s1291_s26 + $0x28] sm:$0xff]  }
  0x12   : > { %977 = vmatpush3.bf16.msra.mxu0 %v1063_v1  ;;  %1031 = vmatpush3.bf16.msra.mxu1 %v1063_v1  ;;  %v1077_v15 = vld [vmem:[%s1291_s26 + $0x58] sm:$0xff]   ;;  %v1079_v17 = vld [vmem:[%s1291_s26 + $0x60] sm:$0xff]   ;;  %v1081_v19 = vld [vmem:[%s1291_s26 + $0x68] sm:$0xff]  }
  0x13   : > { %978 = vmatprep.subr.bf16.mxu0 %v1064_v2  ;;  %1024 = vmatprep.subr.bf16.mxu1 %v1064_v2  ;;  %v1082_v20 = vld [vmem:[%s1291_s26 + $0x30] sm:$0xff]   ;;  %v1084_v22 = vld [vmem:[%s1291_s26 + $0x38] sm:$0xff]   ;;  %v1327_v24 = vld [vmem:[%s1410_s2] ss:$0 sm:$0xff] }
  0x14   : > { %v1083_v21 = vld [vmem:[%s1291_s26 + $0x70] sm:$0xff]   ;;  %v1085_v23 = vld [vmem:[%s1291_s26 + $0x78] sm:$0xff]  }
  0x16   : > { %979 = vmatpush3.bf16.msra.mxu0 %v1064_v2  ;;  %1032 = vmatpush3.bf16.msra.mxu1 %v1064_v2 }
  0x17   : > { %980 = vmatprep.subr.bf16.mxu0 %v1065_v3  ;;  %1025 = vmatprep.subr.bf16.mxu1 %v1065_v3 }
  0x1a   : > { %981 = vmatpush3.bf16.msra.mxu0 %v1065_v3  ;;  %1033 = vmatpush3.bf16.msra.mxu1 %v1065_v3 }
  0x1b   : > { %982 = vmatprep.subr.bf16.mxu0 %v1066_v6  ;;  %1026 = vmatprep.subr.bf16.mxu1 %v1066_v6 }
  0x1e   : > { %983 = vmatpush3.bf16.msra.mxu0 %v1066_v6  ;;  %1034 = vmatpush3.bf16.msra.mxu1 %v1066_v6 }
  0x1f   : > { %984 = vmatprep.subr.bf16.mxu0 %v1067_v7  ;;  %1027 = vmatprep.subr.bf16.mxu1 %v1067_v7 }
  0x22   : > { %985 = vmatpush3.bf16.msra.mxu0 %v1067_v7  ;;  %1035 = vmatpush3.bf16.msra.mxu1 %v1067_v7 }
  0x23   : > { %986 = vmatprep.subr.bf16.mxu0 %v1068_v8  ;;  %1028 = vmatprep.subr.bf16.mxu1 %v1068_v8 }
  0x26   : > { %987 = vmatpush3.bf16.msra.mxu0 %v1068_v8  ;;  %1036 = vmatpush3.bf16.msra.mxu1 %v1068_v8 }
  0x27   : > { %988 = vmatprep.subr.bf16.mxu0 %v1069_v9  ;;  %1029 = vmatprep.subr.bf16.mxu1 %v1069_v9 }
  0x2a   : > { %989 = vmatpush3.bf16.msra.mxu0 %v1069_v9  ;;  %1037 = vmatpush3.bf16.msra.mxu1 %v1069_v9 }
  0x2d   : > { %991 = vmatmul.mubr.bf16.vlgmr.msra.gmra.mxu0 %v1072_v10  ;;  %1007 = vmatmul.mubr.bf16.vlgmr.msra.gmra.mxu1 %v1073_v11 }
  0x2e   : > { %994 = vmatprep.mubr.bf16.mxu0 %v1074_v12  ;;  %1010 = vmatprep.mubr.bf16.mxu1 %v1075_v13 }
  0x35   : > { %995 = vmatmul.mubr.bf16.gmra.mxu0 %v1076_v14  ;;  %1011 = vmatmul.mubr.bf16.gmra.mxu1 %v1077_v15 }
  0x36   : > { %998 = vmatprep.mubr.bf16.mxu0 %v1078_v16  ;;  %1014 = vmatprep.mubr.bf16.mxu1 %v1079_v17 }
  0x3d   : > { %999 = vmatmul.mubr.bf16.gmra.mxu0 %v1080_v18  ;;  %1015 = vmatmul.mubr.bf16.gmra.mxu1 %v1081_v19 }
  0x3e   : > { %1002 = vmatprep.mubr.bf16.mxu0 %v1082_v20  ;;  %1018 = vmatprep.mubr.bf16.mxu1 %v1083_v21 }
  0x45   : > { %1003 = vmatmul.mubr.bf16.gmra.mxu0 %v1084_v22  ;;  %1019 = vmatmul.mubr.bf16.gmra.mxu1 %v1085_v23 }
  0xed   : > { %v992_v25 = vpop.f32.mrf.mxu0  ;;  %v1008_v26 = vpop.f32.mrf.mxu1 }
  0xee   : > { %v468_v27 = vadd.f32 %v992_v25, %v1327_v24  ;;  %v532_v28 = vadd.f32 %v1008_v26, %v1327_v24 }
  0xef   : > { %v459_v29 = vpop.f32.mrf.mxu0  ;;  %v523_v30 = vpop.f32.mrf.mxu1 }
  0xf0   : > { %v588_v31 = vsub.f32 0.0, %v468_v27  ;;  %v604_v32 = vsub.f32 0.0, %v532_v28  ;;  %v460_v33 = vadd.f32 %v1327_v24, %v459_v29  ;;  %v524_v34 = vadd.f32 %v1327_v24, %v523_v30 }
  0xf1   : > { %v993_v35 = vpop.f32.mrf.mxu0  ;;  %v1009_v36 = vpop.f32.mrf.mxu1 }
  0xf2   : > { %v622_v37 = vmul.f32 1.442695, %v588_v31  ;;  %v654_v38 = vmul.f32 1.442695, %v604_v32  ;;  %v586_v39 = vsub.f32 0.0, %v460_v33  ;;  %v602_v40 = vsub.f32 0.0, %v524_v34 }
  0xf3   : > { %v471_v41 = vadd.f32 %v993_v35, %v1327_v24  ;;  %v535_v42 = vadd.f32 %v1009_v36, %v1327_v24  ;;  %v462_v43 = vpop.f32.mrf.mxu0  ;;  %v526_v44 = vpop.f32.mrf.mxu1 }
  0xf4   : > { %1086 = vpow2.f32 %v622_v37  ;;  %v618_v45 = vmul.f32 1.442695, %v586_v39  ;;  %v650_v46 = vmul.f32 1.442695, %v602_v40  ;;  %v463_v47 = vadd.f32 %v1327_v24, %v462_v43 }
  0xf5   : > { %1088 = vpow2.f32 %v654_v38  ;;  %v589_v48 = vsub.f32 0.0, %v471_v41  ;;  %v605_v49 = vsub.f32 0.0, %v535_v42  ;;  %v527_v50 = vadd.f32 %v1327_v24, %v526_v44  ;;  %v996_v51 = vpop.f32.mrf.mxu0  ;;  %v1012_v52 = vpop.f32.mrf.mxu1 }
  0xf6   : > { %1090 = vpow2.f32 %v618_v45  ;;  %v587_v53 = vsub.f32 0.0, %v463_v47  ;;  %v484_v54 = vadd.f32 %v996_v51, %v1327_v24  ;;  %v548_v55 = vadd.f32 %v1012_v52, %v1327_v24 }
  0xf7   : > { %1092 = vpow2.f32 %v650_v46  ;;  %v624_v56 = vmul.f32 1.442695, %v589_v48  ;;  %v656_v57 = vmul.f32 1.442695, %v605_v49  ;;  %v603_v58 = vsub.f32 0.0, %v527_v50  ;;  %v475_v59 = vpop.f32.mrf.mxu0  ;;  %v539_v60 = vpop.f32.mrf.mxu1 }
  0xf8   : > { %v620_v61 = vmul.f32 1.442695, %v587_v53  ;;  %v592_v62 = vsub.f32 0.0, %v484_v54  ;;  %v608_v63 = vsub.f32 0.0, %v548_v55  ;;  %v476_v0 = vadd.f32 %v1327_v24, %v475_v59 }
  0xf9   : > { %1094 = vpow2.f32 %v624_v56  ;;  %v652_v1 = vmul.f32 1.442695, %v603_v58  ;;  %v540_v2 = vadd.f32 %v1327_v24, %v539_v60  ;;  %v997_v3 = vpop.f32.mrf.mxu0  ;;  %v1013_v4 = vpop.f32.mrf.mxu1 }
  0xfa   : > { %1096 = vpow2.f32 %v656_v57  ;;  %v630_v5 = vmul.f32 1.442695, %v592_v62  ;;  %v662_v6 = vmul.f32 1.442695, %v608_v63  ;;  %v590_v7 = vsub.f32 0.0, %v476_v0 }
  0xfb   : > { %1098 = vpow2.f32 %v620_v61  ;;  %v606_v8 = vsub.f32 0.0, %v540_v2  ;;  %v487_v9 = vadd.f32 %v997_v3, %v1327_v24  ;;  %v551_v10 = vadd.f32 %v1013_v4, %v1327_v24  ;;  %v478_v11 = vpop.f32.mrf.mxu0  ;;  %v542_v12 = vpop.f32.mrf.mxu1 }
  0xfc   : > { %1100 = vpow2.f32 %v652_v1  ;;  %v626_v13 = vmul.f32 1.442695, %v590_v7  ;;  %v479_v14 = vadd.f32 %v1327_v24, %v478_v11  ;;  %v543_v15 = vadd.f32 %v1327_v24, %v542_v12 }
  0xfd   : > { %1102 = vpow2.f32 %v630_v5  ;;  %v658_v16 = vmul.f32 1.442695, %v606_v8  ;;  %v593_v17 = vsub.f32 0.0, %v487_v9  ;;  %v609_v18 = vsub.f32 0.0, %v551_v10  ;;  %v1000_v19 = vpop.f32.mrf.mxu0  ;;  %v1016_v20 = vpop.f32.mrf.mxu1 }
  0xfe   : > { %1104 = vpow2.f32 %v662_v6  ;;  %v591_v21 = vsub.f32 0.0, %v479_v14  ;;  %v607_v28 = vsub.f32 0.0, %v543_v15  ;;  %v500_v41 = vadd.f32 %v1000_v19, %v1327_v24 }
  0xff   : > { %1106 = vpow2.f32 %v626_v13  ;;  %v632_v22 = vmul.f32 1.442695, %v593_v17  ;;  %v664_v23 = vmul.f32 1.442695, %v609_v18  ;;  %v491_v25 = vpop.f32.mrf.mxu0  ;;  %v555_v26 = vpop.f32.mrf.mxu1  ;;  %v564_v43 = vadd.f32 %v1016_v20, %v1327_v24 }
 0x100   : > { %1108 = vpow2.f32 %v658_v16  ;;  %v628_v27 = vmul.f32 1.442695, %v591_v21  ;;  %v660_v38 = vmul.f32 1.442695, %v607_v28  ;;  %v596_v52 = vsub.f32 0.0, %v500_v41 }
 0x101   : > { %v1087_v29 = vpop.eup %1086  ;;  %1110 = vpow2.f32 %v632_v22  ;;  %v1001_v30 = vpop.f32.mrf.mxu0  ;;  %v612_v55 = vsub.f32 0.0, %v564_v43  ;;  %v492_v56 = vadd.f32 %v1327_v24, %v491_v25  ;;  %v556_v59 = vadd.f32 %v1327_v24, %v555_v26 }
 0x102   : > { %v1089_v31 = vpop.eup %1088  ;;  %v684_v32 = vadd.f32 1.0, %v1087_v29  ;;  %1112 = vpow2.f32 %v664_v23  ;;  %v1017_v35 = vpop.f32.mrf.mxu1  ;;  %v503_v63 = vadd.f32 %v1001_v30, %v1327_v24  ;;  %v638_v3 = vmul.f32 1.442695, %v596_v52 }
 0x103   : > { %v1091_v33 = vpop.eup %1090  ;;  %v700_v34 = vadd.f32 1.0, %v1089_v31  ;;  %1114 = vpow2.f32 %v628_v27  ;;  %v494_v39 = vpop.f32.mrf.mxu0  ;;  %v567_v4 = vadd.f32 %v1017_v35, %v1327_v24  ;;  %v670_v7 = vmul.f32 1.442695, %v612_v55 }
 0x104   : > { %v1093_v36 = vpop.eup %1092  ;;  %1116 = vrcp.f32 %v684_v32  ;;  %v682_v37 = vadd.f32 1.0, %v1091_v33  ;;  %v558_v46 = vpop.f32.mrf.mxu1  ;;  %v594_v8 = vsub.f32 0.0, %v492_v56  ;;  %v610_v11 = vsub.f32 0.0, %v556_v59 }
 0x105   : > { %1118 = vrcp.f32 %v700_v34  ;;  %v698_v40 = vadd.f32 1.0, %v1093_v36  ;;  %v1004_v49 = vpop.f32.mrf.mxu0  ;;  %v495_v12 = vadd.f32 %v1327_v24, %v494_v39  ;;  %v597_v16 = vsub.f32 0.0, %v503_v63 }
 0x106   : > { %v1095_v42 = vpop.eup %1094  ;;  %1120 = vrcp.f32 %v682_v37  ;;  %v1020_v60 = vpop.f32.mrf.mxu1  ;;  %v559_v17 = vadd.f32 %v1327_v24, %v558_v46  ;;  %v613_v21 = vsub.f32 0.0, %v567_v4  ;;  %v516_v22 = vadd.f32 %v1004_v49, %v1327_v24 }
 0x107   : > { %v1097_v44 = vpop.eup %1096  ;;  %1122 = vrcp.f32 %v698_v40  ;;  %v685_v45 = vadd.f32 1.0, %v1095_v42  ;;  %v507_v0 = vpop.f32.mrf.mxu0  ;;  %v634_v25 = vmul.f32 1.442695, %v594_v8  ;;  %v580_v26 = vadd.f32 %v1020_v60, %v1327_v24 }
 0x108   : > { %v1099_v47 = vpop.eup %1098  ;;  %v701_v48 = vadd.f32 1.0, %v1097_v44  ;;  %1124 = vpow2.f32 %v660_v38  ;;  %v571_v13 = vpop.f32.mrf.mxu1  ;;  %v666_v28 = vmul.f32 1.442695, %v610_v11  ;;  %v595_v29 = vsub.f32 0.0, %v495_v12 }
 0x109   : > { %v1101_v50 = vpop.eup %1100  ;;  %1126 = vrcp.f32 %v685_v45  ;;  %v683_v51 = vadd.f32 1.0, %v1099_v47  ;;  %v1005_v18 = vpop.f32.mrf.mxu0  ;;  %v508_v30 = vadd.f32 %v1327_v24, %v507_v0  ;;  %v640_v33 = vmul.f32 1.442695, %v597_v16 }
 0x10a   : > { %v1103_v53 = vpop.eup %1102  ;;  %1128 = vrcp.f32 %v701_v48  ;;  %v699_v54 = vadd.f32 1.0, %v1101_v50  ;;  %v1021_v31 = vpop.f32.mrf.mxu1  ;;  %v611_v34 = vsub.f32 0.0, %v559_v17  ;;  %v572_v35 = vadd.f32 %v1327_v24, %v571_v13 }
 0x10b   : > { %v1105_v57 = vpop.eup %1104  ;;  %1130 = vrcp.f32 %v683_v51  ;;  %v688_v58 = vadd.f32 1.0, %v1103_v53  ;;  %v510_v36 = vpop.f32.mrf.mxu0  ;;  %v672_v38 = vmul.f32 1.442695, %v613_v21  ;;  %v600_v39 = vsub.f32 0.0, %v516_v22 }
 0x10c   : > { %v1107_v61 = vpop.eup %1106  ;;  %1132 = vrcp.f32 %v699_v54  ;;  %v704_v62 = vadd.f32 1.0, %v1105_v57  ;;  %v519_v40 = vadd.f32 %v1005_v18, %v1327_v24  ;;  %v616_v43 = vsub.f32 0.0, %v580_v26  ;;  %v574_v55 = vpop.f32.mrf.mxu1 }
 0x10d   : > { %v1109_v1 = vpop.eup %1108  ;;  %1134 = vrcp.f32 %v688_v58  ;;  %v686_v2 = vadd.f32 1.0, %v1107_v61  ;;  %v583_v44 = vadd.f32 %v1021_v31, %v1327_v24  ;;  %v636_v46 = vmul.f32 1.442695, %v595_v29 }
 0x10e   : > { %v1111_v5 = vpop.eup %1110  ;;  %1136 = vrcp.f32 %v704_v62  ;;  %v702_v6 = vadd.f32 1.0, %v1109_v1  ;;  %v598_v47 = vsub.f32 0.0, %v508_v30  ;;  %v511_v48 = vadd.f32 %v1327_v24, %v510_v36 }
 0x10f   : > { %v1113_v9 = vpop.eup %1112  ;;  %1138 = vrcp.f32 %v686_v2  ;;  %v689_v10 = vadd.f32 1.0, %v1111_v5  ;;  %v668_v50 = vmul.f32 1.442695, %v611_v34  ;;  %v614_v51 = vsub.f32 0.0, %v572_v35 }
 0x110   : > { %v1115_v14 = vpop.eup %1114  ;;  %1140 = vrcp.f32 %v702_v6  ;;  %v705_v15 = vadd.f32 1.0, %v1113_v9  ;;  %v646_v53 = vmul.f32 1.442695, %v600_v39  ;;  %v601_v54 = vsub.f32 0.0, %v519_v40 }
 0x111   : > { %v1117_v19 = vpop.eup %1116  ;;  %1142 = vrcp.f32 %v689_v10  ;;  %v687_v20 = vadd.f32 1.0, %v1115_v14  ;;  %v678_v57 = vmul.f32 1.442695, %v616_v43  ;;  %v617_v58 = vsub.f32 0.0, %v583_v44 }
 0x112   : > { %v1119_v23 = vpop.eup %1118  ;;  %780 = vst [vmem:[%s1355_s18 + $0x10] sm:$0xff] %v1117_v19  ;;  %1144 = vrcp.f32 %v705_v15  ;;  %v642_v60 = vmul.f32 1.442695, %v598_v47  ;;  %v599_v61 = vsub.f32 0.0, %v511_v48  ;;  %v674_v63 = vmul.f32 1.442695, %v614_v51 }
 0x113   : > { %v1121_v27 = vpop.eup %1120  ;;  %796 = vst [vmem:[%s1355_s18 + $0x90] sm:$0xff] %v1119_v23  ;;  %1146 = vrcp.f32 %v687_v20  ;;  %v575_v0 = vadd.f32 %v1327_v24, %v574_v55  ;;  %v648_v2 = vmul.f32 1.442695, %v601_v54  ;;  %v680_v4 = vmul.f32 1.442695, %v617_v58 }
 0x114   : > { %v1123_v32 = vpop.eup %1122  ;;  %778 = vst [vmem:[%s1355_s18] sm:$0xff] %v1121_v27  ;;  %1148 = vpow2.f32 %v638_v3  ;;  %v644_v6 = vmul.f32 1.442695, %v599_v61 }
 0x115   : > { %v1125_v37 = vpop.eup %1124  ;;  %794 = vst [vmem:[%s1355_s18 + $0x80] sm:$0xff] %v1123_v32  ;;  %1150 = vpow2.f32 %v670_v7  ;;  %v615_v8 = vsub.f32 0.0, %v575_v0 }
 0x116   : > { %v1127_v41 = vpop.eup %1126  ;;  %v703_v42 = vadd.f32 1.0, %v1125_v37  ;;  %1152 = vpow2.f32 %v634_v25 }
 0x117   : > { %v1129_v45 = vpop.eup %1128  ;;  %781 = vst [vmem:[%s1355_s18 + $0x18] sm:$0xff] %v1127_v41  ;;  %1154 = vpow2.f32 %v666_v28  ;;  %v676_v15 = vmul.f32 1.442695, %v615_v8 }
 0x118   : > { %v1131_v49 = vpop.eup %1130  ;;  %797 = vst [vmem:[%s1355_s18 + $0x98] sm:$0xff] %v1129_v45  ;;  %1156 = vrcp.f32 %v703_v42 }
 0x119   : > { %v1133_v52 = vpop.eup %1132  ;;  %779 = vst [vmem:[%s1355_s18 + $0x8] sm:$0xff] %v1131_v49  ;;  %1158 = vpow2.f32 %v640_v33 }
 0x11a   : > { %v1135_v56 = vpop.eup %1134  ;;  %795 = vst [vmem:[%s1355_s18 + $0x88] sm:$0xff] %v1133_v52  ;;  %1160 = vpow2.f32 %v672_v38 }
 0x11b   : > { %v1137_v59 = vpop.eup %1136  ;;  %784 = vst [vmem:[%s1355_s18 + $0x30] sm:$0xff] %v1135_v56  ;;  %1162 = vpow2.f32 %v636_v46 }
 0x11c   : > { %v1139_v62 = vpop.eup %1138  ;;  %800 = vst [vmem:[%s1355_s18 + $0xb0] sm:$0xff] %v1137_v59  ;;  %1164 = vpow2.f32 %v668_v50 }
 0x11d   : > { %v1141_v1 = vpop.eup %1140  ;;  %782 = vst [vmem:[%s1355_s18 + $0x20] sm:$0xff] %v1139_v62  ;;  %1166 = vpow2.f32 %v646_v53 }
 0x11e   : > { %v1143_v3 = vpop.eup %1142  ;;  %798 = vst [vmem:[%s1355_s18 + $0xa0] sm:$0xff] %v1141_v1  ;;  %1168 = vpow2.f32 %v678_v57 }
 0x11f   : > { %v1145_v5 = vpop.eup %1144  ;;  %785 = vst [vmem:[%s1355_s18 + $0x38] sm:$0xff] %v1143_v3  ;;  %1170 = vpow2.f32 %v642_v60 }
 0x120   : > { %v1147_v7 = vpop.eup %1146  ;;  %801 = vst [vmem:[%s1355_s18 + $0xb8] sm:$0xff] %v1145_v5  ;;  %1172 = vpow2.f32 %v674_v63 }
 0x121   : > { %v1149_v9 = vpop.eup %1148  ;;  %783 = vst [vmem:[%s1355_s18 + $0x28] sm:$0xff] %v1147_v7  ;;  %1174 = vpow2.f32 %v648_v2 }
 0x122   : > { %v1151_v24 = vpop.eup %1150  ;;  %v692_v10 = vadd.f32 1.0, %v1149_v9  ;;  %1176 = vpow2.f32 %v680_v4 }
 0x123   : > { %v1153_v11 = vpop.eup %1152  ;;  %v708_v12 = vadd.f32 1.0, %v1151_v24  ;;  %1178 = vpow2.f32 %v644_v6 }
 0x124   : > { %v1155_v13 = vpop.eup %1154  ;;  %1180 = vrcp.f32 %v692_v10  ;;  %v690_v14 = vadd.f32 1.0, %v1153_v11 }
 0x125   : > { %v1157_v16 = vpop.eup %1156  ;;  %1182 = vrcp.f32 %v708_v12  ;;  %v706_v17 = vadd.f32 1.0, %v1155_v13 }
 0x126   : > { %v1159_v18 = vpop.eup %1158  ;;  %799 = vst [vmem:[%s1355_s18 + $0xa8] sm:$0xff] %v1157_v16  ;;  %1184 = vrcp.f32 %v690_v14 }
 0x127   : > { %v1161_v19 = vpop.eup %1160  ;;  %1186 = vrcp.f32 %v706_v17  ;;  %v693_v20 = vadd.f32 1.0, %v1159_v18 }
 0x128   : > { %v1163_v21 = vpop.eup %1162  ;;  %v709_v22 = vadd.f32 1.0, %v1161_v19  ;;  %1188 = vpow2.f32 %v676_v15 }
 0x129   : > { %v1165_v23 = vpop.eup %1164  ;;  %1190 = vrcp.f32 %v693_v20  ;;  %v691_v25 = vadd.f32 1.0, %v1163_v21 }
 0x12a   : > { %v1167_v26 = vpop.eup %1166  ;;  %1192 = vrcp.f32 %v709_v22  ;;  %v707_v27 = vadd.f32 1.0, %v1165_v23 }
 0x12b   : > { %v1169_v28 = vpop.eup %1168  ;;  %1194 = vrcp.f32 %v691_v25  ;;  %v696_v29 = vadd.f32 1.0, %v1167_v26 }
 0x12c   : > { %v1171_v30 = vpop.eup %1170  ;;  %1196 = vrcp.f32 %v707_v27  ;;  %v712_v31 = vadd.f32 1.0, %v1169_v28 }
 0x12d   : > { %v1173_v32 = vpop.eup %1172  ;;  %1198 = vrcp.f32 %v696_v29  ;;  %v694_v33 = vadd.f32 1.0, %v1171_v30 }
 0x12e   : > { %v1175_v34 = vpop.eup %1174  ;;  %1200 = vrcp.f32 %v712_v31  ;;  %v710_v35 = vadd.f32 1.0, %v1173_v32 }
 0x12f   : > { %v1177_v36 = vpop.eup %1176  ;;  %1202 = vrcp.f32 %v694_v33  ;;  %v697_v37 = vadd.f32 1.0, %v1175_v34 }
 0x130   : > { %v1179_v38 = vpop.eup %1178  ;;  %1204 = vrcp.f32 %v710_v35  ;;  %v713_v39 = vadd.f32 1.0, %v1177_v36 }
 0x131   : > { %v1181_v40 = vpop.eup %1180  ;;  %1206 = vrcp.f32 %v697_v37  ;;  %v695_v41 = vadd.f32 1.0, %v1179_v38 }
 0x132   : > { %v1183_v42 = vpop.eup %1182  ;;  %788 = vst [vmem:[%s1355_s18 + $0x50] sm:$0xff] %v1181_v40  ;;  %1208 = vrcp.f32 %v713_v39 }
 0x133   : > { %v1185_v43 = vpop.eup %1184  ;;  %804 = vst [vmem:[%s1355_s18 + $0xd0] sm:$0xff] %v1183_v42  ;;  %1210 = vrcp.f32 %v695_v41 }
 0x134   : > { %v1187_v44 = vpop.eup %1186  ;;  %786 = vst [vmem:[%s1355_s18 + $0x40] sm:$0xff] %v1185_v43 }
 0x135   : > { %v1189_v45 = vpop.eup %1188  ;;  %802 = vst [vmem:[%s1355_s18 + $0xc0] sm:$0xff] %v1187_v44 }
 0x136   : > { %v1191_v46 = vpop.eup %1190  ;;  %v711_v47 = vadd.f32 1.0, %v1189_v45 }
 0x137   : > { %v1193_v48 = vpop.eup %1192  ;;  %789 = vst [vmem:[%s1355_s18 + $0x58] sm:$0xff] %v1191_v46 }
 0x138   : > { %v1195_v49 = vpop.eup %1194  ;;  %805 = vst [vmem:[%s1355_s18 + $0xd8] sm:$0xff] %v1193_v48  ;;  %1212 = vrcp.f32 %v711_v47 }
 0x139   : > { %v1197_v50 = vpop.eup %1196  ;;  %787 = vst [vmem:[%s1355_s18 + $0x48] sm:$0xff] %v1195_v49 }
 0x13a   : > { %v1199_v51 = vpop.eup %1198  ;;  %803 = vst [vmem:[%s1355_s18 + $0xc8] sm:$0xff] %v1197_v50 }
 0x13b   : > { %v1201_v52 = vpop.eup %1200  ;;  %792 = vst [vmem:[%s1355_s18 + $0x70] sm:$0xff] %v1199_v51 }
 0x13c   : > { %v1203_v53 = vpop.eup %1202  ;;  %808 = vst [vmem:[%s1355_s18 + $0xf0] sm:$0xff] %v1201_v52 }
 0x13d   : > { %v1205_v54 = vpop.eup %1204  ;;  %790 = vst [vmem:[%s1355_s18 + $0x60] sm:$0xff] %v1203_v53 }
 0x13e   : > { %v1207_v55 = vpop.eup %1206  ;;  %806 = vst [vmem:[%s1355_s18 + $0xe0] sm:$0xff] %v1205_v54 }
 0x13f   : > { %v1209_v56 = vpop.eup %1208  ;;  %793 = vst [vmem:[%s1355_s18 + $0x78] sm:$0xff] %v1207_v55 }
 0x140   : > { %v1211_v57 = vpop.eup %1210  ;;  %809 = vst [vmem:[%s1355_s18 + $0xf8] sm:$0xff] %v1209_v56 }
 0x141   : > { %791 = vst [vmem:[%s1355_s18 + $0x68] sm:$0xff] %v1211_v57 }
 0x145   : > { %v1213_v58 = vpop.eup %1212 }
 0x146   : > { %807 = vst [vmem:[%s1355_s18 + $0xe8] sm:$0xff] %v1213_v58 }
 0x147 PF: > { %s13_s14 = sadd.s32 1, %s1236_s14   ;;  %s1412_s12 = smov %s1232_s13 }
 0x148   : > { %p10_p5 = scmp.ge.s32.totalorder %s13_s14, 4   ;;  %s1413_s13 = smov %s1415_s15 }
 0x14a   :  { %12 = sbr.rel (!%p10_p5) target bundleno = 2 (0x2), region = 68 }

</bundles_post_ra>
